<compile_context>
chip_gen: v7x
topology: tpu7x:2x2x1
jax: 0.10.0
libtpu: 0.0.40
codegen_flags: <defaults>
</compile_context>

<pallas_src>
import numpy as np
import jax
import jax.numpy as jnp
from jax.experimental import pallas as pl
from jax.experimental.pallas import tpu as pltpu


# -----------------------------------------------------------------------------
# Hardware / tiling helpers
# -----------------------------------------------------------------------------
def _vmem_capacity_bytes():
    """Per-core VMEM capacity; conservative 64 MiB (v7x) fallback."""
    try:
        cap = int(pltpu.get_tpu_info().vmem_capacity_bytes)
        if cap > 0:
            return cap
    except Exception:
        pass
    return 64 * 1024 * 1024


def _supports_bf16_vpu():
    """bf16 VPU/EUP exists on v6e / v7x only (not on v5e and older)."""
    try:
        kind = jax.devices()[0].device_kind.lower()
    except Exception:
        return False
    return ("v6" in kind) or ("v7" in kind)


def _default_nonlin_dtype(compute_dtype):
    if np.dtype(compute_dtype) == np.dtype(jnp.bfloat16) and _supports_bf16_vpu():
        return jnp.bfloat16
    return jnp.float32


def _round_up(n, m):
    return ((n + m - 1) // m) * m


def _batch_tile(Bp, cap=128):
    """Bp is a multiple of 8.  Return a multiple-of-8 divisor of Bp, <= cap,
    and <= Bp//2 whenever Bp >= 16 so both of v7x's TensorCores get a tile."""
    assert Bp % 8 == 0, "batch must be padded to a multiple of 8 before tiling"
    target = Bp if Bp < 16 else Bp // 2
    target = max(8, min(cap, (target // 8) * 8))
    bt = target
    while Bp % bt:
        bt -= 8
    return bt


def _choose_time_chunk(T, Bt, D, H, O, x_bytes, y_bytes, w_bytes, vmem_cap,
                       tc_cap=32):
    """Largest divisor of T such that the kernel's VMEM residency fits in ~45%
    of per-core VMEM.  Raises (explicitly) if even the resident weights don't
    fit -- no silent full-dim fallback."""
    budget = int(vmem_cap * 0.45)
    const = (D * 4 * H * w_bytes             # W_ih^T (single-buffered)
             + H * 4 * H * w_bytes           # W_hh^T (single-buffered)
             + 4 * H * 4                     # fused bias (fp32)
             + 2 * 2 * Bt * H * 4            # h0/c0 inputs (double-buffered)
             + 2 * 2 * Bt * H * 4            # hT/cT outputs (double-buffered)
             + 2 * Bt * H * 4)               # fp32 h/c carries
    if O:
        const += H * O * w_bytes + O * 4 + 2 * Bt * O * 4
    per_t = (2 * Bt * D * x_bytes            # x chunk (double-buffered)
             + 2 * Bt * H * y_bytes          # y chunk (double-buffered)
             + Bt * 4 * H * 4)               # gx scratch (fp32, single)
    avail = budget - const
    if avail <= 0:
        raise ValueError(
            f"LSTM layer weights ({const} B resident) exceed the VMEM budget "
            f"({budget} B of {vmem_cap} B); reduce hidden size or batch tile.")
    tc = int(min(max(avail // per_t, 1), T, tc_cap))
    while T % tc:
        tc -= 1
    return tc


# -----------------------------------------------------------------------------
# Fused LSTM-layer kernel (input projection + recurrence + optional head)
# -----------------------------------------------------------------------------
def _make_fused_lstm_kernel(with_head, nonlin_dtype):
    """Kernel over one (batch-tile, time-chunk) grid cell.

    Inputs (per block):
      x_ref    (Tc, Bt, D)   input chunk (bf16/f32)
      h0_ref   (Bt, H)       initial hidden (fp32)
      c0_ref   (Bt, H)       initial cell   (fp32)
      w_ih_ref (D, 4H)       input->gate weights, pre-transposed, resident
      w_hh_ref (H, 4H)       hidden->gate weights, pre-transposed, resident
      b_ref    (1, 4H)       b_ih + b_hh (fp32)
      [w_out_ref (H, O), b_out_ref (1, O)]   fused Linear head (top layer only)
    Outputs:
      y_ref (Tc, Bt, H); hT_ref / cT_ref (Bt, H) (last chunk only);
      [out_ref (Bt, O)] (last chunk only)
    Scratch:
      gx_sc (Tc*Bt, 4H) fp32   per-chunk x@W_ih^T + b, NEVER written to HBM
      h_sc / c_sc (Bt, H) fp32 state carries across time chunks
    """
    def kernel(*refs):
        if with_head:
            (x_ref, h0_ref, c0_ref, w_ih_ref, w_hh_ref, b_ref,
             w_out_ref, b_out_ref,
             y_ref, hT_ref, cT_ref, out_ref,
             gx_sc, h_sc, c_sc) = refs
        else:
            (x_ref, h0_ref, c0_ref, w_ih_ref, w_hh_ref, b_ref,
             y_ref, hT_ref, cT_ref,
             gx_sc, h_sc, c_sc) = refs

        t_blk = pl.program_id(1)
        n_blk = pl.num_programs(1)
        Tc, Bt, D = x_ref.shape
        H = h_sc.shape[-1]

        @pl.when(t_blk == 0)
        def _():
            h_sc[...] = h0_ref[...].astype(jnp.float32)
            c_sc[...] = c0_ref[...].astype(jnp.float32)

        # Hoisted input projection, fused in-kernel: one big (Tc*Bt, D)x(D, 4H)
        # MXU matmul with fp32 accumulation; gx lives only in VMEM scratch.
        w_ih = w_ih_ref[...]
        x2d = x_ref[...].reshape(Tc * Bt, D)
        gx_sc[...] = (jnp.dot(x2d.astype(w_ih.dtype), w_ih,
                              preferred_element_type=jnp.float32)
                      + b_ref[...])

        w_hh = w_hh_ref[...]

        def step(t, carry):
            h, c = carry
            row = pl.multiple_of(t * Bt, Bt)
            gates = gx_sc[pl.ds(row, Bt), :] + jnp.dot(
                h.astype(w_hh.dtype), w_hh, preferred_element_type=jnp.float32)
            # bf16 transcendentals on v6e/v7x (single EUP on the critical path),
            # fp32 on v5e; h/c carries stay fp32.
            g_nl = gates.astype(nonlin_dtype)
            i = jax.nn.sigmoid(g_nl[:, 0 * H:1 * H]).astype(jnp.float32)
            f = jax.nn.sigmoid(g_nl[:, 1 * H:2 * H]).astype(jnp.float32)
            g = jnp.tanh(g_nl[:, 2 * H:3 * H]).astype(jnp.float32)
            o = jax.nn.sigmoid(g_nl[:, 3 * H:4 * H]).astype(jnp.float32)
            c_new = f * c + i * g
            h_new = o * jnp.tanh(c_new.astype(nonlin_dtype)).astype(jnp.float32)
            y_ref[t] = h_new.astype(y_ref.dtype)
            return (h_new, c_new)

        # Serially-dependent recurrence: partial unroll only (full unroll just
        # inflates live ranges / spill pressure; no extra cross-step overlap).
        h, c = jax.lax.fori_loop(0, Tc, step, (h_sc[...], c_sc[...]),
                                 unroll=min(Tc, 8))
        h_sc[...] = h
        c_sc[...] = c

        @pl.when(t_blk == n_blk - 1)
        def _():
            hT_ref[...] = h.astype(hT_ref.dtype)
            cT_ref[...] = c.astype(cT_ref.dtype)
            if with_head:
                w_out = w_out_ref[...]
                out_ref[...] = (jnp.dot(h.astype(w_out.dtype), w_out,
                                        preferred_element_type=jnp.float32)
                                + b_out_ref[...]).astype(out_ref.dtype)

    return kernel


def lstm_layer_pallas(x_tbd, h0, c0, w_ih_t, w_hh_t, b2d, *,
                      y_dtype, nonlin_dtype, head=None, use_buffered=True):
    """One LSTM layer (fused input projection + recurrence [+ Linear head]).

    x_tbd: (T, B, D) time-major input; h0/c0: (B, H) fp32; w_ih_t: (D, 4H);
    w_hh_t: (H, 4H); b2d: (1, 4H) fp32; head: optional (w_out_t (H,O), b (1,O)).
    Returns (y (T,B,H), hT (B,H), cT (B,H)[, out (B,O)]).
    """
    T, B, D = x_tbd.shape
    H = w_hh_t.shape[0]
    assert w_ih_t.shape == (D, 4 * H) and w_hh_t.shape == (H, 4 * H)
    assert B % 8 == 0, "pad batch to a multiple of 8 before calling"
    O = head[0].shape[1] if head is not None else 0

    vmem_cap = _vmem_capacity_bytes()
    Bt = _batch_tile(B)
    x_bytes = np.dtype(x_tbd.dtype).itemsize
    y_bytes = np.dtype(y_dtype).itemsize
    w_bytes = np.dtype(w_ih_t.dtype).itemsize
    Tc = _choose_time_chunk(T, Bt, D, H, O, x_bytes, y_bytes, w_bytes, vmem_cap)
    n_b, n_t = B // Bt, T // Tc

    def _spec(shape, index_map, constant=False):
        if constant and use_buffered:
            # Constant index_map -> single buffer (don't waste VMEM on a
            # pointless second buffer for resident weights/biases).
            return pl.BlockSpec(shape, index_map, pipeline_mode=pl.Buffered(1))
        return pl.BlockSpec(shape, index_map)

    in_specs = [
        _spec((Tc, Bt, D), lambda b, t: (t, b, 0)),                 # x chunk
        _spec((Bt, H), lambda b, t: (b, 0)),                        # h0
        _spec((Bt, H), lambda b, t: (b, 0)),                        # c0
        _spec((D, 4 * H), lambda b, t: (0, 0), constant=True),      # W_ih^T
        _spec((H, 4 * H), lambda b, t: (0, 0), constant=True),      # W_hh^T
        _spec((1, 4 * H), lambda b, t: (0, 0), constant=True),      # bias
    ]
    out_specs = [
        pl.BlockSpec((Tc, Bt, H), lambda b, t: (t, b, 0)),          # y chunk
        pl.BlockSpec((Bt, H), lambda b, t: (b, 0)),                 # h_T
        pl.BlockSpec((Bt, H), lambda b, t: (b, 0)),                 # c_T
    ]
    out_shape = [
        jax.ShapeDtypeStruct((T, B, H), y_dtype),
        jax.ShapeDtypeStruct((B, H), jnp.float32),
        jax.ShapeDtypeStruct((B, H), jnp.float32),
    ]
    args = [x_tbd, h0, c0, w_ih_t, w_hh_t, b2d]
    if head is not None:
        w_out_t, b_out2d = head
        in_specs += [
            _spec((H, O), lambda b, t: (0, 0), constant=True),      # W_out^T
            _spec((1, O), lambda b, t: (0, 0), constant=True),      # b_out
        ]
        out_specs.append(pl.BlockSpec((Bt, O), lambda b, t: (b, 0)))
        out_shape.append(jax.ShapeDtypeStruct((B, O), jnp.float32))
        args += [w_out_t, b_out2d]

    flops = 2 * T * B * D * 4 * H + 2 * T * B * H * 4 * H
    if O:
        flops += 2 * B * H * O
    bytes_accessed = (T * B * D * x_bytes + T * B * H * y_bytes
                      + (D + H) * 4 * H * w_bytes + 4 * H * 4
                      + 4 * B * H * 4)
    if O:
        bytes_accessed += H * O * w_bytes + O * 4 + B * O * 4
    cost = pl.CostEstimate(flops=flops,
                           transcendentals=5 * T * B * H,
                           bytes_accessed=bytes_accessed)

    grid_spec = pltpu.PrefetchScalarGridSpec(
        num_scalar_prefetch=0,
        grid=(n_b, n_t),                       # batch tiles parallel, time last
        in_specs=in_specs,
        out_specs=out_specs,
        scratch_shapes=[
            pltpu.VMEM((Tc * Bt, 4 * H), jnp.float32),   # gx chunk (VMEM only)
            pltpu.VMEM((Bt, H), jnp.float32),            # h carry (fp32)
            pltpu.VMEM((Bt, H), jnp.float32),            # c carry (fp32)
        ],
    )
    return pl.pallas_call(
        _make_fused_lstm_kernel(head is not None, nonlin_dtype),
        out_shape=tuple(out_shape),
        grid_spec=grid_spec,
        cost_estimate=cost,
        compiler_params=pltpu.CompilerParams(
            dimension_semantics=("parallel", "arbitrary"),
            vmem_limit_bytes=int(vmem_cap * 0.75)),
    )(*args)


# -----------------------------------------------------------------------------
# Parameter construction / packing (done once, outside the forward pass)
# -----------------------------------------------------------------------------
def init_stacked_lstm_params(key, input_size, hidden_size, num_layers):
    """PyTorch-style init: U(-1/sqrt(H), 1/sqrt(H)) for all LSTM params."""
    k = 1.0 / np.sqrt(hidden_size)
    params = []
    for layer in range(num_layers):
        in_sz = input_size if layer == 0 else hidden_size
        key, k1, k2, k3, k4 = jax.random.split(key, 5)
        w_ih = jax.random.uniform(k1, (4 * hidden_size, in_sz), jnp.float32, -k, k)
        w_hh = jax.random.uniform(k2, (4 * hidden_size, hidden_size), jnp.float32, -k, k)
        b_ih = jax.random.uniform(k3, (4 * hidden_size,), jnp.float32, -k, k)
        b_hh = jax.random.uniform(k4, (4 * hidden_size,), jnp.float32, -k, k)
        params.append((w_ih, w_hh, b_ih, b_hh))
    return key, params


def pack_lstm_params(params, compute_dtype=jnp.bfloat16):
    """Pre-transpose weights (bf16 by default) and pre-sum biases (fp32), once."""
    packed = []
    for (w_ih, w_hh, b_ih, b_hh) in params:
        packed.append((
            jnp.transpose(w_ih).astype(compute_dtype),   # (D_in, 4H)
            jnp.transpose(w_hh).astype(compute_dtype),   # (H, 4H)
            (b_ih + b_hh)[None, :].astype(jnp.float32),  # (1, 4H), fp32
        ))
    return packed


def pack_head_params(w_out, b_out, compute_dtype=jnp.bfloat16):
    return (jnp.transpose(w_out).astype(compute_dtype),  # (H, O)
            b_out[None, :].astype(jnp.float32))          # (1, O)


# -----------------------------------------------------------------------------
# Model assembly (plain-JAX glue, time-major internally)
# -----------------------------------------------------------------------------
def run_stacked_lstm_tm(x_tbd, packed_params, hidden=None, *, head=None,
                        nonlin_dtype=jnp.float32, use_buffered=True):
    """nn.LSTM(num_layers=len(packed_params)) over time-major input."""
    T, B, _ = x_tbd.shape
    L = len(packed_params)
    H = packed_params[0][1].shape[0]
    if hidden is None:
        h0 = jnp.zeros((L, B, H), jnp.float32)
        c0 = jnp.zeros((L, B, H), jnp.float32)
    else:
        h0, c0 = hidden

    h_finals, c_finals = [], []
    out = None
    y = x_tbd
    for l, (w_ih_t, w_hh_t, b2d) in enumerate(packed_params):
        layer_head = head if l == L - 1 else None
        res = lstm_layer_pallas(y, h0[l], c0[l], w_ih_t, w_hh_t, b2d,
                                y_dtype=w_hh_t.dtype,
                                nonlin_dtype=nonlin_dtype,
                                head=layer_head, use_buffered=use_buffered)
        if layer_head is None:
            y, hT, cT = res
        else:
            y, hT, cT, out = res
        h_finals.append(hT)
        c_finals.append(cT)
    return y, (jnp.stack(h_finals), jnp.stack(c_finals)), out


def lstm_feature_extractor(x, packed1, packed2, packed_head, hidden_states=None,
                           *, nonlin_dtype=jnp.float32, use_buffered=True):
    """Forward pass of LSTMFeatureExtractor.

    x: (B, T, input_size); returns (output (B, out_size), (hidden1, hidden2)).
    """
    B = x.shape[0]
    compute_dtype = packed1[0][0].dtype
    # Mandatory batch padding to the sublane tile (8 fp32 / 16 bf16): keeps the
    # (Bt, H) state blocks and per-gate lane slices unmasked on every gen.
    mult = 16 if np.dtype(compute_dtype) == np.dtype(jnp.bfloat16) else 8
    Bp = _round_up(B, mult)

    if hidden_states is None:
        hidden1 = hidden2 = None
    else:
        hidden1, hidden2 = hidden_states

    def _pad_hidden(hid):
        if hid is None or Bp == B:
            return hid
        h, c = hid
        pad = ((0, 0), (0, Bp - B), (0, 0))
        return (jnp.pad(h, pad), jnp.pad(c, pad))

    if Bp != B:
        x = jnp.pad(x, ((0, Bp - B), (0, 0), (0, 0)))
    hidden1 = _pad_hidden(hidden1)
    hidden2 = _pad_hidden(hidden2)

    x_tbd = jnp.transpose(x, (1, 0, 2)).astype(compute_dtype)   # time-major
    y1_tbd, hidden1, _ = run_stacked_lstm_tm(
        x_tbd, packed1, hidden1, nonlin_dtype=nonlin_dtype,
        use_buffered=use_buffered)
    # output_layer(lstm2_out[:, -1, :]) == Linear(h_T of lstm2's top layer),
    # fused into the last layer's kernel (no extra pallas_call / HBM round trip).
    _, hidden2, output = run_stacked_lstm_tm(
        y1_tbd, packed2, hidden2, head=packed_head,
        nonlin_dtype=nonlin_dtype, use_buffered=use_buffered)

    if Bp != B:
        output = output[:B]
        hidden1 = (hidden1[0][:, :B], hidden1[1][:, :B])
        hidden2 = (hidden2[0][:, :B], hidden2[1][:, :B])
    return output, (hidden1, hidden2)


# -----------------------------------------------------------------------------
# Pure-JAX reference (for correctness check)
# -----------------------------------------------------------------------------
def _lstm_layer_ref(x_tbd, h0, c0, w_ih, w_hh, b_ih, b_hh):
    w_ih_t, w_hh_t = w_ih.T, w_hh.T
    b = b_ih + b_hh

    def step(carry, xt):
        h, c = carry
        gates = xt @ w_ih_t + h @ w_hh_t + b
        i, f, g, o = jnp.split(gates, 4, axis=-1)
        i, f, o = jax.nn.sigmoid(i), jax.nn.sigmoid(f), jax.nn.sigmoid(o)
        g = jnp.tanh(g)
        c = f * c + i * g
        h = o * jnp.tanh(c)
        return (h, c), h

    (hT, cT), ys = jax.lax.scan(step, (h0, c0), x_tbd)
    return ys, hT, cT


def _model_ref(x, params1, params2, w_out, b_out):
    def stacked(x_btd, params):
        B = x_btd.shape[0]
        H = params[0][1].shape[-1]
        x_tbd = jnp.transpose(x_btd, (1, 0, 2))
        hs, cs = [], []
        for (w_ih, w_hh, b_ih, b_hh) in params:
            h0 = jnp.zeros((B, H), jnp.float32)
            c0 = jnp.zeros((B, H), jnp.float32)
            x_tbd, hT, cT = _lstm_layer_ref(x_tbd, h0, c0, w_ih, w_hh, b_ih, b_hh)
            hs.append(hT)
            cs.append(cT)
        return jnp.transpose(x_tbd, (1, 0, 2)), (jnp.stack(hs), jnp.stack(cs))

    y1, h1 = stacked(x, params1)
    y2, h2 = stacked(y1, params2)
    out = y2[:, -1, :] @ w_out.T + b_out
    return out, (h1, h2)


# -----------------------------------------------------------------------------
if __name__ == "__main__":
    # Small shapes consistent with the module (scaled down from 2048/512).
    B, T = 2, 8
    INPUT_SIZE, HIDDEN_SIZE, NUM_LAYERS, OUT_SIZE = 64, 32, 2, 64

    key = jax.random.PRNGKey(0)
    key, params1 = init_stacked_lstm_params(key, INPUT_SIZE, HIDDEN_SIZE, NUM_LAYERS)
    key, params2 = init_stacked_lstm_params(key, HIDDEN_SIZE, HIDDEN_SIZE, NUM_LAYERS)
    kl = 1.0 / np.sqrt(HIDDEN_SIZE)
    key, kw, kb, kx = jax.random.split(key, 4)
    w_out = jax.random.uniform(kw, (OUT_SIZE, HIDDEN_SIZE), jnp.float32, -kl, kl)
    b_out = jax.random.uniform(kb, (OUT_SIZE,), jnp.float32, -kl, kl)
    x = jax.random.normal(kx, (B, T, INPUT_SIZE), jnp.float32)

    # Pure-JAX reference (fp32).
    out_r, ((h1r, c1r), (h2r, c2r)) = _model_ref(x, params1, params2, w_out, b_out)

    # fp32 path: tight correctness check.  bf16 path (the production default:
    # bf16 weights/x/y, fp32 gate accumulation, fp32 carries): loose tolerance.
    for compute_dtype, tol in ((jnp.float32, 1e-4), (jnp.bfloat16, 2e-1)):
        packed1 = pack_lstm_params(params1, compute_dtype)
        packed2 = pack_lstm_params(params2, compute_dtype)
        packed_head = pack_head_params(w_out, b_out, compute_dtype)
        nonlin_dtype = _default_nonlin_dtype(compute_dtype)

        def _run(use_buffered, p1=packed1, p2=packed2, ph=packed_head,
                 nd=nonlin_dtype):
            fwd = jax.jit(lambda xx: lstm_feature_extractor(
                xx, p1, p2, ph, nonlin_dtype=nd, use_buffered=use_buffered))
            res = fwd(x)
            jax.block_until_ready(res)
            return res

        try:
            out, ((h1, c1), (h2, c2)) = _run(True)
        except Exception:
            # Fallback if pl.Buffered(1) single-buffering is unsupported in
            # this jax build; correctness is unaffected.
            out, ((h1, c1), (h2, c2)) = _run(False)

        np.testing.assert_allclose(np.asarray(out, np.float32), np.asarray(out_r),
                                   atol=tol, rtol=tol)
        np.testing.assert_allclose(np.asarray(h1), np.asarray(h1r), atol=tol, rtol=tol)
        np.testing.assert_allclose(np.asarray(c1), np.asarray(c1r), atol=tol, rtol=tol)
        np.testing.assert_allclose(np.asarray(h2), np.asarray(h2r), atol=tol, rtol=tol)
        np.testing.assert_allclose(np.asarray(c2), np.asarray(c2r), atol=tol, rtol=tol)

        assert out.shape == (B, OUT_SIZE)
        assert h1.shape == (NUM_LAYERS, B, HIDDEN_SIZE)
        assert c2.shape == (NUM_LAYERS, B, HIDDEN_SIZE)

    print("KERNEL_OK")
</pallas_src>

<mosaic_0001>
module attributes {stable_mosaic.version = 11 : i64} {
  func.func @kernel(%arg0: i32, %arg1: i32, %arg2: memref<8x8x64xf32, #tpu.memory_space<vmem>>, %arg3: memref<8x32xf32, #tpu.memory_space<vmem>>, %arg4: memref<8x32xf32, #tpu.memory_space<vmem>>, %arg5: memref<64x128xf32, #tpu.memory_space<vmem>>, %arg6: memref<32x128xf32, #tpu.memory_space<vmem>>, %arg7: memref<1x128xf32, #tpu.memory_space<vmem>>, %arg8: memref<8x8x32xf32, #tpu.memory_space<vmem>>, %arg9: memref<8x32xf32, #tpu.memory_space<vmem>>, %arg10: memref<8x32xf32, #tpu.memory_space<vmem>>, %arg11: memref<64x128xf32, #tpu.memory_space<vmem>>, %arg12: memref<8x32xf32, #tpu.memory_space<vmem>>, %arg13: memref<8x32xf32, #tpu.memory_space<vmem>>) attributes {dimension_semantics = [#tpu.dimension_semantics<parallel>, #tpu.dimension_semantics<arbitrary>], iteration_bounds = array<i64: 1, 1>, scalar_prefetch = 0 : i64, scratch_operands = 3 : i64, tpu.core_type = #tpu.core_type<tc>, window_params = [{transform_indices = @transform_0, window_bounds = array<i64: 8, 8, 64>}, {transform_indices = @transform_1, window_bounds = array<i64: 8, 32>}, {transform_indices = @transform_2, window_bounds = array<i64: 8, 32>}, {pipeline_mode = #tpu.pipeline_mode<synchronous>, transform_indices = @transform_3, window_bounds = array<i64: 64, 128>}, {pipeline_mode = #tpu.pipeline_mode<synchronous>, transform_indices = @transform_4, window_bounds = array<i64: 32, 128>}, {pipeline_mode = #tpu.pipeline_mode<synchronous>, transform_indices = @transform_5, window_bounds = array<i64: 1, 128>}, {transform_indices = @transform_6, window_bounds = array<i64: 8, 8, 32>}, {transform_indices = @transform_7, window_bounds = array<i64: 8, 32>}, {transform_indices = @transform_8, window_bounds = array<i64: 8, 32>}]} {
    %c0_i32 = arith.constant 0 : i32
    %0 = arith.cmpi eq, %arg1, %c0_i32 : i32
    %1 = arith.extui %0 : i1 to i32
    %c0_i32_0 = arith.constant 0 : i32
    %2 = arith.cmpi ne, %1, %c0_i32_0 : i32
    scf.if %2 {
      %c0_86 = arith.constant 0 : index
      %c0_87 = arith.constant 0 : index
      %299 = vector.load %arg3[%c0_86, %c0_87] : memref<8x32xf32, #tpu.memory_space<vmem>>, vector<8x32xf32>
      %c0_88 = arith.constant 0 : index
      %c0_89 = arith.constant 0 : index
      %300 = vector.load %arg12[%c0_88, %c0_89] : memref<8x32xf32, #tpu.memory_space<vmem>>, vector<8x32xf32>
      tpu.vector_store %arg12[%c0_88, %c0_89], %299 {strides = array<i32>} : memref<8x32xf32, #tpu.memory_space<vmem>>, vector<8x32xf32>,
      %c0_90 = arith.constant 0 : index
      %c0_91 = arith.constant 0 : index
      %301 = vector.load %arg4[%c0_90, %c0_91] : memref<8x32xf32, #tpu.memory_space<vmem>>, vector<8x32xf32>
      %c0_92 = arith.constant 0 : index
      %c0_93 = arith.constant 0 : index
      %302 = vector.load %arg13[%c0_92, %c0_93] : memref<8x32xf32, #tpu.memory_space<vmem>>, vector<8x32xf32>
      tpu.vector_store %arg13[%c0_92, %c0_93], %301 {strides = array<i32>} : memref<8x32xf32, #tpu.memory_space<vmem>>, vector<8x32xf32>,
    } else {
    }
    %c0 = arith.constant 0 : index
    %c0_1 = arith.constant 0 : index
    %3 = vector.load %arg5[%c0, %c0_1] : memref<64x128xf32, #tpu.memory_space<vmem>>, vector<64x128xf32>
    %c0_2 = arith.constant 0 : index
    %c0_3 = arith.constant 0 : index
    %c0_4 = arith.constant 0 : index
    %4 = vector.load %arg2[%c0_2, %c0_3, %c0_4] : memref<8x8x64xf32, #tpu.memory_space<vmem>>, vector<8x8x64xf32>
    %5 = vector.shape_cast %4 : vector<8x8x64xf32> to vector<64x64xf32>
    %cst = arith.constant dense<0.000000e+00> : vector<64x128xf32>
    %6 = tpu.matmul %5, %3, %cst {dimension_numbers = #tpu.dot_dimension_numbers<[1], [0], [0], [1], [0, 0, 1, 1], [], []>} : vector<64x64xf32>, vector<64x128xf32>, vector<64x128xf32> -> vector<64x128xf32>
    %c0_5 = arith.constant 0 : index
    %c0_6 = arith.constant 0 : index
    %7 = vector.load %arg7[%c0_5, %c0_6] : memref<1x128xf32, #tpu.memory_space<vmem>>, vector<1x128xf32>
    %8 = vector.broadcast %7 : vector<1x128xf32> to vector<64x128xf32>
    %9 = arith.addf %6, %8 : vector<64x128xf32>
    %c0_7 = arith.constant 0 : index
    %c0_8 = arith.constant 0 : index
    %10 = vector.load %arg11[%c0_7, %c0_8] : memref<64x128xf32, #tpu.memory_space<vmem>>, vector<64x128xf32>
    tpu.vector_store %arg11[%c0_7, %c0_8], %9 {strides = array<i32>} : memref<64x128xf32, #tpu.memory_space<vmem>>, vector<64x128xf32>,
    %c0_9 = arith.constant 0 : index
    %c0_10 = arith.constant 0 : index
    %11 = vector.load %arg6[%c0_9, %c0_10] : memref<32x128xf32, #tpu.memory_space<vmem>>, vector<32x128xf32>
    %c0_11 = arith.constant 0 : index
    %c0_12 = arith.constant 0 : index
    %12 = vector.load %arg12[%c0_11, %c0_12] : memref<8x32xf32, #tpu.memory_space<vmem>>, vector<8x32xf32>
    %c0_13 = arith.constant 0 : index
    %c0_14 = arith.constant 0 : index
    %13 = vector.load %arg13[%c0_13, %c0_14] : memref<8x32xf32, #tpu.memory_space<vmem>>, vector<8x32xf32>
    %c0_i32_15 = arith.constant 0 : i32
    %c8_i32 = arith.constant 8 : i32
    %14 = arith.muli %c0_i32_15, %c8_i32 : i32
    %15 = tpu.assume_multiple %14, 8 : i32
    %16 = arith.index_cast %15 : i32 to index
    %c0_16 = arith.constant 0 : index
    %17 = vector.load %arg11[%16, %c0_16] : memref<64x128xf32, #tpu.memory_space<vmem>>, vector<8x128xf32>
    %cst_17 = arith.constant dense<0.000000e+00> : vector<8x128xf32>
    %18 = tpu.matmul %12, %11, %cst_17 {dimension_numbers = #tpu.dot_dimension_numbers<[1], [0], [0], [1], [0, 0, 1, 1], [], []>} : vector<8x32xf32>, vector<32x128xf32>, vector<8x128xf32> -> vector<8x128xf32>
    %19 = arith.addf %17, %18 : vector<8x128xf32>
    %20 = vector.extract_strided_slice %19 {offsets = [0, 0], sizes = [8, 32], strides = [1, 1]} : vector<8x128xf32> to vector<8x32xf32>
    %21 = arith.negf %20 : vector<8x32xf32>
    %22 = math.exp %21 : vector<8x32xf32>
    %cst_18 = arith.constant 1.000000e+00 : f32
    %23 = vector.broadcast %cst_18 : f32 to vector<8x32xf32>
    %24 = arith.addf %23, %22 : vector<8x32xf32>
    %25 = arith.divf %23, %24 : vector<8x32xf32>
    %26 = vector.extract_strided_slice %19 {offsets = [0, 32], sizes = [8, 32], strides = [1, 1]} : vector<8x128xf32> to vector<8x32xf32>
    %27 = arith.negf %26 : vector<8x32xf32>
    %28 = math.exp %27 : vector<8x32xf32>
    %cst_19 = arith.constant 1.000000e+00 : f32
    %29 = vector.broadcast %cst_19 : f32 to vector<8x32xf32>
    %30 = arith.addf %29, %28 : vector<8x32xf32>
    %31 = arith.divf %29, %30 : vector<8x32xf32>
    %32 = vector.extract_strided_slice %19 {offsets = [0, 64], sizes = [8, 32], strides = [1, 1]} : vector<8x128xf32> to vector<8x32xf32>
    %33 = math.tanh %32 : vector<8x32xf32>
    %34 = vector.extract_strided_slice %19 {offsets = [0, 96], sizes = [8, 32], strides = [1, 1]} : vector<8x128xf32> to vector<8x32xf32>
    %35 = arith.negf %34 : vector<8x32xf32>
    %36 = math.exp %35 : vector<8x32xf32>
    %cst_20 = arith.constant 1.000000e+00 : f32
    %37 = vector.broadcast %cst_20 : f32 to vector<8x32xf32>
    %38 = arith.addf %37, %36 : vector<8x32xf32>
    %39 = arith.divf %37, %38 : vector<8x32xf32>
    %40 = arith.mulf %31, %13 : vector<8x32xf32>
    %41 = arith.mulf %25, %33 : vector<8x32xf32>
    %42 = arith.addf %40, %41 : vector<8x32xf32>
    %43 = math.tanh %42 : vector<8x32xf32>
    %44 = arith.mulf %39, %43 : vector<8x32xf32>
    %45 = arith.index_cast %c0_i32_15 : i32 to index
    %c0_21 = arith.constant 0 : index
    %c0_22 = arith.constant 0 : index
    %46 = vector.load %arg8[%45, %c0_21, %c0_22] : memref<8x8x32xf32, #tpu.memory_space<vmem>>, vector<1x8x32xf32>
    %47 = vector.shape_cast %46 : vector<1x8x32xf32> to vector<8x32xf32>
    %48 = vector.shape_cast %44 : vector<8x32xf32> to vector<1x8x32xf32>
    tpu.vector_store %arg8[%45, %c0_21, %c0_22], %48 {strides = array<i32>} : memref<8x8x32xf32, #tpu.memory_space<vmem>>, vector<1x8x32xf32>,
    %c1_i32 = arith.constant 1 : i32
    %c8_i32_23 = arith.constant 8 : i32
    %49 = arith.muli %c1_i32, %c8_i32_23 : i32
    %50 = tpu.assume_multiple %49, 8 : i32
    %51 = arith.index_cast %50 : i32 to index
    %c0_24 = arith.constant 0 : index
    %52 = vector.load %arg11[%51, %c0_24] : memref<64x128xf32, #tpu.memory_space<vmem>>, vector<8x128xf32>
    %cst_25 = arith.constant dense<0.000000e+00> : vector<8x128xf32>
    %53 = tpu.matmul %44, %11, %cst_25 {dimension_numbers = #tpu.dot_dimension_numbers<[1], [0], [0], [1], [0, 0, 1, 1], [], []>} : vector<8x32xf32>, vector<32x128xf32>, vector<8x128xf32> -> vector<8x128xf32>
    %54 = arith.addf %52, %53 : vector<8x128xf32>
    %55 = vector.extract_strided_slice %54 {offsets = [0, 0], sizes = [8, 32], strides = [1, 1]} : vector<8x128xf32> to vector<8x32xf32>
    %56 = arith.negf %55 : vector<8x32xf32>
    %57 = math.exp %56 : vector<8x32xf32>
    %cst_26 = arith.constant 1.000000e+00 : f32
    %58 = vector.broadcast %cst_26 : f32 to vector<8x32xf32>
    %59 = arith.addf %58, %57 : vector<8x32xf32>
    %60 = arith.divf %58, %59 : vector<8x32xf32>
    %61 = vector.extract_strided_slice %54 {offsets = [0, 32], sizes = [8, 32], strides = [1, 1]} : vector<8x128xf32> to vector<8x32xf32>
    %62 = arith.negf %61 : vector<8x32xf32>
    %63 = math.exp %62 : vector<8x32xf32>
    %cst_27 = arith.constant 1.000000e+00 : f32
    %64 = vector.broadcast %cst_27 : f32 to vector<8x32xf32>
    %65 = arith.addf %64, %63 : vector<8x32xf32>
    %66 = arith.divf %64, %65 : vector<8x32xf32>
    %67 = vector.extract_strided_slice %54 {offsets = [0, 64], sizes = [8, 32], strides = [1, 1]} : vector<8x128xf32> to vector<8x32xf32>
    %68 = math.tanh %67 : vector<8x32xf32>
    %69 = vector.extract_strided_slice %54 {offsets = [0, 96], sizes = [8, 32], strides = [1, 1]} : vector<8x128xf32> to vector<8x32xf32>
    %70 = arith.negf %69 : vector<8x32xf32>
    %71 = math.exp %70 : vector<8x32xf32>
    %cst_28 = arith.constant 1.000000e+00 : f32
    %72 = vector.broadcast %cst_28 : f32 to vector<8x32xf32>
    %73 = arith.addf %72, %71 : vector<8x32xf32>
    %74 = arith.divf %72, %73 : vector<8x32xf32>
    %75 = arith.mulf %66, %42 : vector<8x32xf32>
    %76 = arith.mulf %60, %68 : vector<8x32xf32>
    %77 = arith.addf %75, %76 : vector<8x32xf32>
    %78 = math.tanh %77 : vector<8x32xf32>
    %79 = arith.mulf %74, %78 : vector<8x32xf32>
    %80 = arith.index_cast %c1_i32 : i32 to index
    %c0_29 = arith.constant 0 : index
    %c0_30 = arith.constant 0 : index
    %81 = vector.load %arg8[%80, %c0_29, %c0_30] : memref<8x8x32xf32, #tpu.memory_space<vmem>>, vector<1x8x32xf32>
    %82 = vector.shape_cast %81 : vector<1x8x32xf32> to vector<8x32xf32>
    %83 = vector.shape_cast %79 : vector<8x32xf32> to vector<1x8x32xf32>
    tpu.vector_store %arg8[%80, %c0_29, %c0_30], %83 {strides = array<i32>} : memref<8x8x32xf32, #tpu.memory_space<vmem>>, vector<1x8x32xf32>,
    %c2_i32 = arith.constant 2 : i32
    %c8_i32_31 = arith.constant 8 : i32
    %84 = arith.muli %c2_i32, %c8_i32_31 : i32
    %85 = tpu.assume_multiple %84, 8 : i32
    %86 = arith.index_cast %85 : i32 to index
    %c0_32 = arith.constant 0 : index
    %87 = vector.load %arg11[%86, %c0_32] : memref<64x128xf32, #tpu.memory_space<vmem>>, vector<8x128xf32>
    %cst_33 = arith.constant dense<0.000000e+00> : vector<8x128xf32>
    %88 = tpu.matmul %79, %11, %cst_33 {dimension_numbers = #tpu.dot_dimension_numbers<[1], [0], [0], [1], [0, 0, 1, 1], [], []>} : vector<8x32xf32>, vector<32x128xf32>, vector<8x128xf32> -> vector<8x128xf32>
    %89 = arith.addf %87, %88 : vector<8x128xf32>
    %90 = vector.extract_strided_slice %89 {offsets = [0, 0], sizes = [8, 32], strides = [1, 1]} : vector<8x128xf32> to vector<8x32xf32>
    %91 = arith.negf %90 : vector<8x32xf32>
    %92 = math.exp %91 : vector<8x32xf32>
    %cst_34 = arith.constant 1.000000e+00 : f32
    %93 = vector.broadcast %cst_34 : f32 to vector<8x32xf32>
    %94 = arith.addf %93, %92 : vector<8x32xf32>
    %95 = arith.divf %93, %94 : vector<8x32xf32>
    %96 = vector.extract_strided_slice %89 {offsets = [0, 32], sizes = [8, 32], strides = [1, 1]} : vector<8x128xf32> to vector<8x32xf32>
    %97 = arith.negf %96 : vector<8x32xf32>
    %98 = math.exp %97 : vector<8x32xf32>
    %cst_35 = arith.constant 1.000000e+00 : f32
    %99 = vector.broadcast %cst_35 : f32 to vector<8x32xf32>
    %100 = arith.addf %99, %98 : vector<8x32xf32>
    %101 = arith.divf %99, %100 : vector<8x32xf32>
    %102 = vector.extract_strided_slice %89 {offsets = [0, 64], sizes = [8, 32], strides = [1, 1]} : vector<8x128xf32> to vector<8x32xf32>
    %103 = math.tanh %102 : vector<8x32xf32>
    %104 = vector.extract_strided_slice %89 {offsets = [0, 96], sizes = [8, 32], strides = [1, 1]} : vector<8x128xf32> to vector<8x32xf32>
    %105 = arith.negf %104 : vector<8x32xf32>
    %106 = math.exp %105 : vector<8x32xf32>
    %cst_36 = arith.constant 1.000000e+00 : f32
    %107 = vector.broadcast %cst_36 : f32 to vector<8x32xf32>
    %108 = arith.addf %107, %106 : vector<8x32xf32>
    %109 = arith.divf %107, %108 : vector<8x32xf32>
    %110 = arith.mulf %101, %77 : vector<8x32xf32>
    %111 = arith.mulf %95, %103 : vector<8x32xf32>
    %112 = arith.addf %110, %111 : vector<8x32xf32>
    %113 = math.tanh %112 : vector<8x32xf32>
    %114 = arith.mulf %109, %113 : vector<8x32xf32>
    %115 = arith.index_cast %c2_i32 : i32 to index
    %c0_37 = arith.constant 0 : index
    %c0_38 = arith.constant 0 : index
    %116 = vector.load %arg8[%115, %c0_37, %c0_38] : memref<8x8x32xf32, #tpu.memory_space<vmem>>, vector<1x8x32xf32>
    %117 = vector.shape_cast %116 : vector<1x8x32xf32> to vector<8x32xf32>
    %118 = vector.shape_cast %114 : vector<8x32xf32> to vector<1x8x32xf32>
    tpu.vector_store %arg8[%115, %c0_37, %c0_38], %118 {strides = array<i32>} : memref<8x8x32xf32, #tpu.memory_space<vmem>>, vector<1x8x32xf32>,
    %c3_i32 = arith.constant 3 : i32
    %c8_i32_39 = arith.constant 8 : i32
    %119 = arith.muli %c3_i32, %c8_i32_39 : i32
    %120 = tpu.assume_multiple %119, 8 : i32
    %121 = arith.index_cast %120 : i32 to index
    %c0_40 = arith.constant 0 : index
    %122 = vector.load %arg11[%121, %c0_40] : memref<64x128xf32, #tpu.memory_space<vmem>>, vector<8x128xf32>
    %cst_41 = arith.constant dense<0.000000e+00> : vector<8x128xf32>
    %123 = tpu.matmul %114, %11, %cst_41 {dimension_numbers = #tpu.dot_dimension_numbers<[1], [0], [0], [1], [0, 0, 1, 1], [], []>} : vector<8x32xf32>, vector<32x128xf32>, vector<8x128xf32> -> vector<8x128xf32>
    %124 = arith.addf %122, %123 : vector<8x128xf32>
    %125 = vector.extract_strided_slice %124 {offsets = [0, 0], sizes = [8, 32], strides = [1, 1]} : vector<8x128xf32> to vector<8x32xf32>
    %126 = arith.negf %125 : vector<8x32xf32>
    %127 = math.exp %126 : vector<8x32xf32>
    %cst_42 = arith.constant 1.000000e+00 : f32
    %128 = vector.broadcast %cst_42 : f32 to vector<8x32xf32>
    %129 = arith.addf %128, %127 : vector<8x32xf32>
    %130 = arith.divf %128, %129 : vector<8x32xf32>
    %131 = vector.extract_strided_slice %124 {offsets = [0, 32], sizes = [8, 32], strides = [1, 1]} : vector<8x128xf32> to vector<8x32xf32>
    %132 = arith.negf %131 : vector<8x32xf32>
    %133 = math.exp %132 : vector<8x32xf32>
    %cst_43 = arith.constant 1.000000e+00 : f32
    %134 = vector.broadcast %cst_43 : f32 to vector<8x32xf32>
    %135 = arith.addf %134, %133 : vector<8x32xf32>
    %136 = arith.divf %134, %135 : vector<8x32xf32>
    %137 = vector.extract_strided_slice %124 {offsets = [0, 64], sizes = [8, 32], strides = [1, 1]} : vector<8x128xf32> to vector<8x32xf32>
    %138 = math.tanh %137 : vector<8x32xf32>
    %139 = vector.extract_strided_slice %124 {offsets = [0, 96], sizes = [8, 32], strides = [1, 1]} : vector<8x128xf32> to vector<8x32xf32>
    %140 = arith.negf %139 : vector<8x32xf32>
    %141 = math.exp %140 : vector<8x32xf32>
    %cst_44 = arith.constant 1.000000e+00 : f32
    %142 = vector.broadcast %cst_44 : f32 to vector<8x32xf32>
    %143 = arith.addf %142, %141 : vector<8x32xf32>
    %144 = arith.divf %142, %143 : vector<8x32xf32>
    %145 = arith.mulf %136, %112 : vector<8x32xf32>
    %146 = arith.mulf %130, %138 : vector<8x32xf32>
    %147 = arith.addf %145, %146 : vector<8x32xf32>
    %148 = math.tanh %147 : vector<8x32xf32>
    %149 = arith.mulf %144, %148 : vector<8x32xf32>
    %150 = arith.index_cast %c3_i32 : i32 to index
    %c0_45 = arith.constant 0 : index
    %c0_46 = arith.constant 0 : index
    %151 = vector.load %arg8[%150, %c0_45, %c0_46] : memref<8x8x32xf32, #tpu.memory_space<vmem>>, vector<1x8x32xf32>
    %152 = vector.shape_cast %151 : vector<1x8x32xf32> to vector<8x32xf32>
    %153 = vector.shape_cast %149 : vector<8x32xf32> to vector<1x8x32xf32>
    tpu.vector_store %arg8[%150, %c0_45, %c0_46], %153 {strides = array<i32>} : memref<8x8x32xf32, #tpu.memory_space<vmem>>, vector<1x8x32xf32>,
    %c4_i32 = arith.constant 4 : i32
    %c8_i32_47 = arith.constant 8 : i32
    %154 = arith.muli %c4_i32, %c8_i32_47 : i32
    %155 = tpu.assume_multiple %154, 8 : i32
    %156 = arith.index_cast %155 : i32 to index
    %c0_48 = arith.constant 0 : index
    %157 = vector.load %arg11[%156, %c0_48] : memref<64x128xf32, #tpu.memory_space<vmem>>, vector<8x128xf32>
    %cst_49 = arith.constant dense<0.000000e+00> : vector<8x128xf32>
    %158 = tpu.matmul %149, %11, %cst_49 {dimension_numbers = #tpu.dot_dimension_numbers<[1], [0], [0], [1], [0, 0, 1, 1], [], []>} : vector<8x32xf32>, vector<32x128xf32>, vector<8x128xf32> -> vector<8x128xf32>
    %159 = arith.addf %157, %158 : vector<8x128xf32>
    %160 = vector.extract_strided_slice %159 {offsets = [0, 0], sizes = [8, 32], strides = [1, 1]} : vector<8x128xf32> to vector<8x32xf32>
    %161 = arith.negf %160 : vector<8x32xf32>
    %162 = math.exp %161 : vector<8x32xf32>
    %cst_50 = arith.constant 1.000000e+00 : f32
    %163 = vector.broadcast %cst_50 : f32 to vector<8x32xf32>
    %164 = arith.addf %163, %162 : vector<8x32xf32>
    %165 = arith.divf %163, %164 : vector<8x32xf32>
    %166 = vector.extract_strided_slice %159 {offsets = [0, 32], sizes = [8, 32], strides = [1, 1]} : vector<8x128xf32> to vector<8x32xf32>
    %167 = arith.negf %166 : vector<8x32xf32>
    %168 = math.exp %167 : vector<8x32xf32>
    %cst_51 = arith.constant 1.000000e+00 : f32
    %169 = vector.broadcast %cst_51 : f32 to vector<8x32xf32>
    %170 = arith.addf %169, %168 : vector<8x32xf32>
    %171 = arith.divf %169, %170 : vector<8x32xf32>
    %172 = vector.extract_strided_slice %159 {offsets = [0, 64], sizes = [8, 32], strides = [1, 1]} : vector<8x128xf32> to vector<8x32xf32>
    %173 = math.tanh %172 : vector<8x32xf32>
    %174 = vector.extract_strided_slice %159 {offsets = [0, 96], sizes = [8, 32], strides = [1, 1]} : vector<8x128xf32> to vector<8x32xf32>
    %175 = arith.negf %174 : vector<8x32xf32>
    %176 = math.exp %175 : vector<8x32xf32>
    %cst_52 = arith.constant 1.000000e+00 : f32
    %177 = vector.broadcast %cst_52 : f32 to vector<8x32xf32>
    %178 = arith.addf %177, %176 : vector<8x32xf32>
    %179 = arith.divf %177, %178 : vector<8x32xf32>
    %180 = arith.mulf %171, %147 : vector<8x32xf32>
    %181 = arith.mulf %165, %173 : vector<8x32xf32>
    %182 = arith.addf %180, %181 : vector<8x32xf32>
    %183 = math.tanh %182 : vector<8x32xf32>
    %184 = arith.mulf %179, %183 : vector<8x32xf32>
    %185 = arith.index_cast %c4_i32 : i32 to index
    %c0_53 = arith.constant 0 : index
    %c0_54 = arith.constant 0 : index
    %186 = vector.load %arg8[%185, %c0_53, %c0_54] : memref<8x8x32xf32, #tpu.memory_space<vmem>>, vector<1x8x32xf32>
    %187 = vector.shape_cast %186 : vector<1x8x32xf32> to vector<8x32xf32>
    %188 = vector.shape_cast %184 : vector<8x32xf32> to vector<1x8x32xf32>
    tpu.vector_store %arg8[%185, %c0_53, %c0_54], %188 {strides = array<i32>} : memref<8x8x32xf32, #tpu.memory_space<vmem>>, vector<1x8x32xf32>,
    %c5_i32 = arith.constant 5 : i32
    %c8_i32_55 = arith.constant 8 : i32
    %189 = arith.muli %c5_i32, %c8_i32_55 : i32
    %190 = tpu.assume_multiple %189, 8 : i32
    %191 = arith.index_cast %190 : i32 to index
    %c0_56 = arith.constant 0 : index
    %192 = vector.load %arg11[%191, %c0_56] : memref<64x128xf32, #tpu.memory_space<vmem>>, vector<8x128xf32>
    %cst_57 = arith.constant dense<0.000000e+00> : vector<8x128xf32>
    %193 = tpu.matmul %184, %11, %cst_57 {dimension_numbers = #tpu.dot_dimension_numbers<[1], [0], [0], [1], [0, 0, 1, 1], [], []>} : vector<8x32xf32>, vector<32x128xf32>, vector<8x128xf32> -> vector<8x128xf32>
    %194 = arith.addf %192, %193 : vector<8x128xf32>
    %195 = vector.extract_strided_slice %194 {offsets = [0, 0], sizes = [8, 32], strides = [1, 1]} : vector<8x128xf32> to vector<8x32xf32>
    %196 = arith.negf %195 : vector<8x32xf32>
    %197 = math.exp %196 : vector<8x32xf32>
    %cst_58 = arith.constant 1.000000e+00 : f32
    %198 = vector.broadcast %cst_58 : f32 to vector<8x32xf32>
    %199 = arith.addf %198, %197 : vector<8x32xf32>
    %200 = arith.divf %198, %199 : vector<8x32xf32>
    %201 = vector.extract_strided_slice %194 {offsets = [0, 32], sizes = [8, 32], strides = [1, 1]} : vector<8x128xf32> to vector<8x32xf32>
    %202 = arith.negf %201 : vector<8x32xf32>
    %203 = math.exp %202 : vector<8x32xf32>
    %cst_59 = arith.constant 1.000000e+00 : f32
    %204 = vector.broadcast %cst_59 : f32 to vector<8x32xf32>
    %205 = arith.addf %204, %203 : vector<8x32xf32>
    %206 = arith.divf %204, %205 : vector<8x32xf32>
    %207 = vector.extract_strided_slice %194 {offsets = [0, 64], sizes = [8, 32], strides = [1, 1]} : vector<8x128xf32> to vector<8x32xf32>
    %208 = math.tanh %207 : vector<8x32xf32>
    %209 = vector.extract_strided_slice %194 {offsets = [0, 96], sizes = [8, 32], strides = [1, 1]} : vector<8x128xf32> to vector<8x32xf32>
    %210 = arith.negf %209 : vector<8x32xf32>
    %211 = math.exp %210 : vector<8x32xf32>
    %cst_60 = arith.constant 1.000000e+00 : f32
    %212 = vector.broadcast %cst_60 : f32 to vector<8x32xf32>
    %213 = arith.addf %212, %211 : vector<8x32xf32>
    %214 = arith.divf %212, %213 : vector<8x32xf32>
    %215 = arith.mulf %206, %182 : vector<8x32xf32>
    %216 = arith.mulf %200, %208 : vector<8x32xf32>
    %217 = arith.addf %215, %216 : vector<8x32xf32>
    %218 = math.tanh %217 : vector<8x32xf32>
    %219 = arith.mulf %214, %218 : vector<8x32xf32>
    %220 = arith.index_cast %c5_i32 : i32 to index
    %c0_61 = arith.constant 0 : index
    %c0_62 = arith.constant 0 : index
    %221 = vector.load %arg8[%220, %c0_61, %c0_62] : memref<8x8x32xf32, #tpu.memory_space<vmem>>, vector<1x8x32xf32>
    %222 = vector.shape_cast %221 : vector<1x8x32xf32> to vector<8x32xf32>
    %223 = vector.shape_cast %219 : vector<8x32xf32> to vector<1x8x32xf32>
    tpu.vector_store %arg8[%220, %c0_61, %c0_62], %223 {strides = array<i32>} : memref<8x8x32xf32, #tpu.memory_space<vmem>>, vector<1x8x32xf32>,
    %c6_i32 = arith.constant 6 : i32
    %c8_i32_63 = arith.constant 8 : i32
    %224 = arith.muli %c6_i32, %c8_i32_63 : i32
    %225 = tpu.assume_multiple %224, 8 : i32
    %226 = arith.index_cast %225 : i32 to index
    %c0_64 = arith.constant 0 : index
    %227 = vector.load %arg11[%226, %c0_64] : memref<64x128xf32, #tpu.memory_space<vmem>>, vector<8x128xf32>
    %cst_65 = arith.constant dense<0.000000e+00> : vector<8x128xf32>
    %228 = tpu.matmul %219, %11, %cst_65 {dimension_numbers = #tpu.dot_dimension_numbers<[1], [0], [0], [1], [0, 0, 1, 1], [], []>} : vector<8x32xf32>, vector<32x128xf32>, vector<8x128xf32> -> vector<8x128xf32>
    %229 = arith.addf %227, %228 : vector<8x128xf32>
    %230 = vector.extract_strided_slice %229 {offsets = [0, 0], sizes = [8, 32], strides = [1, 1]} : vector<8x128xf32> to vector<8x32xf32>
    %231 = arith.negf %230 : vector<8x32xf32>
    %232 = math.exp %231 : vector<8x32xf32>
    %cst_66 = arith.constant 1.000000e+00 : f32
    %233 = vector.broadcast %cst_66 : f32 to vector<8x32xf32>
    %234 = arith.addf %233, %232 : vector<8x32xf32>
    %235 = arith.divf %233, %234 : vector<8x32xf32>
    %236 = vector.extract_strided_slice %229 {offsets = [0, 32], sizes = [8, 32], strides = [1, 1]} : vector<8x128xf32> to vector<8x32xf32>
    %237 = arith.negf %236 : vector<8x32xf32>
    %238 = math.exp %237 : vector<8x32xf32>
    %cst_67 = arith.constant 1.000000e+00 : f32
    %239 = vector.broadcast %cst_67 : f32 to vector<8x32xf32>
    %240 = arith.addf %239, %238 : vector<8x32xf32>
    %241 = arith.divf %239, %240 : vector<8x32xf32>
    %242 = vector.extract_strided_slice %229 {offsets = [0, 64], sizes = [8, 32], strides = [1, 1]} : vector<8x128xf32> to vector<8x32xf32>
    %243 = math.tanh %242 : vector<8x32xf32>
    %244 = vector.extract_strided_slice %229 {offsets = [0, 96], sizes = [8, 32], strides = [1, 1]} : vector<8x128xf32> to vector<8x32xf32>
    %245 = arith.negf %244 : vector<8x32xf32>
    %246 = math.exp %245 : vector<8x32xf32>
    %cst_68 = arith.constant 1.000000e+00 : f32
    %247 = vector.broadcast %cst_68 : f32 to vector<8x32xf32>
    %248 = arith.addf %247, %246 : vector<8x32xf32>
    %249 = arith.divf %247, %248 : vector<8x32xf32>
    %250 = arith.mulf %241, %217 : vector<8x32xf32>
    %251 = arith.mulf %235, %243 : vector<8x32xf32>
    %252 = arith.addf %250, %251 : vector<8x32xf32>
    %253 = math.tanh %252 : vector<8x32xf32>
    %254 = arith.mulf %249, %253 : vector<8x32xf32>
    %255 = arith.index_cast %c6_i32 : i32 to index
    %c0_69 = arith.constant 0 : index
    %c0_70 = arith.constant 0 : index
    %256 = vector.load %arg8[%255, %c0_69, %c0_70] : memref<8x8x32xf32, #tpu.memory_space<vmem>>, vector<1x8x32xf32>
    %257 = vector.shape_cast %256 : vector<1x8x32xf32> to vector<8x32xf32>
    %258 = vector.shape_cast %254 : vector<8x32xf32> to vector<1x8x32xf32>
    tpu.vector_store %arg8[%255, %c0_69, %c0_70], %258 {strides = array<i32>} : memref<8x8x32xf32, #tpu.memory_space<vmem>>, vector<1x8x32xf32>,
    %c7_i32 = arith.constant 7 : i32
    %c8_i32_71 = arith.constant 8 : i32
    %259 = arith.muli %c7_i32, %c8_i32_71 : i32
    %260 = tpu.assume_multiple %259, 8 : i32
    %261 = arith.index_cast %260 : i32 to index
    %c0_72 = arith.constant 0 : index
    %262 = vector.load %arg11[%261, %c0_72] : memref<64x128xf32, #tpu.memory_space<vmem>>, vector<8x128xf32>
    %cst_73 = arith.constant dense<0.000000e+00> : vector<8x128xf32>
    %263 = tpu.matmul %254, %11, %cst_73 {dimension_numbers = #tpu.dot_dimension_numbers<[1], [0], [0], [1], [0, 0, 1, 1], [], []>} : vector<8x32xf32>, vector<32x128xf32>, vector<8x128xf32> -> vector<8x128xf32>
    %264 = arith.addf %262, %263 : vector<8x128xf32>
    %265 = vector.extract_strided_slice %264 {offsets = [0, 0], sizes = [8, 32], strides = [1, 1]} : vector<8x128xf32> to vector<8x32xf32>
    %266 = arith.negf %265 : vector<8x32xf32>
    %267 = math.exp %266 : vector<8x32xf32>
    %cst_74 = arith.constant 1.000000e+00 : f32
    %268 = vector.broadcast %cst_74 : f32 to vector<8x32xf32>
    %269 = arith.addf %268, %267 : vector<8x32xf32>
    %270 = arith.divf %268, %269 : vector<8x32xf32>
    %271 = vector.extract_strided_slice %264 {offsets = [0, 32], sizes = [8, 32], strides = [1, 1]} : vector<8x128xf32> to vector<8x32xf32>
    %272 = arith.negf %271 : vector<8x32xf32>
    %273 = math.exp %272 : vector<8x32xf32>
    %cst_75 = arith.constant 1.000000e+00 : f32
    %274 = vector.broadcast %cst_75 : f32 to vector<8x32xf32>
    %275 = arith.addf %274, %273 : vector<8x32xf32>
    %276 = arith.divf %274, %275 : vector<8x32xf32>
    %277 = vector.extract_strided_slice %264 {offsets = [0, 64], sizes = [8, 32], strides = [1, 1]} : vector<8x128xf32> to vector<8x32xf32>
    %278 = math.tanh %277 : vector<8x32xf32>
    %279 = vector.extract_strided_slice %264 {offsets = [0, 96], sizes = [8, 32], strides = [1, 1]} : vector<8x128xf32> to vector<8x32xf32>
    %280 = arith.negf %279 : vector<8x32xf32>
    %281 = math.exp %280 : vector<8x32xf32>
    %cst_76 = arith.constant 1.000000e+00 : f32
    %282 = vector.broadcast %cst_76 : f32 to vector<8x32xf32>
    %283 = arith.addf %282, %281 : vector<8x32xf32>
    %284 = arith.divf %282, %283 : vector<8x32xf32>
    %285 = arith.mulf %276, %252 : vector<8x32xf32>
    %286 = arith.mulf %270, %278 : vector<8x32xf32>
    %287 = arith.addf %285, %286 : vector<8x32xf32>
    %288 = math.tanh %287 : vector<8x32xf32>
    %289 = arith.mulf %284, %288 : vector<8x32xf32>
    %290 = arith.index_cast %c7_i32 : i32 to index
    %c0_77 = arith.constant 0 : index
    %c0_78 = arith.constant 0 : index
    %291 = vector.load %arg8[%290, %c0_77, %c0_78] : memref<8x8x32xf32, #tpu.memory_space<vmem>>, vector<1x8x32xf32>
    %292 = vector.shape_cast %291 : vector<1x8x32xf32> to vector<8x32xf32>
    %293 = vector.shape_cast %289 : vector<8x32xf32> to vector<1x8x32xf32>
    tpu.vector_store %arg8[%290, %c0_77, %c0_78], %293 {strides = array<i32>} : memref<8x8x32xf32, #tpu.memory_space<vmem>>, vector<1x8x32xf32>,
    %c8_i32_79 = arith.constant 8 : i32
    %c0_80 = arith.constant 0 : index
    %c0_81 = arith.constant 0 : index
    %294 = vector.load %arg12[%c0_80, %c0_81] : memref<8x32xf32, #tpu.memory_space<vmem>>, vector<8x32xf32>
    tpu.vector_store %arg12[%c0_80, %c0_81], %289 {strides = array<i32>} : memref<8x32xf32, #tpu.memory_space<vmem>>, vector<8x32xf32>,
    %c0_82 = arith.constant 0 : index
    %c0_83 = arith.constant 0 : index
    %295 = vector.load %arg13[%c0_82, %c0_83] : memref<8x32xf32, #tpu.memory_space<vmem>>, vector<8x32xf32>
    tpu.vector_store %arg13[%c0_82, %c0_83], %287 {strides = array<i32>} : memref<8x32xf32, #tpu.memory_space<vmem>>, vector<8x32xf32>,
    %c0_i32_84 = arith.constant 0 : i32
    %296 = arith.cmpi eq, %arg1, %c0_i32_84 : i32
    %297 = arith.extui %296 : i1 to i32
    %c0_i32_85 = arith.constant 0 : i32
    %298 = arith.cmpi ne, %297, %c0_i32_85 : i32
    scf.if %298 {
      %c0_86 = arith.constant 0 : index
      %c0_87 = arith.constant 0 : index
      %299 = vector.load %arg9[%c0_86, %c0_87] : memref<8x32xf32, #tpu.memory_space<vmem>>, vector<8x32xf32>
      tpu.vector_store %arg9[%c0_86, %c0_87], %289 {strides = array<i32>} : memref<8x32xf32, #tpu.memory_space<vmem>>, vector<8x32xf32>,
      %c0_88 = arith.constant 0 : index
      %c0_89 = arith.constant 0 : index
      %300 = vector.load %arg10[%c0_88, %c0_89] : memref<8x32xf32, #tpu.memory_space<vmem>>, vector<8x32xf32>
      tpu.vector_store %arg10[%c0_88, %c0_89], %287 {strides = array<i32>} : memref<8x32xf32, #tpu.memory_space<vmem>>, vector<8x32xf32>,
    } else {
    }
    return
  }
  func.func @transform_0(%arg0: i32, %arg1: i32) -> (i32, i32, i32) {
    %c0_i32 = arith.constant 0 : i32
    %c0_i32_0 = arith.constant 0 : i32
    return %arg1, %arg0, %c0_i32 : i32, i32, i32
  }
  func.func @transform_1(%arg0: i32, %arg1: i32) -> (i32, i32) {
    %c0_i32 = arith.constant 0 : i32
    %c0_i32_0 = arith.constant 0 : i32
    return %arg0, %c0_i32 : i32, i32
  }
  func.func @transform_2(%arg0: i32, %arg1: i32) -> (i32, i32) {
    %c0_i32 = arith.constant 0 : i32
    %c0_i32_0 = arith.constant 0 : i32
    return %arg0, %c0_i32 : i32, i32
  }
  func.func @transform_3(%arg0: i32, %arg1: i32) -> (i32, i32) {
    %c0_i32 = arith.constant 0 : i32
    %c0_i32_0 = arith.constant 0 : i32
    %c0_i32_1 = arith.constant 0 : i32
    return %c0_i32, %c0_i32_0 : i32, i32
  }
  func.func @transform_4(%arg0: i32, %arg1: i32) -> (i32, i32) {
    %c0_i32 = arith.constant 0 : i32
    %c0_i32_0 = arith.constant 0 : i32
    %c0_i32_1 = arith.constant 0 : i32
    return %c0_i32, %c0_i32_0 : i32, i32
  }
  func.func @transform_5(%arg0: i32, %arg1: i32) -> (i32, i32) {
    %c0_i32 = arith.constant 0 : i32
    %c0_i32_0 = arith.constant 0 : i32
    %c0_i32_1 = arith.constant 0 : i32
    return %c0_i32, %c0_i32_0 : i32, i32
  }
  func.func @transform_6(%arg0: i32, %arg1: i32) -> (i32, i32, i32) {
    %c0_i32 = arith.constant 0 : i32
    %c0_i32_0 = arith.constant 0 : i32
    return %arg1, %arg0, %c0_i32 : i32, i32, i32
  }
  func.func @transform_7(%arg0: i32, %arg1: i32) -> (i32, i32) {
    %c0_i32 = arith.constant 0 : i32
    %c0_i32_0 = arith.constant 0 : i32
    return %arg0, %c0_i32 : i32, i32
  }
  func.func @transform_8(%arg0: i32, %arg1: i32) -> (i32, i32) {
    %c0_i32 = arith.constant 0 : i32
    %c0_i32_0 = arith.constant 0 : i32
    return %arg0, %c0_i32 : i32, i32
  }
}

module attributes {stable_mosaic.version = 11 : i64} {
  func.func @kernel(%arg0: i32, %arg1: i32, %arg2: memref<8x8x32xf32, #tpu.memory_space<vmem>>, %arg3: memref<8x32xf32, #tpu.memory_space<vmem>>, %arg4: memref<8x32xf32, #tpu.memory_space<vmem>>, %arg5: memref<32x128xf32, #tpu.memory_space<vmem>>, %arg6: memref<32x128xf32, #tpu.memory_space<vmem>>, %arg7: memref<1x128xf32, #tpu.memory_space<vmem>>, %arg8: memref<8x8x32xf32, #tpu.memory_space<vmem>>, %arg9: memref<8x32xf32, #tpu.memory_space<vmem>>, %arg10: memref<8x32xf32, #tpu.memory_space<vmem>>, %arg11: memref<64x128xf32, #tpu.memory_space<vmem>>, %arg12: memref<8x32xf32, #tpu.memory_space<vmem>>, %arg13: memref<8x32xf32, #tpu.memory_space<vmem>>) attributes {dimension_semantics = [#tpu.dimension_semantics<parallel>, #tpu.dimension_semantics<arbitrary>], iteration_bounds = array<i64: 1, 1>, scalar_prefetch = 0 : i64, scratch_operands = 3 : i64, tpu.core_type = #tpu.core_type<tc>, window_params = [{transform_indices = @transform_0, window_bounds = array<i64: 8, 8, 32>}, {transform_indices = @transform_1, window_bounds = array<i64: 8, 32>}, {transform_indices = @transform_2, window_bounds = array<i64: 8, 32>}, {pipeline_mode = #tpu.pipeline_mode<synchronous>, transform_indices = @transform_3, window_bounds = array<i64: 32, 128>}, {pipeline_mode = #tpu.pipeline_mode<synchronous>, transform_indices = @transform_4, window_bounds = array<i64: 32, 128>}, {pipeline_mode = #tpu.pipeline_mode<synchronous>, transform_indices = @transform_5, window_bounds = array<i64: 1, 128>}, {transform_indices = @transform_6, window_bounds = array<i64: 8, 8, 32>}, {transform_indices = @transform_7, window_bounds = array<i64: 8, 32>}, {transform_indices = @transform_8, window_bounds = array<i64: 8, 32>}]} {
    %c0_i32 = arith.constant 0 : i32
    %0 = arith.cmpi eq, %arg1, %c0_i32 : i32
    %1 = arith.extui %0 : i1 to i32
    %c0_i32_0 = arith.constant 0 : i32
    %2 = arith.cmpi ne, %1, %c0_i32_0 : i32
    scf.if %2 {
      %c0_86 = arith.constant 0 : index
      %c0_87 = arith.constant 0 : index
      %299 = vector.load %arg3[%c0_86, %c0_87] : memref<8x32xf32, #tpu.memory_space<vmem>>, vector<8x32xf32>
      %c0_88 = arith.constant 0 : index
      %c0_89 = arith.constant 0 : index
      %300 = vector.load %arg12[%c0_88, %c0_89] : memref<8x32xf32, #tpu.memory_space<vmem>>, vector<8x32xf32>
      tpu.vector_store %arg12[%c0_88, %c0_89], %299 {strides = array<i32>} : memref<8x32xf32, #tpu.memory_space<vmem>>, vector<8x32xf32>,
      %c0_90 = arith.constant 0 : index
      %c0_91 = arith.constant 0 : index
      %301 = vector.load %arg4[%c0_90, %c0_91] : memref<8x32xf32, #tpu.memory_space<vmem>>, vector<8x32xf32>
      %c0_92 = arith.constant 0 : index
      %c0_93 = arith.constant 0 : index
      %302 = vector.load %arg13[%c0_92, %c0_93] : memref<8x32xf32, #tpu.memory_space<vmem>>, vector<8x32xf32>
      tpu.vector_store %arg13[%c0_92, %c0_93], %301 {strides = array<i32>} : memref<8x32xf32, #tpu.memory_space<vmem>>, vector<8x32xf32>,
    } else {
    }
    %c0 = arith.constant 0 : index
    %c0_1 = arith.constant 0 : index
    %3 = vector.load %arg5[%c0, %c0_1] : memref<32x128xf32, #tpu.memory_space<vmem>>, vector<32x128xf32>
    %c0_2 = arith.constant 0 : index
    %c0_3 = arith.constant 0 : index
    %c0_4 = arith.constant 0 : index
    %4 = vector.load %arg2[%c0_2, %c0_3, %c0_4] : memref<8x8x32xf32, #tpu.memory_space<vmem>>, vector<8x8x32xf32>
    %5 = vector.shape_cast %4 : vector<8x8x32xf32> to vector<64x32xf32>
    %cst = arith.constant dense<0.000000e+00> : vector<64x128xf32>
    %6 = tpu.matmul %5, %3, %cst {dimension_numbers = #tpu.dot_dimension_numbers<[1], [0], [0], [1], [0, 0, 1, 1], [], []>} : vector<64x32xf32>, vector<32x128xf32>, vector<64x128xf32> -> vector<64x128xf32>
    %c0_5 = arith.constant 0 : index
    %c0_6 = arith.constant 0 : index
    %7 = vector.load %arg7[%c0_5, %c0_6] : memref<1x128xf32, #tpu.memory_space<vmem>>, vector<1x128xf32>
    %8 = vector.broadcast %7 : vector<1x128xf32> to vector<64x128xf32>
    %9 = arith.addf %6, %8 : vector<64x128xf32>
    %c0_7 = arith.constant 0 : index
    %c0_8 = arith.constant 0 : index
    %10 = vector.load %arg11[%c0_7, %c0_8] : memref<64x128xf32, #tpu.memory_space<vmem>>, vector<64x128xf32>
    tpu.vector_store %arg11[%c0_7, %c0_8], %9 {strides = array<i32>} : memref<64x128xf32, #tpu.memory_space<vmem>>, vector<64x128xf32>,
    %c0_9 = arith.constant 0 : index
    %c0_10 = arith.constant 0 : index
    %11 = vector.load %arg6[%c0_9, %c0_10] : memref<32x128xf32, #tpu.memory_space<vmem>>, vector<32x128xf32>
    %c0_11 = arith.constant 0 : index
    %c0_12 = arith.constant 0 : index
    %12 = vector.load %arg12[%c0_11, %c0_12] : memref<8x32xf32, #tpu.memory_space<vmem>>, vector<8x32xf32>
    %c0_13 = arith.constant 0 : index
    %c0_14 = arith.constant 0 : index
    %13 = vector.load %arg13[%c0_13, %c0_14] : memref<8x32xf32, #tpu.memory_space<vmem>>, vector<8x32xf32>
    %c0_i32_15 = arith.constant 0 : i32
    %c8_i32 = arith.constant 8 : i32
    %14 = arith.muli %c0_i32_15, %c8_i32 : i32
    %15 = tpu.assume_multiple %14, 8 : i32
    %16 = arith.index_cast %15 : i32 to index
    %c0_16 = arith.constant 0 : index
    %17 = vector.load %arg11[%16, %c0_16] : memref<64x128xf32, #tpu.memory_space<vmem>>, vector<8x128xf32>
    %cst_17 = arith.constant dense<0.000000e+00> : vector<8x128xf32>
    %18 = tpu.matmul %12, %11, %cst_17 {dimension_numbers = #tpu.dot_dimension_numbers<[1], [0], [0], [1], [0, 0, 1, 1], [], []>} : vector<8x32xf32>, vector<32x128xf32>, vector<8x128xf32> -> vector<8x128xf32>
    %19 = arith.addf %17, %18 : vector<8x128xf32>
    %20 = vector.extract_strided_slice %19 {offsets = [0, 0], sizes = [8, 32], strides = [1, 1]} : vector<8x128xf32> to vector<8x32xf32>
    %21 = arith.negf %20 : vector<8x32xf32>
    %22 = math.exp %21 : vector<8x32xf32>
    %cst_18 = arith.constant 1.000000e+00 : f32
    %23 = vector.broadcast %cst_18 : f32 to vector<8x32xf32>
    %24 = arith.addf %23, %22 : vector<8x32xf32>
    %25 = arith.divf %23, %24 : vector<8x32xf32>
    %26 = vector.extract_strided_slice %19 {offsets = [0, 32], sizes = [8, 32], strides = [1, 1]} : vector<8x128xf32> to vector<8x32xf32>
    %27 = arith.negf %26 : vector<8x32xf32>
    %28 = math.exp %27 : vector<8x32xf32>
    %cst_19 = arith.constant 1.000000e+00 : f32
    %29 = vector.broadcast %cst_19 : f32 to vector<8x32xf32>
    %30 = arith.addf %29, %28 : vector<8x32xf32>
    %31 = arith.divf %29, %30 : vector<8x32xf32>
    %32 = vector.extract_strided_slice %19 {offsets = [0, 64], sizes = [8, 32], strides = [1, 1]} : vector<8x128xf32> to vector<8x32xf32>
    %33 = math.tanh %32 : vector<8x32xf32>
    %34 = vector.extract_strided_slice %19 {offsets = [0, 96], sizes = [8, 32], strides = [1, 1]} : vector<8x128xf32> to vector<8x32xf32>
    %35 = arith.negf %34 : vector<8x32xf32>
    %36 = math.exp %35 : vector<8x32xf32>
    %cst_20 = arith.constant 1.000000e+00 : f32
    %37 = vector.broadcast %cst_20 : f32 to vector<8x32xf32>
    %38 = arith.addf %37, %36 : vector<8x32xf32>
    %39 = arith.divf %37, %38 : vector<8x32xf32>
    %40 = arith.mulf %31, %13 : vector<8x32xf32>
    %41 = arith.mulf %25, %33 : vector<8x32xf32>
    %42 = arith.addf %40, %41 : vector<8x32xf32>
    %43 = math.tanh %42 : vector<8x32xf32>
    %44 = arith.mulf %39, %43 : vector<8x32xf32>
    %45 = arith.index_cast %c0_i32_15 : i32 to index
    %c0_21 = arith.constant 0 : index
    %c0_22 = arith.constant 0 : index
    %46 = vector.load %arg8[%45, %c0_21, %c0_22] : memref<8x8x32xf32, #tpu.memory_space<vmem>>, vector<1x8x32xf32>
    %47 = vector.shape_cast %46 : vector<1x8x32xf32> to vector<8x32xf32>
    %48 = vector.shape_cast %44 : vector<8x32xf32> to vector<1x8x32xf32>
    tpu.vector_store %arg8[%45, %c0_21, %c0_22], %48 {strides = array<i32>} : memref<8x8x32xf32, #tpu.memory_space<vmem>>, vector<1x8x32xf32>,
    %c1_i32 = arith.constant 1 : i32
    %c8_i32_23 = arith.constant 8 : i32
    %49 = arith.muli %c1_i32, %c8_i32_23 : i32
    %50 = tpu.assume_multiple %49, 8 : i32
    %51 = arith.index_cast %50 : i32 to index
    %c0_24 = arith.constant 0 : index
    %52 = vector.load %arg11[%51, %c0_24] : memref<64x128xf32, #tpu.memory_space<vmem>>, vector<8x128xf32>
    %cst_25 = arith.constant dense<0.000000e+00> : vector<8x128xf32>
    %53 = tpu.matmul %44, %11, %cst_25 {dimension_numbers = #tpu.dot_dimension_numbers<[1], [0], [0], [1], [0, 0, 1, 1], [], []>} : vector<8x32xf32>, vector<32x128xf32>, vector<8x128xf32> -> vector<8x128xf32>
    %54 = arith.addf %52, %53 : vector<8x128xf32>
    %55 = vector.extract_strided_slice %54 {offsets = [0, 0], sizes = [8, 32], strides = [1, 1]} : vector<8x128xf32> to vector<8x32xf32>
    %56 = arith.negf %55 : vector<8x32xf32>
    %57 = math.exp %56 : vector<8x32xf32>
    %cst_26 = arith.constant 1.000000e+00 : f32
    %58 = vector.broadcast %cst_26 : f32 to vector<8x32xf32>
    %59 = arith.addf %58, %57 : vector<8x32xf32>
    %60 = arith.divf %58, %59 : vector<8x32xf32>
    %61 = vector.extract_strided_slice %54 {offsets = [0, 32], sizes = [8, 32], strides = [1, 1]} : vector<8x128xf32> to vector<8x32xf32>
    %62 = arith.negf %61 : vector<8x32xf32>
    %63 = math.exp %62 : vector<8x32xf32>
    %cst_27 = arith.constant 1.000000e+00 : f32
    %64 = vector.broadcast %cst_27 : f32 to vector<8x32xf32>
    %65 = arith.addf %64, %63 : vector<8x32xf32>
    %66 = arith.divf %64, %65 : vector<8x32xf32>
    %67 = vector.extract_strided_slice %54 {offsets = [0, 64], sizes = [8, 32], strides = [1, 1]} : vector<8x128xf32> to vector<8x32xf32>
    %68 = math.tanh %67 : vector<8x32xf32>
    %69 = vector.extract_strided_slice %54 {offsets = [0, 96], sizes = [8, 32], strides = [1, 1]} : vector<8x128xf32> to vector<8x32xf32>
    %70 = arith.negf %69 : vector<8x32xf32>
    %71 = math.exp %70 : vector<8x32xf32>
    %cst_28 = arith.constant 1.000000e+00 : f32
    %72 = vector.broadcast %cst_28 : f32 to vector<8x32xf32>
    %73 = arith.addf %72, %71 : vector<8x32xf32>
    %74 = arith.divf %72, %73 : vector<8x32xf32>
    %75 = arith.mulf %66, %42 : vector<8x32xf32>
    %76 = arith.mulf %60, %68 : vector<8x32xf32>
    %77 = arith.addf %75, %76 : vector<8x32xf32>
    %78 = math.tanh %77 : vector<8x32xf32>
    %79 = arith.mulf %74, %78 : vector<8x32xf32>
    %80 = arith.index_cast %c1_i32 : i32 to index
    %c0_29 = arith.constant 0 : index
    %c0_30 = arith.constant 0 : index
    %81 = vector.load %arg8[%80, %c0_29, %c0_30] : memref<8x8x32xf32, #tpu.memory_space<vmem>>, vector<1x8x32xf32>
    %82 = vector.shape_cast %81 : vector<1x8x32xf32> to vector<8x32xf32>
    %83 = vector.shape_cast %79 : vector<8x32xf32> to vector<1x8x32xf32>
    tpu.vector_store %arg8[%80, %c0_29, %c0_30], %83 {strides = array<i32>} : memref<8x8x32xf32, #tpu.memory_space<vmem>>, vector<1x8x32xf32>,
    %c2_i32 = arith.constant 2 : i32
    %c8_i32_31 = arith.constant 8 : i32
    %84 = arith.muli %c2_i32, %c8_i32_31 : i32
    %85 = tpu.assume_multiple %84, 8 : i32
    %86 = arith.index_cast %85 : i32 to index
    %c0_32 = arith.constant 0 : index
    %87 = vector.load %arg11[%86, %c0_32] : memref<64x128xf32, #tpu.memory_space<vmem>>, vector<8x128xf32>
    %cst_33 = arith.constant dense<0.000000e+00> : vector<8x128xf32>
    %88 = tpu.matmul %79, %11, %cst_33 {dimension_numbers = #tpu.dot_dimension_numbers<[1], [0], [0], [1], [0, 0, 1, 1], [], []>} : vector<8x32xf32>, vector<32x128xf32>, vector<8x128xf32> -> vector<8x128xf32>
    %89 = arith.addf %87, %88 : vector<8x128xf32>
    %90 = vector.extract_strided_slice %89 {offsets = [0, 0], sizes = [8, 32], strides = [1, 1]} : vector<8x128xf32> to vector<8x32xf32>
    %91 = arith.negf %90 : vector<8x32xf32>
    %92 = math.exp %91 : vector<8x32xf32>
    %cst_34 = arith.constant 1.000000e+00 : f32
    %93 = vector.broadcast %cst_34 : f32 to vector<8x32xf32>
    %94 = arith.addf %93, %92 : vector<8x32xf32>
    %95 = arith.divf %93, %94 : vector<8x32xf32>
    %96 = vector.extract_strided_slice %89 {offsets = [0, 32], sizes = [8, 32], strides = [1, 1]} : vector<8x128xf32> to vector<8x32xf32>
    %97 = arith.negf %96 : vector<8x32xf32>
    %98 = math.exp %97 : vector<8x32xf32>
    %cst_35 = arith.constant 1.000000e+00 : f32
    %99 = vector.broadcast %cst_35 : f32 to vector<8x32xf32>
    %100 = arith.addf %99, %98 : vector<8x32xf32>
    %101 = arith.divf %99, %100 : vector<8x32xf32>
    %102 = vector.extract_strided_slice %89 {offsets = [0, 64], sizes = [8, 32], strides = [1, 1]} : vector<8x128xf32> to vector<8x32xf32>
    %103 = math.tanh %102 : vector<8x32xf32>
    %104 = vector.extract_strided_slice %89 {offsets = [0, 96], sizes = [8, 32], strides = [1, 1]} : vector<8x128xf32> to vector<8x32xf32>
    %105 = arith.negf %104 : vector<8x32xf32>
    %106 = math.exp %105 : vector<8x32xf32>
    %cst_36 = arith.constant 1.000000e+00 : f32
    %107 = vector.broadcast %cst_36 : f32 to vector<8x32xf32>
    %108 = arith.addf %107, %106 : vector<8x32xf32>
    %109 = arith.divf %107, %108 : vector<8x32xf32>
    %110 = arith.mulf %101, %77 : vector<8x32xf32>
    %111 = arith.mulf %95, %103 : vector<8x32xf32>
    %112 = arith.addf %110, %111 : vector<8x32xf32>
    %113 = math.tanh %112 : vector<8x32xf32>
    %114 = arith.mulf %109, %113 : vector<8x32xf32>
    %115 = arith.index_cast %c2_i32 : i32 to index
    %c0_37 = arith.constant 0 : index
    %c0_38 = arith.constant 0 : index
    %116 = vector.load %arg8[%115, %c0_37, %c0_38] : memref<8x8x32xf32, #tpu.memory_space<vmem>>, vector<1x8x32xf32>
    %117 = vector.shape_cast %116 : vector<1x8x32xf32> to vector<8x32xf32>
    %118 = vector.shape_cast %114 : vector<8x32xf32> to vector<1x8x32xf32>
    tpu.vector_store %arg8[%115, %c0_37, %c0_38], %118 {strides = array<i32>} : memref<8x8x32xf32, #tpu.memory_space<vmem>>, vector<1x8x32xf32>,
    %c3_i32 = arith.constant 3 : i32
    %c8_i32_39 = arith.constant 8 : i32
    %119 = arith.muli %c3_i32, %c8_i32_39 : i32
    %120 = tpu.assume_multiple %119, 8 : i32
    %121 = arith.index_cast %120 : i32 to index
    %c0_40 = arith.constant 0 : index
    %122 = vector.load %arg11[%121, %c0_40] : memref<64x128xf32, #tpu.memory_space<vmem>>, vector<8x128xf32>
    %cst_41 = arith.constant dense<0.000000e+00> : vector<8x128xf32>
    %123 = tpu.matmul %114, %11, %cst_41 {dimension_numbers = #tpu.dot_dimension_numbers<[1], [0], [0], [1], [0, 0, 1, 1], [], []>} : vector<8x32xf32>, vector<32x128xf32>, vector<8x128xf32> -> vector<8x128xf32>
    %124 = arith.addf %122, %123 : vector<8x128xf32>
    %125 = vector.extract_strided_slice %124 {offsets = [0, 0], sizes = [8, 32], strides = [1, 1]} : vector<8x128xf32> to vector<8x32xf32>
    %126 = arith.negf %125 : vector<8x32xf32>
    %127 = math.exp %126 : vector<8x32xf32>
    %cst_42 = arith.constant 1.000000e+00 : f32
    %128 = vector.broadcast %cst_42 : f32 to vector<8x32xf32>
    %129 = arith.addf %128, %127 : vector<8x32xf32>
    %130 = arith.divf %128, %129 : vector<8x32xf32>
    %131 = vector.extract_strided_slice %124 {offsets = [0, 32], sizes = [8, 32], strides = [1, 1]} : vector<8x128xf32> to vector<8x32xf32>
    %132 = arith.negf %131 : vector<8x32xf32>
    %133 = math.exp %132 : vector<8x32xf32>
    %cst_43 = arith.constant 1.000000e+00 : f32
    %134 = vector.broadcast %cst_43 : f32 to vector<8x32xf32>
    %135 = arith.addf %134, %133 : vector<8x32xf32>
    %136 = arith.divf %134, %135 : vector<8x32xf32>
    %137 = vector.extract_strided_slice %124 {offsets = [0, 64], sizes = [8, 32], strides = [1, 1]} : vector<8x128xf32> to vector<8x32xf32>
    %138 = math.tanh %137 : vector<8x32xf32>
    %139 = vector.extract_strided_slice %124 {offsets = [0, 96], sizes = [8, 32], strides = [1, 1]} : vector<8x128xf32> to vector<8x32xf32>
    %140 = arith.negf %139 : vector<8x32xf32>
    %141 = math.exp %140 : vector<8x32xf32>
    %cst_44 = arith.constant 1.000000e+00 : f32
    %142 = vector.broadcast %cst_44 : f32 to vector<8x32xf32>
    %143 = arith.addf %142, %141 : vector<8x32xf32>
    %144 = arith.divf %142, %143 : vector<8x32xf32>
    %145 = arith.mulf %136, %112 : vector<8x32xf32>
    %146 = arith.mulf %130, %138 : vector<8x32xf32>
    %147 = arith.addf %145, %146 : vector<8x32xf32>
    %148 = math.tanh %147 : vector<8x32xf32>
    %149 = arith.mulf %144, %148 : vector<8x32xf32>
    %150 = arith.index_cast %c3_i32 : i32 to index
    %c0_45 = arith.constant 0 : index
    %c0_46 = arith.constant 0 : index
    %151 = vector.load %arg8[%150, %c0_45, %c0_46] : memref<8x8x32xf32, #tpu.memory_space<vmem>>, vector<1x8x32xf32>
    %152 = vector.shape_cast %151 : vector<1x8x32xf32> to vector<8x32xf32>
    %153 = vector.shape_cast %149 : vector<8x32xf32> to vector<1x8x32xf32>
    tpu.vector_store %arg8[%150, %c0_45, %c0_46], %153 {strides = array<i32>} : memref<8x8x32xf32, #tpu.memory_space<vmem>>, vector<1x8x32xf32>,
    %c4_i32 = arith.constant 4 : i32
    %c8_i32_47 = arith.constant 8 : i32
    %154 = arith.muli %c4_i32, %c8_i32_47 : i32
    %155 = tpu.assume_multiple %154, 8 : i32
    %156 = arith.index_cast %155 : i32 to index
    %c0_48 = arith.constant 0 : index
    %157 = vector.load %arg11[%156, %c0_48] : memref<64x128xf32, #tpu.memory_space<vmem>>, vector<8x128xf32>
    %cst_49 = arith.constant dense<0.000000e+00> : vector<8x128xf32>
    %158 = tpu.matmul %149, %11, %cst_49 {dimension_numbers = #tpu.dot_dimension_numbers<[1], [0], [0], [1], [0, 0, 1, 1], [], []>} : vector<8x32xf32>, vector<32x128xf32>, vector<8x128xf32> -> vector<8x128xf32>
    %159 = arith.addf %157, %158 : vector<8x128xf32>
    %160 = vector.extract_strided_slice %159 {offsets = [0, 0], sizes = [8, 32], strides = [1, 1]} : vector<8x128xf32> to vector<8x32xf32>
    %161 = arith.negf %160 : vector<8x32xf32>
    %162 = math.exp %161 : vector<8x32xf32>
    %cst_50 = arith.constant 1.000000e+00 : f32
    %163 = vector.broadcast %cst_50 : f32 to vector<8x32xf32>
    %164 = arith.addf %163, %162 : vector<8x32xf32>
    %165 = arith.divf %163, %164 : vector<8x32xf32>
    %166 = vector.extract_strided_slice %159 {offsets = [0, 32], sizes = [8, 32], strides = [1, 1]} : vector<8x128xf32> to vector<8x32xf32>
    %167 = arith.negf %166 : vector<8x32xf32>
    %168 = math.exp %167 : vector<8x32xf32>
    %cst_51 = arith.constant 1.000000e+00 : f32
    %169 = vector.broadcast %cst_51 : f32 to vector<8x32xf32>
    %170 = arith.addf %169, %168 : vector<8x32xf32>
    %171 = arith.divf %169, %170 : vector<8x32xf32>
    %172 = vector.extract_strided_slice %159 {offsets = [0, 64], sizes = [8, 32], strides = [1, 1]} : vector<8x128xf32> to vector<8x32xf32>
    %173 = math.tanh %172 : vector<8x32xf32>
    %174 = vector.extract_strided_slice %159 {offsets = [0, 96], sizes = [8, 32], strides = [1, 1]} : vector<8x128xf32> to vector<8x32xf32>
    %175 = arith.negf %174 : vector<8x32xf32>
    %176 = math.exp %175 : vector<8x32xf32>
    %cst_52 = arith.constant 1.000000e+00 : f32
    %177 = vector.broadcast %cst_52 : f32 to vector<8x32xf32>
    %178 = arith.addf %177, %176 : vector<8x32xf32>
    %179 = arith.divf %177, %178 : vector<8x32xf32>
    %180 = arith.mulf %171, %147 : vector<8x32xf32>
    %181 = arith.mulf %165, %173 : vector<8x32xf32>
    %182 = arith.addf %180, %181 : vector<8x32xf32>
    %183 = math.tanh %182 : vector<8x32xf32>
    %184 = arith.mulf %179, %183 : vector<8x32xf32>
    %185 = arith.index_cast %c4_i32 : i32 to index
    %c0_53 = arith.constant 0 : index
    %c0_54 = arith.constant 0 : index
    %186 = vector.load %arg8[%185, %c0_53, %c0_54] : memref<8x8x32xf32, #tpu.memory_space<vmem>>, vector<1x8x32xf32>
    %187 = vector.shape_cast %186 : vector<1x8x32xf32> to vector<8x32xf32>
    %188 = vector.shape_cast %184 : vector<8x32xf32> to vector<1x8x32xf32>
    tpu.vector_store %arg8[%185, %c0_53, %c0_54], %188 {strides = array<i32>} : memref<8x8x32xf32, #tpu.memory_space<vmem>>, vector<1x8x32xf32>,
    %c5_i32 = arith.constant 5 : i32
    %c8_i32_55 = arith.constant 8 : i32
    %189 = arith.muli %c5_i32, %c8_i32_55 : i32
    %190 = tpu.assume_multiple %189, 8 : i32
    %191 = arith.index_cast %190 : i32 to index
    %c0_56 = arith.constant 0 : index
    %192 = vector.load %arg11[%191, %c0_56] : memref<64x128xf32, #tpu.memory_space<vmem>>, vector<8x128xf32>
    %cst_57 = arith.constant dense<0.000000e+00> : vector<8x128xf32>
    %193 = tpu.matmul %184, %11, %cst_57 {dimension_numbers = #tpu.dot_dimension_numbers<[1], [0], [0], [1], [0, 0, 1, 1], [], []>} : vector<8x32xf32>, vector<32x128xf32>, vector<8x128xf32> -> vector<8x128xf32>
    %194 = arith.addf %192, %193 : vector<8x128xf32>
    %195 = vector.extract_strided_slice %194 {offsets = [0, 0], sizes = [8, 32], strides = [1, 1]} : vector<8x128xf32> to vector<8x32xf32>
    %196 = arith.negf %195 : vector<8x32xf32>
    %197 = math.exp %196 : vector<8x32xf32>
    %cst_58 = arith.constant 1.000000e+00 : f32
    %198 = vector.broadcast %cst_58 : f32 to vector<8x32xf32>
    %199 = arith.addf %198, %197 : vector<8x32xf32>
    %200 = arith.divf %198, %199 : vector<8x32xf32>
    %201 = vector.extract_strided_slice %194 {offsets = [0, 32], sizes = [8, 32], strides = [1, 1]} : vector<8x128xf32> to vector<8x32xf32>
    %202 = arith.negf %201 : vector<8x32xf32>
    %203 = math.exp %202 : vector<8x32xf32>
    %cst_59 = arith.constant 1.000000e+00 : f32
    %204 = vector.broadcast %cst_59 : f32 to vector<8x32xf32>
    %205 = arith.addf %204, %203 : vector<8x32xf32>
    %206 = arith.divf %204, %205 : vector<8x32xf32>
    %207 = vector.extract_strided_slice %194 {offsets = [0, 64], sizes = [8, 32], strides = [1, 1]} : vector<8x128xf32> to vector<8x32xf32>
    %208 = math.tanh %207 : vector<8x32xf32>
    %209 = vector.extract_strided_slice %194 {offsets = [0, 96], sizes = [8, 32], strides = [1, 1]} : vector<8x128xf32> to vector<8x32xf32>
    %210 = arith.negf %209 : vector<8x32xf32>
    %211 = math.exp %210 : vector<8x32xf32>
    %cst_60 = arith.constant 1.000000e+00 : f32
    %212 = vector.broadcast %cst_60 : f32 to vector<8x32xf32>
    %213 = arith.addf %212, %211 : vector<8x32xf32>
    %214 = arith.divf %212, %213 : vector<8x32xf32>
    %215 = arith.mulf %206, %182 : vector<8x32xf32>
    %216 = arith.mulf %200, %208 : vector<8x32xf32>
    %217 = arith.addf %215, %216 : vector<8x32xf32>
    %218 = math.tanh %217 : vector<8x32xf32>
    %219 = arith.mulf %214, %218 : vector<8x32xf32>
    %220 = arith.index_cast %c5_i32 : i32 to index
    %c0_61 = arith.constant 0 : index
    %c0_62 = arith.constant 0 : index
    %221 = vector.load %arg8[%220, %c0_61, %c0_62] : memref<8x8x32xf32, #tpu.memory_space<vmem>>, vector<1x8x32xf32>
    %222 = vector.shape_cast %221 : vector<1x8x32xf32> to vector<8x32xf32>
    %223 = vector.shape_cast %219 : vector<8x32xf32> to vector<1x8x32xf32>
    tpu.vector_store %arg8[%220, %c0_61, %c0_62], %223 {strides = array<i32>} : memref<8x8x32xf32, #tpu.memory_space<vmem>>, vector<1x8x32xf32>,
    %c6_i32 = arith.constant 6 : i32
    %c8_i32_63 = arith.constant 8 : i32
    %224 = arith.muli %c6_i32, %c8_i32_63 : i32
    %225 = tpu.assume_multiple %224, 8 : i32
    %226 = arith.index_cast %225 : i32 to index
    %c0_64 = arith.constant 0 : index
    %227 = vector.load %arg11[%226, %c0_64] : memref<64x128xf32, #tpu.memory_space<vmem>>, vector<8x128xf32>
    %cst_65 = arith.constant dense<0.000000e+00> : vector<8x128xf32>
    %228 = tpu.matmul %219, %11, %cst_65 {dimension_numbers = #tpu.dot_dimension_numbers<[1], [0], [0], [1], [0, 0, 1, 1], [], []>} : vector<8x32xf32>, vector<32x128xf32>, vector<8x128xf32> -> vector<8x128xf32>
    %229 = arith.addf %227, %228 : vector<8x128xf32>
    %230 = vector.extract_strided_slice %229 {offsets = [0, 0], sizes = [8, 32], strides = [1, 1]} : vector<8x128xf32> to vector<8x32xf32>
    %231 = arith.negf %230 : vector<8x32xf32>
    %232 = math.exp %231 : vector<8x32xf32>
    %cst_66 = arith.constant 1.000000e+00 : f32
    %233 = vector.broadcast %cst_66 : f32 to vector<8x32xf32>
    %234 = arith.addf %233, %232 : vector<8x32xf32>
    %235 = arith.divf %233, %234 : vector<8x32xf32>
    %236 = vector.extract_strided_slice %229 {offsets = [0, 32], sizes = [8, 32], strides = [1, 1]} : vector<8x128xf32> to vector<8x32xf32>
    %237 = arith.negf %236 : vector<8x32xf32>
    %238 = math.exp %237 : vector<8x32xf32>
    %cst_67 = arith.constant 1.000000e+00 : f32
    %239 = vector.broadcast %cst_67 : f32 to vector<8x32xf32>
    %240 = arith.addf %239, %238 : vector<8x32xf32>
    %241 = arith.divf %239, %240 : vector<8x32xf32>
    %242 = vector.extract_strided_slice %229 {offsets = [0, 64], sizes = [8, 32], strides = [1, 1]} : vector<8x128xf32> to vector<8x32xf32>
    %243 = math.tanh %242 : vector<8x32xf32>
    %244 = vector.extract_strided_slice %229 {offsets = [0, 96], sizes = [8, 32], strides = [1, 1]} : vector<8x128xf32> to vector<8x32xf32>
    %245 = arith.negf %244 : vector<8x32xf32>
    %246 = math.exp %245 : vector<8x32xf32>
    %cst_68 = arith.constant 1.000000e+00 : f32
    %247 = vector.broadcast %cst_68 : f32 to vector<8x32xf32>
    %248 = arith.addf %247, %246 : vector<8x32xf32>
    %249 = arith.divf %247, %248 : vector<8x32xf32>
    %250 = arith.mulf %241, %217 : vector<8x32xf32>
    %251 = arith.mulf %235, %243 : vector<8x32xf32>
    %252 = arith.addf %250, %251 : vector<8x32xf32>
    %253 = math.tanh %252 : vector<8x32xf32>
    %254 = arith.mulf %249, %253 : vector<8x32xf32>
    %255 = arith.index_cast %c6_i32 : i32 to index
    %c0_69 = arith.constant 0 : index
    %c0_70 = arith.constant 0 : index
    %256 = vector.load %arg8[%255, %c0_69, %c0_70] : memref<8x8x32xf32, #tpu.memory_space<vmem>>, vector<1x8x32xf32>
    %257 = vector.shape_cast %256 : vector<1x8x32xf32> to vector<8x32xf32>
    %258 = vector.shape_cast %254 : vector<8x32xf32> to vector<1x8x32xf32>
    tpu.vector_store %arg8[%255, %c0_69, %c0_70], %258 {strides = array<i32>} : memref<8x8x32xf32, #tpu.memory_space<vmem>>, vector<1x8x32xf32>,
    %c7_i32 = arith.constant 7 : i32
    %c8_i32_71 = arith.constant 8 : i32
    %259 = arith.muli %c7_i32, %c8_i32_71 : i32
    %260 = tpu.assume_multiple %259, 8 : i32
    %261 = arith.index_cast %260 : i32 to index
    %c0_72 = arith.constant 0 : index
    %262 = vector.load %arg11[%261, %c0_72] : memref<64x128xf32, #tpu.memory_space<vmem>>, vector<8x128xf32>
    %cst_73 = arith.constant dense<0.000000e+00> : vector<8x128xf32>
    %263 = tpu.matmul %254, %11, %cst_73 {dimension_numbers = #tpu.dot_dimension_numbers<[1], [0], [0], [1], [0, 0, 1, 1], [], []>} : vector<8x32xf32>, vector<32x128xf32>, vector<8x128xf32> -> vector<8x128xf32>
    %264 = arith.addf %262, %263 : vector<8x128xf32>
    %265 = vector.extract_strided_slice %264 {offsets = [0, 0], sizes = [8, 32], strides = [1, 1]} : vector<8x128xf32> to vector<8x32xf32>
    %266 = arith.negf %265 : vector<8x32xf32>
    %267 = math.exp %266 : vector<8x32xf32>
    %cst_74 = arith.constant 1.000000e+00 : f32
    %268 = vector.broadcast %cst_74 : f32 to vector<8x32xf32>
    %269 = arith.addf %268, %267 : vector<8x32xf32>
    %270 = arith.divf %268, %269 : vector<8x32xf32>
    %271 = vector.extract_strided_slice %264 {offsets = [0, 32], sizes = [8, 32], strides = [1, 1]} : vector<8x128xf32> to vector<8x32xf32>
    %272 = arith.negf %271 : vector<8x32xf32>
    %273 = math.exp %272 : vector<8x32xf32>
    %cst_75 = arith.constant 1.000000e+00 : f32
    %274 = vector.broadcast %cst_75 : f32 to vector<8x32xf32>
    %275 = arith.addf %274, %273 : vector<8x32xf32>
    %276 = arith.divf %274, %275 : vector<8x32xf32>
    %277 = vector.extract_strided_slice %264 {offsets = [0, 64], sizes = [8, 32], strides = [1, 1]} : vector<8x128xf32> to vector<8x32xf32>
    %278 = math.tanh %277 : vector<8x32xf32>
    %279 = vector.extract_strided_slice %264 {offsets = [0, 96], sizes = [8, 32], strides = [1, 1]} : vector<8x128xf32> to vector<8x32xf32>
    %280 = arith.negf %279 : vector<8x32xf32>
    %281 = math.exp %280 : vector<8x32xf32>
    %cst_76 = arith.constant 1.000000e+00 : f32
    %282 = vector.broadcast %cst_76 : f32 to vector<8x32xf32>
    %283 = arith.addf %282, %281 : vector<8x32xf32>
    %284 = arith.divf %282, %283 : vector<8x32xf32>
    %285 = arith.mulf %276, %252 : vector<8x32xf32>
    %286 = arith.mulf %270, %278 : vector<8x32xf32>
    %287 = arith.addf %285, %286 : vector<8x32xf32>
    %288 = math.tanh %287 : vector<8x32xf32>
    %289 = arith.mulf %284, %288 : vector<8x32xf32>
    %290 = arith.index_cast %c7_i32 : i32 to index
    %c0_77 = arith.constant 0 : index
    %c0_78 = arith.constant 0 : index
    %291 = vector.load %arg8[%290, %c0_77, %c0_78] : memref<8x8x32xf32, #tpu.memory_space<vmem>>, vector<1x8x32xf32>
    %292 = vector.shape_cast %291 : vector<1x8x32xf32> to vector<8x32xf32>
    %293 = vector.shape_cast %289 : vector<8x32xf32> to vector<1x8x32xf32>
    tpu.vector_store %arg8[%290, %c0_77, %c0_78], %293 {strides = array<i32>} : memref<8x8x32xf32, #tpu.memory_space<vmem>>, vector<1x8x32xf32>,
    %c8_i32_79 = arith.constant 8 : i32
    %c0_80 = arith.constant 0 : index
    %c0_81 = arith.constant 0 : index
    %294 = vector.load %arg12[%c0_80, %c0_81] : memref<8x32xf32, #tpu.memory_space<vmem>>, vector<8x32xf32>
    tpu.vector_store %arg12[%c0_80, %c0_81], %289 {strides = array<i32>} : memref<8x32xf32, #tpu.memory_space<vmem>>, vector<8x32xf32>,
    %c0_82 = arith.constant 0 : index
    %c0_83 = arith.constant 0 : index
    %295 = vector.load %arg13[%c0_82, %c0_83] : memref<8x32xf32, #tpu.memory_space<vmem>>, vector<8x32xf32>
    tpu.vector_store %arg13[%c0_82, %c0_83], %287 {strides = array<i32>} : memref<8x32xf32, #tpu.memory_space<vmem>>, vector<8x32xf32>,
    %c0_i32_84 = arith.constant 0 : i32
    %296 = arith.cmpi eq, %arg1, %c0_i32_84 : i32
    %297 = arith.extui %296 : i1 to i32
    %c0_i32_85 = arith.constant 0 : i32
    %298 = arith.cmpi ne, %297, %c0_i32_85 : i32
    scf.if %298 {
      %c0_86 = arith.constant 0 : index
      %c0_87 = arith.constant 0 : index
      %299 = vector.load %arg9[%c0_86, %c0_87] : memref<8x32xf32, #tpu.memory_space<vmem>>, vector<8x32xf32>
      tpu.vector_store %arg9[%c0_86, %c0_87], %289 {strides = array<i32>} : memref<8x32xf32, #tpu.memory_space<vmem>>, vector<8x32xf32>,
      %c0_88 = arith.constant 0 : index
      %c0_89 = arith.constant 0 : index
      %300 = vector.load %arg10[%c0_88, %c0_89] : memref<8x32xf32, #tpu.memory_space<vmem>>, vector<8x32xf32>
      tpu.vector_store %arg10[%c0_88, %c0_89], %287 {strides = array<i32>} : memref<8x32xf32, #tpu.memory_space<vmem>>, vector<8x32xf32>,
    } else {
    }
    return
  }
  func.func @transform_0(%arg0: i32, %arg1: i32) -> (i32, i32, i32) {
    %c0_i32 = arith.constant 0 : i32
    %c0_i32_0 = arith.constant 0 : i32
    return %arg1, %arg0, %c0_i32 : i32, i32, i32
  }
  func.func @transform_1(%arg0: i32, %arg1: i32) -> (i32, i32) {
    %c0_i32 = arith.constant 0 : i32
    %c0_i32_0 = arith.constant 0 : i32
    return %arg0, %c0_i32 : i32, i32
  }
  func.func @transform_2(%arg0: i32, %arg1: i32) -> (i32, i32) {
    %c0_i32 = arith.constant 0 : i32
    %c0_i32_0 = arith.constant 0 : i32
    return %arg0, %c0_i32 : i32, i32
  }
  func.func @transform_3(%arg0: i32, %arg1: i32) -> (i32, i32) {
    %c0_i32 = arith.constant 0 : i32
    %c0_i32_0 = arith.constant 0 : i32
    %c0_i32_1 = arith.constant 0 : i32
    return %c0_i32, %c0_i32_0 : i32, i32
  }
  func.func @transform_4(%arg0: i32, %arg1: i32) -> (i32, i32) {
    %c0_i32 = arith.constant 0 : i32
    %c0_i32_0 = arith.constant 0 : i32
    %c0_i32_1 = arith.constant 0 : i32
    return %c0_i32, %c0_i32_0 : i32, i32
  }
  func.func @transform_5(%arg0: i32, %arg1: i32) -> (i32, i32) {
    %c0_i32 = arith.constant 0 : i32
    %c0_i32_0 = arith.constant 0 : i32
    %c0_i32_1 = arith.constant 0 : i32
    return %c0_i32, %c0_i32_0 : i32, i32
  }
  func.func @transform_6(%arg0: i32, %arg1: i32) -> (i32, i32, i32) {
    %c0_i32 = arith.constant 0 : i32
    %c0_i32_0 = arith.constant 0 : i32
    return %arg1, %arg0, %c0_i32 : i32, i32, i32
  }
  func.func @transform_7(%arg0: i32, %arg1: i32) -> (i32, i32) {
    %c0_i32 = arith.constant 0 : i32
    %c0_i32_0 = arith.constant 0 : i32
    return %arg0, %c0_i32 : i32, i32
  }
  func.func @transform_8(%arg0: i32, %arg1: i32) -> (i32, i32) {
    %c0_i32 = arith.constant 0 : i32
    %c0_i32_0 = arith.constant 0 : i32
    return %arg0, %c0_i32 : i32, i32
  }
}

module attributes {stable_mosaic.version = 11 : i64} {
  func.func @kernel(%arg0: i32, %arg1: i32, %arg2: memref<8x8x32xf32, #tpu.memory_space<vmem>>, %arg3: memref<8x32xf32, #tpu.memory_space<vmem>>, %arg4: memref<8x32xf32, #tpu.memory_space<vmem>>, %arg5: memref<32x128xf32, #tpu.memory_space<vmem>>, %arg6: memref<32x128xf32, #tpu.memory_space<vmem>>, %arg7: memref<1x128xf32, #tpu.memory_space<vmem>>, %arg8: memref<32x64xf32, #tpu.memory_space<vmem>>, %arg9: memref<1x64xf32, #tpu.memory_space<vmem>>, %arg10: memref<8x8x32xf32, #tpu.memory_space<vmem>>, %arg11: memref<8x32xf32, #tpu.memory_space<vmem>>, %arg12: memref<8x32xf32, #tpu.memory_space<vmem>>, %arg13: memref<8x64xf32, #tpu.memory_space<vmem>>, %arg14: memref<64x128xf32, #tpu.memory_space<vmem>>, %arg15: memref<8x32xf32, #tpu.memory_space<vmem>>, %arg16: memref<8x32xf32, #tpu.memory_space<vmem>>) attributes {dimension_semantics = [#tpu.dimension_semantics<parallel>, #tpu.dimension_semantics<arbitrary>], iteration_bounds = array<i64: 1, 1>, scalar_prefetch = 0 : i64, scratch_operands = 3 : i64, tpu.core_type = #tpu.core_type<tc>, window_params = [{transform_indices = @transform_0, window_bounds = array<i64: 8, 8, 32>}, {transform_indices = @transform_1, window_bounds = array<i64: 8, 32>}, {transform_indices = @transform_2, window_bounds = array<i64: 8, 32>}, {pipeline_mode = #tpu.pipeline_mode<synchronous>, transform_indices = @transform_3, window_bounds = array<i64: 32, 128>}, {pipeline_mode = #tpu.pipeline_mode<synchronous>, transform_indices = @transform_4, window_bounds = array<i64: 32, 128>}, {pipeline_mode = #tpu.pipeline_mode<synchronous>, transform_indices = @transform_5, window_bounds = array<i64: 1, 128>}, {pipeline_mode = #tpu.pipeline_mode<synchronous>, transform_indices = @transform_6, window_bounds = array<i64: 32, 64>}, {pipeline_mode = #tpu.pipeline_mode<synchronous>, transform_indices = @transform_7, window_bounds = array<i64: 1, 64>}, {transform_indices = @transform_8, window_bounds = array<i64: 8, 8, 32>}, {transform_indices = @transform_9, window_bounds = array<i64: 8, 32>}, {transform_indices = @transform_10, window_bounds = array<i64: 8, 32>}, {transform_indices = @transform_11, window_bounds = array<i64: 8, 64>}]} {
    %c0_i32 = arith.constant 0 : i32
    %0 = arith.cmpi eq, %arg1, %c0_i32 : i32
    %1 = arith.extui %0 : i1 to i32
    %c0_i32_0 = arith.constant 0 : i32
    %2 = arith.cmpi ne, %1, %c0_i32_0 : i32
    scf.if %2 {
      %c0_86 = arith.constant 0 : index
      %c0_87 = arith.constant 0 : index
      %299 = vector.load %arg3[%c0_86, %c0_87] : memref<8x32xf32, #tpu.memory_space<vmem>>, vector<8x32xf32>
      %c0_88 = arith.constant 0 : index
      %c0_89 = arith.constant 0 : index
      %300 = vector.load %arg15[%c0_88, %c0_89] : memref<8x32xf32, #tpu.memory_space<vmem>>, vector<8x32xf32>
      tpu.vector_store %arg15[%c0_88, %c0_89], %299 {strides = array<i32>} : memref<8x32xf32, #tpu.memory_space<vmem>>, vector<8x32xf32>,
      %c0_90 = arith.constant 0 : index
      %c0_91 = arith.constant 0 : index
      %301 = vector.load %arg4[%c0_90, %c0_91] : memref<8x32xf32, #tpu.memory_space<vmem>>, vector<8x32xf32>
      %c0_92 = arith.constant 0 : index
      %c0_93 = arith.constant 0 : index
      %302 = vector.load %arg16[%c0_92, %c0_93] : memref<8x32xf32, #tpu.memory_space<vmem>>, vector<8x32xf32>
      tpu.vector_store %arg16[%c0_92, %c0_93], %301 {strides = array<i32>} : memref<8x32xf32, #tpu.memory_space<vmem>>, vector<8x32xf32>,
    } else {
    }
    %c0 = arith.constant 0 : index
    %c0_1 = arith.constant 0 : index
    %3 = vector.load %arg5[%c0, %c0_1] : memref<32x128xf32, #tpu.memory_space<vmem>>, vector<32x128xf32>
    %c0_2 = arith.constant 0 : index
    %c0_3 = arith.constant 0 : index
    %c0_4 = arith.constant 0 : index
    %4 = vector.load %arg2[%c0_2, %c0_3, %c0_4] : memref<8x8x32xf32, #tpu.memory_space<vmem>>, vector<8x8x32xf32>
    %5 = vector.shape_cast %4 : vector<8x8x32xf32> to vector<64x32xf32>
    %cst = arith.constant dense<0.000000e+00> : vector<64x128xf32>
    %6 = tpu.matmul %5, %3, %cst {dimension_numbers = #tpu.dot_dimension_numbers<[1], [0], [0], [1], [0, 0, 1, 1], [], []>} : vector<64x32xf32>, vector<32x128xf32>, vector<64x128xf32> -> vector<64x128xf32>
    %c0_5 = arith.constant 0 : index
    %c0_6 = arith.constant 0 : index
    %7 = vector.load %arg7[%c0_5, %c0_6] : memref<1x128xf32, #tpu.memory_space<vmem>>, vector<1x128xf32>
    %8 = vector.broadcast %7 : vector<1x128xf32> to vector<64x128xf32>
    %9 = arith.addf %6, %8 : vector<64x128xf32>
    %c0_7 = arith.constant 0 : index
    %c0_8 = arith.constant 0 : index
    %10 = vector.load %arg14[%c0_7, %c0_8] : memref<64x128xf32, #tpu.memory_space<vmem>>, vector<64x128xf32>
    tpu.vector_store %arg14[%c0_7, %c0_8], %9 {strides = array<i32>} : memref<64x128xf32, #tpu.memory_space<vmem>>, vector<64x128xf32>,
    %c0_9 = arith.constant 0 : index
    %c0_10 = arith.constant 0 : index
    %11 = vector.load %arg6[%c0_9, %c0_10] : memref<32x128xf32, #tpu.memory_space<vmem>>, vector<32x128xf32>
    %c0_11 = arith.constant 0 : index
    %c0_12 = arith.constant 0 : index
    %12 = vector.load %arg15[%c0_11, %c0_12] : memref<8x32xf32, #tpu.memory_space<vmem>>, vector<8x32xf32>
    %c0_13 = arith.constant 0 : index
    %c0_14 = arith.constant 0 : index
    %13 = vector.load %arg16[%c0_13, %c0_14] : memref<8x32xf32, #tpu.memory_space<vmem>>, vector<8x32xf32>
    %c0_i32_15 = arith.constant 0 : i32
    %c8_i32 = arith.constant 8 : i32
    %14 = arith.muli %c0_i32_15, %c8_i32 : i32
    %15 = tpu.assume_multiple %14, 8 : i32
    %16 = arith.index_cast %15 : i32 to index
    %c0_16 = arith.constant 0 : index
    %17 = vector.load %arg14[%16, %c0_16] : memref<64x128xf32, #tpu.memory_space<vmem>>, vector<8x128xf32>
    %cst_17 = arith.constant dense<0.000000e+00> : vector<8x128xf32>
    %18 = tpu.matmul %12, %11, %cst_17 {dimension_numbers = #tpu.dot_dimension_numbers<[1], [0], [0], [1], [0, 0, 1, 1], [], []>} : vector<8x32xf32>, vector<32x128xf32>, vector<8x128xf32> -> vector<8x128xf32>
    %19 = arith.addf %17, %18 : vector<8x128xf32>
    %20 = vector.extract_strided_slice %19 {offsets = [0, 0], sizes = [8, 32], strides = [1, 1]} : vector<8x128xf32> to vector<8x32xf32>
    %21 = arith.negf %20 : vector<8x32xf32>
    %22 = math.exp %21 : vector<8x32xf32>
    %cst_18 = arith.constant 1.000000e+00 : f32
    %23 = vector.broadcast %cst_18 : f32 to vector<8x32xf32>
    %24 = arith.addf %23, %22 : vector<8x32xf32>
    %25 = arith.divf %23, %24 : vector<8x32xf32>
    %26 = vector.extract_strided_slice %19 {offsets = [0, 32], sizes = [8, 32], strides = [1, 1]} : vector<8x128xf32> to vector<8x32xf32>
    %27 = arith.negf %26 : vector<8x32xf32>
    %28 = math.exp %27 : vector<8x32xf32>
    %cst_19 = arith.constant 1.000000e+00 : f32
    %29 = vector.broadcast %cst_19 : f32 to vector<8x32xf32>
    %30 = arith.addf %29, %28 : vector<8x32xf32>
    %31 = arith.divf %29, %30 : vector<8x32xf32>
    %32 = vector.extract_strided_slice %19 {offsets = [0, 64], sizes = [8, 32], strides = [1, 1]} : vector<8x128xf32> to vector<8x32xf32>
    %33 = math.tanh %32 : vector<8x32xf32>
    %34 = vector.extract_strided_slice %19 {offsets = [0, 96], sizes = [8, 32], strides = [1, 1]} : vector<8x128xf32> to vector<8x32xf32>
    %35 = arith.negf %34 : vector<8x32xf32>
    %36 = math.exp %35 : vector<8x32xf32>
    %cst_20 = arith.constant 1.000000e+00 : f32
    %37 = vector.broadcast %cst_20 : f32 to vector<8x32xf32>
    %38 = arith.addf %37, %36 : vector<8x32xf32>
    %39 = arith.divf %37, %38 : vector<8x32xf32>
    %40 = arith.mulf %31, %13 : vector<8x32xf32>
    %41 = arith.mulf %25, %33 : vector<8x32xf32>
    %42 = arith.addf %40, %41 : vector<8x32xf32>
    %43 = math.tanh %42 : vector<8x32xf32>
    %44 = arith.mulf %39, %43 : vector<8x32xf32>
    %45 = arith.index_cast %c0_i32_15 : i32 to index
    %c0_21 = arith.constant 0 : index
    %c0_22 = arith.constant 0 : index
    %46 = vector.load %arg10[%45, %c0_21, %c0_22] : memref<8x8x32xf32, #tpu.memory_space<vmem>>, vector<1x8x32xf32>
    %47 = vector.shape_cast %46 : vector<1x8x32xf32> to vector<8x32xf32>
    %48 = vector.shape_cast %44 : vector<8x32xf32> to vector<1x8x32xf32>
    tpu.vector_store %arg10[%45, %c0_21, %c0_22], %48 {strides = array<i32>} : memref<8x8x32xf32, #tpu.memory_space<vmem>>, vector<1x8x32xf32>,
    %c1_i32 = arith.constant 1 : i32
    %c8_i32_23 = arith.constant 8 : i32
    %49 = arith.muli %c1_i32, %c8_i32_23 : i32
    %50 = tpu.assume_multiple %49, 8 : i32
    %51 = arith.index_cast %50 : i32 to index
    %c0_24 = arith.constant 0 : index
    %52 = vector.load %arg14[%51, %c0_24] : memref<64x128xf32, #tpu.memory_space<vmem>>, vector<8x128xf32>
    %cst_25 = arith.constant dense<0.000000e+00> : vector<8x128xf32>
    %53 = tpu.matmul %44, %11, %cst_25 {dimension_numbers = #tpu.dot_dimension_numbers<[1], [0], [0], [1], [0, 0, 1, 1], [], []>} : vector<8x32xf32>, vector<32x128xf32>, vector<8x128xf32> -> vector<8x128xf32>
    %54 = arith.addf %52, %53 : vector<8x128xf32>
    %55 = vector.extract_strided_slice %54 {offsets = [0, 0], sizes = [8, 32], strides = [1, 1]} : vector<8x128xf32> to vector<8x32xf32>
    %56 = arith.negf %55 : vector<8x32xf32>
    %57 = math.exp %56 : vector<8x32xf32>
    %cst_26 = arith.constant 1.000000e+00 : f32
    %58 = vector.broadcast %cst_26 : f32 to vector<8x32xf32>
    %59 = arith.addf %58, %57 : vector<8x32xf32>
    %60 = arith.divf %58, %59 : vector<8x32xf32>
    %61 = vector.extract_strided_slice %54 {offsets = [0, 32], sizes = [8, 32], strides = [1, 1]} : vector<8x128xf32> to vector<8x32xf32>
    %62 = arith.negf %61 : vector<8x32xf32>
    %63 = math.exp %62 : vector<8x32xf32>
    %cst_27 = arith.constant 1.000000e+00 : f32
    %64 = vector.broadcast %cst_27 : f32 to vector<8x32xf32>
    %65 = arith.addf %64, %63 : vector<8x32xf32>
    %66 = arith.divf %64, %65 : vector<8x32xf32>
    %67 = vector.extract_strided_slice %54 {offsets = [0, 64], sizes = [8, 32], strides = [1, 1]} : vector<8x128xf32> to vector<8x32xf32>
    %68 = math.tanh %67 : vector<8x32xf32>
    %69 = vector.extract_strided_slice %54 {offsets = [0, 96], sizes = [8, 32], strides = [1, 1]} : vector<8x128xf32> to vector<8x32xf32>
    %70 = arith.negf %69 : vector<8x32xf32>
    %71 = math.exp %70 : vector<8x32xf32>
    %cst_28 = arith.constant 1.000000e+00 : f32
    %72 = vector.broadcast %cst_28 : f32 to vector<8x32xf32>
    %73 = arith.addf %72, %71 : vector<8x32xf32>
    %74 = arith.divf %72, %73 : vector<8x32xf32>
    %75 = arith.mulf %66, %42 : vector<8x32xf32>
    %76 = arith.mulf %60, %68 : vector<8x32xf32>
    %77 = arith.addf %75, %76 : vector<8x32xf32>
    %78 = math.tanh %77 : vector<8x32xf32>
    %79 = arith.mulf %74, %78 : vector<8x32xf32>
    %80 = arith.index_cast %c1_i32 : i32 to index
    %c0_29 = arith.constant 0 : index
    %c0_30 = arith.constant 0 : index
    %81 = vector.load %arg10[%80, %c0_29, %c0_30] : memref<8x8x32xf32, #tpu.memory_space<vmem>>, vector<1x8x32xf32>
    %82 = vector.shape_cast %81 : vector<1x8x32xf32> to vector<8x32xf32>
    %83 = vector.shape_cast %79 : vector<8x32xf32> to vector<1x8x32xf32>
    tpu.vector_store %arg10[%80, %c0_29, %c0_30], %83 {strides = array<i32>} : memref<8x8x32xf32, #tpu.memory_space<vmem>>, vector<1x8x32xf32>,
    %c2_i32 = arith.constant 2 : i32
    %c8_i32_31 = arith.constant 8 : i32
    %84 = arith.muli %c2_i32, %c8_i32_31 : i32
    %85 = tpu.assume_multiple %84, 8 : i32
    %86 = arith.index_cast %85 : i32 to index
    %c0_32 = arith.constant 0 : index
    %87 = vector.load %arg14[%86, %c0_32] : memref<64x128xf32, #tpu.memory_space<vmem>>, vector<8x128xf32>
    %cst_33 = arith.constant dense<0.000000e+00> : vector<8x128xf32>
    %88 = tpu.matmul %79, %11, %cst_33 {dimension_numbers = #tpu.dot_dimension_numbers<[1], [0], [0], [1], [0, 0, 1, 1], [], []>} : vector<8x32xf32>, vector<32x128xf32>, vector<8x128xf32> -> vector<8x128xf32>
    %89 = arith.addf %87, %88 : vector<8x128xf32>
    %90 = vector.extract_strided_slice %89 {offsets = [0, 0], sizes = [8, 32], strides = [1, 1]} : vector<8x128xf32> to vector<8x32xf32>
    %91 = arith.negf %90 : vector<8x32xf32>
    %92 = math.exp %91 : vector<8x32xf32>
    %cst_34 = arith.constant 1.000000e+00 : f32
    %93 = vector.broadcast %cst_34 : f32 to vector<8x32xf32>
    %94 = arith.addf %93, %92 : vector<8x32xf32>
    %95 = arith.divf %93, %94 : vector<8x32xf32>
    %96 = vector.extract_strided_slice %89 {offsets = [0, 32], sizes = [8, 32], strides = [1, 1]} : vector<8x128xf32> to vector<8x32xf32>
    %97 = arith.negf %96 : vector<8x32xf32>
    %98 = math.exp %97 : vector<8x32xf32>
    %cst_35 = arith.constant 1.000000e+00 : f32
    %99 = vector.broadcast %cst_35 : f32 to vector<8x32xf32>
    %100 = arith.addf %99, %98 : vector<8x32xf32>
    %101 = arith.divf %99, %100 : vector<8x32xf32>
    %102 = vector.extract_strided_slice %89 {offsets = [0, 64], sizes = [8, 32], strides = [1, 1]} : vector<8x128xf32> to vector<8x32xf32>
    %103 = math.tanh %102 : vector<8x32xf32>
    %104 = vector.extract_strided_slice %89 {offsets = [0, 96], sizes = [8, 32], strides = [1, 1]} : vector<8x128xf32> to vector<8x32xf32>
    %105 = arith.negf %104 : vector<8x32xf32>
    %106 = math.exp %105 : vector<8x32xf32>
    %cst_36 = arith.constant 1.000000e+00 : f32
    %107 = vector.broadcast %cst_36 : f32 to vector<8x32xf32>
    %108 = arith.addf %107, %106 : vector<8x32xf32>
    %109 = arith.divf %107, %108 : vector<8x32xf32>
    %110 = arith.mulf %101, %77 : vector<8x32xf32>
    %111 = arith.mulf %95, %103 : vector<8x32xf32>
    %112 = arith.addf %110, %111 : vector<8x32xf32>
    %113 = math.tanh %112 : vector<8x32xf32>
    %114 = arith.mulf %109, %113 : vector<8x32xf32>
    %115 = arith.index_cast %c2_i32 : i32 to index
    %c0_37 = arith.constant 0 : index
    %c0_38 = arith.constant 0 : index
    %116 = vector.load %arg10[%115, %c0_37, %c0_38] : memref<8x8x32xf32, #tpu.memory_space<vmem>>, vector<1x8x32xf32>
    %117 = vector.shape_cast %116 : vector<1x8x32xf32> to vector<8x32xf32>
    %118 = vector.shape_cast %114 : vector<8x32xf32> to vector<1x8x32xf32>
    tpu.vector_store %arg10[%115, %c0_37, %c0_38], %118 {strides = array<i32>} : memref<8x8x32xf32, #tpu.memory_space<vmem>>, vector<1x8x32xf32>,
    %c3_i32 = arith.constant 3 : i32
    %c8_i32_39 = arith.constant 8 : i32
    %119 = arith.muli %c3_i32, %c8_i32_39 : i32
    %120 = tpu.assume_multiple %119, 8 : i32
    %121 = arith.index_cast %120 : i32 to index
    %c0_40 = arith.constant 0 : index
    %122 = vector.load %arg14[%121, %c0_40] : memref<64x128xf32, #tpu.memory_space<vmem>>, vector<8x128xf32>
    %cst_41 = arith.constant dense<0.000000e+00> : vector<8x128xf32>
    %123 = tpu.matmul %114, %11, %cst_41 {dimension_numbers = #tpu.dot_dimension_numbers<[1], [0], [0], [1], [0, 0, 1, 1], [], []>} : vector<8x32xf32>, vector<32x128xf32>, vector<8x128xf32> -> vector<8x128xf32>
    %124 = arith.addf %122, %123 : vector<8x128xf32>
    %125 = vector.extract_strided_slice %124 {offsets = [0, 0], sizes = [8, 32], strides = [1, 1]} : vector<8x128xf32> to vector<8x32xf32>
    %126 = arith.negf %125 : vector<8x32xf32>
    %127 = math.exp %126 : vector<8x32xf32>
    %cst_42 = arith.constant 1.000000e+00 : f32
    %128 = vector.broadcast %cst_42 : f32 to vector<8x32xf32>
    %129 = arith.addf %128, %127 : vector<8x32xf32>
    %130 = arith.divf %128, %129 : vector<8x32xf32>
    %131 = vector.extract_strided_slice %124 {offsets = [0, 32], sizes = [8, 32], strides = [1, 1]} : vector<8x128xf32> to vector<8x32xf32>
    %132 = arith.negf %131 : vector<8x32xf32>
    %133 = math.exp %132 : vector<8x32xf32>
    %cst_43 = arith.constant 1.000000e+00 : f32
    %134 = vector.broadcast %cst_43 : f32 to vector<8x32xf32>
    %135 = arith.addf %134, %133 : vector<8x32xf32>
    %136 = arith.divf %134, %135 : vector<8x32xf32>
    %137 = vector.extract_strided_slice %124 {offsets = [0, 64], sizes = [8, 32], strides = [1, 1]} : vector<8x128xf32> to vector<8x32xf32>
    %138 = math.tanh %137 : vector<8x32xf32>
    %139 = vector.extract_strided_slice %124 {offsets = [0, 96], sizes = [8, 32], strides = [1, 1]} : vector<8x128xf32> to vector<8x32xf32>
    %140 = arith.negf %139 : vector<8x32xf32>
    %141 = math.exp %140 : vector<8x32xf32>
    %cst_44 = arith.constant 1.000000e+00 : f32
    %142 = vector.broadcast %cst_44 : f32 to vector<8x32xf32>
    %143 = arith.addf %142, %141 : vector<8x32xf32>
    %144 = arith.divf %142, %143 : vector<8x32xf32>
    %145 = arith.mulf %136, %112 : vector<8x32xf32>
    %146 = arith.mulf %130, %138 : vector<8x32xf32>
    %147 = arith.addf %145, %146 : vector<8x32xf32>
    %148 = math.tanh %147 : vector<8x32xf32>
    %149 = arith.mulf %144, %148 : vector<8x32xf32>
    %150 = arith.index_cast %c3_i32 : i32 to index
    %c0_45 = arith.constant 0 : index
    %c0_46 = arith.constant 0 : index
    %151 = vector.load %arg10[%150, %c0_45, %c0_46] : memref<8x8x32xf32, #tpu.memory_space<vmem>>, vector<1x8x32xf32>
    %152 = vector.shape_cast %151 : vector<1x8x32xf32> to vector<8x32xf32>
    %153 = vector.shape_cast %149 : vector<8x32xf32> to vector<1x8x32xf32>
    tpu.vector_store %arg10[%150, %c0_45, %c0_46], %153 {strides = array<i32>} : memref<8x8x32xf32, #tpu.memory_space<vmem>>, vector<1x8x32xf32>,
    %c4_i32 = arith.constant 4 : i32
    %c8_i32_47 = arith.constant 8 : i32
    %154 = arith.muli %c4_i32, %c8_i32_47 : i32
    %155 = tpu.assume_multiple %154, 8 : i32
    %156 = arith.index_cast %155 : i32 to index
    %c0_48 = arith.constant 0 : index
    %157 = vector.load %arg14[%156, %c0_48] : memref<64x128xf32, #tpu.memory_space<vmem>>, vector<8x128xf32>
    %cst_49 = arith.constant dense<0.000000e+00> : vector<8x128xf32>
    %158 = tpu.matmul %149, %11, %cst_49 {dimension_numbers = #tpu.dot_dimension_numbers<[1], [0], [0], [1], [0, 0, 1, 1], [], []>} : vector<8x32xf32>, vector<32x128xf32>, vector<8x128xf32> -> vector<8x128xf32>
    %159 = arith.addf %157, %158 : vector<8x128xf32>
    %160 = vector.extract_strided_slice %159 {offsets = [0, 0], sizes = [8, 32], strides = [1, 1]} : vector<8x128xf32> to vector<8x32xf32>
    %161 = arith.negf %160 : vector<8x32xf32>
    %162 = math.exp %161 : vector<8x32xf32>
    %cst_50 = arith.constant 1.000000e+00 : f32
    %163 = vector.broadcast %cst_50 : f32 to vector<8x32xf32>
    %164 = arith.addf %163, %162 : vector<8x32xf32>
    %165 = arith.divf %163, %164 : vector<8x32xf32>
    %166 = vector.extract_strided_slice %159 {offsets = [0, 32], sizes = [8, 32], strides = [1, 1]} : vector<8x128xf32> to vector<8x32xf32>
    %167 = arith.negf %166 : vector<8x32xf32>
    %168 = math.exp %167 : vector<8x32xf32>
    %cst_51 = arith.constant 1.000000e+00 : f32
    %169 = vector.broadcast %cst_51 : f32 to vector<8x32xf32>
    %170 = arith.addf %169, %168 : vector<8x32xf32>
    %171 = arith.divf %169, %170 : vector<8x32xf32>
    %172 = vector.extract_strided_slice %159 {offsets = [0, 64], sizes = [8, 32], strides = [1, 1]} : vector<8x128xf32> to vector<8x32xf32>
    %173 = math.tanh %172 : vector<8x32xf32>
    %174 = vector.extract_strided_slice %159 {offsets = [0, 96], sizes = [8, 32], strides = [1, 1]} : vector<8x128xf32> to vector<8x32xf32>
    %175 = arith.negf %174 : vector<8x32xf32>
    %176 = math.exp %175 : vector<8x32xf32>
    %cst_52 = arith.constant 1.000000e+00 : f32
    %177 = vector.broadcast %cst_52 : f32 to vector<8x32xf32>
    %178 = arith.addf %177, %176 : vector<8x32xf32>
    %179 = arith.divf %177, %178 : vector<8x32xf32>
    %180 = arith.mulf %171, %147 : vector<8x32xf32>
    %181 = arith.mulf %165, %173 : vector<8x32xf32>
    %182 = arith.addf %180, %181 : vector<8x32xf32>
    %183 = math.tanh %182 : vector<8x32xf32>
    %184 = arith.mulf %179, %183 : vector<8x32xf32>
    %185 = arith.index_cast %c4_i32 : i32 to index
    %c0_53 = arith.constant 0 : index
    %c0_54 = arith.constant 0 : index
    %186 = vector.load %arg10[%185, %c0_53, %c0_54] : memref<8x8x32xf32, #tpu.memory_space<vmem>>, vector<1x8x32xf32>
    %187 = vector.shape_cast %186 : vector<1x8x32xf32> to vector<8x32xf32>
    %188 = vector.shape_cast %184 : vector<8x32xf32> to vector<1x8x32xf32>
    tpu.vector_store %arg10[%185, %c0_53, %c0_54], %188 {strides = array<i32>} : memref<8x8x32xf32, #tpu.memory_space<vmem>>, vector<1x8x32xf32>,
    %c5_i32 = arith.constant 5 : i32
    %c8_i32_55 = arith.constant 8 : i32
    %189 = arith.muli %c5_i32, %c8_i32_55 : i32
    %190 = tpu.assume_multiple %189, 8 : i32
    %191 = arith.index_cast %190 : i32 to index
    %c0_56 = arith.constant 0 : index
    %192 = vector.load %arg14[%191, %c0_56] : memref<64x128xf32, #tpu.memory_space<vmem>>, vector<8x128xf32>
    %cst_57 = arith.constant dense<0.000000e+00> : vector<8x128xf32>
    %193 = tpu.matmul %184, %11, %cst_57 {dimension_numbers = #tpu.dot_dimension_numbers<[1], [0], [0], [1], [0, 0, 1, 1], [], []>} : vector<8x32xf32>, vector<32x128xf32>, vector<8x128xf32> -> vector<8x128xf32>
    %194 = arith.addf %192, %193 : vector<8x128xf32>
    %195 = vector.extract_strided_slice %194 {offsets = [0, 0], sizes = [8, 32], strides = [1, 1]} : vector<8x128xf32> to vector<8x32xf32>
    %196 = arith.negf %195 : vector<8x32xf32>
    %197 = math.exp %196 : vector<8x32xf32>
    %cst_58 = arith.constant 1.000000e+00 : f32
    %198 = vector.broadcast %cst_58 : f32 to vector<8x32xf32>
    %199 = arith.addf %198, %197 : vector<8x32xf32>
    %200 = arith.divf %198, %199 : vector<8x32xf32>
    %201 = vector.extract_strided_slice %194 {offsets = [0, 32], sizes = [8, 32], strides = [1, 1]} : vector<8x128xf32> to vector<8x32xf32>
    %202 = arith.negf %201 : vector<8x32xf32>
    %203 = math.exp %202 : vector<8x32xf32>
    %cst_59 = arith.constant 1.000000e+00 : f32
    %204 = vector.broadcast %cst_59 : f32 to vector<8x32xf32>
    %205 = arith.addf %204, %203 : vector<8x32xf32>
    %206 = arith.divf %204, %205 : vector<8x32xf32>
    %207 = vector.extract_strided_slice %194 {offsets = [0, 64], sizes = [8, 32], strides = [1, 1]} : vector<8x128xf32> to vector<8x32xf32>
    %208 = math.tanh %207 : vector<8x32xf32>
    %209 = vector.extract_strided_slice %194 {offsets = [0, 96], sizes = [8, 32], strides = [1, 1]} : vector<8x128xf32> to vector<8x32xf32>
    %210 = arith.negf %209 : vector<8x32xf32>
    %211 = math.exp %210 : vector<8x32xf32>
    %cst_60 = arith.constant 1.000000e+00 : f32
    %212 = vector.broadcast %cst_60 : f32 to vector<8x32xf32>
    %213 = arith.addf %212, %211 : vector<8x32xf32>
    %214 = arith.divf %212, %213 : vector<8x32xf32>
    %215 = arith.mulf %206, %182 : vector<8x32xf32>
    %216 = arith.mulf %200, %208 : vector<8x32xf32>
    %217 = arith.addf %215, %216 : vector<8x32xf32>
    %218 = math.tanh %217 : vector<8x32xf32>
    %219 = arith.mulf %214, %218 : vector<8x32xf32>
    %220 = arith.index_cast %c5_i32 : i32 to index
    %c0_61 = arith.constant 0 : index
    %c0_62 = arith.constant 0 : index
    %221 = vector.load %arg10[%220, %c0_61, %c0_62] : memref<8x8x32xf32, #tpu.memory_space<vmem>>, vector<1x8x32xf32>
    %222 = vector.shape_cast %221 : vector<1x8x32xf32> to vector<8x32xf32>
    %223 = vector.shape_cast %219 : vector<8x32xf32> to vector<1x8x32xf32>
    tpu.vector_store %arg10[%220, %c0_61, %c0_62], %223 {strides = array<i32>} : memref<8x8x32xf32, #tpu.memory_space<vmem>>, vector<1x8x32xf32>,
    %c6_i32 = arith.constant 6 : i32
    %c8_i32_63 = arith.constant 8 : i32
    %224 = arith.muli %c6_i32, %c8_i32_63 : i32
    %225 = tpu.assume_multiple %224, 8 : i32
    %226 = arith.index_cast %225 : i32 to index
    %c0_64 = arith.constant 0 : index
    %227 = vector.load %arg14[%226, %c0_64] : memref<64x128xf32, #tpu.memory_space<vmem>>, vector<8x128xf32>
    %cst_65 = arith.constant dense<0.000000e+00> : vector<8x128xf32>
    %228 = tpu.matmul %219, %11, %cst_65 {dimension_numbers = #tpu.dot_dimension_numbers<[1], [0], [0], [1], [0, 0, 1, 1], [], []>} : vector<8x32xf32>, vector<32x128xf32>, vector<8x128xf32> -> vector<8x128xf32>
    %229 = arith.addf %227, %228 : vector<8x128xf32>
    %230 = vector.extract_strided_slice %229 {offsets = [0, 0], sizes = [8, 32], strides = [1, 1]} : vector<8x128xf32> to vector<8x32xf32>
    %231 = arith.negf %230 : vector<8x32xf32>
    %232 = math.exp %231 : vector<8x32xf32>
    %cst_66 = arith.constant 1.000000e+00 : f32
    %233 = vector.broadcast %cst_66 : f32 to vector<8x32xf32>
    %234 = arith.addf %233, %232 : vector<8x32xf32>
    %235 = arith.divf %233, %234 : vector<8x32xf32>
    %236 = vector.extract_strided_slice %229 {offsets = [0, 32], sizes = [8, 32], strides = [1, 1]} : vector<8x128xf32> to vector<8x32xf32>
    %237 = arith.negf %236 : vector<8x32xf32>
    %238 = math.exp %237 : vector<8x32xf32>
    %cst_67 = arith.constant 1.000000e+00 : f32
    %239 = vector.broadcast %cst_67 : f32 to vector<8x32xf32>
    %240 = arith.addf %239, %238 : vector<8x32xf32>
    %241 = arith.divf %239, %240 : vector<8x32xf32>
    %242 = vector.extract_strided_slice %229 {offsets = [0, 64], sizes = [8, 32], strides = [1, 1]} : vector<8x128xf32> to vector<8x32xf32>
    %243 = math.tanh %242 : vector<8x32xf32>
    %244 = vector.extract_strided_slice %229 {offsets = [0, 96], sizes = [8, 32], strides = [1, 1]} : vector<8x128xf32> to vector<8x32xf32>
    %245 = arith.negf %244 : vector<8x32xf32>
    %246 = math.exp %245 : vector<8x32xf32>
    %cst_68 = arith.constant 1.000000e+00 : f32
    %247 = vector.broadcast %cst_68 : f32 to vector<8x32xf32>
    %248 = arith.addf %247, %246 : vector<8x32xf32>
    %249 = arith.divf %247, %248 : vector<8x32xf32>
    %250 = arith.mulf %241, %217 : vector<8x32xf32>
    %251 = arith.mulf %235, %243 : vector<8x32xf32>
    %252 = arith.addf %250, %251 : vector<8x32xf32>
    %253 = math.tanh %252 : vector<8x32xf32>
    %254 = arith.mulf %249, %253 : vector<8x32xf32>
    %255 = arith.index_cast %c6_i32 : i32 to index
    %c0_69 = arith.constant 0 : index
    %c0_70 = arith.constant 0 : index
    %256 = vector.load %arg10[%255, %c0_69, %c0_70] : memref<8x8x32xf32, #tpu.memory_space<vmem>>, vector<1x8x32xf32>
    %257 = vector.shape_cast %256 : vector<1x8x32xf32> to vector<8x32xf32>
    %258 = vector.shape_cast %254 : vector<8x32xf32> to vector<1x8x32xf32>
    tpu.vector_store %arg10[%255, %c0_69, %c0_70], %258 {strides = array<i32>} : memref<8x8x32xf32, #tpu.memory_space<vmem>>, vector<1x8x32xf32>,
    %c7_i32 = arith.constant 7 : i32
    %c8_i32_71 = arith.constant 8 : i32
    %259 = arith.muli %c7_i32, %c8_i32_71 : i32
    %260 = tpu.assume_multiple %259, 8 : i32
    %261 = arith.index_cast %260 : i32 to index
    %c0_72 = arith.constant 0 : index
    %262 = vector.load %arg14[%261, %c0_72] : memref<64x128xf32, #tpu.memory_space<vmem>>, vector<8x128xf32>
    %cst_73 = arith.constant dense<0.000000e+00> : vector<8x128xf32>
    %263 = tpu.matmul %254, %11, %cst_73 {dimension_numbers = #tpu.dot_dimension_numbers<[1], [0], [0], [1], [0, 0, 1, 1], [], []>} : vector<8x32xf32>, vector<32x128xf32>, vector<8x128xf32> -> vector<8x128xf32>
    %264 = arith.addf %262, %263 : vector<8x128xf32>
    %265 = vector.extract_strided_slice %264 {offsets = [0, 0], sizes = [8, 32], strides = [1, 1]} : vector<8x128xf32> to vector<8x32xf32>
    %266 = arith.negf %265 : vector<8x32xf32>
    %267 = math.exp %266 : vector<8x32xf32>
    %cst_74 = arith.constant 1.000000e+00 : f32
    %268 = vector.broadcast %cst_74 : f32 to vector<8x32xf32>
    %269 = arith.addf %268, %267 : vector<8x32xf32>
    %270 = arith.divf %268, %269 : vector<8x32xf32>
    %271 = vector.extract_strided_slice %264 {offsets = [0, 32], sizes = [8, 32], strides = [1, 1]} : vector<8x128xf32> to vector<8x32xf32>
    %272 = arith.negf %271 : vector<8x32xf32>
    %273 = math.exp %272 : vector<8x32xf32>
    %cst_75 = arith.constant 1.000000e+00 : f32
    %274 = vector.broadcast %cst_75 : f32 to vector<8x32xf32>
    %275 = arith.addf %274, %273 : vector<8x32xf32>
    %276 = arith.divf %274, %275 : vector<8x32xf32>
    %277 = vector.extract_strided_slice %264 {offsets = [0, 64], sizes = [8, 32], strides = [1, 1]} : vector<8x128xf32> to vector<8x32xf32>
    %278 = math.tanh %277 : vector<8x32xf32>
    %279 = vector.extract_strided_slice %264 {offsets = [0, 96], sizes = [8, 32], strides = [1, 1]} : vector<8x128xf32> to vector<8x32xf32>
    %280 = arith.negf %279 : vector<8x32xf32>
    %281 = math.exp %280 : vector<8x32xf32>
    %cst_76 = arith.constant 1.000000e+00 : f32
    %282 = vector.broadcast %cst_76 : f32 to vector<8x32xf32>
    %283 = arith.addf %282, %281 : vector<8x32xf32>
    %284 = arith.divf %282, %283 : vector<8x32xf32>
    %285 = arith.mulf %276, %252 : vector<8x32xf32>
    %286 = arith.mulf %270, %278 : vector<8x32xf32>
    %287 = arith.addf %285, %286 : vector<8x32xf32>
    %288 = math.tanh %287 : vector<8x32xf32>
    %289 = arith.mulf %284, %288 : vector<8x32xf32>
    %290 = arith.index_cast %c7_i32 : i32 to index
    %c0_77 = arith.constant 0 : index
    %c0_78 = arith.constant 0 : index
    %291 = vector.load %arg10[%290, %c0_77, %c0_78] : memref<8x8x32xf32, #tpu.memory_space<vmem>>, vector<1x8x32xf32>
    %292 = vector.shape_cast %291 : vector<1x8x32xf32> to vector<8x32xf32>
    %293 = vector.shape_cast %289 : vector<8x32xf32> to vector<1x8x32xf32>
    tpu.vector_store %arg10[%290, %c0_77, %c0_78], %293 {strides = array<i32>} : memref<8x8x32xf32, #tpu.memory_space<vmem>>, vector<1x8x32xf32>,
    %c8_i32_79 = arith.constant 8 : i32
    %c0_80 = arith.constant 0 : index
    %c0_81 = arith.constant 0 : index
    %294 = vector.load %arg15[%c0_80, %c0_81] : memref<8x32xf32, #tpu.memory_space<vmem>>, vector<8x32xf32>
    tpu.vector_store %arg15[%c0_80, %c0_81], %289 {strides = array<i32>} : memref<8x32xf32, #tpu.memory_space<vmem>>, vector<8x32xf32>,
    %c0_82 = arith.constant 0 : index
    %c0_83 = arith.constant 0 : index
    %295 = vector.load %arg16[%c0_82, %c0_83] : memref<8x32xf32, #tpu.memory_space<vmem>>, vector<8x32xf32>
    tpu.vector_store %arg16[%c0_82, %c0_83], %287 {strides = array<i32>} : memref<8x32xf32, #tpu.memory_space<vmem>>, vector<8x32xf32>,
    %c0_i32_84 = arith.constant 0 : i32
    %296 = arith.cmpi eq, %arg1, %c0_i32_84 : i32
    %297 = arith.extui %296 : i1 to i32
    %c0_i32_85 = arith.constant 0 : i32
    %298 = arith.cmpi ne, %297, %c0_i32_85 : i32
    scf.if %298 {
      %c0_86 = arith.constant 0 : index
      %c0_87 = arith.constant 0 : index
      %299 = vector.load %arg11[%c0_86, %c0_87] : memref<8x32xf32, #tpu.memory_space<vmem>>, vector<8x32xf32>
      tpu.vector_store %arg11[%c0_86, %c0_87], %289 {strides = array<i32>} : memref<8x32xf32, #tpu.memory_space<vmem>>, vector<8x32xf32>,
      %c0_88 = arith.constant 0 : index
      %c0_89 = arith.constant 0 : index
      %300 = vector.load %arg12[%c0_88, %c0_89] : memref<8x32xf32, #tpu.memory_space<vmem>>, vector<8x32xf32>
      tpu.vector_store %arg12[%c0_88, %c0_89], %287 {strides = array<i32>} : memref<8x32xf32, #tpu.memory_space<vmem>>, vector<8x32xf32>,
      %c0_90 = arith.constant 0 : index
      %c0_91 = arith.constant 0 : index
      %301 = vector.load %arg8[%c0_90, %c0_91] : memref<32x64xf32, #tpu.memory_space<vmem>>, vector<32x64xf32>
      %cst_92 = arith.constant dense<0.000000e+00> : vector<8x64xf32>
      %302 = tpu.matmul %289, %301, %cst_92 {dimension_numbers = #tpu.dot_dimension_numbers<[1], [0], [0], [1], [0, 0, 1, 1], [], []>} : vector<8x32xf32>, vector<32x64xf32>, vector<8x64xf32> -> vector<8x64xf32>
      %c0_93 = arith.constant 0 : index
      %c0_94 = arith.constant 0 : index
      %303 = vector.load %arg9[%c0_93, %c0_94] : memref<1x64xf32, #tpu.memory_space<vmem>>, vector<1x64xf32>
      %304 = vector.broadcast %303 : vector<1x64xf32> to vector<8x64xf32>
      %305 = arith.addf %302, %304 : vector<8x64xf32>
      %c0_95 = arith.constant 0 : index
      %c0_96 = arith.constant 0 : index
      %306 = vector.load %arg13[%c0_95, %c0_96] : memref<8x64xf32, #tpu.memory_space<vmem>>, vector<8x64xf32>
      tpu.vector_store %arg13[%c0_95, %c0_96], %305 {strides = array<i32>} : memref<8x64xf32, #tpu.memory_space<vmem>>, vector<8x64xf32>,
    } else {
    }
    return
  }
  func.func @transform_0(%arg0: i32, %arg1: i32) -> (i32, i32, i32) {
    %c0_i32 = arith.constant 0 : i32
    %c0_i32_0 = arith.constant 0 : i32
    return %arg1, %arg0, %c0_i32 : i32, i32, i32
  }
  func.func @transform_1(%arg0: i32, %arg1: i32) -> (i32, i32) {
    %c0_i32 = arith.constant 0 : i32
    %c0_i32_0 = arith.constant 0 : i32
    return %arg0, %c0_i32 : i32, i32
  }
  func.func @transform_2(%arg0: i32, %arg1: i32) -> (i32, i32) {
    %c0_i32 = arith.constant 0 : i32
    %c0_i32_0 = arith.constant 0 : i32
    return %arg0, %c0_i32 : i32, i32
  }
  func.func @transform_3(%arg0: i32, %arg1: i32) -> (i32, i32) {
    %c0_i32 = arith.constant 0 : i32
    %c0_i32_0 = arith.constant 0 : i32
    %c0_i32_1 = arith.constant 0 : i32
    return %c0_i32, %c0_i32_0 : i32, i32
  }
  func.func @transform_4(%arg0: i32, %arg1: i32) -> (i32, i32) {
    %c0_i32 = arith.constant 0 : i32
    %c0_i32_0 = arith.constant 0 : i32
    %c0_i32_1 = arith.constant 0 : i32
    return %c0_i32, %c0_i32_0 : i32, i32
  }
  func.func @transform_5(%arg0: i32, %arg1: i32) -> (i32, i32) {
    %c0_i32 = arith.constant 0 : i32
    %c0_i32_0 = arith.constant 0 : i32
    %c0_i32_1 = arith.constant 0 : i32
    return %c0_i32, %c0_i32_0 : i32, i32
  }
  func.func @transform_6(%arg0: i32, %arg1: i32) -> (i32, i32) {
    %c0_i32 = arith.constant 0 : i32
    %c0_i32_0 = arith.constant 0 : i32
    %c0_i32_1 = arith.constant 0 : i32
    return %c0_i32, %c0_i32_0 : i32, i32
  }
  func.func @transform_7(%arg0: i32, %arg1: i32) -> (i32, i32) {
    %c0_i32 = arith.constant 0 : i32
    %c0_i32_0 = arith.constant 0 : i32
    %c0_i32_1 = arith.constant 0 : i32
    return %c0_i32, %c0_i32_0 : i32, i32
  }
  func.func @transform_8(%arg0: i32, %arg1: i32) -> (i32, i32, i32) {
    %c0_i32 = arith.constant 0 : i32
    %c0_i32_0 = arith.constant 0 : i32
    return %arg1, %arg0, %c0_i32 : i32, i32, i32
  }
  func.func @transform_9(%arg0: i32, %arg1: i32) -> (i32, i32) {
    %c0_i32 = arith.constant 0 : i32
    %c0_i32_0 = arith.constant 0 : i32
    return %arg0, %c0_i32 : i32, i32
  }
  func.func @transform_10(%arg0: i32, %arg1: i32) -> (i32, i32) {
    %c0_i32 = arith.constant 0 : i32
    %c0_i32_0 = arith.constant 0 : i32
    return %arg0, %c0_i32 : i32, i32
  }
  func.func @transform_11(%arg0: i32, %arg1: i32) -> (i32, i32) {
    %c0_i32 = arith.constant 0 : i32
    %c0_i32_0 = arith.constant 0 : i32
    return %arg0, %c0_i32 : i32, i32
  }
}

module attributes {stable_mosaic.version = 11 : i64} {
  func.func @kernel(%arg0: i32, %arg1: i32, %arg2: memref<8x8x64xf32, #tpu.memory_space<vmem>>, %arg3: memref<8x32xf32, #tpu.memory_space<vmem>>, %arg4: memref<8x32xf32, #tpu.memory_space<vmem>>, %arg5: memref<64x128xf32, #tpu.memory_space<vmem>>, %arg6: memref<32x128xf32, #tpu.memory_space<vmem>>, %arg7: memref<1x128xf32, #tpu.memory_space<vmem>>, %arg8: memref<8x8x32xf32, #tpu.memory_space<vmem>>, %arg9: memref<8x32xf32, #tpu.memory_space<vmem>>, %arg10: memref<8x32xf32, #tpu.memory_space<vmem>>, %arg11: memref<64x128xf32, #tpu.memory_space<vmem>>, %arg12: memref<8x32xf32, #tpu.memory_space<vmem>>, %arg13: memref<8x32xf32, #tpu.memory_space<vmem>>) attributes {dimension_semantics = [#tpu.dimension_semantics<parallel>, #tpu.dimension_semantics<arbitrary>], iteration_bounds = array<i64: 1, 1>, scalar_prefetch = 0 : i64, scratch_operands = 3 : i64, tpu.core_type = #tpu.core_type<tc>, window_params = [{transform_indices = @transform_0, window_bounds = array<i64: 8, 8, 64>}, {transform_indices = @transform_1, window_bounds = array<i64: 8, 32>}, {transform_indices = @transform_2, window_bounds = array<i64: 8, 32>}, {pipeline_mode = #tpu.pipeline_mode<synchronous>, transform_indices = @transform_3, window_bounds = array<i64: 64, 128>}, {pipeline_mode = #tpu.pipeline_mode<synchronous>, transform_indices = @transform_4, window_bounds = array<i64: 32, 128>}, {pipeline_mode = #tpu.pipeline_mode<synchronous>, transform_indices = @transform_5, window_bounds = array<i64: 1, 128>}, {transform_indices = @transform_6, window_bounds = array<i64: 8, 8, 32>}, {transform_indices = @transform_7, window_bounds = array<i64: 8, 32>}, {transform_indices = @transform_8, window_bounds = array<i64: 8, 32>}]} {
    %c0_i32 = arith.constant 0 : i32
    %0 = arith.cmpi eq, %arg1, %c0_i32 : i32
    %1 = arith.extui %0 : i1 to i32
    %c0_i32_0 = arith.constant 0 : i32
    %2 = arith.cmpi ne, %1, %c0_i32_0 : i32
    scf.if %2 {
      %c0_86 = arith.constant 0 : index
      %c0_87 = arith.constant 0 : index
      %299 = vector.load %arg3[%c0_86, %c0_87] : memref<8x32xf32, #tpu.memory_space<vmem>>, vector<8x32xf32>
      %c0_88 = arith.constant 0 : index
      %c0_89 = arith.constant 0 : index
      %300 = vector.load %arg12[%c0_88, %c0_89] : memref<8x32xf32, #tpu.memory_space<vmem>>, vector<8x32xf32>
      tpu.vector_store %arg12[%c0_88, %c0_89], %299 {strides = array<i32>} : memref<8x32xf32, #tpu.memory_space<vmem>>, vector<8x32xf32>,
      %c0_90 = arith.constant 0 : index
      %c0_91 = arith.constant 0 : index
      %301 = vector.load %arg4[%c0_90, %c0_91] : memref<8x32xf32, #tpu.memory_space<vmem>>, vector<8x32xf32>
      %c0_92 = arith.constant 0 : index
      %c0_93 = arith.constant 0 : index
      %302 = vector.load %arg13[%c0_92, %c0_93] : memref<8x32xf32, #tpu.memory_space<vmem>>, vector<8x32xf32>
      tpu.vector_store %arg13[%c0_92, %c0_93], %301 {strides = array<i32>} : memref<8x32xf32, #tpu.memory_space<vmem>>, vector<8x32xf32>,
    } else {
    }
    %c0 = arith.constant 0 : index
    %c0_1 = arith.constant 0 : index
    %3 = vector.load %arg5[%c0, %c0_1] : memref<64x128xf32, #tpu.memory_space<vmem>>, vector<64x128xf32>
    %c0_2 = arith.constant 0 : index
    %c0_3 = arith.constant 0 : index
    %c0_4 = arith.constant 0 : index
    %4 = vector.load %arg2[%c0_2, %c0_3, %c0_4] : memref<8x8x64xf32, #tpu.memory_space<vmem>>, vector<8x8x64xf32>
    %5 = vector.shape_cast %4 : vector<8x8x64xf32> to vector<64x64xf32>
    %cst = arith.constant dense<0.000000e+00> : vector<64x128xf32>
    %6 = tpu.matmul %5, %3, %cst {dimension_numbers = #tpu.dot_dimension_numbers<[1], [0], [0], [1], [0, 0, 1, 1], [], []>} : vector<64x64xf32>, vector<64x128xf32>, vector<64x128xf32> -> vector<64x128xf32>
    %c0_5 = arith.constant 0 : index
    %c0_6 = arith.constant 0 : index
    %7 = vector.load %arg7[%c0_5, %c0_6] : memref<1x128xf32, #tpu.memory_space<vmem>>, vector<1x128xf32>
    %8 = vector.broadcast %7 : vector<1x128xf32> to vector<64x128xf32>
    %9 = arith.addf %6, %8 : vector<64x128xf32>
    %c0_7 = arith.constant 0 : index
    %c0_8 = arith.constant 0 : index
    %10 = vector.load %arg11[%c0_7, %c0_8] : memref<64x128xf32, #tpu.memory_space<vmem>>, vector<64x128xf32>
    tpu.vector_store %arg11[%c0_7, %c0_8], %9 {strides = array<i32>} : memref<64x128xf32, #tpu.memory_space<vmem>>, vector<64x128xf32>,
    %c0_9 = arith.constant 0 : index
    %c0_10 = arith.constant 0 : index
    %11 = vector.load %arg6[%c0_9, %c0_10] : memref<32x128xf32, #tpu.memory_space<vmem>>, vector<32x128xf32>
    %c0_11 = arith.constant 0 : index
    %c0_12 = arith.constant 0 : index
    %12 = vector.load %arg12[%c0_11, %c0_12] : memref<8x32xf32, #tpu.memory_space<vmem>>, vector<8x32xf32>
    %c0_13 = arith.constant 0 : index
    %c0_14 = arith.constant 0 : index
    %13 = vector.load %arg13[%c0_13, %c0_14] : memref<8x32xf32, #tpu.memory_space<vmem>>, vector<8x32xf32>
    %c0_i32_15 = arith.constant 0 : i32
    %c8_i32 = arith.constant 8 : i32
    %14 = arith.muli %c0_i32_15, %c8_i32 : i32
    %15 = tpu.assume_multiple %14, 8 : i32
    %16 = arith.index_cast %15 : i32 to index
    %c0_16 = arith.constant 0 : index
    %17 = vector.load %arg11[%16, %c0_16] : memref<64x128xf32, #tpu.memory_space<vmem>>, vector<8x128xf32>
    %cst_17 = arith.constant dense<0.000000e+00> : vector<8x128xf32>
    %18 = tpu.matmul %12, %11, %cst_17 {dimension_numbers = #tpu.dot_dimension_numbers<[1], [0], [0], [1], [0, 0, 1, 1], [], []>} : vector<8x32xf32>, vector<32x128xf32>, vector<8x128xf32> -> vector<8x128xf32>
    %19 = arith.addf %17, %18 : vector<8x128xf32>
    %20 = vector.extract_strided_slice %19 {offsets = [0, 0], sizes = [8, 32], strides = [1, 1]} : vector<8x128xf32> to vector<8x32xf32>
    %21 = arith.negf %20 : vector<8x32xf32>
    %22 = math.exp %21 : vector<8x32xf32>
    %cst_18 = arith.constant 1.000000e+00 : f32
    %23 = vector.broadcast %cst_18 : f32 to vector<8x32xf32>
    %24 = arith.addf %23, %22 : vector<8x32xf32>
    %25 = arith.divf %23, %24 : vector<8x32xf32>
    %26 = vector.extract_strided_slice %19 {offsets = [0, 32], sizes = [8, 32], strides = [1, 1]} : vector<8x128xf32> to vector<8x32xf32>
    %27 = arith.negf %26 : vector<8x32xf32>
    %28 = math.exp %27 : vector<8x32xf32>
    %cst_19 = arith.constant 1.000000e+00 : f32
    %29 = vector.broadcast %cst_19 : f32 to vector<8x32xf32>
    %30 = arith.addf %29, %28 : vector<8x32xf32>
    %31 = arith.divf %29, %30 : vector<8x32xf32>
    %32 = vector.extract_strided_slice %19 {offsets = [0, 64], sizes = [8, 32], strides = [1, 1]} : vector<8x128xf32> to vector<8x32xf32>
    %33 = math.tanh %32 : vector<8x32xf32>
    %34 = vector.extract_strided_slice %19 {offsets = [0, 96], sizes = [8, 32], strides = [1, 1]} : vector<8x128xf32> to vector<8x32xf32>
    %35 = arith.negf %34 : vector<8x32xf32>
    %36 = math.exp %35 : vector<8x32xf32>
    %cst_20 = arith.constant 1.000000e+00 : f32
    %37 = vector.broadcast %cst_20 : f32 to vector<8x32xf32>
    %38 = arith.addf %37, %36 : vector<8x32xf32>
    %39 = arith.divf %37, %38 : vector<8x32xf32>
    %40 = arith.mulf %31, %13 : vector<8x32xf32>
    %41 = arith.mulf %25, %33 : vector<8x32xf32>
    %42 = arith.addf %40, %41 : vector<8x32xf32>
    %43 = math.tanh %42 : vector<8x32xf32>
    %44 = arith.mulf %39, %43 : vector<8x32xf32>
    %45 = arith.index_cast %c0_i32_15 : i32 to index
    %c0_21 = arith.constant 0 : index
    %c0_22 = arith.constant 0 : index
    %46 = vector.load %arg8[%45, %c0_21, %c0_22] : memref<8x8x32xf32, #tpu.memory_space<vmem>>, vector<1x8x32xf32>
    %47 = vector.shape_cast %46 : vector<1x8x32xf32> to vector<8x32xf32>
    %48 = vector.shape_cast %44 : vector<8x32xf32> to vector<1x8x32xf32>
    tpu.vector_store %arg8[%45, %c0_21, %c0_22], %48 {strides = array<i32>} : memref<8x8x32xf32, #tpu.memory_space<vmem>>, vector<1x8x32xf32>,
    %c1_i32 = arith.constant 1 : i32
    %c8_i32_23 = arith.constant 8 : i32
    %49 = arith.muli %c1_i32, %c8_i32_23 : i32
    %50 = tpu.assume_multiple %49, 8 : i32
    %51 = arith.index_cast %50 : i32 to index
    %c0_24 = arith.constant 0 : index
    %52 = vector.load %arg11[%51, %c0_24] : memref<64x128xf32, #tpu.memory_space<vmem>>, vector<8x128xf32>
    %cst_25 = arith.constant dense<0.000000e+00> : vector<8x128xf32>
    %53 = tpu.matmul %44, %11, %cst_25 {dimension_numbers = #tpu.dot_dimension_numbers<[1], [0], [0], [1], [0, 0, 1, 1], [], []>} : vector<8x32xf32>, vector<32x128xf32>, vector<8x128xf32> -> vector<8x128xf32>
    %54 = arith.addf %52, %53 : vector<8x128xf32>
    %55 = vector.extract_strided_slice %54 {offsets = [0, 0], sizes = [8, 32], strides = [1, 1]} : vector<8x128xf32> to vector<8x32xf32>
    %56 = arith.negf %55 : vector<8x32xf32>
    %57 = math.exp %56 : vector<8x32xf32>
    %cst_26 = arith.constant 1.000000e+00 : f32
    %58 = vector.broadcast %cst_26 : f32 to vector<8x32xf32>
    %59 = arith.addf %58, %57 : vector<8x32xf32>
    %60 = arith.divf %58, %59 : vector<8x32xf32>
    %61 = vector.extract_strided_slice %54 {offsets = [0, 32], sizes = [8, 32], strides = [1, 1]} : vector<8x128xf32> to vector<8x32xf32>
    %62 = arith.negf %61 : vector<8x32xf32>
    %63 = math.exp %62 : vector<8x32xf32>
    %cst_27 = arith.constant 1.000000e+00 : f32
    %64 = vector.broadcast %cst_27 : f32 to vector<8x32xf32>
    %65 = arith.addf %64, %63 : vector<8x32xf32>
    %66 = arith.divf %64, %65 : vector<8x32xf32>
    %67 = vector.extract_strided_slice %54 {offsets = [0, 64], sizes = [8, 32], strides = [1, 1]} : vector<8x128xf32> to vector<8x32xf32>
    %68 = math.tanh %67 : vector<8x32xf32>
    %69 = vector.extract_strided_slice %54 {offsets = [0, 96], sizes = [8, 32], strides = [1, 1]} : vector<8x128xf32> to vector<8x32xf32>
    %70 = arith.negf %69 : vector<8x32xf32>
    %71 = math.exp %70 : vector<8x32xf32>
    %cst_28 = arith.constant 1.000000e+00 : f32
    %72 = vector.broadcast %cst_28 : f32 to vector<8x32xf32>
    %73 = arith.addf %72, %71 : vector<8x32xf32>
    %74 = arith.divf %72, %73 : vector<8x32xf32>
    %75 = arith.mulf %66, %42 : vector<8x32xf32>
    %76 = arith.mulf %60, %68 : vector<8x32xf32>
    %77 = arith.addf %75, %76 : vector<8x32xf32>
    %78 = math.tanh %77 : vector<8x32xf32>
    %79 = arith.mulf %74, %78 : vector<8x32xf32>
    %80 = arith.index_cast %c1_i32 : i32 to index
    %c0_29 = arith.constant 0 : index
    %c0_30 = arith.constant 0 : index
    %81 = vector.load %arg8[%80, %c0_29, %c0_30] : memref<8x8x32xf32, #tpu.memory_space<vmem>>, vector<1x8x32xf32>
    %82 = vector.shape_cast %81 : vector<1x8x32xf32> to vector<8x32xf32>
    %83 = vector.shape_cast %79 : vector<8x32xf32> to vector<1x8x32xf32>
    tpu.vector_store %arg8[%80, %c0_29, %c0_30], %83 {strides = array<i32>} : memref<8x8x32xf32, #tpu.memory_space<vmem>>, vector<1x8x32xf32>,
    %c2_i32 = arith.constant 2 : i32
    %c8_i32_31 = arith.constant 8 : i32
    %84 = arith.muli %c2_i32, %c8_i32_31 : i32
    %85 = tpu.assume_multiple %84, 8 : i32
    %86 = arith.index_cast %85 : i32 to index
    %c0_32 = arith.constant 0 : index
    %87 = vector.load %arg11[%86, %c0_32] : memref<64x128xf32, #tpu.memory_space<vmem>>, vector<8x128xf32>
    %cst_33 = arith.constant dense<0.000000e+00> : vector<8x128xf32>
    %88 = tpu.matmul %79, %11, %cst_33 {dimension_numbers = #tpu.dot_dimension_numbers<[1], [0], [0], [1], [0, 0, 1, 1], [], []>} : vector<8x32xf32>, vector<32x128xf32>, vector<8x128xf32> -> vector<8x128xf32>
    %89 = arith.addf %87, %88 : vector<8x128xf32>
    %90 = vector.extract_strided_slice %89 {offsets = [0, 0], sizes = [8, 32], strides = [1, 1]} : vector<8x128xf32> to vector<8x32xf32>
    %91 = arith.negf %90 : vector<8x32xf32>
    %92 = math.exp %91 : vector<8x32xf32>
    %cst_34 = arith.constant 1.000000e+00 : f32
    %93 = vector.broadcast %cst_34 : f32 to vector<8x32xf32>
    %94 = arith.addf %93, %92 : vector<8x32xf32>
    %95 = arith.divf %93, %94 : vector<8x32xf32>
    %96 = vector.extract_strided_slice %89 {offsets = [0, 32], sizes = [8, 32], strides = [1, 1]} : vector<8x128xf32> to vector<8x32xf32>
    %97 = arith.negf %96 : vector<8x32xf32>
    %98 = math.exp %97 : vector<8x32xf32>
    %cst_35 = arith.constant 1.000000e+00 : f32
    %99 = vector.broadcast %cst_35 : f32 to vector<8x32xf32>
    %100 = arith.addf %99, %98 : vector<8x32xf32>
    %101 = arith.divf %99, %100 : vector<8x32xf32>
    %102 = vector.extract_strided_slice %89 {offsets = [0, 64], sizes = [8, 32], strides = [1, 1]} : vector<8x128xf32> to vector<8x32xf32>
    %103 = math.tanh %102 : vector<8x32xf32>
    %104 = vector.extract_strided_slice %89 {offsets = [0, 96], sizes = [8, 32], strides = [1, 1]} : vector<8x128xf32> to vector<8x32xf32>
    %105 = arith.negf %104 : vector<8x32xf32>
    %106 = math.exp %105 : vector<8x32xf32>
    %cst_36 = arith.constant 1.000000e+00 : f32
    %107 = vector.broadcast %cst_36 : f32 to vector<8x32xf32>
    %108 = arith.addf %107, %106 : vector<8x32xf32>
    %109 = arith.divf %107, %108 : vector<8x32xf32>
    %110 = arith.mulf %101, %77 : vector<8x32xf32>
    %111 = arith.mulf %95, %103 : vector<8x32xf32>
    %112 = arith.addf %110, %111 : vector<8x32xf32>
    %113 = math.tanh %112 : vector<8x32xf32>
    %114 = arith.mulf %109, %113 : vector<8x32xf32>
    %115 = arith.index_cast %c2_i32 : i32 to index
    %c0_37 = arith.constant 0 : index
    %c0_38 = arith.constant 0 : index
    %116 = vector.load %arg8[%115, %c0_37, %c0_38] : memref<8x8x32xf32, #tpu.memory_space<vmem>>, vector<1x8x32xf32>
    %117 = vector.shape_cast %116 : vector<1x8x32xf32> to vector<8x32xf32>
    %118 = vector.shape_cast %114 : vector<8x32xf32> to vector<1x8x32xf32>
    tpu.vector_store %arg8[%115, %c0_37, %c0_38], %118 {strides = array<i32>} : memref<8x8x32xf32, #tpu.memory_space<vmem>>, vector<1x8x32xf32>,
    %c3_i32 = arith.constant 3 : i32
    %c8_i32_39 = arith.constant 8 : i32
    %119 = arith.muli %c3_i32, %c8_i32_39 : i32
    %120 = tpu.assume_multiple %119, 8 : i32
    %121 = arith.index_cast %120 : i32 to index
    %c0_40 = arith.constant 0 : index
    %122 = vector.load %arg11[%121, %c0_40] : memref<64x128xf32, #tpu.memory_space<vmem>>, vector<8x128xf32>
    %cst_41 = arith.constant dense<0.000000e+00> : vector<8x128xf32>
    %123 = tpu.matmul %114, %11, %cst_41 {dimension_numbers = #tpu.dot_dimension_numbers<[1], [0], [0], [1], [0, 0, 1, 1], [], []>} : vector<8x32xf32>, vector<32x128xf32>, vector<8x128xf32> -> vector<8x128xf32>
    %124 = arith.addf %122, %123 : vector<8x128xf32>
    %125 = vector.extract_strided_slice %124 {offsets = [0, 0], sizes = [8, 32], strides = [1, 1]} : vector<8x128xf32> to vector<8x32xf32>
    %126 = arith.negf %125 : vector<8x32xf32>
    %127 = math.exp %126 : vector<8x32xf32>
    %cst_42 = arith.constant 1.000000e+00 : f32
    %128 = vector.broadcast %cst_42 : f32 to vector<8x32xf32>
    %129 = arith.addf %128, %127 : vector<8x32xf32>
    %130 = arith.divf %128, %129 : vector<8x32xf32>
    %131 = vector.extract_strided_slice %124 {offsets = [0, 32], sizes = [8, 32], strides = [1, 1]} : vector<8x128xf32> to vector<8x32xf32>
    %132 = arith.negf %131 : vector<8x32xf32>
    %133 = math.exp %132 : vector<8x32xf32>
    %cst_43 = arith.constant 1.000000e+00 : f32
    %134 = vector.broadcast %cst_43 : f32 to vector<8x32xf32>
    %135 = arith.addf %134, %133 : vector<8x32xf32>
    %136 = arith.divf %134, %135 : vector<8x32xf32>
    %137 = vector.extract_strided_slice %124 {offsets = [0, 64], sizes = [8, 32], strides = [1, 1]} : vector<8x128xf32> to vector<8x32xf32>
    %138 = math.tanh %137 : vector<8x32xf32>
    %139 = vector.extract_strided_slice %124 {offsets = [0, 96], sizes = [8, 32], strides = [1, 1]} : vector<8x128xf32> to vector<8x32xf32>
    %140 = arith.negf %139 : vector<8x32xf32>
    %141 = math.exp %140 : vector<8x32xf32>
    %cst_44 = arith.constant 1.000000e+00 : f32
    %142 = vector.broadcast %cst_44 : f32 to vector<8x32xf32>
    %143 = arith.addf %142, %141 : vector<8x32xf32>
    %144 = arith.divf %142, %143 : vector<8x32xf32>
    %145 = arith.mulf %136, %112 : vector<8x32xf32>
    %146 = arith.mulf %130, %138 : vector<8x32xf32>
    %147 = arith.addf %145, %146 : vector<8x32xf32>
    %148 = math.tanh %147 : vector<8x32xf32>
    %149 = arith.mulf %144, %148 : vector<8x32xf32>
    %150 = arith.index_cast %c3_i32 : i32 to index
    %c0_45 = arith.constant 0 : index
    %c0_46 = arith.constant 0 : index
    %151 = vector.load %arg8[%150, %c0_45, %c0_46] : memref<8x8x32xf32, #tpu.memory_space<vmem>>, vector<1x8x32xf32>
    %152 = vector.shape_cast %151 : vector<1x8x32xf32> to vector<8x32xf32>
    %153 = vector.shape_cast %149 : vector<8x32xf32> to vector<1x8x32xf32>
    tpu.vector_store %arg8[%150, %c0_45, %c0_46], %153 {strides = array<i32>} : memref<8x8x32xf32, #tpu.memory_space<vmem>>, vector<1x8x32xf32>,
    %c4_i32 = arith.constant 4 : i32
    %c8_i32_47 = arith.constant 8 : i32
    %154 = arith.muli %c4_i32, %c8_i32_47 : i32
    %155 = tpu.assume_multiple %154, 8 : i32
    %156 = arith.index_cast %155 : i32 to index
    %c0_48 = arith.constant 0 : index
    %157 = vector.load %arg11[%156, %c0_48] : memref<64x128xf32, #tpu.memory_space<vmem>>, vector<8x128xf32>
    %cst_49 = arith.constant dense<0.000000e+00> : vector<8x128xf32>
    %158 = tpu.matmul %149, %11, %cst_49 {dimension_numbers = #tpu.dot_dimension_numbers<[1], [0], [0], [1], [0, 0, 1, 1], [], []>} : vector<8x32xf32>, vector<32x128xf32>, vector<8x128xf32> -> vector<8x128xf32>
    %159 = arith.addf %157, %158 : vector<8x128xf32>
    %160 = vector.extract_strided_slice %159 {offsets = [0, 0], sizes = [8, 32], strides = [1, 1]} : vector<8x128xf32> to vector<8x32xf32>
    %161 = arith.negf %160 : vector<8x32xf32>
    %162 = math.exp %161 : vector<8x32xf32>
    %cst_50 = arith.constant 1.000000e+00 : f32
    %163 = vector.broadcast %cst_50 : f32 to vector<8x32xf32>
    %164 = arith.addf %163, %162 : vector<8x32xf32>
    %165 = arith.divf %163, %164 : vector<8x32xf32>
    %166 = vector.extract_strided_slice %159 {offsets = [0, 32], sizes = [8, 32], strides = [1, 1]} : vector<8x128xf32> to vector<8x32xf32>
    %167 = arith.negf %166 : vector<8x32xf32>
    %168 = math.exp %167 : vector<8x32xf32>
    %cst_51 = arith.constant 1.000000e+00 : f32
    %169 = vector.broadcast %cst_51 : f32 to vector<8x32xf32>
    %170 = arith.addf %169, %168 : vector<8x32xf32>
    %171 = arith.divf %169, %170 : vector<8x32xf32>
    %172 = vector.extract_strided_slice %159 {offsets = [0, 64], sizes = [8, 32], strides = [1, 1]} : vector<8x128xf32> to vector<8x32xf32>
    %173 = math.tanh %172 : vector<8x32xf32>
    %174 = vector.extract_strided_slice %159 {offsets = [0, 96], sizes = [8, 32], strides = [1, 1]} : vector<8x128xf32> to vector<8x32xf32>
    %175 = arith.negf %174 : vector<8x32xf32>
    %176 = math.exp %175 : vector<8x32xf32>
    %cst_52 = arith.constant 1.000000e+00 : f32
    %177 = vector.broadcast %cst_52 : f32 to vector<8x32xf32>
    %178 = arith.addf %177, %176 : vector<8x32xf32>
    %179 = arith.divf %177, %178 : vector<8x32xf32>
    %180 = arith.mulf %171, %147 : vector<8x32xf32>
    %181 = arith.mulf %165, %173 : vector<8x32xf32>
    %182 = arith.addf %180, %181 : vector<8x32xf32>
    %183 = math.tanh %182 : vector<8x32xf32>
    %184 = arith.mulf %179, %183 : vector<8x32xf32>
    %185 = arith.index_cast %c4_i32 : i32 to index
    %c0_53 = arith.constant 0 : index
    %c0_54 = arith.constant 0 : index
    %186 = vector.load %arg8[%185, %c0_53, %c0_54] : memref<8x8x32xf32, #tpu.memory_space<vmem>>, vector<1x8x32xf32>
    %187 = vector.shape_cast %186 : vector<1x8x32xf32> to vector<8x32xf32>
    %188 = vector.shape_cast %184 : vector<8x32xf32> to vector<1x8x32xf32>
    tpu.vector_store %arg8[%185, %c0_53, %c0_54], %188 {strides = array<i32>} : memref<8x8x32xf32, #tpu.memory_space<vmem>>, vector<1x8x32xf32>,
    %c5_i32 = arith.constant 5 : i32
    %c8_i32_55 = arith.constant 8 : i32
    %189 = arith.muli %c5_i32, %c8_i32_55 : i32
    %190 = tpu.assume_multiple %189, 8 : i32
    %191 = arith.index_cast %190 : i32 to index
    %c0_56 = arith.constant 0 : index
    %192 = vector.load %arg11[%191, %c0_56] : memref<64x128xf32, #tpu.memory_space<vmem>>, vector<8x128xf32>
    %cst_57 = arith.constant dense<0.000000e+00> : vector<8x128xf32>
    %193 = tpu.matmul %184, %11, %cst_57 {dimension_numbers = #tpu.dot_dimension_numbers<[1], [0], [0], [1], [0, 0, 1, 1], [], []>} : vector<8x32xf32>, vector<32x128xf32>, vector<8x128xf32> -> vector<8x128xf32>
    %194 = arith.addf %192, %193 : vector<8x128xf32>
    %195 = vector.extract_strided_slice %194 {offsets = [0, 0], sizes = [8, 32], strides = [1, 1]} : vector<8x128xf32> to vector<8x32xf32>
    %196 = arith.negf %195 : vector<8x32xf32>
    %197 = math.exp %196 : vector<8x32xf32>
    %cst_58 = arith.constant 1.000000e+00 : f32
    %198 = vector.broadcast %cst_58 : f32 to vector<8x32xf32>
    %199 = arith.addf %198, %197 : vector<8x32xf32>
    %200 = arith.divf %198, %199 : vector<8x32xf32>
    %201 = vector.extract_strided_slice %194 {offsets = [0, 32], sizes = [8, 32], strides = [1, 1]} : vector<8x128xf32> to vector<8x32xf32>
    %202 = arith.negf %201 : vector<8x32xf32>
    %203 = math.exp %202 : vector<8x32xf32>
    %cst_59 = arith.constant 1.000000e+00 : f32
    %204 = vector.broadcast %cst_59 : f32 to vector<8x32xf32>
    %205 = arith.addf %204, %203 : vector<8x32xf32>
    %206 = arith.divf %204, %205 : vector<8x32xf32>
    %207 = vector.extract_strided_slice %194 {offsets = [0, 64], sizes = [8, 32], strides = [1, 1]} : vector<8x128xf32> to vector<8x32xf32>
    %208 = math.tanh %207 : vector<8x32xf32>
    %209 = vector.extract_strided_slice %194 {offsets = [0, 96], sizes = [8, 32], strides = [1, 1]} : vector<8x128xf32> to vector<8x32xf32>
    %210 = arith.negf %209 : vector<8x32xf32>
    %211 = math.exp %210 : vector<8x32xf32>
    %cst_60 = arith.constant 1.000000e+00 : f32
    %212 = vector.broadcast %cst_60 : f32 to vector<8x32xf32>
    %213 = arith.addf %212, %211 : vector<8x32xf32>
    %214 = arith.divf %212, %213 : vector<8x32xf32>
    %215 = arith.mulf %206, %182 : vector<8x32xf32>
    %216 = arith.mulf %200, %208 : vector<8x32xf32>
    %217 = arith.addf %215, %216 : vector<8x32xf32>
    %218 = math.tanh %217 : vector<8x32xf32>
    %219 = arith.mulf %214, %218 : vector<8x32xf32>
    %220 = arith.index_cast %c5_i32 : i32 to index
    %c0_61 = arith.constant 0 : index
    %c0_62 = arith.constant 0 : index
    %221 = vector.load %arg8[%220, %c0_61, %c0_62] : memref<8x8x32xf32, #tpu.memory_space<vmem>>, vector<1x8x32xf32>
    %222 = vector.shape_cast %221 : vector<1x8x32xf32> to vector<8x32xf32>
    %223 = vector.shape_cast %219 : vector<8x32xf32> to vector<1x8x32xf32>
    tpu.vector_store %arg8[%220, %c0_61, %c0_62], %223 {strides = array<i32>} : memref<8x8x32xf32, #tpu.memory_space<vmem>>, vector<1x8x32xf32>,
    %c6_i32 = arith.constant 6 : i32
    %c8_i32_63 = arith.constant 8 : i32
    %224 = arith.muli %c6_i32, %c8_i32_63 : i32
    %225 = tpu.assume_multiple %224, 8 : i32
    %226 = arith.index_cast %225 : i32 to index
    %c0_64 = arith.constant 0 : index
    %227 = vector.load %arg11[%226, %c0_64] : memref<64x128xf32, #tpu.memory_space<vmem>>, vector<8x128xf32>
    %cst_65 = arith.constant dense<0.000000e+00> : vector<8x128xf32>
    %228 = tpu.matmul %219, %11, %cst_65 {dimension_numbers = #tpu.dot_dimension_numbers<[1], [0], [0], [1], [0, 0, 1, 1], [], []>} : vector<8x32xf32>, vector<32x128xf32>, vector<8x128xf32> -> vector<8x128xf32>
    %229 = arith.addf %227, %228 : vector<8x128xf32>
    %230 = vector.extract_strided_slice %229 {offsets = [0, 0], sizes = [8, 32], strides = [1, 1]} : vector<8x128xf32> to vector<8x32xf32>
    %231 = arith.negf %230 : vector<8x32xf32>
    %232 = math.exp %231 : vector<8x32xf32>
    %cst_66 = arith.constant 1.000000e+00 : f32
    %233 = vector.broadcast %cst_66 : f32 to vector<8x32xf32>
    %234 = arith.addf %233, %232 : vector<8x32xf32>
    %235 = arith.divf %233, %234 : vector<8x32xf32>
    %236 = vector.extract_strided_slice %229 {offsets = [0, 32], sizes = [8, 32], strides = [1, 1]} : vector<8x128xf32> to vector<8x32xf32>
    %237 = arith.negf %236 : vector<8x32xf32>
    %238 = math.exp %237 : vector<8x32xf32>
    %cst_67 = arith.constant 1.000000e+00 : f32
    %239 = vector.broadcast %cst_67 : f32 to vector<8x32xf32>
    %240 = arith.addf %239, %238 : vector<8x32xf32>
    %241 = arith.divf %239, %240 : vector<8x32xf32>
    %242 = vector.extract_strided_slice %229 {offsets = [0, 64], sizes = [8, 32], strides = [1, 1]} : vector<8x128xf32> to vector<8x32xf32>
    %243 = math.tanh %242 : vector<8x32xf32>
    %244 = vector.extract_strided_slice %229 {offsets = [0, 96], sizes = [8, 32], strides = [1, 1]} : vector<8x128xf32> to vector<8x32xf32>
    %245 = arith.negf %244 : vector<8x32xf32>
    %246 = math.exp %245 : vector<8x32xf32>
    %cst_68 = arith.constant 1.000000e+00 : f32
    %247 = vector.broadcast %cst_68 : f32 to vector<8x32xf32>
    %248 = arith.addf %247, %246 : vector<8x32xf32>
    %249 = arith.divf %247, %248 : vector<8x32xf32>
    %250 = arith.mulf %241, %217 : vector<8x32xf32>
    %251 = arith.mulf %235, %243 : vector<8x32xf32>
    %252 = arith.addf %250, %251 : vector<8x32xf32>
    %253 = math.tanh %252 : vector<8x32xf32>
    %254 = arith.mulf %249, %253 : vector<8x32xf32>
    %255 = arith.index_cast %c6_i32 : i32 to index
    %c0_69 = arith.constant 0 : index
    %c0_70 = arith.constant 0 : index
    %256 = vector.load %arg8[%255, %c0_69, %c0_70] : memref<8x8x32xf32, #tpu.memory_space<vmem>>, vector<1x8x32xf32>
    %257 = vector.shape_cast %256 : vector<1x8x32xf32> to vector<8x32xf32>
    %258 = vector.shape_cast %254 : vector<8x32xf32> to vector<1x8x32xf32>
    tpu.vector_store %arg8[%255, %c0_69, %c0_70], %258 {strides = array<i32>} : memref<8x8x32xf32, #tpu.memory_space<vmem>>, vector<1x8x32xf32>,
    %c7_i32 = arith.constant 7 : i32
    %c8_i32_71 = arith.constant 8 : i32
    %259 = arith.muli %c7_i32, %c8_i32_71 : i32
    %260 = tpu.assume_multiple %259, 8 : i32
    %261 = arith.index_cast %260 : i32 to index
    %c0_72 = arith.constant 0 : index
    %262 = vector.load %arg11[%261, %c0_72] : memref<64x128xf32, #tpu.memory_space<vmem>>, vector<8x128xf32>
    %cst_73 = arith.constant dense<0.000000e+00> : vector<8x128xf32>
    %263 = tpu.matmul %254, %11, %cst_73 {dimension_numbers = #tpu.dot_dimension_numbers<[1], [0], [0], [1], [0, 0, 1, 1], [], []>} : vector<8x32xf32>, vector<32x128xf32>, vector<8x128xf32> -> vector<8x128xf32>
    %264 = arith.addf %262, %263 : vector<8x128xf32>
    %265 = vector.extract_strided_slice %264 {offsets = [0, 0], sizes = [8, 32], strides = [1, 1]} : vector<8x128xf32> to vector<8x32xf32>
    %266 = arith.negf %265 : vector<8x32xf32>
    %267 = math.exp %266 : vector<8x32xf32>
    %cst_74 = arith.constant 1.000000e+00 : f32
    %268 = vector.broadcast %cst_74 : f32 to vector<8x32xf32>
    %269 = arith.addf %268, %267 : vector<8x32xf32>
    %270 = arith.divf %268, %269 : vector<8x32xf32>
    %271 = vector.extract_strided_slice %264 {offsets = [0, 32], sizes = [8, 32], strides = [1, 1]} : vector<8x128xf32> to vector<8x32xf32>
    %272 = arith.negf %271 : vector<8x32xf32>
    %273 = math.exp %272 : vector<8x32xf32>
    %cst_75 = arith.constant 1.000000e+00 : f32
    %274 = vector.broadcast %cst_75 : f32 to vector<8x32xf32>
    %275 = arith.addf %274, %273 : vector<8x32xf32>
    %276 = arith.divf %274, %275 : vector<8x32xf32>
    %277 = vector.extract_strided_slice %264 {offsets = [0, 64], sizes = [8, 32], strides = [1, 1]} : vector<8x128xf32> to vector<8x32xf32>
    %278 = math.tanh %277 : vector<8x32xf32>
    %279 = vector.extract_strided_slice %264 {offsets = [0, 96], sizes = [8, 32], strides = [1, 1]} : vector<8x128xf32> to vector<8x32xf32>
    %280 = arith.negf %279 : vector<8x32xf32>
    %281 = math.exp %280 : vector<8x32xf32>
    %cst_76 = arith.constant 1.000000e+00 : f32
    %282 = vector.broadcast %cst_76 : f32 to vector<8x32xf32>
    %283 = arith.addf %282, %281 : vector<8x32xf32>
    %284 = arith.divf %282, %283 : vector<8x32xf32>
    %285 = arith.mulf %276, %252 : vector<8x32xf32>
    %286 = arith.mulf %270, %278 : vector<8x32xf32>
    %287 = arith.addf %285, %286 : vector<8x32xf32>
    %288 = math.tanh %287 : vector<8x32xf32>
    %289 = arith.mulf %284, %288 : vector<8x32xf32>
    %290 = arith.index_cast %c7_i32 : i32 to index
    %c0_77 = arith.constant 0 : index
    %c0_78 = arith.constant 0 : index
    %291 = vector.load %arg8[%290, %c0_77, %c0_78] : memref<8x8x32xf32, #tpu.memory_space<vmem>>, vector<1x8x32xf32>
    %292 = vector.shape_cast %291 : vector<1x8x32xf32> to vector<8x32xf32>
    %293 = vector.shape_cast %289 : vector<8x32xf32> to vector<1x8x32xf32>
    tpu.vector_store %arg8[%290, %c0_77, %c0_78], %293 {strides = array<i32>} : memref<8x8x32xf32, #tpu.memory_space<vmem>>, vector<1x8x32xf32>,
    %c8_i32_79 = arith.constant 8 : i32
    %c0_80 = arith.constant 0 : index
    %c0_81 = arith.constant 0 : index
    %294 = vector.load %arg12[%c0_80, %c0_81] : memref<8x32xf32, #tpu.memory_space<vmem>>, vector<8x32xf32>
    tpu.vector_store %arg12[%c0_80, %c0_81], %289 {strides = array<i32>} : memref<8x32xf32, #tpu.memory_space<vmem>>, vector<8x32xf32>,
    %c0_82 = arith.constant 0 : index
    %c0_83 = arith.constant 0 : index
    %295 = vector.load %arg13[%c0_82, %c0_83] : memref<8x32xf32, #tpu.memory_space<vmem>>, vector<8x32xf32>
    tpu.vector_store %arg13[%c0_82, %c0_83], %287 {strides = array<i32>} : memref<8x32xf32, #tpu.memory_space<vmem>>, vector<8x32xf32>,
    %c0_i32_84 = arith.constant 0 : i32
    %296 = arith.cmpi eq, %arg1, %c0_i32_84 : i32
    %297 = arith.extui %296 : i1 to i32
    %c0_i32_85 = arith.constant 0 : i32
    %298 = arith.cmpi ne, %297, %c0_i32_85 : i32
    scf.if %298 {
      %c0_86 = arith.constant 0 : index
      %c0_87 = arith.constant 0 : index
      %299 = vector.load %arg9[%c0_86, %c0_87] : memref<8x32xf32, #tpu.memory_space<vmem>>, vector<8x32xf32>
      tpu.vector_store %arg9[%c0_86, %c0_87], %289 {strides = array<i32>} : memref<8x32xf32, #tpu.memory_space<vmem>>, vector<8x32xf32>,
      %c0_88 = arith.constant 0 : index
      %c0_89 = arith.constant 0 : index
      %300 = vector.load %arg10[%c0_88, %c0_89] : memref<8x32xf32, #tpu.memory_space<vmem>>, vector<8x32xf32>
      tpu.vector_store %arg10[%c0_88, %c0_89], %287 {strides = array<i32>} : memref<8x32xf32, #tpu.memory_space<vmem>>, vector<8x32xf32>,
    } else {
    }
    return
  }
  func.func @transform_0(%arg0: i32, %arg1: i32) -> (i32, i32, i32) {
    %c0_i32 = arith.constant 0 : i32
    %c0_i32_0 = arith.constant 0 : i32
    return %arg1, %arg0, %c0_i32 : i32, i32, i32
  }
  func.func @transform_1(%arg0: i32, %arg1: i32) -> (i32, i32) {
    %c0_i32 = arith.constant 0 : i32
    %c0_i32_0 = arith.constant 0 : i32
    return %arg0, %c0_i32 : i32, i32
  }
  func.func @transform_2(%arg0: i32, %arg1: i32) -> (i32, i32) {
    %c0_i32 = arith.constant 0 : i32
    %c0_i32_0 = arith.constant 0 : i32
    return %arg0, %c0_i32 : i32, i32
  }
  func.func @transform_3(%arg0: i32, %arg1: i32) -> (i32, i32) {
    %c0_i32 = arith.constant 0 : i32
    %c0_i32_0 = arith.constant 0 : i32
    %c0_i32_1 = arith.constant 0 : i32
    return %c0_i32, %c0_i32_0 : i32, i32
  }
  func.func @transform_4(%arg0: i32, %arg1: i32) -> (i32, i32) {
    %c0_i32 = arith.constant 0 : i32
    %c0_i32_0 = arith.constant 0 : i32
    %c0_i32_1 = arith.constant 0 : i32
    return %c0_i32, %c0_i32_0 : i32, i32
  }
  func.func @transform_5(%arg0: i32, %arg1: i32) -> (i32, i32) {
    %c0_i32 = arith.constant 0 : i32
    %c0_i32_0 = arith.constant 0 : i32
    %c0_i32_1 = arith.constant 0 : i32
    return %c0_i32, %c0_i32_0 : i32, i32
  }
  func.func @transform_6(%arg0: i32, %arg1: i32) -> (i32, i32, i32) {
    %c0_i32 = arith.constant 0 : i32
    %c0_i32_0 = arith.constant 0 : i32
    return %arg1, %arg0, %c0_i32 : i32, i32, i32
  }
  func.func @transform_7(%arg0: i32, %arg1: i32) -> (i32, i32) {
    %c0_i32 = arith.constant 0 : i32
    %c0_i32_0 = arith.constant 0 : i32
    return %arg0, %c0_i32 : i32, i32
  }
  func.func @transform_8(%arg0: i32, %arg1: i32) -> (i32, i32) {
    %c0_i32 = arith.constant 0 : i32
    %c0_i32_0 = arith.constant 0 : i32
    return %arg0, %c0_i32 : i32, i32
  }
}

module attributes {stable_mosaic.version = 11 : i64} {
  func.func @kernel(%arg0: i32, %arg1: i32, %arg2: memref<8x8x32xf32, #tpu.memory_space<vmem>>, %arg3: memref<8x32xf32, #tpu.memory_space<vmem>>, %arg4: memref<8x32xf32, #tpu.memory_space<vmem>>, %arg5: memref<32x128xf32, #tpu.memory_space<vmem>>, %arg6: memref<32x128xf32, #tpu.memory_space<vmem>>, %arg7: memref<1x128xf32, #tpu.memory_space<vmem>>, %arg8: memref<32x64xf32, #tpu.memory_space<vmem>>, %arg9: memref<1x64xf32, #tpu.memory_space<vmem>>, %arg10: memref<8x8x32xf32, #tpu.memory_space<vmem>>, %arg11: memref<8x32xf32, #tpu.memory_space<vmem>>, %arg12: memref<8x32xf32, #tpu.memory_space<vmem>>, %arg13: memref<8x64xf32, #tpu.memory_space<vmem>>, %arg14: memref<64x128xf32, #tpu.memory_space<vmem>>, %arg15: memref<8x32xf32, #tpu.memory_space<vmem>>, %arg16: memref<8x32xf32, #tpu.memory_space<vmem>>) attributes {dimension_semantics = [#tpu.dimension_semantics<parallel>, #tpu.dimension_semantics<arbitrary>], iteration_bounds = array<i64: 1, 1>, scalar_prefetch = 0 : i64, scratch_operands = 3 : i64, tpu.core_type = #tpu.core_type<tc>, window_params = [{transform_indices = @transform_0, window_bounds = array<i64: 8, 8, 32>}, {transform_indices = @transform_1, window_bounds = array<i64: 8, 32>}, {transform_indices = @transform_2, window_bounds = array<i64: 8, 32>}, {pipeline_mode = #tpu.pipeline_mode<synchronous>, transform_indices = @transform_3, window_bounds = array<i64: 32, 128>}, {pipeline_mode = #tpu.pipeline_mode<synchronous>, transform_indices = @transform_4, window_bounds = array<i64: 32, 128>}, {pipeline_mode = #tpu.pipeline_mode<synchronous>, transform_indices = @transform_5, window_bounds = array<i64: 1, 128>}, {pipeline_mode = #tpu.pipeline_mode<synchronous>, transform_indices = @transform_6, window_bounds = array<i64: 32, 64>}, {pipeline_mode = #tpu.pipeline_mode<synchronous>, transform_indices = @transform_7, window_bounds = array<i64: 1, 64>}, {transform_indices = @transform_8, window_bounds = array<i64: 8, 8, 32>}, {transform_indices = @transform_9, window_bounds = array<i64: 8, 32>}, {transform_indices = @transform_10, window_bounds = array<i64: 8, 32>}, {transform_indices = @transform_11, window_bounds = array<i64: 8, 64>}]} {
    %c0_i32 = arith.constant 0 : i32
    %0 = arith.cmpi eq, %arg1, %c0_i32 : i32
    %1 = arith.extui %0 : i1 to i32
    %c0_i32_0 = arith.constant 0 : i32
    %2 = arith.cmpi ne, %1, %c0_i32_0 : i32
    scf.if %2 {
      %c0_86 = arith.constant 0 : index
      %c0_87 = arith.constant 0 : index
      %299 = vector.load %arg3[%c0_86, %c0_87] : memref<8x32xf32, #tpu.memory_space<vmem>>, vector<8x32xf32>
      %c0_88 = arith.constant 0 : index
      %c0_89 = arith.constant 0 : index
      %300 = vector.load %arg15[%c0_88, %c0_89] : memref<8x32xf32, #tpu.memory_space<vmem>>, vector<8x32xf32>
      tpu.vector_store %arg15[%c0_88, %c0_89], %299 {strides = array<i32>} : memref<8x32xf32, #tpu.memory_space<vmem>>, vector<8x32xf32>,
      %c0_90 = arith.constant 0 : index
      %c0_91 = arith.constant 0 : index
      %301 = vector.load %arg4[%c0_90, %c0_91] : memref<8x32xf32, #tpu.memory_space<vmem>>, vector<8x32xf32>
      %c0_92 = arith.constant 0 : index
      %c0_93 = arith.constant 0 : index
      %302 = vector.load %arg16[%c0_92, %c0_93] : memref<8x32xf32, #tpu.memory_space<vmem>>, vector<8x32xf32>
      tpu.vector_store %arg16[%c0_92, %c0_93], %301 {strides = array<i32>} : memref<8x32xf32, #tpu.memory_space<vmem>>, vector<8x32xf32>,
    } else {
    }
    %c0 = arith.constant 0 : index
    %c0_1 = arith.constant 0 : index
    %3 = vector.load %arg5[%c0, %c0_1] : memref<32x128xf32, #tpu.memory_space<vmem>>, vector<32x128xf32>
    %c0_2 = arith.constant 0 : index
    %c0_3 = arith.constant 0 : index
    %c0_4 = arith.constant 0 : index
    %4 = vector.load %arg2[%c0_2, %c0_3, %c0_4] : memref<8x8x32xf32, #tpu.memory_space<vmem>>, vector<8x8x32xf32>
    %5 = vector.shape_cast %4 : vector<8x8x32xf32> to vector<64x32xf32>
    %cst = arith.constant dense<0.000000e+00> : vector<64x128xf32>
    %6 = tpu.matmul %5, %3, %cst {dimension_numbers = #tpu.dot_dimension_numbers<[1], [0], [0], [1], [0, 0, 1, 1], [], []>} : vector<64x32xf32>, vector<32x128xf32>, vector<64x128xf32> -> vector<64x128xf32>
    %c0_5 = arith.constant 0 : index
    %c0_6 = arith.constant 0 : index
    %7 = vector.load %arg7[%c0_5, %c0_6] : memref<1x128xf32, #tpu.memory_space<vmem>>, vector<1x128xf32>
    %8 = vector.broadcast %7 : vector<1x128xf32> to vector<64x128xf32>
    %9 = arith.addf %6, %8 : vector<64x128xf32>
    %c0_7 = arith.constant 0 : index
    %c0_8 = arith.constant 0 : index
    %10 = vector.load %arg14[%c0_7, %c0_8] : memref<64x128xf32, #tpu.memory_space<vmem>>, vector<64x128xf32>
    tpu.vector_store %arg14[%c0_7, %c0_8], %9 {strides = array<i32>} : memref<64x128xf32, #tpu.memory_space<vmem>>, vector<64x128xf32>,
    %c0_9 = arith.constant 0 : index
    %c0_10 = arith.constant 0 : index
    %11 = vector.load %arg6[%c0_9, %c0_10] : memref<32x128xf32, #tpu.memory_space<vmem>>, vector<32x128xf32>
    %c0_11 = arith.constant 0 : index
    %c0_12 = arith.constant 0 : index
    %12 = vector.load %arg15[%c0_11, %c0_12] : memref<8x32xf32, #tpu.memory_space<vmem>>, vector<8x32xf32>
    %c0_13 = arith.constant 0 : index
    %c0_14 = arith.constant 0 : index
    %13 = vector.load %arg16[%c0_13, %c0_14] : memref<8x32xf32, #tpu.memory_space<vmem>>, vector<8x32xf32>
    %c0_i32_15 = arith.constant 0 : i32
    %c8_i32 = arith.constant 8 : i32
    %14 = arith.muli %c0_i32_15, %c8_i32 : i32
    %15 = tpu.assume_multiple %14, 8 : i32
    %16 = arith.index_cast %15 : i32 to index
    %c0_16 = arith.constant 0 : index
    %17 = vector.load %arg14[%16, %c0_16] : memref<64x128xf32, #tpu.memory_space<vmem>>, vector<8x128xf32>
    %cst_17 = arith.constant dense<0.000000e+00> : vector<8x128xf32>
    %18 = tpu.matmul %12, %11, %cst_17 {dimension_numbers = #tpu.dot_dimension_numbers<[1], [0], [0], [1], [0, 0, 1, 1], [], []>} : vector<8x32xf32>, vector<32x128xf32>, vector<8x128xf32> -> vector<8x128xf32>
    %19 = arith.addf %17, %18 : vector<8x128xf32>
    %20 = vector.extract_strided_slice %19 {offsets = [0, 0], sizes = [8, 32], strides = [1, 1]} : vector<8x128xf32> to vector<8x32xf32>
    %21 = arith.negf %20 : vector<8x32xf32>
    %22 = math.exp %21 : vector<8x32xf32>
    %cst_18 = arith.constant 1.000000e+00 : f32
    %23 = vector.broadcast %cst_18 : f32 to vector<8x32xf32>
    %24 = arith.addf %23, %22 : vector<8x32xf32>
    %25 = arith.divf %23, %24 : vector<8x32xf32>
    %26 = vector.extract_strided_slice %19 {offsets = [0, 32], sizes = [8, 32], strides = [1, 1]} : vector<8x128xf32> to vector<8x32xf32>
    %27 = arith.negf %26 : vector<8x32xf32>
    %28 = math.exp %27 : vector<8x32xf32>
    %cst_19 = arith.constant 1.000000e+00 : f32
    %29 = vector.broadcast %cst_19 : f32 to vector<8x32xf32>
    %30 = arith.addf %29, %28 : vector<8x32xf32>
    %31 = arith.divf %29, %30 : vector<8x32xf32>
    %32 = vector.extract_strided_slice %19 {offsets = [0, 64], sizes = [8, 32], strides = [1, 1]} : vector<8x128xf32> to vector<8x32xf32>
    %33 = math.tanh %32 : vector<8x32xf32>
    %34 = vector.extract_strided_slice %19 {offsets = [0, 96], sizes = [8, 32], strides = [1, 1]} : vector<8x128xf32> to vector<8x32xf32>
    %35 = arith.negf %34 : vector<8x32xf32>
    %36 = math.exp %35 : vector<8x32xf32>
    %cst_20 = arith.constant 1.000000e+00 : f32
    %37 = vector.broadcast %cst_20 : f32 to vector<8x32xf32>
    %38 = arith.addf %37, %36 : vector<8x32xf32>
    %39 = arith.divf %37, %38 : vector<8x32xf32>
    %40 = arith.mulf %31, %13 : vector<8x32xf32>
    %41 = arith.mulf %25, %33 : vector<8x32xf32>
    %42 = arith.addf %40, %41 : vector<8x32xf32>
    %43 = math.tanh %42 : vector<8x32xf32>
    %44 = arith.mulf %39, %43 : vector<8x32xf32>
    %45 = arith.index_cast %c0_i32_15 : i32 to index
    %c0_21 = arith.constant 0 : index
    %c0_22 = arith.constant 0 : index
    %46 = vector.load %arg10[%45, %c0_21, %c0_22] : memref<8x8x32xf32, #tpu.memory_space<vmem>>, vector<1x8x32xf32>
    %47 = vector.shape_cast %46 : vector<1x8x32xf32> to vector<8x32xf32>
    %48 = vector.shape_cast %44 : vector<8x32xf32> to vector<1x8x32xf32>
    tpu.vector_store %arg10[%45, %c0_21, %c0_22], %48 {strides = array<i32>} : memref<8x8x32xf32, #tpu.memory_space<vmem>>, vector<1x8x32xf32>,
    %c1_i32 = arith.constant 1 : i32
    %c8_i32_23 = arith.constant 8 : i32
    %49 = arith.muli %c1_i32, %c8_i32_23 : i32
    %50 = tpu.assume_multiple %49, 8 : i32
    %51 = arith.index_cast %50 : i32 to index
    %c0_24 = arith.constant 0 : index
    %52 = vector.load %arg14[%51, %c0_24] : memref<64x128xf32, #tpu.memory_space<vmem>>, vector<8x128xf32>
    %cst_25 = arith.constant dense<0.000000e+00> : vector<8x128xf32>
    %53 = tpu.matmul %44, %11, %cst_25 {dimension_numbers = #tpu.dot_dimension_numbers<[1], [0], [0], [1], [0, 0, 1, 1], [], []>} : vector<8x32xf32>, vector<32x128xf32>, vector<8x128xf32> -> vector<8x128xf32>
    %54 = arith.addf %52, %53 : vector<8x128xf32>
    %55 = vector.extract_strided_slice %54 {offsets = [0, 0], sizes = [8, 32], strides = [1, 1]} : vector<8x128xf32> to vector<8x32xf32>
    %56 = arith.negf %55 : vector<8x32xf32>
    %57 = math.exp %56 : vector<8x32xf32>
    %cst_26 = arith.constant 1.000000e+00 : f32
    %58 = vector.broadcast %cst_26 : f32 to vector<8x32xf32>
    %59 = arith.addf %58, %57 : vector<8x32xf32>
    %60 = arith.divf %58, %59 : vector<8x32xf32>
    %61 = vector.extract_strided_slice %54 {offsets = [0, 32], sizes = [8, 32], strides = [1, 1]} : vector<8x128xf32> to vector<8x32xf32>
    %62 = arith.negf %61 : vector<8x32xf32>
    %63 = math.exp %62 : vector<8x32xf32>
    %cst_27 = arith.constant 1.000000e+00 : f32
    %64 = vector.broadcast %cst_27 : f32 to vector<8x32xf32>
    %65 = arith.addf %64, %63 : vector<8x32xf32>
    %66 = arith.divf %64, %65 : vector<8x32xf32>
    %67 = vector.extract_strided_slice %54 {offsets = [0, 64], sizes = [8, 32], strides = [1, 1]} : vector<8x128xf32> to vector<8x32xf32>
    %68 = math.tanh %67 : vector<8x32xf32>
    %69 = vector.extract_strided_slice %54 {offsets = [0, 96], sizes = [8, 32], strides = [1, 1]} : vector<8x128xf32> to vector<8x32xf32>
    %70 = arith.negf %69 : vector<8x32xf32>
    %71 = math.exp %70 : vector<8x32xf32>
    %cst_28 = arith.constant 1.000000e+00 : f32
    %72 = vector.broadcast %cst_28 : f32 to vector<8x32xf32>
    %73 = arith.addf %72, %71 : vector<8x32xf32>
    %74 = arith.divf %72, %73 : vector<8x32xf32>
    %75 = arith.mulf %66, %42 : vector<8x32xf32>
    %76 = arith.mulf %60, %68 : vector<8x32xf32>
    %77 = arith.addf %75, %76 : vector<8x32xf32>
    %78 = math.tanh %77 : vector<8x32xf32>
    %79 = arith.mulf %74, %78 : vector<8x32xf32>
    %80 = arith.index_cast %c1_i32 : i32 to index
    %c0_29 = arith.constant 0 : index
    %c0_30 = arith.constant 0 : index
    %81 = vector.load %arg10[%80, %c0_29, %c0_30] : memref<8x8x32xf32, #tpu.memory_space<vmem>>, vector<1x8x32xf32>
    %82 = vector.shape_cast %81 : vector<1x8x32xf32> to vector<8x32xf32>
    %83 = vector.shape_cast %79 : vector<8x32xf32> to vector<1x8x32xf32>
    tpu.vector_store %arg10[%80, %c0_29, %c0_30], %83 {strides = array<i32>} : memref<8x8x32xf32, #tpu.memory_space<vmem>>, vector<1x8x32xf32>,
    %c2_i32 = arith.constant 2 : i32
    %c8_i32_31 = arith.constant 8 : i32
    %84 = arith.muli %c2_i32, %c8_i32_31 : i32
    %85 = tpu.assume_multiple %84, 8 : i32
    %86 = arith.index_cast %85 : i32 to index
    %c0_32 = arith.constant 0 : index
    %87 = vector.load %arg14[%86, %c0_32] : memref<64x128xf32, #tpu.memory_space<vmem>>, vector<8x128xf32>
    %cst_33 = arith.constant dense<0.000000e+00> : vector<8x128xf32>
    %88 = tpu.matmul %79, %11, %cst_33 {dimension_numbers = #tpu.dot_dimension_numbers<[1], [0], [0], [1], [0, 0, 1, 1], [], []>} : vector<8x32xf32>, vector<32x128xf32>, vector<8x128xf32> -> vector<8x128xf32>
    %89 = arith.addf %87, %88 : vector<8x128xf32>
    %90 = vector.extract_strided_slice %89 {offsets = [0, 0], sizes = [8, 32], strides = [1, 1]} : vector<8x128xf32> to vector<8x32xf32>
    %91 = arith.negf %90 : vector<8x32xf32>
    %92 = math.exp %91 : vector<8x32xf32>
    %cst_34 = arith.constant 1.000000e+00 : f32
    %93 = vector.broadcast %cst_34 : f32 to vector<8x32xf32>
    %94 = arith.addf %93, %92 : vector<8x32xf32>
    %95 = arith.divf %93, %94 : vector<8x32xf32>
    %96 = vector.extract_strided_slice %89 {offsets = [0, 32], sizes = [8, 32], strides = [1, 1]} : vector<8x128xf32> to vector<8x32xf32>
    %97 = arith.negf %96 : vector<8x32xf32>
    %98 = math.exp %97 : vector<8x32xf32>
    %cst_35 = arith.constant 1.000000e+00 : f32
    %99 = vector.broadcast %cst_35 : f32 to vector<8x32xf32>
    %100 = arith.addf %99, %98 : vector<8x32xf32>
    %101 = arith.divf %99, %100 : vector<8x32xf32>
    %102 = vector.extract_strided_slice %89 {offsets = [0, 64], sizes = [8, 32], strides = [1, 1]} : vector<8x128xf32> to vector<8x32xf32>
    %103 = math.tanh %102 : vector<8x32xf32>
    %104 = vector.extract_strided_slice %89 {offsets = [0, 96], sizes = [8, 32], strides = [1, 1]} : vector<8x128xf32> to vector<8x32xf32>
    %105 = arith.negf %104 : vector<8x32xf32>
    %106 = math.exp %105 : vector<8x32xf32>
    %cst_36 = arith.constant 1.000000e+00 : f32
    %107 = vector.broadcast %cst_36 : f32 to vector<8x32xf32>
    %108 = arith.addf %107, %106 : vector<8x32xf32>
    %109 = arith.divf %107, %108 : vector<8x32xf32>
    %110 = arith.mulf %101, %77 : vector<8x32xf32>
    %111 = arith.mulf %95, %103 : vector<8x32xf32>
    %112 = arith.addf %110, %111 : vector<8x32xf32>
    %113 = math.tanh %112 : vector<8x32xf32>
    %114 = arith.mulf %109, %113 : vector<8x32xf32>
    %115 = arith.index_cast %c2_i32 : i32 to index
    %c0_37 = arith.constant 0 : index
    %c0_38 = arith.constant 0 : index
    %116 = vector.load %arg10[%115, %c0_37, %c0_38] : memref<8x8x32xf32, #tpu.memory_space<vmem>>, vector<1x8x32xf32>
    %117 = vector.shape_cast %116 : vector<1x8x32xf32> to vector<8x32xf32>
    %118 = vector.shape_cast %114 : vector<8x32xf32> to vector<1x8x32xf32>
    tpu.vector_store %arg10[%115, %c0_37, %c0_38], %118 {strides = array<i32>} : memref<8x8x32xf32, #tpu.memory_space<vmem>>, vector<1x8x32xf32>,
    %c3_i32 = arith.constant 3 : i32
    %c8_i32_39 = arith.constant 8 : i32
    %119 = arith.muli %c3_i32, %c8_i32_39 : i32
    %120 = tpu.assume_multiple %119, 8 : i32
    %121 = arith.index_cast %120 : i32 to index
    %c0_40 = arith.constant 0 : index
    %122 = vector.load %arg14[%121, %c0_40] : memref<64x128xf32, #tpu.memory_space<vmem>>, vector<8x128xf32>
    %cst_41 = arith.constant dense<0.000000e+00> : vector<8x128xf32>
    %123 = tpu.matmul %114, %11, %cst_41 {dimension_numbers = #tpu.dot_dimension_numbers<[1], [0], [0], [1], [0, 0, 1, 1], [], []>} : vector<8x32xf32>, vector<32x128xf32>, vector<8x128xf32> -> vector<8x128xf32>
    %124 = arith.addf %122, %123 : vector<8x128xf32>
    %125 = vector.extract_strided_slice %124 {offsets = [0, 0], sizes = [8, 32], strides = [1, 1]} : vector<8x128xf32> to vector<8x32xf32>
    %126 = arith.negf %125 : vector<8x32xf32>
    %127 = math.exp %126 : vector<8x32xf32>
    %cst_42 = arith.constant 1.000000e+00 : f32
    %128 = vector.broadcast %cst_42 : f32 to vector<8x32xf32>
    %129 = arith.addf %128, %127 : vector<8x32xf32>
    %130 = arith.divf %128, %129 : vector<8x32xf32>
    %131 = vector.extract_strided_slice %124 {offsets = [0, 32], sizes = [8, 32], strides = [1, 1]} : vector<8x128xf32> to vector<8x32xf32>
    %132 = arith.negf %131 : vector<8x32xf32>
    %133 = math.exp %132 : vector<8x32xf32>
    %cst_43 = arith.constant 1.000000e+00 : f32
    %134 = vector.broadcast %cst_43 : f32 to vector<8x32xf32>
    %135 = arith.addf %134, %133 : vector<8x32xf32>
    %136 = arith.divf %134, %135 : vector<8x32xf32>
    %137 = vector.extract_strided_slice %124 {offsets = [0, 64], sizes = [8, 32], strides = [1, 1]} : vector<8x128xf32> to vector<8x32xf32>
    %138 = math.tanh %137 : vector<8x32xf32>
    %139 = vector.extract_strided_slice %124 {offsets = [0, 96], sizes = [8, 32], strides = [1, 1]} : vector<8x128xf32> to vector<8x32xf32>
    %140 = arith.negf %139 : vector<8x32xf32>
    %141 = math.exp %140 : vector<8x32xf32>
    %cst_44 = arith.constant 1.000000e+00 : f32
    %142 = vector.broadcast %cst_44 : f32 to vector<8x32xf32>
    %143 = arith.addf %142, %141 : vector<8x32xf32>
    %144 = arith.divf %142, %143 : vector<8x32xf32>
    %145 = arith.mulf %136, %112 : vector<8x32xf32>
    %146 = arith.mulf %130, %138 : vector<8x32xf32>
    %147 = arith.addf %145, %146 : vector<8x32xf32>
    %148 = math.tanh %147 : vector<8x32xf32>
    %149 = arith.mulf %144, %148 : vector<8x32xf32>
    %150 = arith.index_cast %c3_i32 : i32 to index
    %c0_45 = arith.constant 0 : index
    %c0_46 = arith.constant 0 : index
    %151 = vector.load %arg10[%150, %c0_45, %c0_46] : memref<8x8x32xf32, #tpu.memory_space<vmem>>, vector<1x8x32xf32>
    %152 = vector.shape_cast %151 : vector<1x8x32xf32> to vector<8x32xf32>
    %153 = vector.shape_cast %149 : vector<8x32xf32> to vector<1x8x32xf32>
    tpu.vector_store %arg10[%150, %c0_45, %c0_46], %153 {strides = array<i32>} : memref<8x8x32xf32, #tpu.memory_space<vmem>>, vector<1x8x32xf32>,
    %c4_i32 = arith.constant 4 : i32
    %c8_i32_47 = arith.constant 8 : i32
    %154 = arith.muli %c4_i32, %c8_i32_47 : i32
    %155 = tpu.assume_multiple %154, 8 : i32
    %156 = arith.index_cast %155 : i32 to index
    %c0_48 = arith.constant 0 : index
    %157 = vector.load %arg14[%156, %c0_48] : memref<64x128xf32, #tpu.memory_space<vmem>>, vector<8x128xf32>
    %cst_49 = arith.constant dense<0.000000e+00> : vector<8x128xf32>
    %158 = tpu.matmul %149, %11, %cst_49 {dimension_numbers = #tpu.dot_dimension_numbers<[1], [0], [0], [1], [0, 0, 1, 1], [], []>} : vector<8x32xf32>, vector<32x128xf32>, vector<8x128xf32> -> vector<8x128xf32>
    %159 = arith.addf %157, %158 : vector<8x128xf32>
    %160 = vector.extract_strided_slice %159 {offsets = [0, 0], sizes = [8, 32], strides = [1, 1]} : vector<8x128xf32> to vector<8x32xf32>
    %161 = arith.negf %160 : vector<8x32xf32>
    %162 = math.exp %161 : vector<8x32xf32>
    %cst_50 = arith.constant 1.000000e+00 : f32
    %163 = vector.broadcast %cst_50 : f32 to vector<8x32xf32>
    %164 = arith.addf %163, %162 : vector<8x32xf32>
    %165 = arith.divf %163, %164 : vector<8x32xf32>
    %166 = vector.extract_strided_slice %159 {offsets = [0, 32], sizes = [8, 32], strides = [1, 1]} : vector<8x128xf32> to vector<8x32xf32>
    %167 = arith.negf %166 : vector<8x32xf32>
    %168 = math.exp %167 : vector<8x32xf32>
    %cst_51 = arith.constant 1.000000e+00 : f32
    %169 = vector.broadcast %cst_51 : f32 to vector<8x32xf32>
    %170 = arith.addf %169, %168 : vector<8x32xf32>
    %171 = arith.divf %169, %170 : vector<8x32xf32>
    %172 = vector.extract_strided_slice %159 {offsets = [0, 64], sizes = [8, 32], strides = [1, 1]} : vector<8x128xf32> to vector<8x32xf32>
    %173 = math.tanh %172 : vector<8x32xf32>
    %174 = vector.extract_strided_slice %159 {offsets = [0, 96], sizes = [8, 32], strides = [1, 1]} : vector<8x128xf32> to vector<8x32xf32>
    %175 = arith.negf %174 : vector<8x32xf32>
    %176 = math.exp %175 : vector<8x32xf32>
    %cst_52 = arith.constant 1.000000e+00 : f32
    %177 = vector.broadcast %cst_52 : f32 to vector<8x32xf32>
    %178 = arith.addf %177, %176 : vector<8x32xf32>
    %179 = arith.divf %177, %178 : vector<8x32xf32>
    %180 = arith.mulf %171, %147 : vector<8x32xf32>
    %181 = arith.mulf %165, %173 : vector<8x32xf32>
    %182 = arith.addf %180, %181 : vector<8x32xf32>
    %183 = math.tanh %182 : vector<8x32xf32>
    %184 = arith.mulf %179, %183 : vector<8x32xf32>
    %185 = arith.index_cast %c4_i32 : i32 to index
    %c0_53 = arith.constant 0 : index
    %c0_54 = arith.constant 0 : index
    %186 = vector.load %arg10[%185, %c0_53, %c0_54] : memref<8x8x32xf32, #tpu.memory_space<vmem>>, vector<1x8x32xf32>
    %187 = vector.shape_cast %186 : vector<1x8x32xf32> to vector<8x32xf32>
    %188 = vector.shape_cast %184 : vector<8x32xf32> to vector<1x8x32xf32>
    tpu.vector_store %arg10[%185, %c0_53, %c0_54], %188 {strides = array<i32>} : memref<8x8x32xf32, #tpu.memory_space<vmem>>, vector<1x8x32xf32>,
    %c5_i32 = arith.constant 5 : i32
    %c8_i32_55 = arith.constant 8 : i32
    %189 = arith.muli %c5_i32, %c8_i32_55 : i32
    %190 = tpu.assume_multiple %189, 8 : i32
    %191 = arith.index_cast %190 : i32 to index
    %c0_56 = arith.constant 0 : index
    %192 = vector.load %arg14[%191, %c0_56] : memref<64x128xf32, #tpu.memory_space<vmem>>, vector<8x128xf32>
    %cst_57 = arith.constant dense<0.000000e+00> : vector<8x128xf32>
    %193 = tpu.matmul %184, %11, %cst_57 {dimension_numbers = #tpu.dot_dimension_numbers<[1], [0], [0], [1], [0, 0, 1, 1], [], []>} : vector<8x32xf32>, vector<32x128xf32>, vector<8x128xf32> -> vector<8x128xf32>
    %194 = arith.addf %192, %193 : vector<8x128xf32>
    %195 = vector.extract_strided_slice %194 {offsets = [0, 0], sizes = [8, 32], strides = [1, 1]} : vector<8x128xf32> to vector<8x32xf32>
    %196 = arith.negf %195 : vector<8x32xf32>
    %197 = math.exp %196 : vector<8x32xf32>
    %cst_58 = arith.constant 1.000000e+00 : f32
    %198 = vector.broadcast %cst_58 : f32 to vector<8x32xf32>
    %199 = arith.addf %198, %197 : vector<8x32xf32>
    %200 = arith.divf %198, %199 : vector<8x32xf32>
    %201 = vector.extract_strided_slice %194 {offsets = [0, 32], sizes = [8, 32], strides = [1, 1]} : vector<8x128xf32> to vector<8x32xf32>
    %202 = arith.negf %201 : vector<8x32xf32>
    %203 = math.exp %202 : vector<8x32xf32>
    %cst_59 = arith.constant 1.000000e+00 : f32
    %204 = vector.broadcast %cst_59 : f32 to vector<8x32xf32>
    %205 = arith.addf %204, %203 : vector<8x32xf32>
    %206 = arith.divf %204, %205 : vector<8x32xf32>
    %207 = vector.extract_strided_slice %194 {offsets = [0, 64], sizes = [8, 32], strides = [1, 1]} : vector<8x128xf32> to vector<8x32xf32>
    %208 = math.tanh %207 : vector<8x32xf32>
    %209 = vector.extract_strided_slice %194 {offsets = [0, 96], sizes = [8, 32], strides = [1, 1]} : vector<8x128xf32> to vector<8x32xf32>
    %210 = arith.negf %209 : vector<8x32xf32>
    %211 = math.exp %210 : vector<8x32xf32>
    %cst_60 = arith.constant 1.000000e+00 : f32
    %212 = vector.broadcast %cst_60 : f32 to vector<8x32xf32>
    %213 = arith.addf %212, %211 : vector<8x32xf32>
    %214 = arith.divf %212, %213 : vector<8x32xf32>
    %215 = arith.mulf %206, %182 : vector<8x32xf32>
    %216 = arith.mulf %200, %208 : vector<8x32xf32>
    %217 = arith.addf %215, %216 : vector<8x32xf32>
    %218 = math.tanh %217 : vector<8x32xf32>
    %219 = arith.mulf %214, %218 : vector<8x32xf32>
    %220 = arith.index_cast %c5_i32 : i32 to index
    %c0_61 = arith.constant 0 : index
    %c0_62 = arith.constant 0 : index
    %221 = vector.load %arg10[%220, %c0_61, %c0_62] : memref<8x8x32xf32, #tpu.memory_space<vmem>>, vector<1x8x32xf32>
    %222 = vector.shape_cast %221 : vector<1x8x32xf32> to vector<8x32xf32>
    %223 = vector.shape_cast %219 : vector<8x32xf32> to vector<1x8x32xf32>
    tpu.vector_store %arg10[%220, %c0_61, %c0_62], %223 {strides = array<i32>} : memref<8x8x32xf32, #tpu.memory_space<vmem>>, vector<1x8x32xf32>,
    %c6_i32 = arith.constant 6 : i32
    %c8_i32_63 = arith.constant 8 : i32
    %224 = arith.muli %c6_i32, %c8_i32_63 : i32
    %225 = tpu.assume_multiple %224, 8 : i32
    %226 = arith.index_cast %225 : i32 to index
    %c0_64 = arith.constant 0 : index
    %227 = vector.load %arg14[%226, %c0_64] : memref<64x128xf32, #tpu.memory_space<vmem>>, vector<8x128xf32>
    %cst_65 = arith.constant dense<0.000000e+00> : vector<8x128xf32>
    %228 = tpu.matmul %219, %11, %cst_65 {dimension_numbers = #tpu.dot_dimension_numbers<[1], [0], [0], [1], [0, 0, 1, 1], [], []>} : vector<8x32xf32>, vector<32x128xf32>, vector<8x128xf32> -> vector<8x128xf32>
    %229 = arith.addf %227, %228 : vector<8x128xf32>
    %230 = vector.extract_strided_slice %229 {offsets = [0, 0], sizes = [8, 32], strides = [1, 1]} : vector<8x128xf32> to vector<8x32xf32>
    %231 = arith.negf %230 : vector<8x32xf32>
    %232 = math.exp %231 : vector<8x32xf32>
    %cst_66 = arith.constant 1.000000e+00 : f32
    %233 = vector.broadcast %cst_66 : f32 to vector<8x32xf32>
    %234 = arith.addf %233, %232 : vector<8x32xf32>
    %235 = arith.divf %233, %234 : vector<8x32xf32>
    %236 = vector.extract_strided_slice %229 {offsets = [0, 32], sizes = [8, 32], strides = [1, 1]} : vector<8x128xf32> to vector<8x32xf32>
    %237 = arith.negf %236 : vector<8x32xf32>
    %238 = math.exp %237 : vector<8x32xf32>
    %cst_67 = arith.constant 1.000000e+00 : f32
    %239 = vector.broadcast %cst_67 : f32 to vector<8x32xf32>
    %240 = arith.addf %239, %238 : vector<8x32xf32>
    %241 = arith.divf %239, %240 : vector<8x32xf32>
    %242 = vector.extract_strided_slice %229 {offsets = [0, 64], sizes = [8, 32], strides = [1, 1]} : vector<8x128xf32> to vector<8x32xf32>
    %243 = math.tanh %242 : vector<8x32xf32>
    %244 = vector.extract_strided_slice %229 {offsets = [0, 96], sizes = [8, 32], strides = [1, 1]} : vector<8x128xf32> to vector<8x32xf32>
    %245 = arith.negf %244 : vector<8x32xf32>
    %246 = math.exp %245 : vector<8x32xf32>
    %cst_68 = arith.constant 1.000000e+00 : f32
    %247 = vector.broadcast %cst_68 : f32 to vector<8x32xf32>
    %248 = arith.addf %247, %246 : vector<8x32xf32>
    %249 = arith.divf %247, %248 : vector<8x32xf32>
    %250 = arith.mulf %241, %217 : vector<8x32xf32>
    %251 = arith.mulf %235, %243 : vector<8x32xf32>
    %252 = arith.addf %250, %251 : vector<8x32xf32>
    %253 = math.tanh %252 : vector<8x32xf32>
    %254 = arith.mulf %249, %253 : vector<8x32xf32>
    %255 = arith.index_cast %c6_i32 : i32 to index
    %c0_69 = arith.constant 0 : index
    %c0_70 = arith.constant 0 : index
    %256 = vector.load %arg10[%255, %c0_69, %c0_70] : memref<8x8x32xf32, #tpu.memory_space<vmem>>, vector<1x8x32xf32>
    %257 = vector.shape_cast %256 : vector<1x8x32xf32> to vector<8x32xf32>
    %258 = vector.shape_cast %254 : vector<8x32xf32> to vector<1x8x32xf32>
    tpu.vector_store %arg10[%255, %c0_69, %c0_70], %258 {strides = array<i32>} : memref<8x8x32xf32, #tpu.memory_space<vmem>>, vector<1x8x32xf32>,
    %c7_i32 = arith.constant 7 : i32
    %c8_i32_71 = arith.constant 8 : i32
    %259 = arith.muli %c7_i32, %c8_i32_71 : i32
    %260 = tpu.assume_multiple %259, 8 : i32
    %261 = arith.index_cast %260 : i32 to index
    %c0_72 = arith.constant 0 : index
    %262 = vector.load %arg14[%261, %c0_72] : memref<64x128xf32, #tpu.memory_space<vmem>>, vector<8x128xf32>
    %cst_73 = arith.constant dense<0.000000e+00> : vector<8x128xf32>
    %263 = tpu.matmul %254, %11, %cst_73 {dimension_numbers = #tpu.dot_dimension_numbers<[1], [0], [0], [1], [0, 0, 1, 1], [], []>} : vector<8x32xf32>, vector<32x128xf32>, vector<8x128xf32> -> vector<8x128xf32>
    %264 = arith.addf %262, %263 : vector<8x128xf32>
    %265 = vector.extract_strided_slice %264 {offsets = [0, 0], sizes = [8, 32], strides = [1, 1]} : vector<8x128xf32> to vector<8x32xf32>
    %266 = arith.negf %265 : vector<8x32xf32>
    %267 = math.exp %266 : vector<8x32xf32>
    %cst_74 = arith.constant 1.000000e+00 : f32
    %268 = vector.broadcast %cst_74 : f32 to vector<8x32xf32>
    %269 = arith.addf %268, %267 : vector<8x32xf32>
    %270 = arith.divf %268, %269 : vector<8x32xf32>
    %271 = vector.extract_strided_slice %264 {offsets = [0, 32], sizes = [8, 32], strides = [1, 1]} : vector<8x128xf32> to vector<8x32xf32>
    %272 = arith.negf %271 : vector<8x32xf32>
    %273 = math.exp %272 : vector<8x32xf32>
    %cst_75 = arith.constant 1.000000e+00 : f32
    %274 = vector.broadcast %cst_75 : f32 to vector<8x32xf32>
    %275 = arith.addf %274, %273 : vector<8x32xf32>
    %276 = arith.divf %274, %275 : vector<8x32xf32>
    %277 = vector.extract_strided_slice %264 {offsets = [0, 64], sizes = [8, 32], strides = [1, 1]} : vector<8x128xf32> to vector<8x32xf32>
    %278 = math.tanh %277 : vector<8x32xf32>
    %279 = vector.extract_strided_slice %264 {offsets = [0, 96], sizes = [8, 32], strides = [1, 1]} : vector<8x128xf32> to vector<8x32xf32>
    %280 = arith.negf %279 : vector<8x32xf32>
    %281 = math.exp %280 : vector<8x32xf32>
    %cst_76 = arith.constant 1.000000e+00 : f32
    %282 = vector.broadcast %cst_76 : f32 to vector<8x32xf32>
    %283 = arith.addf %282, %281 : vector<8x32xf32>
    %284 = arith.divf %282, %283 : vector<8x32xf32>
    %285 = arith.mulf %276, %252 : vector<8x32xf32>
    %286 = arith.mulf %270, %278 : vector<8x32xf32>
    %287 = arith.addf %285, %286 : vector<8x32xf32>
    %288 = math.tanh %287 : vector<8x32xf32>
    %289 = arith.mulf %284, %288 : vector<8x32xf32>
    %290 = arith.index_cast %c7_i32 : i32 to index
    %c0_77 = arith.constant 0 : index
    %c0_78 = arith.constant 0 : index
    %291 = vector.load %arg10[%290, %c0_77, %c0_78] : memref<8x8x32xf32, #tpu.memory_space<vmem>>, vector<1x8x32xf32>
    %292 = vector.shape_cast %291 : vector<1x8x32xf32> to vector<8x32xf32>
    %293 = vector.shape_cast %289 : vector<8x32xf32> to vector<1x8x32xf32>
    tpu.vector_store %arg10[%290, %c0_77, %c0_78], %293 {strides = array<i32>} : memref<8x8x32xf32, #tpu.memory_space<vmem>>, vector<1x8x32xf32>,
    %c8_i32_79 = arith.constant 8 : i32
    %c0_80 = arith.constant 0 : index
    %c0_81 = arith.constant 0 : index
    %294 = vector.load %arg15[%c0_80, %c0_81] : memref<8x32xf32, #tpu.memory_space<vmem>>, vector<8x32xf32>
    tpu.vector_store %arg15[%c0_80, %c0_81], %289 {strides = array<i32>} : memref<8x32xf32, #tpu.memory_space<vmem>>, vector<8x32xf32>,
    %c0_82 = arith.constant 0 : index
    %c0_83 = arith.constant 0 : index
    %295 = vector.load %arg16[%c0_82, %c0_83] : memref<8x32xf32, #tpu.memory_space<vmem>>, vector<8x32xf32>
    tpu.vector_store %arg16[%c0_82, %c0_83], %287 {strides = array<i32>} : memref<8x32xf32, #tpu.memory_space<vmem>>, vector<8x32xf32>,
    %c0_i32_84 = arith.constant 0 : i32
    %296 = arith.cmpi eq, %arg1, %c0_i32_84 : i32
    %297 = arith.extui %296 : i1 to i32
    %c0_i32_85 = arith.constant 0 : i32
    %298 = arith.cmpi ne, %297, %c0_i32_85 : i32
    scf.if %298 {
      %c0_86 = arith.constant 0 : index
      %c0_87 = arith.constant 0 : index
      %299 = vector.load %arg11[%c0_86, %c0_87] : memref<8x32xf32, #tpu.memory_space<vmem>>, vector<8x32xf32>
      tpu.vector_store %arg11[%c0_86, %c0_87], %289 {strides = array<i32>} : memref<8x32xf32, #tpu.memory_space<vmem>>, vector<8x32xf32>,
      %c0_88 = arith.constant 0 : index
      %c0_89 = arith.constant 0 : index
      %300 = vector.load %arg12[%c0_88, %c0_89] : memref<8x32xf32, #tpu.memory_space<vmem>>, vector<8x32xf32>
      tpu.vector_store %arg12[%c0_88, %c0_89], %287 {strides = array<i32>} : memref<8x32xf32, #tpu.memory_space<vmem>>, vector<8x32xf32>,
      %c0_90 = arith.constant 0 : index
      %c0_91 = arith.constant 0 : index
      %301 = vector.load %arg8[%c0_90, %c0_91] : memref<32x64xf32, #tpu.memory_space<vmem>>, vector<32x64xf32>
      %cst_92 = arith.constant dense<0.000000e+00> : vector<8x64xf32>
      %302 = tpu.matmul %289, %301, %cst_92 {dimension_numbers = #tpu.dot_dimension_numbers<[1], [0], [0], [1], [0, 0, 1, 1], [], []>} : vector<8x32xf32>, vector<32x64xf32>, vector<8x64xf32> -> vector<8x64xf32>
      %c0_93 = arith.constant 0 : index
      %c0_94 = arith.constant 0 : index
      %303 = vector.load %arg9[%c0_93, %c0_94] : memref<1x64xf32, #tpu.memory_space<vmem>>, vector<1x64xf32>
      %304 = vector.broadcast %303 : vector<1x64xf32> to vector<8x64xf32>
      %305 = arith.addf %302, %304 : vector<8x64xf32>
      %c0_95 = arith.constant 0 : index
      %c0_96 = arith.constant 0 : index
      %306 = vector.load %arg13[%c0_95, %c0_96] : memref<8x64xf32, #tpu.memory_space<vmem>>, vector<8x64xf32>
      tpu.vector_store %arg13[%c0_95, %c0_96], %305 {strides = array<i32>} : memref<8x64xf32, #tpu.memory_space<vmem>>, vector<8x64xf32>,
    } else {
    }
    return
  }
  func.func @transform_0(%arg0: i32, %arg1: i32) -> (i32, i32, i32) {
    %c0_i32 = arith.constant 0 : i32
    %c0_i32_0 = arith.constant 0 : i32
    return %arg1, %arg0, %c0_i32 : i32, i32, i32
  }
  func.func @transform_1(%arg0: i32, %arg1: i32) -> (i32, i32) {
    %c0_i32 = arith.constant 0 : i32
    %c0_i32_0 = arith.constant 0 : i32
    return %arg0, %c0_i32 : i32, i32
  }
  func.func @transform_2(%arg0: i32, %arg1: i32) -> (i32, i32) {
    %c0_i32 = arith.constant 0 : i32
    %c0_i32_0 = arith.constant 0 : i32
    return %arg0, %c0_i32 : i32, i32
  }
  func.func @transform_3(%arg0: i32, %arg1: i32) -> (i32, i32) {
    %c0_i32 = arith.constant 0 : i32
    %c0_i32_0 = arith.constant 0 : i32
    %c0_i32_1 = arith.constant 0 : i32
    return %c0_i32, %c0_i32_0 : i32, i32
  }
  func.func @transform_4(%arg0: i32, %arg1: i32) -> (i32, i32) {
    %c0_i32 = arith.constant 0 : i32
    %c0_i32_0 = arith.constant 0 : i32
    %c0_i32_1 = arith.constant 0 : i32
    return %c0_i32, %c0_i32_0 : i32, i32
  }
  func.func @transform_5(%arg0: i32, %arg1: i32) -> (i32, i32) {
    %c0_i32 = arith.constant 0 : i32
    %c0_i32_0 = arith.constant 0 : i32
    %c0_i32_1 = arith.constant 0 : i32
    return %c0_i32, %c0_i32_0 : i32, i32
  }
  func.func @transform_6(%arg0: i32, %arg1: i32) -> (i32, i32) {
    %c0_i32 = arith.constant 0 : i32
    %c0_i32_0 = arith.constant 0 : i32
    %c0_i32_1 = arith.constant 0 : i32
    return %c0_i32, %c0_i32_0 : i32, i32
  }
  func.func @transform_7(%arg0: i32, %arg1: i32) -> (i32, i32) {
    %c0_i32 = arith.constant 0 : i32
    %c0_i32_0 = arith.constant 0 : i32
    %c0_i32_1 = arith.constant 0 : i32
    return %c0_i32, %c0_i32_0 : i32, i32
  }
  func.func @transform_8(%arg0: i32, %arg1: i32) -> (i32, i32, i32) {
    %c0_i32 = arith.constant 0 : i32
    %c0_i32_0 = arith.constant 0 : i32
    return %arg1, %arg0, %c0_i32 : i32, i32, i32
  }
  func.func @transform_9(%arg0: i32, %arg1: i32) -> (i32, i32) {
    %c0_i32 = arith.constant 0 : i32
    %c0_i32_0 = arith.constant 0 : i32
    return %arg0, %c0_i32 : i32, i32
  }
  func.func @transform_10(%arg0: i32, %arg1: i32) -> (i32, i32) {
    %c0_i32 = arith.constant 0 : i32
    %c0_i32_0 = arith.constant 0 : i32
    return %arg0, %c0_i32 : i32, i32
  }
  func.func @transform_11(%arg0: i32, %arg1: i32) -> (i32, i32) {
    %c0_i32 = arith.constant 0 : i32
    %c0_i32_0 = arith.constant 0 : i32
    return %arg0, %c0_i32 : i32, i32
  }
}

module attributes {stable_mosaic.version = 11 : i64} {
  func.func @kernel(%arg0: i32, %arg1: i32, %arg2: memref<8x8x32xf32, #tpu.memory_space<vmem>>, %arg3: memref<8x32xf32, #tpu.memory_space<vmem>>, %arg4: memref<8x32xf32, #tpu.memory_space<vmem>>, %arg5: memref<32x128xf32, #tpu.memory_space<vmem>>, %arg6: memref<32x128xf32, #tpu.memory_space<vmem>>, %arg7: memref<1x128xf32, #tpu.memory_space<vmem>>, %arg8: memref<8x8x32xf32, #tpu.memory_space<vmem>>, %arg9: memref<8x32xf32, #tpu.memory_space<vmem>>, %arg10: memref<8x32xf32, #tpu.memory_space<vmem>>, %arg11: memref<64x128xf32, #tpu.memory_space<vmem>>, %arg12: memref<8x32xf32, #tpu.memory_space<vmem>>, %arg13: memref<8x32xf32, #tpu.memory_space<vmem>>) attributes {dimension_semantics = [#tpu.dimension_semantics<parallel>, #tpu.dimension_semantics<arbitrary>], iteration_bounds = array<i64: 1, 1>, scalar_prefetch = 0 : i64, scratch_operands = 3 : i64, tpu.core_type = #tpu.core_type<tc>, window_params = [{transform_indices = @transform_0, window_bounds = array<i64: 8, 8, 32>}, {transform_indices = @transform_1, window_bounds = array<i64: 8, 32>}, {transform_indices = @transform_2, window_bounds = array<i64: 8, 32>}, {pipeline_mode = #tpu.pipeline_mode<synchronous>, transform_indices = @transform_3, window_bounds = array<i64: 32, 128>}, {pipeline_mode = #tpu.pipeline_mode<synchronous>, transform_indices = @transform_4, window_bounds = array<i64: 32, 128>}, {pipeline_mode = #tpu.pipeline_mode<synchronous>, transform_indices = @transform_5, window_bounds = array<i64: 1, 128>}, {transform_indices = @transform_6, window_bounds = array<i64: 8, 8, 32>}, {transform_indices = @transform_7, window_bounds = array<i64: 8, 32>}, {transform_indices = @transform_8, window_bounds = array<i64: 8, 32>}]} {
    %c0_i32 = arith.constant 0 : i32
    %0 = arith.cmpi eq, %arg1, %c0_i32 : i32
    %1 = arith.extui %0 : i1 to i32
    %c0_i32_0 = arith.constant 0 : i32
    %2 = arith.cmpi ne, %1, %c0_i32_0 : i32
    scf.if %2 {
      %c0_86 = arith.constant 0 : index
      %c0_87 = arith.constant 0 : index
      %299 = vector.load %arg3[%c0_86, %c0_87] : memref<8x32xf32, #tpu.memory_space<vmem>>, vector<8x32xf32>
      %c0_88 = arith.constant 0 : index
      %c0_89 = arith.constant 0 : index
      %300 = vector.load %arg12[%c0_88, %c0_89] : memref<8x32xf32, #tpu.memory_space<vmem>>, vector<8x32xf32>
      tpu.vector_store %arg12[%c0_88, %c0_89], %299 {strides = array<i32>} : memref<8x32xf32, #tpu.memory_space<vmem>>, vector<8x32xf32>,
      %c0_90 = arith.constant 0 : index
      %c0_91 = arith.constant 0 : index
      %301 = vector.load %arg4[%c0_90, %c0_91] : memref<8x32xf32, #tpu.memory_space<vmem>>, vector<8x32xf32>
      %c0_92 = arith.constant 0 : index
      %c0_93 = arith.constant 0 : index
      %302 = vector.load %arg13[%c0_92, %c0_93] : memref<8x32xf32, #tpu.memory_space<vmem>>, vector<8x32xf32>
      tpu.vector_store %arg13[%c0_92, %c0_93], %301 {strides = array<i32>} : memref<8x32xf32, #tpu.memory_space<vmem>>, vector<8x32xf32>,
    } else {
    }
    %c0 = arith.constant 0 : index
    %c0_1 = arith.constant 0 : index
    %3 = vector.load %arg5[%c0, %c0_1] : memref<32x128xf32, #tpu.memory_space<vmem>>, vector<32x128xf32>
    %c0_2 = arith.constant 0 : index
    %c0_3 = arith.constant 0 : index
    %c0_4 = arith.constant 0 : index
    %4 = vector.load %arg2[%c0_2, %c0_3, %c0_4] : memref<8x8x32xf32, #tpu.memory_space<vmem>>, vector<8x8x32xf32>
    %5 = vector.shape_cast %4 : vector<8x8x32xf32> to vector<64x32xf32>
    %cst = arith.constant dense<0.000000e+00> : vector<64x128xf32>
    %6 = tpu.matmul %5, %3, %cst {dimension_numbers = #tpu.dot_dimension_numbers<[1], [0], [0], [1], [0, 0, 1, 1], [], []>} : vector<64x32xf32>, vector<32x128xf32>, vector<64x128xf32> -> vector<64x128xf32>
    %c0_5 = arith.constant 0 : index
    %c0_6 = arith.constant 0 : index
    %7 = vector.load %arg7[%c0_5, %c0_6] : memref<1x128xf32, #tpu.memory_space<vmem>>, vector<1x128xf32>
    %8 = vector.broadcast %7 : vector<1x128xf32> to vector<64x128xf32>
    %9 = arith.addf %6, %8 : vector<64x128xf32>
    %c0_7 = arith.constant 0 : index
    %c0_8 = arith.constant 0 : index
    %10 = vector.load %arg11[%c0_7, %c0_8] : memref<64x128xf32, #tpu.memory_space<vmem>>, vector<64x128xf32>
    tpu.vector_store %arg11[%c0_7, %c0_8], %9 {strides = array<i32>} : memref<64x128xf32, #tpu.memory_space<vmem>>, vector<64x128xf32>,
    %c0_9 = arith.constant 0 : index
    %c0_10 = arith.constant 0 : index
    %11 = vector.load %arg6[%c0_9, %c0_10] : memref<32x128xf32, #tpu.memory_space<vmem>>, vector<32x128xf32>
    %c0_11 = arith.constant 0 : index
    %c0_12 = arith.constant 0 : index
    %12 = vector.load %arg12[%c0_11, %c0_12] : memref<8x32xf32, #tpu.memory_space<vmem>>, vector<8x32xf32>
    %c0_13 = arith.constant 0 : index
    %c0_14 = arith.constant 0 : index
    %13 = vector.load %arg13[%c0_13, %c0_14] : memref<8x32xf32, #tpu.memory_space<vmem>>, vector<8x32xf32>
    %c0_i32_15 = arith.constant 0 : i32
    %c8_i32 = arith.constant 8 : i32
    %14 = arith.muli %c0_i32_15, %c8_i32 : i32
    %15 = tpu.assume_multiple %14, 8 : i32
    %16 = arith.index_cast %15 : i32 to index
    %c0_16 = arith.constant 0 : index
    %17 = vector.load %arg11[%16, %c0_16] : memref<64x128xf32, #tpu.memory_space<vmem>>, vector<8x128xf32>
    %cst_17 = arith.constant dense<0.000000e+00> : vector<8x128xf32>
    %18 = tpu.matmul %12, %11, %cst_17 {dimension_numbers = #tpu.dot_dimension_numbers<[1], [0], [0], [1], [0, 0, 1, 1], [], []>} : vector<8x32xf32>, vector<32x128xf32>, vector<8x128xf32> -> vector<8x128xf32>
    %19 = arith.addf %17, %18 : vector<8x128xf32>
    %20 = vector.extract_strided_slice %19 {offsets = [0, 0], sizes = [8, 32], strides = [1, 1]} : vector<8x128xf32> to vector<8x32xf32>
    %21 = arith.negf %20 : vector<8x32xf32>
    %22 = math.exp %21 : vector<8x32xf32>
    %cst_18 = arith.constant 1.000000e+00 : f32
    %23 = vector.broadcast %cst_18 : f32 to vector<8x32xf32>
    %24 = arith.addf %23, %22 : vector<8x32xf32>
    %25 = arith.divf %23, %24 : vector<8x32xf32>
    %26 = vector.extract_strided_slice %19 {offsets = [0, 32], sizes = [8, 32], strides = [1, 1]} : vector<8x128xf32> to vector<8x32xf32>
    %27 = arith.negf %26 : vector<8x32xf32>
    %28 = math.exp %27 : vector<8x32xf32>
    %cst_19 = arith.constant 1.000000e+00 : f32
    %29 = vector.broadcast %cst_19 : f32 to vector<8x32xf32>
    %30 = arith.addf %29, %28 : vector<8x32xf32>
    %31 = arith.divf %29, %30 : vector<8x32xf32>
    %32 = vector.extract_strided_slice %19 {offsets = [0, 64], sizes = [8, 32], strides = [1, 1]} : vector<8x128xf32> to vector<8x32xf32>
    %33 = math.tanh %32 : vector<8x32xf32>
    %34 = vector.extract_strided_slice %19 {offsets = [0, 96], sizes = [8, 32], strides = [1, 1]} : vector<8x128xf32> to vector<8x32xf32>
    %35 = arith.negf %34 : vector<8x32xf32>
    %36 = math.exp %35 : vector<8x32xf32>
    %cst_20 = arith.constant 1.000000e+00 : f32
    %37 = vector.broadcast %cst_20 : f32 to vector<8x32xf32>
    %38 = arith.addf %37, %36 : vector<8x32xf32>
    %39 = arith.divf %37, %38 : vector<8x32xf32>
    %40 = arith.mulf %31, %13 : vector<8x32xf32>
    %41 = arith.mulf %25, %33 : vector<8x32xf32>
    %42 = arith.addf %40, %41 : vector<8x32xf32>
    %43 = math.tanh %42 : vector<8x32xf32>
    %44 = arith.mulf %39, %43 : vector<8x32xf32>
    %45 = arith.index_cast %c0_i32_15 : i32 to index
    %c0_21 = arith.constant 0 : index
    %c0_22 = arith.constant 0 : index
    %46 = vector.load %arg8[%45, %c0_21, %c0_22] : memref<8x8x32xf32, #tpu.memory_space<vmem>>, vector<1x8x32xf32>
    %47 = vector.shape_cast %46 : vector<1x8x32xf32> to vector<8x32xf32>
    %48 = vector.shape_cast %44 : vector<8x32xf32> to vector<1x8x32xf32>
    tpu.vector_store %arg8[%45, %c0_21, %c0_22], %48 {strides = array<i32>} : memref<8x8x32xf32, #tpu.memory_space<vmem>>, vector<1x8x32xf32>,
    %c1_i32 = arith.constant 1 : i32
    %c8_i32_23 = arith.constant 8 : i32
    %49 = arith.muli %c1_i32, %c8_i32_23 : i32
    %50 = tpu.assume_multiple %49, 8 : i32
    %51 = arith.index_cast %50 : i32 to index
    %c0_24 = arith.constant 0 : index
    %52 = vector.load %arg11[%51, %c0_24] : memref<64x128xf32, #tpu.memory_space<vmem>>, vector<8x128xf32>
    %cst_25 = arith.constant dense<0.000000e+00> : vector<8x128xf32>
    %53 = tpu.matmul %44, %11, %cst_25 {dimension_numbers = #tpu.dot_dimension_numbers<[1], [0], [0], [1], [0, 0, 1, 1], [], []>} : vector<8x32xf32>, vector<32x128xf32>, vector<8x128xf32> -> vector<8x128xf32>
    %54 = arith.addf %52, %53 : vector<8x128xf32>
    %55 = vector.extract_strided_slice %54 {offsets = [0, 0], sizes = [8, 32], strides = [1, 1]} : vector<8x128xf32> to vector<8x32xf32>
    %56 = arith.negf %55 : vector<8x32xf32>
    %57 = math.exp %56 : vector<8x32xf32>
    %cst_26 = arith.constant 1.000000e+00 : f32
    %58 = vector.broadcast %cst_26 : f32 to vector<8x32xf32>
    %59 = arith.addf %58, %57 : vector<8x32xf32>
    %60 = arith.divf %58, %59 : vector<8x32xf32>
    %61 = vector.extract_strided_slice %54 {offsets = [0, 32], sizes = [8, 32], strides = [1, 1]} : vector<8x128xf32> to vector<8x32xf32>
    %62 = arith.negf %61 : vector<8x32xf32>
    %63 = math.exp %62 : vector<8x32xf32>
    %cst_27 = arith.constant 1.000000e+00 : f32
    %64 = vector.broadcast %cst_27 : f32 to vector<8x32xf32>
    %65 = arith.addf %64, %63 : vector<8x32xf32>
    %66 = arith.divf %64, %65 : vector<8x32xf32>
    %67 = vector.extract_strided_slice %54 {offsets = [0, 64], sizes = [8, 32], strides = [1, 1]} : vector<8x128xf32> to vector<8x32xf32>
    %68 = math.tanh %67 : vector<8x32xf32>
    %69 = vector.extract_strided_slice %54 {offsets = [0, 96], sizes = [8, 32], strides = [1, 1]} : vector<8x128xf32> to vector<8x32xf32>
    %70 = arith.negf %69 : vector<8x32xf32>
    %71 = math.exp %70 : vector<8x32xf32>
    %cst_28 = arith.constant 1.000000e+00 : f32
    %72 = vector.broadcast %cst_28 : f32 to vector<8x32xf32>
    %73 = arith.addf %72, %71 : vector<8x32xf32>
    %74 = arith.divf %72, %73 : vector<8x32xf32>
    %75 = arith.mulf %66, %42 : vector<8x32xf32>
    %76 = arith.mulf %60, %68 : vector<8x32xf32>
    %77 = arith.addf %75, %76 : vector<8x32xf32>
    %78 = math.tanh %77 : vector<8x32xf32>
    %79 = arith.mulf %74, %78 : vector<8x32xf32>
    %80 = arith.index_cast %c1_i32 : i32 to index
    %c0_29 = arith.constant 0 : index
    %c0_30 = arith.constant 0 : index
    %81 = vector.load %arg8[%80, %c0_29, %c0_30] : memref<8x8x32xf32, #tpu.memory_space<vmem>>, vector<1x8x32xf32>
    %82 = vector.shape_cast %81 : vector<1x8x32xf32> to vector<8x32xf32>
    %83 = vector.shape_cast %79 : vector<8x32xf32> to vector<1x8x32xf32>
    tpu.vector_store %arg8[%80, %c0_29, %c0_30], %83 {strides = array<i32>} : memref<8x8x32xf32, #tpu.memory_space<vmem>>, vector<1x8x32xf32>,
    %c2_i32 = arith.constant 2 : i32
    %c8_i32_31 = arith.constant 8 : i32
    %84 = arith.muli %c2_i32, %c8_i32_31 : i32
    %85 = tpu.assume_multiple %84, 8 : i32
    %86 = arith.index_cast %85 : i32 to index
    %c0_32 = arith.constant 0 : index
    %87 = vector.load %arg11[%86, %c0_32] : memref<64x128xf32, #tpu.memory_space<vmem>>, vector<8x128xf32>
    %cst_33 = arith.constant dense<0.000000e+00> : vector<8x128xf32>
    %88 = tpu.matmul %79, %11, %cst_33 {dimension_numbers = #tpu.dot_dimension_numbers<[1], [0], [0], [1], [0, 0, 1, 1], [], []>} : vector<8x32xf32>, vector<32x128xf32>, vector<8x128xf32> -> vector<8x128xf32>
    %89 = arith.addf %87, %88 : vector<8x128xf32>
    %90 = vector.extract_strided_slice %89 {offsets = [0, 0], sizes = [8, 32], strides = [1, 1]} : vector<8x128xf32> to vector<8x32xf32>
    %91 = arith.negf %90 : vector<8x32xf32>
    %92 = math.exp %91 : vector<8x32xf32>
    %cst_34 = arith.constant 1.000000e+00 : f32
    %93 = vector.broadcast %cst_34 : f32 to vector<8x32xf32>
    %94 = arith.addf %93, %92 : vector<8x32xf32>
    %95 = arith.divf %93, %94 : vector<8x32xf32>
    %96 = vector.extract_strided_slice %89 {offsets = [0, 32], sizes = [8, 32], strides = [1, 1]} : vector<8x128xf32> to vector<8x32xf32>
    %97 = arith.negf %96 : vector<8x32xf32>
    %98 = math.exp %97 : vector<8x32xf32>
    %cst_35 = arith.constant 1.000000e+00 : f32
    %99 = vector.broadcast %cst_35 : f32 to vector<8x32xf32>
    %100 = arith.addf %99, %98 : vector<8x32xf32>
    %101 = arith.divf %99, %100 : vector<8x32xf32>
    %102 = vector.extract_strided_slice %89 {offsets = [0, 64], sizes = [8, 32], strides = [1, 1]} : vector<8x128xf32> to vector<8x32xf32>
    %103 = math.tanh %102 : vector<8x32xf32>
    %104 = vector.extract_strided_slice %89 {offsets = [0, 96], sizes = [8, 32], strides = [1, 1]} : vector<8x128xf32> to vector<8x32xf32>
    %105 = arith.negf %104 : vector<8x32xf32>
    %106 = math.exp %105 : vector<8x32xf32>
    %cst_36 = arith.constant 1.000000e+00 : f32
    %107 = vector.broadcast %cst_36 : f32 to vector<8x32xf32>
    %108 = arith.addf %107, %106 : vector<8x32xf32>
    %109 = arith.divf %107, %108 : vector<8x32xf32>
    %110 = arith.mulf %101, %77 : vector<8x32xf32>
    %111 = arith.mulf %95, %103 : vector<8x32xf32>
    %112 = arith.addf %110, %111 : vector<8x32xf32>
    %113 = math.tanh %112 : vector<8x32xf32>
    %114 = arith.mulf %109, %113 : vector<8x32xf32>
    %115 = arith.index_cast %c2_i32 : i32 to index
    %c0_37 = arith.constant 0 : index
    %c0_38 = arith.constant 0 : index
    %116 = vector.load %arg8[%115, %c0_37, %c0_38] : memref<8x8x32xf32, #tpu.memory_space<vmem>>, vector<1x8x32xf32>
    %117 = vector.shape_cast %116 : vector<1x8x32xf32> to vector<8x32xf32>
    %118 = vector.shape_cast %114 : vector<8x32xf32> to vector<1x8x32xf32>
    tpu.vector_store %arg8[%115, %c0_37, %c0_38], %118 {strides = array<i32>} : memref<8x8x32xf32, #tpu.memory_space<vmem>>, vector<1x8x32xf32>,
    %c3_i32 = arith.constant 3 : i32
    %c8_i32_39 = arith.constant 8 : i32
    %119 = arith.muli %c3_i32, %c8_i32_39 : i32
    %120 = tpu.assume_multiple %119, 8 : i32
    %121 = arith.index_cast %120 : i32 to index
    %c0_40 = arith.constant 0 : index
    %122 = vector.load %arg11[%121, %c0_40] : memref<64x128xf32, #tpu.memory_space<vmem>>, vector<8x128xf32>
    %cst_41 = arith.constant dense<0.000000e+00> : vector<8x128xf32>
    %123 = tpu.matmul %114, %11, %cst_41 {dimension_numbers = #tpu.dot_dimension_numbers<[1], [0], [0], [1], [0, 0, 1, 1], [], []>} : vector<8x32xf32>, vector<32x128xf32>, vector<8x128xf32> -> vector<8x128xf32>
    %124 = arith.addf %122, %123 : vector<8x128xf32>
    %125 = vector.extract_strided_slice %124 {offsets = [0, 0], sizes = [8, 32], strides = [1, 1]} : vector<8x128xf32> to vector<8x32xf32>
    %126 = arith.negf %125 : vector<8x32xf32>
    %127 = math.exp %126 : vector<8x32xf32>
    %cst_42 = arith.constant 1.000000e+00 : f32
    %128 = vector.broadcast %cst_42 : f32 to vector<8x32xf32>
    %129 = arith.addf %128, %127 : vector<8x32xf32>
    %130 = arith.divf %128, %129 : vector<8x32xf32>
    %131 = vector.extract_strided_slice %124 {offsets = [0, 32], sizes = [8, 32], strides = [1, 1]} : vector<8x128xf32> to vector<8x32xf32>
    %132 = arith.negf %131 : vector<8x32xf32>
    %133 = math.exp %132 : vector<8x32xf32>
    %cst_43 = arith.constant 1.000000e+00 : f32
    %134 = vector.broadcast %cst_43 : f32 to vector<8x32xf32>
    %135 = arith.addf %134, %133 : vector<8x32xf32>
    %136 = arith.divf %134, %135 : vector<8x32xf32>
    %137 = vector.extract_strided_slice %124 {offsets = [0, 64], sizes = [8, 32], strides = [1, 1]} : vector<8x128xf32> to vector<8x32xf32>
    %138 = math.tanh %137 : vector<8x32xf32>
    %139 = vector.extract_strided_slice %124 {offsets = [0, 96], sizes = [8, 32], strides = [1, 1]} : vector<8x128xf32> to vector<8x32xf32>
    %140 = arith.negf %139 : vector<8x32xf32>
    %141 = math.exp %140 : vector<8x32xf32>
    %cst_44 = arith.constant 1.000000e+00 : f32
    %142 = vector.broadcast %cst_44 : f32 to vector<8x32xf32>
    %143 = arith.addf %142, %141 : vector<8x32xf32>
    %144 = arith.divf %142, %143 : vector<8x32xf32>
    %145 = arith.mulf %136, %112 : vector<8x32xf32>
    %146 = arith.mulf %130, %138 : vector<8x32xf32>
    %147 = arith.addf %145, %146 : vector<8x32xf32>
    %148 = math.tanh %147 : vector<8x32xf32>
    %149 = arith.mulf %144, %148 : vector<8x32xf32>
    %150 = arith.index_cast %c3_i32 : i32 to index
    %c0_45 = arith.constant 0 : index
    %c0_46 = arith.constant 0 : index
    %151 = vector.load %arg8[%150, %c0_45, %c0_46] : memref<8x8x32xf32, #tpu.memory_space<vmem>>, vector<1x8x32xf32>
    %152 = vector.shape_cast %151 : vector<1x8x32xf32> to vector<8x32xf32>
    %153 = vector.shape_cast %149 : vector<8x32xf32> to vector<1x8x32xf32>
    tpu.vector_store %arg8[%150, %c0_45, %c0_46], %153 {strides = array<i32>} : memref<8x8x32xf32, #tpu.memory_space<vmem>>, vector<1x8x32xf32>,
    %c4_i32 = arith.constant 4 : i32
    %c8_i32_47 = arith.constant 8 : i32
    %154 = arith.muli %c4_i32, %c8_i32_47 : i32
    %155 = tpu.assume_multiple %154, 8 : i32
    %156 = arith.index_cast %155 : i32 to index
    %c0_48 = arith.constant 0 : index
    %157 = vector.load %arg11[%156, %c0_48] : memref<64x128xf32, #tpu.memory_space<vmem>>, vector<8x128xf32>
    %cst_49 = arith.constant dense<0.000000e+00> : vector<8x128xf32>
    %158 = tpu.matmul %149, %11, %cst_49 {dimension_numbers = #tpu.dot_dimension_numbers<[1], [0], [0], [1], [0, 0, 1, 1], [], []>} : vector<8x32xf32>, vector<32x128xf32>, vector<8x128xf32> -> vector<8x128xf32>
    %159 = arith.addf %157, %158 : vector<8x128xf32>
    %160 = vector.extract_strided_slice %159 {offsets = [0, 0], sizes = [8, 32], strides = [1, 1]} : vector<8x128xf32> to vector<8x32xf32>
    %161 = arith.negf %160 : vector<8x32xf32>
    %162 = math.exp %161 : vector<8x32xf32>
    %cst_50 = arith.constant 1.000000e+00 : f32
    %163 = vector.broadcast %cst_50 : f32 to vector<8x32xf32>
    %164 = arith.addf %163, %162 : vector<8x32xf32>
    %165 = arith.divf %163, %164 : vector<8x32xf32>
    %166 = vector.extract_strided_slice %159 {offsets = [0, 32], sizes = [8, 32], strides = [1, 1]} : vector<8x128xf32> to vector<8x32xf32>
    %167 = arith.negf %166 : vector<8x32xf32>
    %168 = math.exp %167 : vector<8x32xf32>
    %cst_51 = arith.constant 1.000000e+00 : f32
    %169 = vector.broadcast %cst_51 : f32 to vector<8x32xf32>
    %170 = arith.addf %169, %168 : vector<8x32xf32>
    %171 = arith.divf %169, %170 : vector<8x32xf32>
    %172 = vector.extract_strided_slice %159 {offsets = [0, 64], sizes = [8, 32], strides = [1, 1]} : vector<8x128xf32> to vector<8x32xf32>
    %173 = math.tanh %172 : vector<8x32xf32>
    %174 = vector.extract_strided_slice %159 {offsets = [0, 96], sizes = [8, 32], strides = [1, 1]} : vector<8x128xf32> to vector<8x32xf32>
    %175 = arith.negf %174 : vector<8x32xf32>
    %176 = math.exp %175 : vector<8x32xf32>
    %cst_52 = arith.constant 1.000000e+00 : f32
    %177 = vector.broadcast %cst_52 : f32 to vector<8x32xf32>
    %178 = arith.addf %177, %176 : vector<8x32xf32>
    %179 = arith.divf %177, %178 : vector<8x32xf32>
    %180 = arith.mulf %171, %147 : vector<8x32xf32>
    %181 = arith.mulf %165, %173 : vector<8x32xf32>
    %182 = arith.addf %180, %181 : vector<8x32xf32>
    %183 = math.tanh %182 : vector<8x32xf32>
    %184 = arith.mulf %179, %183 : vector<8x32xf32>
    %185 = arith.index_cast %c4_i32 : i32 to index
    %c0_53 = arith.constant 0 : index
    %c0_54 = arith.constant 0 : index
    %186 = vector.load %arg8[%185, %c0_53, %c0_54] : memref<8x8x32xf32, #tpu.memory_space<vmem>>, vector<1x8x32xf32>
    %187 = vector.shape_cast %186 : vector<1x8x32xf32> to vector<8x32xf32>
    %188 = vector.shape_cast %184 : vector<8x32xf32> to vector<1x8x32xf32>
    tpu.vector_store %arg8[%185, %c0_53, %c0_54], %188 {strides = array<i32>} : memref<8x8x32xf32, #tpu.memory_space<vmem>>, vector<1x8x32xf32>,
    %c5_i32 = arith.constant 5 : i32
    %c8_i32_55 = arith.constant 8 : i32
    %189 = arith.muli %c5_i32, %c8_i32_55 : i32
    %190 = tpu.assume_multiple %189, 8 : i32
    %191 = arith.index_cast %190 : i32 to index
    %c0_56 = arith.constant 0 : index
    %192 = vector.load %arg11[%191, %c0_56] : memref<64x128xf32, #tpu.memory_space<vmem>>, vector<8x128xf32>
    %cst_57 = arith.constant dense<0.000000e+00> : vector<8x128xf32>
    %193 = tpu.matmul %184, %11, %cst_57 {dimension_numbers = #tpu.dot_dimension_numbers<[1], [0], [0], [1], [0, 0, 1, 1], [], []>} : vector<8x32xf32>, vector<32x128xf32>, vector<8x128xf32> -> vector<8x128xf32>
    %194 = arith.addf %192, %193 : vector<8x128xf32>
    %195 = vector.extract_strided_slice %194 {offsets = [0, 0], sizes = [8, 32], strides = [1, 1]} : vector<8x128xf32> to vector<8x32xf32>
    %196 = arith.negf %195 : vector<8x32xf32>
    %197 = math.exp %196 : vector<8x32xf32>
    %cst_58 = arith.constant 1.000000e+00 : f32
    %198 = vector.broadcast %cst_58 : f32 to vector<8x32xf32>
    %199 = arith.addf %198, %197 : vector<8x32xf32>
    %200 = arith.divf %198, %199 : vector<8x32xf32>
    %201 = vector.extract_strided_slice %194 {offsets = [0, 32], sizes = [8, 32], strides = [1, 1]} : vector<8x128xf32> to vector<8x32xf32>
    %202 = arith.negf %201 : vector<8x32xf32>
    %203 = math.exp %202 : vector<8x32xf32>
    %cst_59 = arith.constant 1.000000e+00 : f32
    %204 = vector.broadcast %cst_59 : f32 to vector<8x32xf32>
    %205 = arith.addf %204, %203 : vector<8x32xf32>
    %206 = arith.divf %204, %205 : vector<8x32xf32>
    %207 = vector.extract_strided_slice %194 {offsets = [0, 64], sizes = [8, 32], strides = [1, 1]} : vector<8x128xf32> to vector<8x32xf32>
    %208 = math.tanh %207 : vector<8x32xf32>
    %209 = vector.extract_strided_slice %194 {offsets = [0, 96], sizes = [8, 32], strides = [1, 1]} : vector<8x128xf32> to vector<8x32xf32>
    %210 = arith.negf %209 : vector<8x32xf32>
    %211 = math.exp %210 : vector<8x32xf32>
    %cst_60 = arith.constant 1.000000e+00 : f32
    %212 = vector.broadcast %cst_60 : f32 to vector<8x32xf32>
    %213 = arith.addf %212, %211 : vector<8x32xf32>
    %214 = arith.divf %212, %213 : vector<8x32xf32>
    %215 = arith.mulf %206, %182 : vector<8x32xf32>
    %216 = arith.mulf %200, %208 : vector<8x32xf32>
    %217 = arith.addf %215, %216 : vector<8x32xf32>
    %218 = math.tanh %217 : vector<8x32xf32>
    %219 = arith.mulf %214, %218 : vector<8x32xf32>
    %220 = arith.index_cast %c5_i32 : i32 to index
    %c0_61 = arith.constant 0 : index
    %c0_62 = arith.constant 0 : index
    %221 = vector.load %arg8[%220, %c0_61, %c0_62] : memref<8x8x32xf32, #tpu.memory_space<vmem>>, vector<1x8x32xf32>
    %222 = vector.shape_cast %221 : vector<1x8x32xf32> to vector<8x32xf32>
    %223 = vector.shape_cast %219 : vector<8x32xf32> to vector<1x8x32xf32>
    tpu.vector_store %arg8[%220, %c0_61, %c0_62], %223 {strides = array<i32>} : memref<8x8x32xf32, #tpu.memory_space<vmem>>, vector<1x8x32xf32>,
    %c6_i32 = arith.constant 6 : i32
    %c8_i32_63 = arith.constant 8 : i32
    %224 = arith.muli %c6_i32, %c8_i32_63 : i32
    %225 = tpu.assume_multiple %224, 8 : i32
    %226 = arith.index_cast %225 : i32 to index
    %c0_64 = arith.constant 0 : index
    %227 = vector.load %arg11[%226, %c0_64] : memref<64x128xf32, #tpu.memory_space<vmem>>, vector<8x128xf32>
    %cst_65 = arith.constant dense<0.000000e+00> : vector<8x128xf32>
    %228 = tpu.matmul %219, %11, %cst_65 {dimension_numbers = #tpu.dot_dimension_numbers<[1], [0], [0], [1], [0, 0, 1, 1], [], []>} : vector<8x32xf32>, vector<32x128xf32>, vector<8x128xf32> -> vector<8x128xf32>
    %229 = arith.addf %227, %228 : vector<8x128xf32>
    %230 = vector.extract_strided_slice %229 {offsets = [0, 0], sizes = [8, 32], strides = [1, 1]} : vector<8x128xf32> to vector<8x32xf32>
    %231 = arith.negf %230 : vector<8x32xf32>
    %232 = math.exp %231 : vector<8x32xf32>
    %cst_66 = arith.constant 1.000000e+00 : f32
    %233 = vector.broadcast %cst_66 : f32 to vector<8x32xf32>
    %234 = arith.addf %233, %232 : vector<8x32xf32>
    %235 = arith.divf %233, %234 : vector<8x32xf32>
    %236 = vector.extract_strided_slice %229 {offsets = [0, 32], sizes = [8, 32], strides = [1, 1]} : vector<8x128xf32> to vector<8x32xf32>
    %237 = arith.negf %236 : vector<8x32xf32>
    %238 = math.exp %237 : vector<8x32xf32>
    %cst_67 = arith.constant 1.000000e+00 : f32
    %239 = vector.broadcast %cst_67 : f32 to vector<8x32xf32>
    %240 = arith.addf %239, %238 : vector<8x32xf32>
    %241 = arith.divf %239, %240 : vector<8x32xf32>
    %242 = vector.extract_strided_slice %229 {offsets = [0, 64], sizes = [8, 32], strides = [1, 1]} : vector<8x128xf32> to vector<8x32xf32>
    %243 = math.tanh %242 : vector<8x32xf32>
    %244 = vector.extract_strided_slice %229 {offsets = [0, 96], sizes = [8, 32], strides = [1, 1]} : vector<8x128xf32> to vector<8x32xf32>
    %245 = arith.negf %244 : vector<8x32xf32>
    %246 = math.exp %245 : vector<8x32xf32>
    %cst_68 = arith.constant 1.000000e+00 : f32
    %247 = vector.broadcast %cst_68 : f32 to vector<8x32xf32>
    %248 = arith.addf %247, %246 : vector<8x32xf32>
    %249 = arith.divf %247, %248 : vector<8x32xf32>
    %250 = arith.mulf %241, %217 : vector<8x32xf32>
    %251 = arith.mulf %235, %243 : vector<8x32xf32>
    %252 = arith.addf %250, %251 : vector<8x32xf32>
    %253 = math.tanh %252 : vector<8x32xf32>
    %254 = arith.mulf %249, %253 : vector<8x32xf32>
    %255 = arith.index_cast %c6_i32 : i32 to index
    %c0_69 = arith.constant 0 : index
    %c0_70 = arith.constant 0 : index
    %256 = vector.load %arg8[%255, %c0_69, %c0_70] : memref<8x8x32xf32, #tpu.memory_space<vmem>>, vector<1x8x32xf32>
    %257 = vector.shape_cast %256 : vector<1x8x32xf32> to vector<8x32xf32>
    %258 = vector.shape_cast %254 : vector<8x32xf32> to vector<1x8x32xf32>
    tpu.vector_store %arg8[%255, %c0_69, %c0_70], %258 {strides = array<i32>} : memref<8x8x32xf32, #tpu.memory_space<vmem>>, vector<1x8x32xf32>,
    %c7_i32 = arith.constant 7 : i32
    %c8_i32_71 = arith.constant 8 : i32
    %259 = arith.muli %c7_i32, %c8_i32_71 : i32
    %260 = tpu.assume_multiple %259, 8 : i32
    %261 = arith.index_cast %260 : i32 to index
    %c0_72 = arith.constant 0 : index
    %262 = vector.load %arg11[%261, %c0_72] : memref<64x128xf32, #tpu.memory_space<vmem>>, vector<8x128xf32>
    %cst_73 = arith.constant dense<0.000000e+00> : vector<8x128xf32>
    %263 = tpu.matmul %254, %11, %cst_73 {dimension_numbers = #tpu.dot_dimension_numbers<[1], [0], [0], [1], [0, 0, 1, 1], [], []>} : vector<8x32xf32>, vector<32x128xf32>, vector<8x128xf32> -> vector<8x128xf32>
    %264 = arith.addf %262, %263 : vector<8x128xf32>
    %265 = vector.extract_strided_slice %264 {offsets = [0, 0], sizes = [8, 32], strides = [1, 1]} : vector<8x128xf32> to vector<8x32xf32>
    %266 = arith.negf %265 : vector<8x32xf32>
    %267 = math.exp %266 : vector<8x32xf32>
    %cst_74 = arith.constant 1.000000e+00 : f32
    %268 = vector.broadcast %cst_74 : f32 to vector<8x32xf32>
    %269 = arith.addf %268, %267 : vector<8x32xf32>
    %270 = arith.divf %268, %269 : vector<8x32xf32>
    %271 = vector.extract_strided_slice %264 {offsets = [0, 32], sizes = [8, 32], strides = [1, 1]} : vector<8x128xf32> to vector<8x32xf32>
    %272 = arith.negf %271 : vector<8x32xf32>
    %273 = math.exp %272 : vector<8x32xf32>
    %cst_75 = arith.constant 1.000000e+00 : f32
    %274 = vector.broadcast %cst_75 : f32 to vector<8x32xf32>
    %275 = arith.addf %274, %273 : vector<8x32xf32>
    %276 = arith.divf %274, %275 : vector<8x32xf32>
    %277 = vector.extract_strided_slice %264 {offsets = [0, 64], sizes = [8, 32], strides = [1, 1]} : vector<8x128xf32> to vector<8x32xf32>
    %278 = math.tanh %277 : vector<8x32xf32>
    %279 = vector.extract_strided_slice %264 {offsets = [0, 96], sizes = [8, 32], strides = [1, 1]} : vector<8x128xf32> to vector<8x32xf32>
    %280 = arith.negf %279 : vector<8x32xf32>
    %281 = math.exp %280 : vector<8x32xf32>
    %cst_76 = arith.constant 1.000000e+00 : f32
    %282 = vector.broadcast %cst_76 : f32 to vector<8x32xf32>
    %283 = arith.addf %282, %281 : vector<8x32xf32>
    %284 = arith.divf %282, %283 : vector<8x32xf32>
    %285 = arith.mulf %276, %252 : vector<8x32xf32>
    %286 = arith.mulf %270, %278 : vector<8x32xf32>
    %287 = arith.addf %285, %286 : vector<8x32xf32>
    %288 = math.tanh %287 : vector<8x32xf32>
    %289 = arith.mulf %284, %288 : vector<8x32xf32>
    %290 = arith.index_cast %c7_i32 : i32 to index
    %c0_77 = arith.constant 0 : index
    %c0_78 = arith.constant 0 : index
    %291 = vector.load %arg8[%290, %c0_77, %c0_78] : memref<8x8x32xf32, #tpu.memory_space<vmem>>, vector<1x8x32xf32>
    %292 = vector.shape_cast %291 : vector<1x8x32xf32> to vector<8x32xf32>
    %293 = vector.shape_cast %289 : vector<8x32xf32> to vector<1x8x32xf32>
    tpu.vector_store %arg8[%290, %c0_77, %c0_78], %293 {strides = array<i32>} : memref<8x8x32xf32, #tpu.memory_space<vmem>>, vector<1x8x32xf32>,
    %c8_i32_79 = arith.constant 8 : i32
    %c0_80 = arith.constant 0 : index
    %c0_81 = arith.constant 0 : index
    %294 = vector.load %arg12[%c0_80, %c0_81] : memref<8x32xf32, #tpu.memory_space<vmem>>, vector<8x32xf32>
    tpu.vector_store %arg12[%c0_80, %c0_81], %289 {strides = array<i32>} : memref<8x32xf32, #tpu.memory_space<vmem>>, vector<8x32xf32>,
    %c0_82 = arith.constant 0 : index
    %c0_83 = arith.constant 0 : index
    %295 = vector.load %arg13[%c0_82, %c0_83] : memref<8x32xf32, #tpu.memory_space<vmem>>, vector<8x32xf32>
    tpu.vector_store %arg13[%c0_82, %c0_83], %287 {strides = array<i32>} : memref<8x32xf32, #tpu.memory_space<vmem>>, vector<8x32xf32>,
    %c0_i32_84 = arith.constant 0 : i32
    %296 = arith.cmpi eq, %arg1, %c0_i32_84 : i32
    %297 = arith.extui %296 : i1 to i32
    %c0_i32_85 = arith.constant 0 : i32
    %298 = arith.cmpi ne, %297, %c0_i32_85 : i32
    scf.if %298 {
      %c0_86 = arith.constant 0 : index
      %c0_87 = arith.constant 0 : index
      %299 = vector.load %arg9[%c0_86, %c0_87] : memref<8x32xf32, #tpu.memory_space<vmem>>, vector<8x32xf32>
      tpu.vector_store %arg9[%c0_86, %c0_87], %289 {strides = array<i32>} : memref<8x32xf32, #tpu.memory_space<vmem>>, vector<8x32xf32>,
      %c0_88 = arith.constant 0 : index
      %c0_89 = arith.constant 0 : index
      %300 = vector.load %arg10[%c0_88, %c0_89] : memref<8x32xf32, #tpu.memory_space<vmem>>, vector<8x32xf32>
      tpu.vector_store %arg10[%c0_88, %c0_89], %287 {strides = array<i32>} : memref<8x32xf32, #tpu.memory_space<vmem>>, vector<8x32xf32>,
    } else {
    }
    return
  }
  func.func @transform_0(%arg0: i32, %arg1: i32) -> (i32, i32, i32) {
    %c0_i32 = arith.constant 0 : i32
    %c0_i32_0 = arith.constant 0 : i32
    return %arg1, %arg0, %c0_i32 : i32, i32, i32
  }
  func.func @transform_1(%arg0: i32, %arg1: i32) -> (i32, i32) {
    %c0_i32 = arith.constant 0 : i32
    %c0_i32_0 = arith.constant 0 : i32
    return %arg0, %c0_i32 : i32, i32
  }
  func.func @transform_2(%arg0: i32, %arg1: i32) -> (i32, i32) {
    %c0_i32 = arith.constant 0 : i32
    %c0_i32_0 = arith.constant 0 : i32
    return %arg0, %c0_i32 : i32, i32
  }
  func.func @transform_3(%arg0: i32, %arg1: i32) -> (i32, i32) {
    %c0_i32 = arith.constant 0 : i32
    %c0_i32_0 = arith.constant 0 : i32
    %c0_i32_1 = arith.constant 0 : i32
    return %c0_i32, %c0_i32_0 : i32, i32
  }
  func.func @transform_4(%arg0: i32, %arg1: i32) -> (i32, i32) {
    %c0_i32 = arith.constant 0 : i32
    %c0_i32_0 = arith.constant 0 : i32
    %c0_i32_1 = arith.constant 0 : i32
    return %c0_i32, %c0_i32_0 : i32, i32
  }
  func.func @transform_5(%arg0: i32, %arg1: i32) -> (i32, i32) {
    %c0_i32 = arith.constant 0 : i32
    %c0_i32_0 = arith.constant 0 : i32
    %c0_i32_1 = arith.constant 0 : i32
    return %c0_i32, %c0_i32_0 : i32, i32
  }
  func.func @transform_6(%arg0: i32, %arg1: i32) -> (i32, i32, i32) {
    %c0_i32 = arith.constant 0 : i32
    %c0_i32_0 = arith.constant 0 : i32
    return %arg1, %arg0, %c0_i32 : i32, i32, i32
  }
  func.func @transform_7(%arg0: i32, %arg1: i32) -> (i32, i32) {
    %c0_i32 = arith.constant 0 : i32
    %c0_i32_0 = arith.constant 0 : i32
    return %arg0, %c0_i32 : i32, i32
  }
  func.func @transform_8(%arg0: i32, %arg1: i32) -> (i32, i32) {
    %c0_i32 = arith.constant 0 : i32
    %c0_i32_0 = arith.constant 0 : i32
    return %arg0, %c0_i32 : i32, i32
  }
}

</mosaic_0001>

<bundles_post_ra>
// kernel: _lambda_.4
= control target key start
LH: loop header
LB: loop body
LE: loop exit
PB: predicated region body
PF: predicated region fallthrough
CT: control target
= control target key end

     0   :  { %v1407_v3 = vmov 0.0|0.0   ;;  %vm1408_vm0 = vmmov 0   ;;  %v1409_v4 = vmov 0.0   ;;  %vm58_vm1 = vcmask 523264   ;;  %s1410_s14 = smov 64   ;;  %s1691_s3 = inlined_call_operand.vmem [shape: f32[64,128], index: 3, kind: input, shape index: {}]   ;;  %s1692_s4 = inlined_call_operand.vmem [shape: f32[32,128], index: 4, kind: input, shape index: {}]   ;;  %s1693_s0 = inlined_call_operand.vmem [shape: f32[8,8,64], index: 0, kind: input, shape index: {}]   ;;  %s1694_s1 = inlined_call_operand.vmem [shape: f32[8,32], index: 1, kind: input, shape index: {}, may-alias: {1,2}]   ;;  %s1695_s2 = inlined_call_operand.vmem [shape: f32[8,32], index: 2, kind: input, shape index: {}, may-alias: {1,2}]   ;;  %s1696_s5 = inlined_call_operand.vmem [shape: f32[1,128], index: 5, kind: input, shape index: {}]   ;;  %s1697_s6 = inlined_call_operand.vmem [shape: f32[8,8,32], index: 6, kind: output, shape index: {0}]   ;;  %s1698_s8 = inlined_call_operand.vmem [shape: f32[8,32], index: 8, kind: output, shape index: {2}]   ;;  %s1699_s7 = inlined_call_operand.vmem [shape: f32[8,32], index: 7, kind: output, shape index: {1}]  }
   0x1   :  { %v35_v0 = vld [vmem:[%s1691_s3] sm:$0xff]  ;;  %v36_v1 = vld [vmem:[%s1691_s3 + $0x8] sm:$0xff]  ;;  %v37_v2 = vld [vmem:[%s1691_s3 + $0x10] sm:$0xff]  ;;  %1289 = vmatprep.subr.bf16.mxu1 %v1407_v3  ;;  %1193 = vmatprep.mubr.msk.f32.mxu1 %vm1408_vm0, %v1409_v4  ;;  %vm31_vm2 = vcmask 261120  }
   0x2   :  { %v1273_v5 = vpack.c.bf16 %v36_v1, %v35_v0  ;;  %v38_v6 = vld [vmem:[%s1691_s3 + $0x18] sm:$0xff]  ;;  %v39_v7 = vld [vmem:[%s1691_s3 + $0x20] sm:$0xff]  ;;  %v40_v9 = vld [vmem:[%s1691_s3 + $0x28] sm:$0xff] }
   0x3   :  { %v1277_v8 = vpack.c.bf16 %v38_v6, %v37_v2  ;;  %v196_v10 = vld [vmem:[%s1692_s4] sm:$0xff]  ;;  %v197_v11 = vld [vmem:[%s1692_s4 + $0x8] sm:$0xff]  ;;  %v198_v14 = vld [vmem:[%s1692_s4 + $0x10] sm:$0xff]  ;;  %v1281_v17 = vpack.c.bf16 %v40_v9, %v39_v7 }
   0x4   :  { %1274 = vmatprep.subr.bf16.mxu0 %v1273_v5  ;;  %v1485_v12 = vpack.c.bf16 %v197_v11, %v196_v10  ;;  %v43_v13 = vld [vmem:[%s1693_s0] sm:$0xff]  ;;  %v199_v15 = vld [vmem:[%s1692_s4 + $0x18] sm:$0xff]  ;;  %v41_v19 = vld [vmem:[%s1691_s3 + $0x30] sm:$0xff] }
   0x5   :  { %1276 = vmatpush3.bf16.msra.mxu0 %v1273_v5  ;;  %1173 = vmatprep.mubr.msk.f32.mxu0 %vm58_vm1, %v43_v13  ;;  %v30_v16 = vld [vmem:[%s1694_s1] sm:$0xff]  ;;  %v1501_v18 = vpack.c.bf16 %v199_v15, %v198_v14  ;;  %v42_v20 = vld [vmem:[%s1691_s3 + $0x38] sm:$0xff]  ;;  %v44_v23 = vld [vmem:[%s1693_s0 + $0x8] sm:$0xff] }
   0x6   :  { %1278 = vmatprep.subr.bf16.mxu0 %v1277_v8  ;;  %1291 = vmatpush3.bf16.msra.mxu1 %v1485_v12  ;;  %32 = vst.msk [vmem:[#allocation3] sm:$0xff] %vm31_vm2, %v30_v16  ;;  %v1285_v21 = vpack.c.bf16 %v42_v20, %v41_v19  ;;  %v33_v24 = vld [vmem:[%s1695_s2] sm:$0xff]  ;;  %s1411_s2 = smov 32   ;;  %v45_v62 = vld [vmem:[%s1693_s0 + $0x10] sm:$0xff]  ;;  %v46_v63 = vld [vmem:[%s1693_s0 + $0x18] sm:$0xff] }
   0x7   :  { %1292 = vmatprep.subr.bf16.mxu1 %v1407_v3  ;;  %34 = vst.msk [vmem:[#allocation4] sm:$0xff] %vm31_vm2, %v33_v24  ;;  %v1536_v27 = vld [vmem:[%s1696_s5] ss:$0 sm:$0xff]  ;;  %s1412_s5 = smov 96  }
   0x8   :  { %v47_v24 = vld [vmem:[%s1693_s0 + $0x20] sm:$0xff] }
   0x9   :  { %1280 = vmatpush3.bf16.msra.mxu0 %v1277_v8 }
   0xa   :  { %1282 = vmatprep.subr.bf16.mxu0 %v1281_v17  ;;  %1294 = vmatpush3.bf16.msra.mxu1 %v1501_v18 }
   0xb   :  { %1295 = vmatprep.subr.bf16.mxu1 %v1407_v3 }
   0xd   :  { %1284 = vmatpush3.bf16.msra.mxu0 %v1281_v17  ;;  %v200_v22 = vld [vmem:[#allocation3] sm:$0xff] }
   0xe   :  { %1286 = vmatprep.subr.bf16.mxu0 %v1285_v21  ;;  %1194 = vmatmul.mubr.msk.f32.vlgmr.msra.gmra.mrb[0].mxu1 %vm31_vm2, %v200_v22  ;;  %v201_v33 = vld [vmem:[#allocation4] sm:$0xff] }
   0xf   :  { %1297 = vmatpush3.bf16.msra.mxu1 %v1485_v12  ;;  %1204 = vmatprep.mubr.msk.f32.mxu1 %vm1408_vm0, %v1409_v4 }
  0x10   :  { %1298 = vmatprep.subr.bf16.mxu1 %v1407_v3 }
  0x11   :  { %1288 = vmatpush3.bf16.msra.mxu0 %v1285_v21 }
  0x12   :  { %1307 = vmatprep.subr.bf16.mxu0 %v1407_v3 }
  0x13   :  { %1300 = vmatpush3.bf16.msra.mxu1 %v1501_v18 }
  0x14   :  { %1174 = vmatmul.mubr.msk.f32.vlgmr.msra.gmra.mrb[0].mxu0 %vm58_vm1, %v44_v23  ;;  %1301 = vmatprep.subr.bf16.mxu1 %v1407_v3 }
  0x15   :  { %1309 = vmatpush3.bf16.msra.mxu0 %v1485_v12  ;;  %1176 = vmatprep.mubr.msk.f32.mxu0 %vm58_vm1, %v45_v62 }
  0x16   :  { %1310 = vmatprep.subr.bf16.mxu0 %v1407_v3 }
  0x18   :  { %1177 = vmatmul.mubr.msk.f32.gmra.mrb[2].mxu0 %vm58_vm1, %v46_v63 }
  0x19   :  { %1312 = vmatpush3.bf16.msra.mxu0 %v1501_v18  ;;  %1179 = vmatprep.mubr.msk.f32.mxu0 %vm58_vm1, %v47_v24 }
  0x1a   :  { %1319 = vmatprep.subr.bf16.mxu0 %v1407_v3 }
  0xe1   :  { %v273_v25 = vpop.f32.mrb[0].mxu1 }
  0xe2   :  { %v1195_v26 = vpop.f32.mrb[1].mxu1 }
  0xe3   :  { %v49_v26 = vld [vmem:[%s1693_s0 + $0x30] sm:$0xff] }
  0xe7   :  { %v1175_v28 = vpop.f32.mrb[0].mxu0 }
  0xe8   :  { %v149_v29 = vpop.f32.mrb[1].mxu0  ;;  %v155_v48 = vadd.f32 %v1175_v28, %v1536_v27  ;;  %v50_v28 = vld [vmem:[%s1693_s0 + $0x38] sm:$0xff] }
  0xe9   :  { %v150_v30 = vadd.f32 %v1536_v27, %v149_v29 }
  0xeb   :  { %v277_v31 = vadd.f32 %v273_v25, %v150_v30  ;;  %v1178_v5 = vpop.f32.mrb[2].mxu0  ;;  %v48_v25 = vld [vmem:[%s1693_s0 + $0x28] sm:$0xff] }
  0xec   :  { %v159_v6 = vpop.f32.mrb[3].mxu0  ;;  %1180 = vmatmul.mubr.msk.f32.gmra.mrb[4].mxu0 %vm58_vm1, %v48_v25 }
  0xed   :  { %1343 = vtanh.f32 %v277_v31  ;;  %v1079_v34 = vmul.f32 -1.442695, %v277_v31  ;;  %v160_v8 = vadd.f32 %v1536_v27, %v159_v6  ;;  %1182 = vmatprep.mubr.msk.f32.mxu0 %vm58_vm1, %v49_v26 }
  0xef   :  { %1345 = vpow2.f32 %v1079_v34 }
  0xf0   :  { %1183 = vmatmul.mubr.msk.f32.gmra.mrb[6].mxu0 %vm58_vm1, %v50_v28 }
  0xf1   :  { %1226 = vmatprep.mubr.msk.f32.mxu0 %vm1408_vm0, %v1409_v4 }
  0xf7   :  { %v1344_v32 = vpop.eup %1343 }
  0xf8   :  { %291 = vrot.lane.b32.xlu0 %v1344_v32, %s1410_s14 }
  0xf9   :  { %v1346_v35 = vpop.eup %1345 }
  0xfa   :  { %v281_v36 = vadd.f32 1.0, %v1346_v35 }
  0xfc   :  { %286 = vrot.lane.b32.xlu0 %v201_v33, %s1411_s2  ;;  %1347 = vrcp.f32 %v281_v36 }
 0x106   :  { %v1348_v37 = vpop.eup %1347 }
 0x16a   :  { %v292_v38 = vpop.permute.xlu0 %291 }
 0x16b   :  { %v294_v39 = vmul.f32 %v1348_v37, %v292_v38 }
 0x16d   :  { %296 = vrot.lane.b32.xlu1 %v294_v39, %s1411_s2 }
 0x16e   :  { %v287_v40 = vpop.permute.xlu0 %286 }
 0x16f   :  { %v289_v41 = vmul.f32 %v1348_v37, %v287_v40 }
 0x1bf   :  { %v1602_v32 = vpop.f32.mrb[4].mxu0 }
 0x1c0   :  { %v169_v33 = vpop.f32.mrb[5].mxu0 }
 0x1c3   :  { %v1604_v34 = vpop.f32.mrb[6].mxu0 }
 0x1c4   :  { %v1606_v35 = vpop.f32.mrb[7].mxu0 }
 0x1c5   :  { %v180_v28 = vadd.f32 %v1536_v27, %v1606_v35 }
 0x1df   :  { %v297_v42 = vpop.permute.xlu1 %296 }
 0x1e0   :  { %v299_v43 = vadd.f32 %v297_v42, %v289_v41 }
 0x1e2   :  { %1349 = vtanh.f32 %v299_v43 }
 0x1ec   :  { %v1350_v44 = vpop.eup %1349 }
 0x1ed   :  { %302 = vrot.lane.b32.xlu1 %v1350_v44, %s1410_s14 }
 0x25f   :  { %v303_v45 = vpop.permute.xlu1 %302 }
 0x260   :  { %v305_v46 = vmul.f32 %v1348_v37, %v303_v45  ;;  %v165_v37 = vadd.f32 %v1178_v5, %v1536_v27 }
 0x262   :  { %307 = vrot.lane.b32.xlu0 %v305_v46, %s1411_s2 }
 0x2d4   :  { %v308_v47 = vpop.permute.xlu0 %307 }
 0x2d5   :  { %310 = vst.msk [vmem:[%s1697_s6] sm:$0xff] %vm31_vm2, %v308_v47  ;;  %1205 = vmatmul.mubr.msk.f32.vlgmr.msra.gmra.mrb[2].mxu1 %vm31_vm2, %v308_v47 }
 0x2d6   :  { %1303 = vmatpush3.bf16.msra.mxu1 %v1485_v12  ;;  %1215 = vmatprep.mubr.msk.f32.mxu1 %vm1408_vm0, %v1409_v4 }
 0x2d7   :  { %1304 = vmatprep.subr.bf16.mxu1 %v1407_v3 }
 0x2da   :  { %1306 = vmatpush3.bf16.msra.mxu1 %v1501_v18 }
 0x2db   :  { %1313 = vmatprep.subr.bf16.mxu1 %v1407_v3 }
 0x3a8   :  { %v381_v49 = vpop.f32.mrb[2].mxu1 }
 0x3a9   :  { %v385_v50 = vadd.f32 %v381_v49, %v155_v48  ;;  %v1206_v51 = vpop.f32.mrb[3].mxu1 }
 0x3ab   :  { %1351 = vtanh.f32 %v385_v50  ;;  %v1081_v53 = vmul.f32 -1.442695, %v385_v50 }
 0x3ad   :  { %1353 = vpow2.f32 %v1081_v53 }
 0x3b5   :  { %v1352_v52 = vpop.eup %1351 }
 0x3b6   :  { %395 = vrot.lane.b32.xlu1 %v1352_v52, %s1410_s14 }
 0x3b7   :  { %v1354_v54 = vpop.eup %1353 }
 0x3b8   :  { %v389_v55 = vadd.f32 1.0, %v1354_v54 }
 0x3ba   :  { %1355 = vrcp.f32 %v389_v55  ;;  %v170_v55 = vadd.f32 %v1536_v27, %v169_v33 }
 0x3c4   :  { %v1356_v56 = vpop.eup %1355 }
 0x3c5   :  { %v393_v59 = vmul.f32 %v1356_v56, %v299_v43 }
 0x428   :  { %v396_v57 = vpop.permute.xlu1 %395 }
 0x429   :  { %v398_v58 = vmul.f32 %v1356_v56, %v396_v57 }
 0x42b   :  { %400 = vrot.lane.b32.xlu0 %v398_v58, %s1411_s2 }
 0x49d   :  { %v401_v60 = vpop.permute.xlu0 %400 }
 0x49e   :  { %v403_v61 = vadd.f32 %v401_v60, %v393_v59 }
 0x4a0   :  { %1357 = vtanh.f32 %v403_v61 }
 0x4aa   :  { %v1358_v0 = vpop.eup %1357 }
 0x4ab   :  { %406 = vrot.lane.b32.xlu1 %v1358_v0, %s1410_s14 }
 0x51d   :  { %v407_v1 = vpop.permute.xlu1 %406 }
 0x51e   :  { %v409_v2 = vmul.f32 %v1356_v56, %v407_v1 }
 0x520   :  { %411 = vrot.lane.b32.xlu0 %v409_v2, %s1411_s2 }
 0x592   :  { %v412_v7 = vpop.permute.xlu0 %411 }
 0x593   :  { %1082 = vst.msk [vmem:[%s1697_s6 + $0x8] sm:$0xff] %vm31_vm2, %v412_v7  ;;  %1216 = vmatmul.mubr.msk.f32.vlgmr.msra.gmra.mrb[4].mxu1 %vm31_vm2, %v412_v7 }
 0x594   :  { %1315 = vmatpush3.bf16.msra.mxu1 %v1485_v12  ;;  %1237 = vmatprep.mubr.msk.f32.mxu1 %vm1408_vm0, %v1409_v4 }
 0x595   :  { %1316 = vmatprep.subr.bf16.mxu1 %v1407_v3 }
 0x598   :  { %1318 = vmatpush3.bf16.msra.mxu1 %v1501_v18 }
 0x599   :  { %1325 = vmatprep.subr.bf16.mxu1 %v1407_v3 }
 0x666   :  { %v486_v9 = vpop.f32.mrb[4].mxu1 }
 0x667   :  { %v490_v10 = vadd.f32 %v486_v9, %v160_v8  ;;  %v1217_v11 = vpop.f32.mrb[5].mxu1 }
 0x668   :  { %v175_v11 = vadd.f32 %v1602_v32, %v1536_v27 }
 0x669   :  { %1359 = vtanh.f32 %v490_v10  ;;  %v1084_v14 = vmul.f32 -1.442695, %v490_v10 }
 0x66b   :  { %1361 = vpow2.f32 %v1084_v14 }
 0x673   :  { %v1360_v13 = vpop.eup %1359 }
 0x674   :  { %500 = vrot.lane.b32.xlu1 %v1360_v13, %s1410_s14 }
 0x675   :  { %v1362_v15 = vpop.eup %1361 }
 0x676   :  { %v494_v16 = vadd.f32 1.0, %v1362_v15 }
 0x678   :  { %1363 = vrcp.f32 %v494_v16 }
 0x682   :  { %v1364_v17 = vpop.eup %1363 }
 0x683   :  { %v498_v21 = vmul.f32 %v1364_v17, %v403_v61 }
 0x6e6   :  { %v501_v19 = vpop.permute.xlu1 %500 }
 0x6e7   :  { %v503_v20 = vmul.f32 %v1364_v17, %v501_v19 }
 0x6e9   :  { %505 = vrot.lane.b32.xlu0 %v503_v20, %s1411_s2 }
 0x75b   :  { %v506_v22 = vpop.permute.xlu0 %505 }
 0x75c   :  { %v508_v23 = vadd.f32 %v506_v22, %v498_v21 }
 0x75e   :  { %1365 = vtanh.f32 %v508_v23 }
 0x768   :  { %v1366_v29 = vpop.eup %1365 }
 0x769   :  { %511 = vrot.lane.b32.xlu1 %v1366_v29, %s1410_s14 }
 0x7db   :  { %v512_v30 = vpop.permute.xlu1 %511 }
 0x7dc   :  { %v514_v31 = vmul.f32 %v1364_v17, %v512_v30 }
 0x7de   :  { %516 = vrot.lane.b32.xlu0 %v514_v31, %s1411_s2 }
 0x850   :  { %v517_v36 = vpop.permute.xlu0 %516 }
 0x851   :  { %1085 = vst.msk [vmem:[%s1697_s6 + $0x10] sm:$0xff] %vm31_vm2, %v517_v36  ;;  %1227 = vmatmul.mubr.msk.f32.vlgmr.msra.gmra.mrb[8].mxu0 %vm31_vm2, %v517_v36 }
 0x852   :  { %1321 = vmatpush3.bf16.msra.mxu0 %v1485_v12  ;;  %1248 = vmatprep.mubr.msk.f32.mxu0 %vm1408_vm0, %v1409_v4 }
 0x853   :  { %1322 = vmatprep.subr.bf16.mxu0 %v1407_v3 }
 0x856   :  { %1324 = vmatpush3.bf16.msra.mxu0 %v1501_v18 }
 0x857   :  { %1331 = vmatprep.subr.bf16.mxu0 %v1407_v3 }
 0x924   :  { %v591_v38 = vpop.f32.mrb[8].mxu0 }
 0x925   :  { %v595_v39 = vadd.f32 %v591_v38, %v165_v37  ;;  %v1228_v40 = vpop.f32.mrb[9].mxu0 }
 0x927   :  { %1367 = vtanh.f32 %v595_v39  ;;  %v1087_v42 = vmul.f32 -1.442695, %v595_v39 }
 0x929   :  { %1369 = vpow2.f32 %v1087_v42 }
 0x931   :  { %v1368_v41 = vpop.eup %1367 }
 0x932   :  { %605 = vrot.lane.b32.xlu1 %v1368_v41, %s1410_s14 }
 0x933   :  { %v1370_v43 = vpop.eup %1369 }
 0x934   :  { %v599_v44 = vadd.f32 1.0, %v1370_v43 }
 0x936   :  { %1371 = vrcp.f32 %v599_v44 }
 0x940   :  { %v1372_v45 = vpop.eup %1371 }
 0x941   :  { %v603_v48 = vmul.f32 %v1372_v45, %v508_v23 }
 0x9a4   :  { %v606_v46 = vpop.permute.xlu1 %605 }
 0x9a5   :  { %v608_v47 = vmul.f32 %v1372_v45, %v606_v46 }
 0x9a7   :  { %610 = vrot.lane.b32.xlu0 %v608_v47, %s1411_s2  ;;  %v185_v47 = vadd.f32 %v1604_v34, %v1536_v27 }
 0xa19   :  { %v611_v49 = vpop.permute.xlu0 %610 }
 0xa1a   :  { %v613_v50 = vadd.f32 %v611_v49, %v603_v48 }
 0xa1c   :  { %1373 = vtanh.f32 %v613_v50 }
 0xa26   :  { %v1374_v51 = vpop.eup %1373 }
 0xa27   :  { %616 = vrot.lane.b32.xlu1 %v1374_v51, %s1410_s14 }
 0xa99   :  { %v617_v52 = vpop.permute.xlu1 %616 }
 0xa9a   :  { %v619_v53 = vmul.f32 %v1372_v45, %v617_v52 }
 0xa9c   :  { %621 = vrot.lane.b32.xlu0 %v619_v53, %s1411_s2 }
 0xb0e   :  { %v622_v54 = vpop.permute.xlu0 %621 }
 0xb0f   :  { %1088 = vst.msk [vmem:[%s1697_s6 + $0x18] sm:$0xff] %vm31_vm2, %v622_v54  ;;  %1238 = vmatmul.mubr.msk.f32.vlgmr.msra.gmra.mrb[6].mxu1 %vm31_vm2, %v622_v54 }
 0xb10   :  { %1327 = vmatpush3.bf16.msra.mxu1 %v1485_v12  ;;  %1259 = vmatprep.mubr.msk.f32.mxu1 %vm1408_vm0, %v1409_v4 }
 0xb11   :  { %1328 = vmatprep.subr.bf16.mxu1 %v1407_v3 }
 0xb14   :  { %1330 = vmatpush3.bf16.msra.mxu1 %v1501_v18 }
 0xbe2   :  { %v696_v56 = vpop.f32.mrb[6].mxu1 }
 0xbe3   :  { %v700_v57 = vadd.f32 %v696_v56, %v170_v55  ;;  %v1239_v58 = vpop.f32.mrb[7].mxu1 }
 0xbe5   :  { %1375 = vtanh.f32 %v700_v57  ;;  %v1090_v60 = vmul.f32 -1.442695, %v700_v57 }
 0xbe7   :  { %1377 = vpow2.f32 %v1090_v60 }
 0xbef   :  { %v1376_v59 = vpop.eup %1375 }
 0xbf0   :  { %710 = vrot.lane.b32.xlu1 %v1376_v59, %s1410_s14 }
 0xbf1   :  { %v1378_v61 = vpop.eup %1377 }
 0xbf2   :  { %v704_v62 = vadd.f32 1.0, %v1378_v61 }
 0xbf4   :  { %1379 = vrcp.f32 %v704_v62 }
 0xbfe   :  { %v1380_v63 = vpop.eup %1379 }
 0xbff   :  { %v708_v2 = vmul.f32 %v1380_v63, %v613_v50 }
 0xc62   :  { %v711_v0 = vpop.permute.xlu1 %710 }
 0xc63   :  { %v713_v1 = vmul.f32 %v1380_v63, %v711_v0 }
 0xc65   :  { %715 = vrot.lane.b32.xlu0 %v713_v1, %s1411_s2 }
 0xcd7   :  { %v716_v5 = vpop.permute.xlu0 %715 }
 0xcd8   :  { %v718_v6 = vadd.f32 %v716_v5, %v708_v2 }
 0xcda   :  { %1381 = vtanh.f32 %v718_v6 }
 0xce4   :  { %v1382_v7 = vpop.eup %1381 }
 0xce5   :  { %721 = vrot.lane.b32.xlu1 %v1382_v7, %s1410_s14 }
 0xd57   :  { %v722_v8 = vpop.permute.xlu1 %721 }
 0xd58   :  { %v724_v9 = vmul.f32 %v1380_v63, %v722_v8 }
 0xd5a   :  { %726 = vrot.lane.b32.xlu0 %v724_v9, %s1411_s2 }
 0xdcc   :  { %v727_v10 = vpop.permute.xlu0 %726 }
 0xdcd   :  { %1091 = vst.msk [vmem:[%s1697_s6 + $0x20] sm:$0xff] %vm31_vm2, %v727_v10  ;;  %1249 = vmatmul.mubr.msk.f32.vlgmr.msra.gmra.mrb[10].mxu0 %vm31_vm2, %v727_v10 }
 0xdce   :  { %1333 = vmatpush3.bf16.msra.mxu0 %v1485_v12  ;;  %1270 = vmatprep.mubr.msk.f32.mxu0 %vm1408_vm0, %v1409_v4 }
 0xdcf   :  { %1334 = vmatprep.subr.bf16.mxu0 %v1407_v3 }
 0xdd2   :  { %1336 = vmatpush3.bf16.msra.mxu0 %v1501_v18 }
 0xea0   :  { %v801_v13 = vpop.f32.mrb[10].mxu0 }
 0xea1   :  { %v805_v14 = vadd.f32 %v801_v13, %v175_v11  ;;  %v1250_v15 = vpop.f32.mrb[11].mxu0 }
 0xea3   :  { %1383 = vtanh.f32 %v805_v14  ;;  %v1093_v17 = vmul.f32 -1.442695, %v805_v14 }
 0xea5   :  { %1385 = vpow2.f32 %v1093_v17 }
 0xead   :  { %v1384_v16 = vpop.eup %1383 }
 0xeae   :  { %815 = vrot.lane.b32.xlu1 %v1384_v16, %s1410_s14 }
 0xeaf   :  { %v1386_v12 = vpop.eup %1385 }
 0xeb0   :  { %v809_v19 = vadd.f32 1.0, %v1386_v12 }
 0xeb2   :  { %1387 = vrcp.f32 %v809_v19 }
 0xebc   :  { %v1388_v4 = vpop.eup %1387 }
 0xebd   :  { %v813_v18 = vmul.f32 %v1388_v4, %v718_v6 }
 0xf20   :  { %v816_v20 = vpop.permute.xlu1 %815 }
 0xf21   :  { %v818_v3 = vmul.f32 %v1388_v4, %v816_v20 }
 0xf23   :  { %820 = vrot.lane.b32.xlu0 %v818_v3, %s1411_s2 }
 0xf95   :  { %v821_v21 = vpop.permute.xlu0 %820 }
 0xf96   :  { %v823_v22 = vadd.f32 %v821_v21, %v813_v18 }
 0xf98   :  { %1389 = vtanh.f32 %v823_v22 }
 0xfa2   :  { %v1390_v23 = vpop.eup %1389 }
 0xfa3   :  { %826 = vrot.lane.b32.xlu1 %v1390_v23, %s1410_s14 }
0x1015   :  { %v827_v24 = vpop.permute.xlu1 %826 }
0x1016   :  { %v829_v25 = vmul.f32 %v1388_v4, %v827_v24 }
0x1018   :  { %831 = vrot.lane.b32.xlu0 %v829_v25, %s1411_s2 }
0x108a   :  { %v832_v26 = vpop.permute.xlu0 %831 }
0x108b   :  { %1094 = vst.msk [vmem:[%s1697_s6 + $0x28] sm:$0xff] %vm31_vm2, %v832_v26  ;;  %1260 = vmatmul.mubr.msk.f32.vlgmr.msra.gmra.mrb[8].mxu1 %vm31_vm2, %v832_v26 }
0x115e   :  { %v906_v29 = vpop.f32.mrb[8].mxu1 }
0x115f   :  { %v910_v30 = vadd.f32 %v906_v29, %v180_v28  ;;  %v1261_v31 = vpop.f32.mrb[9].mxu1 }
0x1161   :  { %1391 = vtanh.f32 %v910_v30  ;;  %v1096_v33 = vmul.f32 -1.442695, %v910_v30 }
0x1163   :  { %1393 = vpow2.f32 %v1096_v33 }
0x116b   :  { %v1392_v32 = vpop.eup %1391 }
0x116c   :  { %920 = vrot.lane.b32.xlu1 %v1392_v32, %s1410_s14 }
0x116d   :  { %v1394_v36 = vpop.eup %1393 }
0x116e   :  { %v914_v37 = vadd.f32 1.0, %v1394_v36 }
0x1170   :  { %1395 = vrcp.f32 %v914_v37 }
0x117a   :  { %v1396_v38 = vpop.eup %1395 }
0x117b   :  { %v918_v41 = vmul.f32 %v1396_v38, %v823_v22 }
0x11de   :  { %v921_v39 = vpop.permute.xlu1 %920 }
0x11df   :  { %v923_v40 = vmul.f32 %v1396_v38, %v921_v39 }
0x11e1   :  { %925 = vrot.lane.b32.xlu0 %v923_v40, %s1411_s2 }
0x1253   :  { %v926_v42 = vpop.permute.xlu0 %925 }
0x1254   :  { %v928_v35 = vadd.f32 %v926_v42, %v918_v41 }
0x1256   :  { %1397 = vtanh.f32 %v928_v35 }
0x1260   :  { %v1398_v43 = vpop.eup %1397 }
0x1261   :  { %931 = vrot.lane.b32.xlu1 %v1398_v43, %s1410_s14 }
0x12d3   :  { %v932_v44 = vpop.permute.xlu1 %931 }
0x12d4   :  { %v934_v45 = vmul.f32 %v1396_v38, %v932_v44 }
0x12d6   :  { %936 = vrot.lane.b32.xlu0 %v934_v45, %s1411_s2 }
0x1348   :  { %v937_v46 = vpop.permute.xlu0 %936 }
0x1349   :  { %1097 = vst.msk [vmem:[%s1697_s6 + $0x30] sm:$0xff] %vm31_vm2, %v937_v46  ;;  %1271 = vmatmul.mubr.msk.f32.vlgmr.msra.gmra.mrb[12].mxu0 %vm31_vm2, %v937_v46 }
0x141c   :  { %v1011_v48 = vpop.f32.mrb[12].mxu0 }
0x141d   :  { %v1015_v49 = vadd.f32 %v1011_v48, %v185_v47  ;;  %v1272_v50 = vpop.f32.mrb[13].mxu0 }
0x141f   :  { %1399 = vtanh.f32 %v1015_v49  ;;  %v1099_v52 = vmul.f32 -1.442695, %v1015_v49 }
0x1421   :  { %1401 = vpow2.f32 %v1099_v52 }
0x1429   :  { %v1400_v51 = vpop.eup %1399 }
0x142a   :  { %1025 = vrot.lane.b32.xlu1 %v1400_v51, %s1410_s14 }
0x142b   :  { %v1402_v53 = vpop.eup %1401 }
0x142c   :  { %v1019_v54 = vadd.f32 1.0, %v1402_v53 }
0x142e   :  { %1403 = vrcp.f32 %v1019_v54 }
0x1438   :  { %v1404_v55 = vpop.eup %1403 }
0x1439   :  { %v1023_v58 = vmul.f32 %v1404_v55, %v928_v35 }
0x149c   :  { %v1026_v56 = vpop.permute.xlu1 %1025 }
0x149d   :  { %v1028_v57 = vmul.f32 %v1404_v55, %v1026_v56 }
0x149f   :  { %1030 = vrot.lane.b32.xlu0 %v1028_v57, %s1411_s2 }
0x1511   :  { %v1031_v59 = vpop.permute.xlu0 %1030 }
0x1512   :  { %v1033_v27 = vadd.f32 %v1031_v59, %v1023_v58 }
0x1514   :  { %1405 = vtanh.f32 %v1033_v27 }
0x151e   :  { %v1406_v34 = vpop.eup %1405 }
0x151f   :  { %1036 = vrot.lane.b32.xlu1 %v1406_v34, %s1410_s14 }
0x1523   :  { %1048 = vrot.lane.b32.xlu1 %v1033_v27, %s1412_s5 }
0x1591   :  { %v1037_v60 = vpop.permute.xlu1 %1036 }
0x1592   :  { %v1039_v61 = vmul.f32 %v1404_v55, %v1037_v60 }
0x1594   :  { %1041 = vrot.lane.b32.xlu0 %v1039_v61, %s1411_s2 }
0x1595   :  { %v1049_v62 = vpop.permute.xlu1 %1048 }
0x1596   :  { %1051 = vst.msk [vmem:[#allocation4] sm:$0xff] %vm31_vm2, %v1049_v62  ;;  %1056 = vst.msk [vmem:[%s1698_s8] sm:$0xff] %vm31_vm2, %v1049_v62 }
0x1606   :  { %v1042_v63 = vpop.permute.xlu0 %1041 }
0x1607   :  { %1100 = vst.msk [vmem:[%s1697_s6 + $0x38] sm:$0xff] %vm31_vm2, %v1042_v63  ;;  %1046 = vst.msk [vmem:[#allocation3] sm:$0xff] %vm31_vm2, %v1042_v63 }
0x1608   :  { %1055 = vst.msk [vmem:[%s1699_s7] sm:$0xff] %vm31_vm2, %v1042_v63 }

// kernel: _lambda_.5
= control target key start
LH: loop header
LB: loop body
LE: loop exit
PB: predicated region body
PF: predicated region fallthrough
CT: control target
= control target key end

     0   :  { %v1382_v2 = vmov 0.0|0.0   ;;  %vm1383_vm0 = vmmov 0   ;;  %v1384_v4 = vmov 0.0   ;;  %vm31_vm1 = vcmask 261120   ;;  %s1385_s28 = smov 64   ;;  %s1657_s3 = inlined_call_operand.vmem [shape: f32[32,128], index: 3, kind: input, shape index: {}]   ;;  %s1658_s4 = inlined_call_operand.vmem [shape: f32[32,128], index: 4, kind: input, shape index: {}]   ;;  %s1659_s0 = inlined_call_operand.vmem [shape: f32[8,8,32], index: 0, kind: input, shape index: {}]   ;;  %s1660_s1 = inlined_call_operand.vmem [shape: f32[8,32], index: 1, kind: input, shape index: {}, may-alias: {1,2}]   ;;  %s1661_s2 = inlined_call_operand.vmem [shape: f32[8,32], index: 2, kind: input, shape index: {}, may-alias: {1,2}]   ;;  %s1662_s5 = inlined_call_operand.vmem [shape: f32[1,128], index: 5, kind: input, shape index: {}]   ;;  %s1663_s6 = inlined_call_operand.vmem [shape: f32[8,8,32], index: 6, kind: output, shape index: {0}]   ;;  %s1664_s8 = inlined_call_operand.vmem [shape: f32[8,32], index: 8, kind: output, shape index: {2}]   ;;  %s1665_s7 = inlined_call_operand.vmem [shape: f32[8,32], index: 7, kind: output, shape index: {1}]  }
   0x1   :  { %v35_v0 = vld [vmem:[%s1657_s3] sm:$0xff]  ;;  %v36_v1 = vld [vmem:[%s1657_s3 + $0x8] sm:$0xff]  ;;  %1264 = vmatprep.subr.bf16.mxu1 %v1382_v2  ;;  %1176 = vmatprep.mubr.msk.f32.mxu1 %vm1383_vm0, %v1384_v4  ;;  %v37_v7 = vld [vmem:[%s1657_s3 + $0x10] sm:$0xff] }
   0x2   :  { %v192_v3 = vld [vmem:[%s1658_s4] sm:$0xff]  ;;  %v1256_v5 = vpack.c.bf16 %v36_v1, %v35_v0  ;;  %v193_v6 = vld [vmem:[%s1658_s4 + $0x8] sm:$0xff]  ;;  %v38_v8 = vld [vmem:[%s1657_s3 + $0x18] sm:$0xff] }
   0x3   :  { %v1454_v9 = vpack.c.bf16 %v193_v6, %v192_v3  ;;  %v1260_v10 = vpack.c.bf16 %v38_v8, %v37_v7  ;;  %v39_v11 = vld [vmem:[%s1659_s0] sm:$0xff]  ;;  %v194_v12 = vld [vmem:[%s1658_s4 + $0x10] sm:$0xff]  ;;  %v195_v13 = vld [vmem:[%s1658_s4 + $0x18] sm:$0xff] }
   0x4   :  { %1257 = vmatprep.subr.bf16.mxu0 %v1256_v5  ;;  %1156 = vmatprep.mubr.msk.f32.mxu0 %vm31_vm1, %v39_v11  ;;  %v30_v14 = vld [vmem:[%s1660_s1] sm:$0xff]  ;;  %v1470_v15 = vpack.c.bf16 %v195_v13, %v194_v12  ;;  %v40_v16 = vld [vmem:[%s1659_s0 + $0x8] sm:$0xff]  ;;  %v41_v56 = vld [vmem:[%s1659_s0 + $0x10] sm:$0xff] }
   0x5   :  { %1259 = vmatpush3.bf16.msra.mxu0 %v1256_v5  ;;  %1266 = vmatpush3.bf16.msra.mxu1 %v1454_v9  ;;  %32 = vst.msk [vmem:[#allocation3] sm:$0xff] %vm31_vm1, %v30_v14  ;;  %v33_v18 = vld [vmem:[%s1661_s2] sm:$0xff]  ;;  %s1386_s2 = smov 32   ;;  %v42_v57 = vld [vmem:[%s1659_s0 + $0x18] sm:$0xff]  ;;  %v44_v59 = vld [vmem:[%s1659_s0 + $0x28] sm:$0xff] }
   0x6   :  { %1261 = vmatprep.subr.bf16.mxu0 %v1260_v10  ;;  %1267 = vmatprep.subr.bf16.mxu1 %v1382_v2  ;;  %34 = vst.msk [vmem:[#allocation4] sm:$0xff] %vm31_vm1, %v33_v18  ;;  %v1499_v19 = vld [vmem:[%s1662_s5] ss:$0 sm:$0xff]  ;;  %v45_v60 = vld [vmem:[%s1659_s0 + $0x30] sm:$0xff]  ;;  %v46_v61 = vld [vmem:[%s1659_s0 + $0x38] sm:$0xff]  ;;  %s1387_s5 = smov 96  }
   0x7   :  { %v43_v58 = vld [vmem:[%s1659_s0 + $0x20] sm:$0xff] }
   0x9   :  { %1263 = vmatpush3.bf16.msra.mxu0 %v1260_v10  ;;  %1269 = vmatpush3.bf16.msra.mxu1 %v1470_v15 }
   0xa   :  { %1270 = vmatprep.subr.bf16.mxu1 %v1382_v2  ;;  %1276 = vmatprep.subr.bf16.mxu0 %v1382_v2 }
   0xc   :  { %1157 = vmatmul.mubr.msk.f32.vlgmr.msra.gmra.mrb[0].mxu0 %vm31_vm1, %v40_v16  ;;  %v196_v17 = vld [vmem:[#allocation3] sm:$0xff] }
   0xd   :  { %1177 = vmatmul.mubr.msk.f32.vlgmr.msra.gmra.mrb[0].mxu1 %vm31_vm1, %v196_v17  ;;  %1278 = vmatpush3.bf16.msra.mxu0 %v1454_v9  ;;  %v197_v27 = vld [vmem:[#allocation4] sm:$0xff] }
   0xe   :  { %1272 = vmatpush3.bf16.msra.mxu1 %v1454_v9  ;;  %1187 = vmatprep.mubr.msk.f32.mxu1 %vm1383_vm0, %v1384_v4 }
   0xf   :  { %1273 = vmatprep.subr.bf16.mxu1 %v1382_v2  ;;  %1279 = vmatprep.subr.bf16.mxu0 %v1382_v2 }
  0x10   :  { %1159 = vmatprep.mubr.msk.f32.mxu0 %vm31_vm1, %v41_v56 }
  0x11   :  { %1281 = vmatpush3.bf16.msra.mxu0 %v1470_v15 }
  0x12   :  { %1275 = vmatpush3.bf16.msra.mxu1 %v1470_v15  ;;  %1288 = vmatprep.subr.bf16.mxu0 %v1382_v2 }
  0x13   :  { %1282 = vmatprep.subr.bf16.mxu1 %v1382_v2  ;;  %1160 = vmatmul.mubr.msk.f32.gmra.mrb[2].mxu0 %vm31_vm1, %v42_v57 }
  0x14   :  { %1162 = vmatprep.mubr.msk.f32.mxu0 %vm31_vm1, %v43_v58 }
  0x17   :  { %1163 = vmatmul.mubr.msk.f32.gmra.mrb[4].mxu0 %vm31_vm1, %v44_v59 }
  0x18   :  { %1165 = vmatprep.mubr.msk.f32.mxu0 %vm31_vm1, %v45_v60 }
  0x1b   :  { %1166 = vmatmul.mubr.msk.f32.gmra.mrb[6].mxu0 %vm31_vm1, %v46_v61 }
  0x1c   :  { %1198 = vmatprep.mubr.msk.f32.mxu0 %vm1383_vm0, %v1384_v4 }
  0xdf   :  { %v1158_v20 = vpop.f32.mrb[0].mxu0 }
  0xe0   :  { %v145_v21 = vpop.f32.mrb[1].mxu0  ;;  %v268_v22 = vpop.f32.mrb[0].mxu1  ;;  %v151_v42 = vadd.f32 %v1158_v20, %v1499_v19 }
  0xe1   :  { %v146_v23 = vadd.f32 %v1499_v19, %v145_v21  ;;  %v1178_v24 = vpop.f32.mrb[1].mxu1 }
  0xe3   :  { %v272_v25 = vadd.f32 %v268_v22, %v146_v23 }
  0xe5   :  { %1318 = vtanh.f32 %v272_v25  ;;  %v1074_v28 = vmul.f32 -1.442695, %v272_v25 }
  0xe6   :  { %v1161_v1 = vpop.f32.mrb[2].mxu0 }
  0xe7   :  { %1320 = vpow2.f32 %v1074_v28  ;;  %v155_v3 = vpop.f32.mrb[3].mxu0 }
  0xe8   :  { %v156_v11 = vadd.f32 %v1499_v19, %v155_v3 }
  0xea   :  { %v1549_v5 = vpop.f32.mrb[4].mxu0 }
  0xeb   :  { %v1551_v6 = vpop.f32.mrb[5].mxu0 }
  0xee   :  { %v1553_v7 = vpop.f32.mrb[6].mxu0 }
  0xef   :  { %v1319_v26 = vpop.eup %1318  ;;  %v1555_v8 = vpop.f32.mrb[7].mxu0 }
  0xf0   :  { %286 = vrot.lane.b32.xlu0 %v1319_v26, %s1385_s28 }
  0xf1   :  { %v1321_v29 = vpop.eup %1320 }
  0xf2   :  { %v276_v30 = vadd.f32 1.0, %v1321_v29 }
  0xf4   :  { %281 = vrot.lane.b32.xlu0 %v197_v27, %s1386_s2  ;;  %1322 = vrcp.f32 %v276_v30 }
  0xfe   :  { %v1323_v31 = vpop.eup %1322 }
 0x162   :  { %v287_v32 = vpop.permute.xlu0 %286 }
 0x163   :  { %v289_v33 = vmul.f32 %v1323_v31, %v287_v32 }
 0x165   :  { %291 = vrot.lane.b32.xlu1 %v289_v33, %s1386_s2 }
 0x166   :  { %v282_v34 = vpop.permute.xlu0 %281 }
 0x167   :  { %v284_v35 = vmul.f32 %v1323_v31, %v282_v34 }
 0x1d7   :  { %v292_v36 = vpop.permute.xlu1 %291 }
 0x1d8   :  { %v294_v37 = vadd.f32 %v292_v36, %v284_v35 }
 0x1da   :  { %1324 = vtanh.f32 %v294_v37 }
 0x1e4   :  { %v1325_v38 = vpop.eup %1324 }
 0x1e5   :  { %297 = vrot.lane.b32.xlu1 %v1325_v38, %s1385_s28 }
 0x257   :  { %v298_v39 = vpop.permute.xlu1 %297 }
 0x258   :  { %v300_v40 = vmul.f32 %v1323_v31, %v298_v39  ;;  %v161_v31 = vadd.f32 %v1161_v1, %v1499_v19 }
 0x25a   :  { %302 = vrot.lane.b32.xlu0 %v300_v40, %s1386_s2 }
 0x2cc   :  { %v303_v41 = vpop.permute.xlu0 %302 }
 0x2cd   :  { %305 = vst.msk [vmem:[%s1663_s6] sm:$0xff] %vm31_vm1, %v303_v41  ;;  %1188 = vmatmul.mubr.msk.f32.vlgmr.msra.gmra.mrb[2].mxu1 %vm31_vm1, %v303_v41 }
 0x2ce   :  { %1284 = vmatpush3.bf16.msra.mxu1 %v1454_v9  ;;  %1209 = vmatprep.mubr.msk.f32.mxu1 %vm1383_vm0, %v1384_v4 }
 0x2cf   :  { %1285 = vmatprep.subr.bf16.mxu1 %v1382_v2 }
 0x2d2   :  { %1287 = vmatpush3.bf16.msra.mxu1 %v1470_v15 }
 0x2d3   :  { %1294 = vmatprep.subr.bf16.mxu1 %v1382_v2 }
 0x3a0   :  { %v376_v43 = vpop.f32.mrb[2].mxu1 }
 0x3a1   :  { %v380_v44 = vadd.f32 %v376_v43, %v151_v42  ;;  %v1189_v45 = vpop.f32.mrb[3].mxu1 }
 0x3a3   :  { %1326 = vtanh.f32 %v380_v44  ;;  %v1076_v47 = vmul.f32 -1.442695, %v380_v44 }
 0x3a5   :  { %1328 = vpow2.f32 %v1076_v47 }
 0x3ad   :  { %v1327_v46 = vpop.eup %1326 }
 0x3ae   :  { %390 = vrot.lane.b32.xlu1 %v1327_v46, %s1385_s28 }
 0x3af   :  { %v1329_v48 = vpop.eup %1328 }
 0x3b0   :  { %v384_v49 = vadd.f32 1.0, %v1329_v48 }
 0x3b2   :  { %1330 = vrcp.f32 %v384_v49  ;;  %v166_v49 = vadd.f32 %v1499_v19, %v1551_v6  ;;  %v171_v6 = vadd.f32 %v1549_v5, %v1499_v19 }
 0x3bc   :  { %v1331_v50 = vpop.eup %1330 }
 0x3bd   :  { %v388_v53 = vmul.f32 %v1331_v50, %v294_v37 }
 0x420   :  { %v391_v51 = vpop.permute.xlu1 %390 }
 0x421   :  { %v393_v52 = vmul.f32 %v1331_v50, %v391_v51 }
 0x423   :  { %395 = vrot.lane.b32.xlu0 %v393_v52, %s1386_s2 }
 0x495   :  { %v396_v54 = vpop.permute.xlu0 %395 }
 0x496   :  { %v398_v55 = vadd.f32 %v396_v54, %v388_v53 }
 0x498   :  { %1332 = vtanh.f32 %v398_v55 }
 0x4a2   :  { %v1333_v62 = vpop.eup %1332 }
 0x4a3   :  { %401 = vrot.lane.b32.xlu1 %v1333_v62, %s1385_s28 }
 0x515   :  { %v402_v63 = vpop.permute.xlu1 %401 }
 0x516   :  { %v404_v0 = vmul.f32 %v1331_v50, %v402_v63 }
 0x518   :  { %406 = vrot.lane.b32.xlu0 %v404_v0, %s1386_s2 }
 0x58a   :  { %v407_v10 = vpop.permute.xlu0 %406 }
 0x58b   :  { %1077 = vst.msk [vmem:[%s1663_s6 + $0x8] sm:$0xff] %vm31_vm1, %v407_v10  ;;  %1199 = vmatmul.mubr.msk.f32.vlgmr.msra.gmra.mrb[8].mxu0 %vm31_vm1, %v407_v10 }
 0x58c   :  { %1290 = vmatpush3.bf16.msra.mxu0 %v1454_v9  ;;  %1220 = vmatprep.mubr.msk.f32.mxu0 %vm1383_vm0, %v1384_v4 }
 0x58d   :  { %1291 = vmatprep.subr.bf16.mxu0 %v1382_v2 }
 0x590   :  { %1293 = vmatpush3.bf16.msra.mxu0 %v1470_v15 }
 0x591   :  { %1300 = vmatprep.subr.bf16.mxu0 %v1382_v2 }
 0x65e   :  { %v481_v12 = vpop.f32.mrb[8].mxu0 }
 0x65f   :  { %v485_v13 = vadd.f32 %v481_v12, %v156_v11  ;;  %v1200_v14 = vpop.f32.mrb[9].mxu0 }
 0x661   :  { %1334 = vtanh.f32 %v485_v13  ;;  %v1079_v17 = vmul.f32 -1.442695, %v485_v13 }
 0x663   :  { %1336 = vpow2.f32 %v1079_v17 }
 0x66b   :  { %v1335_v16 = vpop.eup %1334 }
 0x66c   :  { %495 = vrot.lane.b32.xlu1 %v1335_v16, %s1385_s28 }
 0x66d   :  { %v1337_v18 = vpop.eup %1336 }
 0x66e   :  { %v489_v20 = vadd.f32 1.0, %v1337_v18 }
 0x670   :  { %1338 = vrcp.f32 %v489_v20 }
 0x67a   :  { %v1339_v21 = vpop.eup %1338 }
 0x67b   :  { %v493_v24 = vmul.f32 %v1339_v21, %v398_v55 }
 0x6de   :  { %v496_v22 = vpop.permute.xlu1 %495 }
 0x6df   :  { %v498_v23 = vmul.f32 %v1339_v21, %v496_v22 }
 0x6e1   :  { %500 = vrot.lane.b32.xlu0 %v498_v23, %s1386_s2 }
 0x753   :  { %v501_v25 = vpop.permute.xlu0 %500 }
 0x754   :  { %v503_v26 = vadd.f32 %v501_v25, %v493_v24  ;;  %v176_v24 = vadd.f32 %v1499_v19, %v1555_v8 }
 0x756   :  { %1340 = vtanh.f32 %v503_v26 }
 0x760   :  { %v1341_v27 = vpop.eup %1340 }
 0x761   :  { %506 = vrot.lane.b32.xlu1 %v1341_v27, %s1385_s28 }
 0x7d3   :  { %v507_v28 = vpop.permute.xlu1 %506 }
 0x7d4   :  { %v509_v29 = vmul.f32 %v1339_v21, %v507_v28 }
 0x7d6   :  { %511 = vrot.lane.b32.xlu0 %v509_v29, %s1386_s2 }
 0x848   :  { %v512_v30 = vpop.permute.xlu0 %511 }
 0x849   :  { %1080 = vst.msk [vmem:[%s1663_s6 + $0x10] sm:$0xff] %vm31_vm1, %v512_v30  ;;  %1210 = vmatmul.mubr.msk.f32.vlgmr.msra.gmra.mrb[4].mxu1 %vm31_vm1, %v512_v30 }
 0x84a   :  { %1296 = vmatpush3.bf16.msra.mxu1 %v1454_v9  ;;  %1231 = vmatprep.mubr.msk.f32.mxu1 %vm1383_vm0, %v1384_v4 }
 0x84b   :  { %1297 = vmatprep.subr.bf16.mxu1 %v1382_v2 }
 0x84e   :  { %1299 = vmatpush3.bf16.msra.mxu1 %v1470_v15 }
 0x84f   :  { %1306 = vmatprep.subr.bf16.mxu1 %v1382_v2 }
 0x91c   :  { %v586_v32 = vpop.f32.mrb[4].mxu1 }
 0x91d   :  { %v590_v33 = vadd.f32 %v586_v32, %v161_v31  ;;  %v1211_v34 = vpop.f32.mrb[5].mxu1 }
 0x91f   :  { %1342 = vtanh.f32 %v590_v33  ;;  %v1082_v36 = vmul.f32 -1.442695, %v590_v33 }
 0x921   :  { %1344 = vpow2.f32 %v1082_v36 }
 0x929   :  { %v1343_v35 = vpop.eup %1342 }
 0x92a   :  { %600 = vrot.lane.b32.xlu1 %v1343_v35, %s1385_s28 }
 0x92b   :  { %v1345_v37 = vpop.eup %1344 }
 0x92c   :  { %v594_v38 = vadd.f32 1.0, %v1345_v37 }
 0x92e   :  { %1346 = vrcp.f32 %v594_v38 }
 0x938   :  { %v1347_v39 = vpop.eup %1346 }
 0x939   :  { %v598_v42 = vmul.f32 %v1347_v39, %v503_v26 }
 0x99c   :  { %v601_v40 = vpop.permute.xlu1 %600 }
 0x99d   :  { %v603_v41 = vmul.f32 %v1347_v39, %v601_v40 }
 0x99f   :  { %605 = vrot.lane.b32.xlu0 %v603_v41, %s1386_s2  ;;  %v181_v41 = vadd.f32 %v1553_v7, %v1499_v19 }
 0xa11   :  { %v606_v43 = vpop.permute.xlu0 %605 }
 0xa12   :  { %v608_v44 = vadd.f32 %v606_v43, %v598_v42 }
 0xa14   :  { %1348 = vtanh.f32 %v608_v44 }
 0xa1e   :  { %v1349_v45 = vpop.eup %1348 }
 0xa1f   :  { %611 = vrot.lane.b32.xlu1 %v1349_v45, %s1385_s28 }
 0xa91   :  { %v612_v46 = vpop.permute.xlu1 %611 }
 0xa92   :  { %v614_v47 = vmul.f32 %v1347_v39, %v612_v46 }
 0xa94   :  { %616 = vrot.lane.b32.xlu0 %v614_v47, %s1386_s2 }
 0xb06   :  { %v617_v48 = vpop.permute.xlu0 %616 }
 0xb07   :  { %1083 = vst.msk [vmem:[%s1663_s6 + $0x18] sm:$0xff] %vm31_vm1, %v617_v48  ;;  %1221 = vmatmul.mubr.msk.f32.vlgmr.msra.gmra.mrb[10].mxu0 %vm31_vm1, %v617_v48 }
 0xb08   :  { %1302 = vmatpush3.bf16.msra.mxu0 %v1454_v9  ;;  %1242 = vmatprep.mubr.msk.f32.mxu0 %vm1383_vm0, %v1384_v4 }
 0xb09   :  { %1303 = vmatprep.subr.bf16.mxu0 %v1382_v2 }
 0xb0c   :  { %1305 = vmatpush3.bf16.msra.mxu0 %v1470_v15 }
 0xbda   :  { %v691_v50 = vpop.f32.mrb[10].mxu0 }
 0xbdb   :  { %v695_v51 = vadd.f32 %v691_v50, %v166_v49  ;;  %v1222_v52 = vpop.f32.mrb[11].mxu0 }
 0xbdd   :  { %1350 = vtanh.f32 %v695_v51  ;;  %v1085_v54 = vmul.f32 -1.442695, %v695_v51 }
 0xbdf   :  { %1352 = vpow2.f32 %v1085_v54 }
 0xbe7   :  { %v1351_v53 = vpop.eup %1350 }
 0xbe8   :  { %705 = vrot.lane.b32.xlu1 %v1351_v53, %s1385_s28 }
 0xbe9   :  { %v1353_v55 = vpop.eup %1352 }
 0xbea   :  { %v699_v56 = vadd.f32 1.0, %v1353_v55 }
 0xbec   :  { %1354 = vrcp.f32 %v699_v56 }
 0xbf6   :  { %v1355_v57 = vpop.eup %1354 }
 0xbf7   :  { %v703_v60 = vmul.f32 %v1355_v57, %v608_v44 }
 0xc5a   :  { %v706_v58 = vpop.permute.xlu1 %705 }
 0xc5b   :  { %v708_v59 = vmul.f32 %v1355_v57, %v706_v58 }
 0xc5d   :  { %710 = vrot.lane.b32.xlu0 %v708_v59, %s1386_s2 }
 0xccf   :  { %v711_v61 = vpop.permute.xlu0 %710 }
 0xcd0   :  { %v713_v62 = vadd.f32 %v711_v61, %v703_v60 }
 0xcd2   :  { %1356 = vtanh.f32 %v713_v62 }
 0xcdc   :  { %v1357_v63 = vpop.eup %1356 }
 0xcdd   :  { %716 = vrot.lane.b32.xlu1 %v1357_v63, %s1385_s28 }
 0xd4f   :  { %v717_v0 = vpop.permute.xlu1 %716 }
 0xd50   :  { %v719_v1 = vmul.f32 %v1355_v57, %v717_v0 }
 0xd52   :  { %721 = vrot.lane.b32.xlu0 %v719_v1, %s1386_s2 }
 0xdc4   :  { %v722_v3 = vpop.permute.xlu0 %721 }
 0xdc5   :  { %1086 = vst.msk [vmem:[%s1663_s6 + $0x20] sm:$0xff] %vm31_vm1, %v722_v3  ;;  %1232 = vmatmul.mubr.msk.f32.vlgmr.msra.gmra.mrb[6].mxu1 %vm31_vm1, %v722_v3 }
 0xdc6   :  { %1308 = vmatpush3.bf16.msra.mxu1 %v1454_v9  ;;  %1253 = vmatprep.mubr.msk.f32.mxu1 %vm1383_vm0, %v1384_v4 }
 0xdc7   :  { %1309 = vmatprep.subr.bf16.mxu1 %v1382_v2 }
 0xdca   :  { %1311 = vmatpush3.bf16.msra.mxu1 %v1470_v15 }
 0xe98   :  { %v796_v10 = vpop.f32.mrb[6].mxu1 }
 0xe99   :  { %v800_v11 = vadd.f32 %v796_v10, %v171_v6  ;;  %v1233_v12 = vpop.f32.mrb[7].mxu1 }
 0xe9b   :  { %1358 = vtanh.f32 %v800_v11  ;;  %v1088_v14 = vmul.f32 -1.442695, %v800_v11 }
 0xe9d   :  { %1360 = vpow2.f32 %v1088_v14 }
 0xea5   :  { %v1359_v13 = vpop.eup %1358 }
 0xea6   :  { %810 = vrot.lane.b32.xlu1 %v1359_v13, %s1385_s28 }
 0xea7   :  { %v1361_v9 = vpop.eup %1360 }
 0xea8   :  { %v804_v16 = vadd.f32 1.0, %v1361_v9 }
 0xeaa   :  { %1362 = vrcp.f32 %v804_v16 }
 0xeb4   :  { %v1363_v4 = vpop.eup %1362 }
 0xeb5   :  { %v808_v15 = vmul.f32 %v1363_v4, %v713_v62 }
 0xf18   :  { %v811_v17 = vpop.permute.xlu1 %810 }
 0xf19   :  { %v813_v2 = vmul.f32 %v1363_v4, %v811_v17 }
 0xf1b   :  { %815 = vrot.lane.b32.xlu0 %v813_v2, %s1386_s2 }
 0xf8d   :  { %v816_v18 = vpop.permute.xlu0 %815 }
 0xf8e   :  { %v818_v5 = vadd.f32 %v816_v18, %v808_v15 }
 0xf90   :  { %1364 = vtanh.f32 %v818_v5 }
 0xf9a   :  { %v1365_v20 = vpop.eup %1364 }
 0xf9b   :  { %821 = vrot.lane.b32.xlu1 %v1365_v20, %s1385_s28 }
0x100d   :  { %v822_v21 = vpop.permute.xlu1 %821 }
0x100e   :  { %v824_v22 = vmul.f32 %v1363_v4, %v822_v21 }
0x1010   :  { %826 = vrot.lane.b32.xlu0 %v824_v22, %s1386_s2 }
0x1082   :  { %v827_v23 = vpop.permute.xlu0 %826 }
0x1083   :  { %1089 = vst.msk [vmem:[%s1663_s6 + $0x28] sm:$0xff] %vm31_vm1, %v827_v23  ;;  %1243 = vmatmul.mubr.msk.f32.vlgmr.msra.gmra.mrb[12].mxu0 %vm31_vm1, %v827_v23 }
0x1156   :  { %v901_v25 = vpop.f32.mrb[12].mxu0 }
0x1157   :  { %v905_v26 = vadd.f32 %v901_v25, %v176_v24  ;;  %v1244_v27 = vpop.f32.mrb[13].mxu0 }
0x1159   :  { %1366 = vtanh.f32 %v905_v26  ;;  %v1091_v29 = vmul.f32 -1.442695, %v905_v26 }
0x115b   :  { %1368 = vpow2.f32 %v1091_v29 }
0x1163   :  { %v1367_v28 = vpop.eup %1366 }
0x1164   :  { %915 = vrot.lane.b32.xlu1 %v1367_v28, %s1385_s28 }
0x1165   :  { %v1369_v30 = vpop.eup %1368 }
0x1166   :  { %v909_v31 = vadd.f32 1.0, %v1369_v30 }
0x1168   :  { %1370 = vrcp.f32 %v909_v31 }
0x1172   :  { %v1371_v32 = vpop.eup %1370 }
0x1173   :  { %v913_v35 = vmul.f32 %v1371_v32, %v818_v5 }
0x11d6   :  { %v916_v33 = vpop.permute.xlu1 %915 }
0x11d7   :  { %v918_v34 = vmul.f32 %v1371_v32, %v916_v33 }
0x11d9   :  { %920 = vrot.lane.b32.xlu0 %v918_v34, %s1386_s2 }
0x124b   :  { %v921_v36 = vpop.permute.xlu0 %920 }
0x124c   :  { %v923_v8 = vadd.f32 %v921_v36, %v913_v35 }
0x124e   :  { %1372 = vtanh.f32 %v923_v8 }
0x1258   :  { %v1373_v37 = vpop.eup %1372 }
0x1259   :  { %926 = vrot.lane.b32.xlu1 %v1373_v37, %s1385_s28 }
0x12cb   :  { %v927_v38 = vpop.permute.xlu1 %926 }
0x12cc   :  { %v929_v39 = vmul.f32 %v1371_v32, %v927_v38 }
0x12ce   :  { %931 = vrot.lane.b32.xlu0 %v929_v39, %s1386_s2 }
0x1340   :  { %v932_v40 = vpop.permute.xlu0 %931 }
0x1341   :  { %1092 = vst.msk [vmem:[%s1663_s6 + $0x30] sm:$0xff] %vm31_vm1, %v932_v40  ;;  %1254 = vmatmul.mubr.msk.f32.vlgmr.msra.gmra.mrb[8].mxu1 %vm31_vm1, %v932_v40 }
0x1414   :  { %v1006_v42 = vpop.f32.mrb[8].mxu1 }
0x1415   :  { %v1010_v43 = vadd.f32 %v1006_v42, %v181_v41  ;;  %v1255_v44 = vpop.f32.mrb[9].mxu1 }
0x1417   :  { %1374 = vtanh.f32 %v1010_v43  ;;  %v1094_v46 = vmul.f32 -1.442695, %v1010_v43 }
0x1419   :  { %1376 = vpow2.f32 %v1094_v46 }
0x1421   :  { %v1375_v45 = vpop.eup %1374 }
0x1422   :  { %1020 = vrot.lane.b32.xlu1 %v1375_v45, %s1385_s28 }
0x1423   :  { %v1377_v47 = vpop.eup %1376 }
0x1424   :  { %v1014_v48 = vadd.f32 1.0, %v1377_v47 }
0x1426   :  { %1378 = vrcp.f32 %v1014_v48 }
0x1430   :  { %v1379_v49 = vpop.eup %1378 }
0x1431   :  { %v1018_v52 = vmul.f32 %v1379_v49, %v923_v8 }
0x1494   :  { %v1021_v50 = vpop.permute.xlu1 %1020 }
0x1495   :  { %v1023_v51 = vmul.f32 %v1379_v49, %v1021_v50 }
0x1497   :  { %1025 = vrot.lane.b32.xlu0 %v1023_v51, %s1386_s2 }
0x1509   :  { %v1026_v53 = vpop.permute.xlu0 %1025 }
0x150a   :  { %v1028_v19 = vadd.f32 %v1026_v53, %v1018_v52 }
0x150c   :  { %1380 = vtanh.f32 %v1028_v19 }
0x1516   :  { %v1381_v7 = vpop.eup %1380 }
0x1517   :  { %1031 = vrot.lane.b32.xlu1 %v1381_v7, %s1385_s28 }
0x151b   :  { %1043 = vrot.lane.b32.xlu1 %v1028_v19, %s1387_s5 }
0x1589   :  { %v1032_v54 = vpop.permute.xlu1 %1031 }
0x158a   :  { %v1034_v55 = vmul.f32 %v1379_v49, %v1032_v54 }
0x158c   :  { %1036 = vrot.lane.b32.xlu0 %v1034_v55, %s1386_s2 }
0x158d   :  { %v1044_v56 = vpop.permute.xlu1 %1043 }
0x158e   :  { %1046 = vst.msk [vmem:[#allocation4] sm:$0xff] %vm31_vm1, %v1044_v56  ;;  %1051 = vst.msk [vmem:[%s1664_s8] sm:$0xff] %vm31_vm1, %v1044_v56 }
0x15fe   :  { %v1037_v57 = vpop.permute.xlu0 %1036 }
0x15ff   :  { %1095 = vst.msk [vmem:[%s1663_s6 + $0x38] sm:$0xff] %vm31_vm1, %v1037_v57  ;;  %1041 = vst.msk [vmem:[#allocation3] sm:$0xff] %vm31_vm1, %v1037_v57 }
0x1600   :  { %1050 = vst.msk [vmem:[%s1665_s7] sm:$0xff] %vm31_vm1, %v1037_v57 }

// kernel: _lambda_.7
= control target key start
LH: loop header
LB: loop body
LE: loop exit
PB: predicated region body
PF: predicated region fallthrough
CT: control target
= control target key end

     0   :  { %v1535_v4 = vmov 0.0|0.0   ;;  %vm39_vm0 = vcmask 261120   ;;  %vm1536_vm1 = vmmov 0   ;;  %v1537_v13 = vmov 0.0   ;;  %s1839_s0 = inlined_call_operand.vmem [shape: f32[8,8,32], index: 0, kind: input, shape index: {}]   ;;  %s1840_s1 = inlined_call_operand.vmem [shape: f32[8,32], index: 1, kind: input, shape index: {}, may-alias: {1,2}]   ;;  %s1841_s2 = inlined_call_operand.vmem [shape: f32[8,32], index: 2, kind: input, shape index: {}, may-alias: {1,2}]   ;;  %s1842_s3 = inlined_call_operand.vmem [shape: f32[32,128], index: 3, kind: input, shape index: {}]   ;;  %s1843_s4 = inlined_call_operand.vmem [shape: f32[32,128], index: 4, kind: input, shape index: {}]   ;;  %s1844_s5 = inlined_call_operand.vmem [shape: f32[1,128], index: 5, kind: input, shape index: {}]   ;;  %s1845_s6 = inlined_call_operand.vmem [shape: f32[32,64], index: 6, kind: input, shape index: {}]   ;;  %s1846_s7 = inlined_call_operand.vmem [shape: f32[1,64], index: 7, kind: input, shape index: {}]   ;;  %s1847_s8 = inlined_call_operand.hbm [shape: f32[8,8,32], index: 8, kind: output, shape index: {0}]   ;;  %s1848_s9 = inlined_call_operand.vmem [shape: f32[8,32], index: 9, kind: output, shape index: {1}]   ;;  %s1849_s10 = inlined_call_operand.vmem [shape: f32[8,32], index: 10, kind: output, shape index: {2}]   ;;  %s1850_s11 = inlined_call_operand.vmem [shape: f32[8,64], index: 11, kind: output, shape index: {3}]  }
   0x1   :  { %v43_v0 = vld [vmem:[%s1842_s3] sm:$0xff]  ;;  %v44_v1 = vld [vmem:[%s1842_s3 + $0x8] sm:$0xff]  ;;  %1384 = vmatprep.subr.bf16.mxu1 %v1535_v4  ;;  %v45_v6 = vld [vmem:[%s1842_s3 + $0x10] sm:$0xff]  ;;  %1285 = vmatprep.mubr.msk.f32.mxu1 %vm1536_vm1, %v1537_v13 }
   0x2   :  { %v200_v2 = vld [vmem:[%s1843_s4] sm:$0xff]  ;;  %v1376_v3 = vpack.c.bf16 %v44_v1, %v43_v0  ;;  %v201_v5 = vld [vmem:[%s1843_s4 + $0x8] sm:$0xff]  ;;  %v46_v7 = vld [vmem:[%s1842_s3 + $0x18] sm:$0xff] }
   0x3   :  { %v1623_v8 = vpack.c.bf16 %v201_v5, %v200_v2  ;;  %v1380_v9 = vpack.c.bf16 %v46_v7, %v45_v6  ;;  %v47_v10 = vld [vmem:[%s1839_s0] sm:$0xff]  ;;  %v202_v11 = vld [vmem:[%s1843_s4 + $0x10] sm:$0xff]  ;;  %v203_v12 = vld [vmem:[%s1843_s4 + $0x18] sm:$0xff] }
   0x4   :  { %1377 = vmatprep.subr.bf16.mxu0 %v1376_v3  ;;  %1265 = vmatprep.mubr.msk.f32.mxu0 %vm39_vm0, %v47_v10  ;;  %v38_v14 = vld [vmem:[%s1840_s1] sm:$0xff] }
   0x5   :  { %17 = vsyncpa [#allocation6], 0  ;;  %1379 = vmatpush3.bf16.msra.mxu0 %v1376_v3  ;;  %1386 = vmatpush3.bf16.msra.mxu1 %v1623_v8  ;;  %v1641_v15 = vpack.c.bf16 %v203_v12, %v202_v11  ;;  %40 = vst.msk [vmem:[#allocation3] sm:$0xff] %vm39_vm0, %v38_v14  ;;  %v48_v16 = vld [vmem:[%s1839_s0 + $0x8] sm:$0xff]  ;;  %v41_v18 = vld [vmem:[%s1841_s2] sm:$0xff]  ;;  %s1538_s21 = smov 64  }
   0x6   :  { %1381 = vmatprep.subr.bf16.mxu0 %v1380_v9  ;;  %1387 = vmatprep.subr.bf16.mxu1 %v1535_v4  ;;  %42 = vst.msk [vmem:[#allocation4] sm:$0xff] %vm39_vm0, %v41_v18  ;;  %v1670_v19 = vld [vmem:[%s1844_s5] ss:$0 sm:$0xff]  ;;  %s1539_s2 = smov 32   ;;  %v49_v56 = vld [vmem:[%s1839_s0 + $0x10] sm:$0xff]  ;;  %v50_v57 = vld [vmem:[%s1839_s0 + $0x18] sm:$0xff] }
   0x7   :  { %v51_v58 = vld [vmem:[%s1839_s0 + $0x20] sm:$0xff]  ;;  %v52_v59 = vld [vmem:[%s1839_s0 + $0x28] sm:$0xff]  ;;  %v53_v60 = vld [vmem:[%s1839_s0 + $0x30] sm:$0xff]  ;;  %s1540_s18 = smov 96  }
   0x8   :  { %v54_v61 = vld [vmem:[%s1839_s0 + $0x38] sm:$0xff] }
   0x9   :  { %1383 = vmatpush3.bf16.msra.mxu0 %v1380_v9  ;;  %1389 = vmatpush3.bf16.msra.mxu1 %v1641_v15 }
   0xa   :  { %1390 = vmatprep.subr.bf16.mxu1 %v1535_v4  ;;  %1396 = vmatprep.subr.bf16.mxu0 %v1535_v4 }
   0xc   :  { %1266 = vmatmul.mubr.msk.f32.vlgmr.msra.gmra.mrb[0].mxu0 %vm39_vm0, %v48_v16  ;;  %v204_v17 = vld [vmem:[#allocation3] sm:$0xff] }
   0xd   :  { %1286 = vmatmul.mubr.msk.f32.vlgmr.msra.gmra.mrb[0].mxu1 %vm39_vm0, %v204_v17  ;;  %1398 = vmatpush3.bf16.msra.mxu0 %v1623_v8  ;;  %v205_v27 = vld [vmem:[#allocation4] sm:$0xff] }
   0xe   :  { %1392 = vmatpush3.bf16.msra.mxu1 %v1623_v8  ;;  %1296 = vmatprep.mubr.msk.f32.mxu1 %vm1536_vm1, %v1537_v13 }
   0xf   :  { %1393 = vmatprep.subr.bf16.mxu1 %v1535_v4  ;;  %1399 = vmatprep.subr.bf16.mxu0 %v1535_v4 }
  0x10   :  { %1268 = vmatprep.mubr.msk.f32.mxu0 %vm39_vm0, %v49_v56 }
  0x11   :  { %1401 = vmatpush3.bf16.msra.mxu0 %v1641_v15 }
  0x12   :  { %1395 = vmatpush3.bf16.msra.mxu1 %v1641_v15  ;;  %1408 = vmatprep.subr.bf16.mxu0 %v1535_v4 }
  0x13   :  { %1402 = vmatprep.subr.bf16.mxu1 %v1535_v4  ;;  %1269 = vmatmul.mubr.msk.f32.gmra.mrb[2].mxu0 %vm39_vm0, %v50_v57 }
  0x14   :  { %1271 = vmatprep.mubr.msk.f32.mxu0 %vm39_vm0, %v51_v58 }
  0x17   :  { %1272 = vmatmul.mubr.msk.f32.gmra.mrb[4].mxu0 %vm39_vm0, %v52_v59 }
  0x18   :  { %1274 = vmatprep.mubr.msk.f32.mxu0 %vm39_vm0, %v53_v60 }
  0x1b   :  { %1275 = vmatmul.mubr.msk.f32.gmra.mrb[6].mxu0 %vm39_vm0, %v54_v61 }
  0x1c   :  { %1307 = vmatprep.mubr.msk.f32.mxu0 %vm1536_vm1, %v1537_v13 }
  0xdf   :  { %v1267_v20 = vpop.f32.mrb[0].mxu0 }
  0xe0   :  { %v153_v21 = vpop.f32.mrb[1].mxu0  ;;  %v276_v22 = vpop.f32.mrb[0].mxu1  ;;  %v159_v42 = vadd.f32 %v1267_v20, %v1670_v19 }
  0xe1   :  { %v154_v23 = vadd.f32 %v1670_v19, %v153_v21  ;;  %v1287_v24 = vpop.f32.mrb[1].mxu1 }
  0xe3   :  { %v280_v25 = vadd.f32 %v276_v22, %v154_v23 }
  0xe5   :  { %1447 = vtanh.f32 %v280_v25  ;;  %v1183_v28 = vmul.f32 -1.442695, %v280_v25 }
  0xe6   :  { %v1270_v1 = vpop.f32.mrb[2].mxu0 }
  0xe7   :  { %1449 = vpow2.f32 %v1183_v28  ;;  %v163_v2 = vpop.f32.mrb[3].mxu0 }
  0xe8   :  { %v164_v10 = vadd.f32 %v1670_v19, %v163_v2 }
  0xea   :  { %v1717_v3 = vpop.f32.mrb[4].mxu0 }
  0xeb   :  { %v1719_v5 = vpop.f32.mrb[5].mxu0 }
  0xee   :  { %v1721_v6 = vpop.f32.mrb[6].mxu0 }
  0xef   :  { %v1448_v26 = vpop.eup %1447  ;;  %v1723_v7 = vpop.f32.mrb[7].mxu0 }
  0xf0   :  { %294 = vrot.lane.b32.xlu0 %v1448_v26, %s1538_s21 }
  0xf1   :  { %v1450_v29 = vpop.eup %1449 }
  0xf2   :  { %v284_v30 = vadd.f32 1.0, %v1450_v29 }
  0xf4   :  { %289 = vrot.lane.b32.xlu0 %v205_v27, %s1539_s2  ;;  %1451 = vrcp.f32 %v284_v30 }
  0xfe   :  { %v1452_v31 = vpop.eup %1451 }
 0x162   :  { %v295_v32 = vpop.permute.xlu0 %294 }
 0x163   :  { %v297_v33 = vmul.f32 %v1452_v31, %v295_v32 }
 0x165   :  { %299 = vrot.lane.b32.xlu1 %v297_v33, %s1539_s2 }
 0x166   :  { %v290_v34 = vpop.permute.xlu0 %289 }
 0x167   :  { %v292_v35 = vmul.f32 %v1452_v31, %v290_v34 }
 0x1d7   :  { %v300_v36 = vpop.permute.xlu1 %299 }
 0x1d8   :  { %v302_v37 = vadd.f32 %v300_v36, %v292_v35 }
 0x1da   :  { %1453 = vtanh.f32 %v302_v37 }
 0x1e4   :  { %v1454_v38 = vpop.eup %1453 }
 0x1e5   :  { %305 = vrot.lane.b32.xlu1 %v1454_v38, %s1538_s21 }
 0x257   :  { %v306_v39 = vpop.permute.xlu1 %305 }
 0x258   :  { %v308_v40 = vmul.f32 %v1452_v31, %v306_v39  ;;  %v169_v31 = vadd.f32 %v1270_v1, %v1670_v19 }
 0x25a   :  { %310 = vrot.lane.b32.xlu0 %v308_v40, %s1539_s2 }
 0x2cc   :  { %v311_v41 = vpop.permute.xlu0 %310 }
 0x2cd   :  { %313 = vst.msk [vmem:[#allocation5] sm:$0xff] %vm39_vm0, %v311_v41  ;;  %1297 = vmatmul.mubr.msk.f32.vlgmr.msra.gmra.mrb[2].mxu1 %vm39_vm0, %v311_v41 }
 0x2ce   :  { %1404 = vmatpush3.bf16.msra.mxu1 %v1623_v8  ;;  %1318 = vmatprep.mubr.msk.f32.mxu1 %vm1536_vm1, %v1537_v13 }
 0x2cf   :  { %1405 = vmatprep.subr.bf16.mxu1 %v1535_v4 }
 0x2d2   :  { %1407 = vmatpush3.bf16.msra.mxu1 %v1641_v15 }
 0x2d3   :  { %1414 = vmatprep.subr.bf16.mxu1 %v1535_v4 }
 0x3a0   :  { %v384_v43 = vpop.f32.mrb[2].mxu1 }
 0x3a1   :  { %v388_v44 = vadd.f32 %v384_v43, %v159_v42  ;;  %v1298_v45 = vpop.f32.mrb[3].mxu1 }
 0x3a3   :  { %1455 = vtanh.f32 %v388_v44  ;;  %v1185_v47 = vmul.f32 -1.442695, %v388_v44 }
 0x3a5   :  { %1457 = vpow2.f32 %v1185_v47 }
 0x3ad   :  { %v1456_v46 = vpop.eup %1455 }
 0x3ae   :  { %398 = vrot.lane.b32.xlu1 %v1456_v46, %s1538_s21 }
 0x3af   :  { %v1458_v48 = vpop.eup %1457 }
 0x3b0   :  { %v392_v49 = vadd.f32 1.0, %v1458_v48 }
 0x3b2   :  { %1459 = vrcp.f32 %v392_v49  ;;  %v174_v49 = vadd.f32 %v1670_v19, %v1719_v5  ;;  %v179_v5 = vadd.f32 %v1717_v3, %v1670_v19 }
 0x3bc   :  { %v1460_v50 = vpop.eup %1459 }
 0x3bd   :  { %v396_v53 = vmul.f32 %v1460_v50, %v302_v37 }
 0x420   :  { %v399_v51 = vpop.permute.xlu1 %398 }
 0x421   :  { %v401_v52 = vmul.f32 %v1460_v50, %v399_v51 }
 0x423   :  { %403 = vrot.lane.b32.xlu0 %v401_v52, %s1539_s2 }
 0x495   :  { %v404_v54 = vpop.permute.xlu0 %403 }
 0x496   :  { %v406_v55 = vadd.f32 %v404_v54, %v396_v53 }
 0x498   :  { %1461 = vtanh.f32 %v406_v55 }
 0x4a2   :  { %v1462_v62 = vpop.eup %1461 }
 0x4a3   :  { %409 = vrot.lane.b32.xlu1 %v1462_v62, %s1538_s21 }
 0x515   :  { %v410_v63 = vpop.permute.xlu1 %409 }
 0x516   :  { %v412_v0 = vmul.f32 %v1460_v50, %v410_v63 }
 0x518   :  { %414 = vrot.lane.b32.xlu0 %v412_v0, %s1539_s2 }
 0x58a   :  { %v415_v9 = vpop.permute.xlu0 %414 }
 0x58b   :  { %418 = vst.msk [vmem:[#allocation5 + $0x8] sm:$0xff] %vm39_vm0, %v415_v9  ;;  %1308 = vmatmul.mubr.msk.f32.vlgmr.msra.gmra.mrb[8].mxu0 %vm39_vm0, %v415_v9 }
 0x58c   :  { %1410 = vmatpush3.bf16.msra.mxu0 %v1623_v8  ;;  %1329 = vmatprep.mubr.msk.f32.mxu0 %vm1536_vm1, %v1537_v13 }
 0x58d   :  { %1411 = vmatprep.subr.bf16.mxu0 %v1535_v4 }
 0x590   :  { %1413 = vmatpush3.bf16.msra.mxu0 %v1641_v15 }
 0x591   :  { %1420 = vmatprep.subr.bf16.mxu0 %v1535_v4 }
 0x65e   :  { %v489_v11 = vpop.f32.mrb[8].mxu0 }
 0x65f   :  { %v493_v12 = vadd.f32 %v489_v11, %v164_v10  ;;  %v1309_v14 = vpop.f32.mrb[9].mxu0 }
 0x661   :  { %1463 = vtanh.f32 %v493_v12  ;;  %v1187_v17 = vmul.f32 -1.442695, %v493_v12 }
 0x663   :  { %1465 = vpow2.f32 %v1187_v17 }
 0x66b   :  { %v1464_v16 = vpop.eup %1463 }
 0x66c   :  { %503 = vrot.lane.b32.xlu1 %v1464_v16, %s1538_s21 }
 0x66d   :  { %v1466_v18 = vpop.eup %1465 }
 0x66e   :  { %v497_v20 = vadd.f32 1.0, %v1466_v18 }
 0x670   :  { %1467 = vrcp.f32 %v497_v20 }
 0x67a   :  { %v1468_v21 = vpop.eup %1467 }
 0x67b   :  { %v501_v24 = vmul.f32 %v1468_v21, %v406_v55 }
 0x6de   :  { %v504_v22 = vpop.permute.xlu1 %503 }
 0x6df   :  { %v506_v23 = vmul.f32 %v1468_v21, %v504_v22 }
 0x6e1   :  { %508 = vrot.lane.b32.xlu0 %v506_v23, %s1539_s2 }
 0x753   :  { %v509_v25 = vpop.permute.xlu0 %508 }
 0x754   :  { %v511_v26 = vadd.f32 %v509_v25, %v501_v24 }
 0x756   :  { %1469 = vtanh.f32 %v511_v26 }
 0x760   :  { %v1470_v27 = vpop.eup %1469 }
 0x761   :  { %514 = vrot.lane.b32.xlu1 %v1470_v27, %s1538_s21 }
 0x7d3   :  { %v515_v28 = vpop.permute.xlu1 %514 }
 0x7d4   :  { %v517_v29 = vmul.f32 %v1468_v21, %v515_v28 }
 0x7d6   :  { %519 = vrot.lane.b32.xlu0 %v517_v29, %s1539_s2 }
 0x848   :  { %v520_v30 = vpop.permute.xlu0 %519 }
 0x849   :  { %523 = vst.msk [vmem:[#allocation5 + $0x10] sm:$0xff] %vm39_vm0, %v520_v30  ;;  %1319 = vmatmul.mubr.msk.f32.vlgmr.msra.gmra.mrb[4].mxu1 %vm39_vm0, %v520_v30 }
 0x84a   :  { %1416 = vmatpush3.bf16.msra.mxu1 %v1623_v8  ;;  %1340 = vmatprep.mubr.msk.f32.mxu1 %vm1536_vm1, %v1537_v13 }
 0x84b   :  { %1417 = vmatprep.subr.bf16.mxu1 %v1535_v4 }
 0x84e   :  { %1419 = vmatpush3.bf16.msra.mxu1 %v1641_v15 }
 0x84f   :  { %1426 = vmatprep.subr.bf16.mxu1 %v1535_v4 }
 0x91c   :  { %v594_v32 = vpop.f32.mrb[4].mxu1 }
 0x91d   :  { %v598_v33 = vadd.f32 %v594_v32, %v169_v31  ;;  %v1320_v34 = vpop.f32.mrb[5].mxu1 }
 0x91f   :  { %1471 = vtanh.f32 %v598_v33  ;;  %v1189_v36 = vmul.f32 -1.442695, %v598_v33 }
 0x921   :  { %1473 = vpow2.f32 %v1189_v36 }
 0x929   :  { %v1472_v35 = vpop.eup %1471 }
 0x92a   :  { %608 = vrot.lane.b32.xlu1 %v1472_v35, %s1538_s21 }
 0x92b   :  { %v1474_v37 = vpop.eup %1473 }
 0x92c   :  { %v602_v38 = vadd.f32 1.0, %v1474_v37 }
 0x92e   :  { %1475 = vrcp.f32 %v602_v38 }
 0x938   :  { %v1476_v39 = vpop.eup %1475 }
 0x939   :  { %v606_v42 = vmul.f32 %v1476_v39, %v511_v26  ;;  %v184_v26 = vadd.f32 %v1670_v19, %v1723_v7 }
 0x99c   :  { %v609_v40 = vpop.permute.xlu1 %608 }
 0x99d   :  { %v611_v41 = vmul.f32 %v1476_v39, %v609_v40 }
 0x99f   :  { %613 = vrot.lane.b32.xlu0 %v611_v41, %s1539_s2 }
 0xa11   :  { %v614_v43 = vpop.permute.xlu0 %613 }
 0xa12   :  { %v616_v44 = vadd.f32 %v614_v43, %v606_v42  ;;  %v189_v42 = vadd.f32 %v1721_v6, %v1670_v19  ;;  %v1060_v6 = vld [vmem:[%s1845_s6] sm:$0xff] }
 0xa14   :  { %1477 = vtanh.f32 %v616_v44 }
 0xa1e   :  { %v1478_v45 = vpop.eup %1477 }
 0xa1f   :  { %619 = vrot.lane.b32.xlu1 %v1478_v45, %s1538_s21 }
 0xa91   :  { %v620_v46 = vpop.permute.xlu1 %619 }
 0xa92   :  { %v622_v47 = vmul.f32 %v1476_v39, %v620_v46 }
 0xa94   :  { %624 = vrot.lane.b32.xlu0 %v622_v47, %s1539_s2 }
 0xb06   :  { %v625_v48 = vpop.permute.xlu0 %624 }
 0xb07   :  { %628 = vst.msk [vmem:[#allocation5 + $0x18] sm:$0xff] %vm39_vm0, %v625_v48  ;;  %1330 = vmatmul.mubr.msk.f32.vlgmr.msra.gmra.mrb[10].mxu0 %vm39_vm0, %v625_v48 }
 0xb08   :  { %1422 = vmatpush3.bf16.msra.mxu0 %v1623_v8  ;;  %1351 = vmatprep.mubr.msk.f32.mxu0 %vm1536_vm1, %v1537_v13 }
 0xb09   :  { %1423 = vmatprep.subr.bf16.mxu0 %v1535_v4 }
 0xb0c   :  { %1425 = vmatpush3.bf16.msra.mxu0 %v1641_v15 }
 0xb0d   :  { %1432 = vmatprep.subr.bf16.mxu0 %v1535_v4 }
 0xbda   :  { %v699_v50 = vpop.f32.mrb[10].mxu0 }
 0xbdb   :  { %v703_v51 = vadd.f32 %v699_v50, %v174_v49  ;;  %v1331_v52 = vpop.f32.mrb[11].mxu0 }
 0xbdd   :  { %1479 = vtanh.f32 %v703_v51  ;;  %v1191_v54 = vmul.f32 -1.442695, %v703_v51 }
 0xbdf   :  { %1481 = vpow2.f32 %v1191_v54 }
 0xbe7   :  { %v1480_v53 = vpop.eup %1479 }
 0xbe8   :  { %713 = vrot.lane.b32.xlu1 %v1480_v53, %s1538_s21 }
 0xbe9   :  { %v1482_v55 = vpop.eup %1481 }
 0xbea   :  { %v707_v56 = vadd.f32 1.0, %v1482_v55  ;;  %v1061_v55 = vld [vmem:[%s1845_s6 + $0x8] sm:$0xff] }
 0xbec   :  { %1483 = vrcp.f32 %v707_v56  ;;  %v1062_v56 = vld [vmem:[%s1845_s6 + $0x10] sm:$0xff] }
 0xbf6   :  { %v1484_v57 = vpop.eup %1483 }
 0xbf7   :  { %v711_v60 = vmul.f32 %v1484_v57, %v616_v44 }
 0xc5a   :  { %v714_v58 = vpop.permute.xlu1 %713 }
 0xc5b   :  { %v716_v59 = vmul.f32 %v1484_v57, %v714_v58  ;;  %v1063_v58 = vld [vmem:[%s1845_s6 + $0x18] sm:$0xff] }
 0xc5d   :  { %718 = vrot.lane.b32.xlu0 %v716_v59, %s1539_s2  ;;  %v1436_v59 = vpack.c.bf16 %v1063_v58, %v1062_v56 }
 0xccf   :  { %v719_v61 = vpop.permute.xlu0 %718 }
 0xcd0   :  { %v721_v62 = vadd.f32 %v719_v61, %v711_v60 }
 0xcd2   :  { %1485 = vtanh.f32 %v721_v62 }
 0xcdc   :  { %v1486_v63 = vpop.eup %1485 }
 0xcdd   :  { %724 = vrot.lane.b32.xlu1 %v1486_v63, %s1538_s21 }
 0xd4f   :  { %v725_v0 = vpop.permute.xlu1 %724 }
 0xd50   :  { %v727_v1 = vmul.f32 %v1484_v57, %v725_v0  ;;  %v1433_v57 = vpack.c.bf16 %v1061_v55, %v1060_v6 }
 0xd52   :  { %729 = vrot.lane.b32.xlu0 %v727_v1, %s1539_s2 }
 0xdc4   :  { %v730_v2 = vpop.permute.xlu0 %729 }
 0xdc5   :  { %733 = vst.msk [vmem:[#allocation5 + $0x20] sm:$0xff] %vm39_vm0, %v730_v2  ;;  %1341 = vmatmul.mubr.msk.f32.vlgmr.msra.gmra.mrb[6].mxu1 %vm39_vm0, %v730_v2 }
 0xdc6   :  { %1428 = vmatpush3.bf16.msra.mxu1 %v1623_v8  ;;  %1362 = vmatprep.mubr.msk.f32.mxu1 %vm1536_vm1, %v1537_v13 }
 0xdc7   :  { %1429 = vmatprep.subr.bf16.mxu1 %v1535_v4 }
 0xdca   :  { %1431 = vmatpush3.bf16.msra.mxu1 %v1641_v15 }
 0xe98   :  { %v804_v9 = vpop.f32.mrb[6].mxu1 }
 0xe99   :  { %v808_v10 = vadd.f32 %v804_v9, %v179_v5  ;;  %v1342_v11 = vpop.f32.mrb[7].mxu1 }
 0xe9b   :  { %1487 = vtanh.f32 %v808_v10  ;;  %v1193_v14 = vmul.f32 -1.442695, %v808_v10 }
 0xe9d   :  { %1489 = vpow2.f32 %v1193_v14 }
 0xea5   :  { %v1488_v12 = vpop.eup %1487 }
 0xea6   :  { %818 = vrot.lane.b32.xlu1 %v1488_v12, %s1538_s21 }
 0xea7   :  { %v1490_v8 = vpop.eup %1489 }
 0xea8   :  { %v812_v16 = vadd.f32 1.0, %v1490_v8 }
 0xeaa   :  { %1491 = vrcp.f32 %v812_v16 }
 0xeb4   :  { %v1492_v17 = vpop.eup %1491 }
 0xeb5   :  { %v816_v15 = vmul.f32 %v1492_v17, %v721_v62 }
 0xf18   :  { %v819_v18 = vpop.permute.xlu1 %818 }
 0xf19   :  { %v821_v20 = vmul.f32 %v1492_v17, %v819_v18 }
 0xf1b   :  { %823 = vrot.lane.b32.xlu0 %v821_v20, %s1539_s2 }
 0xf8d   :  { %v824_v21 = vpop.permute.xlu0 %823 }
 0xf8e   :  { %v826_v3 = vadd.f32 %v824_v21, %v816_v15 }
 0xf90   :  { %1493 = vtanh.f32 %v826_v3 }
 0xf9a   :  { %v1494_v22 = vpop.eup %1493 }
 0xf9b   :  { %829 = vrot.lane.b32.xlu1 %v1494_v22, %s1538_s21 }
0x100d   :  { %v830_v23 = vpop.permute.xlu1 %829 }
0x100e   :  { %v832_v24 = vmul.f32 %v1492_v17, %v830_v23 }
0x1010   :  { %834 = vrot.lane.b32.xlu0 %v832_v24, %s1539_s2 }
0x1082   :  { %v835_v25 = vpop.permute.xlu0 %834 }
0x1083   :  { %838 = vst.msk [vmem:[#allocation5 + $0x28] sm:$0xff] %vm39_vm0, %v835_v25  ;;  %1352 = vmatmul.mubr.msk.f32.vlgmr.msra.gmra.mrb[12].mxu0 %vm39_vm0, %v835_v25 }
0x1084   :  { %1373 = vmatprep.mubr.msk.f32.mxu0 %vm1536_vm1, %v1537_v13  ;;  %1434 = vmatpush3.bf16.msra.mxu0 %v1433_v57 }
0x1085   :  { %1435 = vmatprep.subr.bf16.mxu0 %v1535_v4 }
0x1088   :  { %1437 = vmatpush3.bf16.msra.mxu0 %v1436_v59 }
0x1156   :  { %v909_v27 = vpop.f32.mrb[12].mxu0 }
0x1157   :  { %v913_v28 = vadd.f32 %v909_v27, %v184_v26  ;;  %v1353_v29 = vpop.f32.mrb[13].mxu0 }
0x1159   :  { %1495 = vtanh.f32 %v913_v28  ;;  %v1195_v31 = vmul.f32 -1.442695, %v913_v28 }
0x115b   :  { %1497 = vpow2.f32 %v1195_v31 }
0x1163   :  { %v1496_v30 = vpop.eup %1495 }
0x1164   :  { %923 = vrot.lane.b32.xlu1 %v1496_v30, %s1538_s21 }
0x1165   :  { %v1498_v32 = vpop.eup %1497 }
0x1166   :  { %v917_v33 = vadd.f32 1.0, %v1498_v32 }
0x1168   :  { %1499 = vrcp.f32 %v917_v33 }
0x1172   :  { %v1500_v34 = vpop.eup %1499 }
0x1173   :  { %v921_v13 = vmul.f32 %v1500_v34, %v826_v3 }
0x11d6   :  { %v924_v35 = vpop.permute.xlu1 %923 }
0x11d7   :  { %v926_v36 = vmul.f32 %v1500_v34, %v924_v35 }
0x11d9   :  { %928 = vrot.lane.b32.xlu0 %v926_v36, %s1539_s2 }
0x124b   :  { %v929_v37 = vpop.permute.xlu0 %928 }
0x124c   :  { %v931_v7 = vadd.f32 %v929_v37, %v921_v13 }
0x124e   :  { %1501 = vtanh.f32 %v931_v7 }
0x1258   :  { %v1502_v38 = vpop.eup %1501 }
0x1259   :  { %934 = vrot.lane.b32.xlu1 %v1502_v38, %s1538_s21 }
0x12cb   :  { %v935_v39 = vpop.permute.xlu1 %934 }
0x12cc   :  { %v937_v40 = vmul.f32 %v1500_v34, %v935_v39 }
0x12ce   :  { %939 = vrot.lane.b32.xlu0 %v937_v40, %s1539_s2 }
0x1340   :  { %v940_v41 = vpop.permute.xlu0 %939 }
0x1341   :  { %943 = vst.msk [vmem:[#allocation5 + $0x30] sm:$0xff] %vm39_vm0, %v940_v41  ;;  %1363 = vmatmul.mubr.msk.f32.vlgmr.msra.gmra.mrb[8].mxu1 %vm39_vm0, %v940_v41 }
0x1414   :  { %v1014_v43 = vpop.f32.mrb[8].mxu1 }
0x1415   :  { %v1018_v44 = vadd.f32 %v1014_v43, %v189_v42  ;;  %v1364_v45 = vpop.f32.mrb[9].mxu1 }
0x1417   :  { %1503 = vtanh.f32 %v1018_v44  ;;  %v1197_v47 = vmul.f32 -1.442695, %v1018_v44 }
0x1419   :  { %1505 = vpow2.f32 %v1197_v47 }
0x1421   :  { %v1504_v46 = vpop.eup %1503 }
0x1422   :  { %1028 = vrot.lane.b32.xlu1 %v1504_v46, %s1538_s21 }
0x1423   :  { %v1506_v48 = vpop.eup %1505 }
0x1424   :  { %v1022_v49 = vadd.f32 1.0, %v1506_v48 }
0x1426   :  { %1507 = vrcp.f32 %v1022_v49 }
0x1430   :  { %v1508_v50 = vpop.eup %1507 }
0x1431   :  { %v1026_v53 = vmul.f32 %v1508_v50, %v931_v7 }
0x1494   :  { %v1029_v51 = vpop.permute.xlu1 %1028 }
0x1495   :  { %v1031_v52 = vmul.f32 %v1508_v50, %v1029_v51 }
0x1497   :  { %1033 = vrot.lane.b32.xlu0 %v1031_v52, %s1539_s2 }
0x1509   :  { %v1034_v54 = vpop.permute.xlu0 %1033 }
0x150a   :  { %v1036_v19 = vadd.f32 %v1034_v54, %v1026_v53 }
0x150c   :  { %1509 = vtanh.f32 %v1036_v19 }
0x1516   :  { %v1510_v60 = vpop.eup %1509 }
0x1517   :  { %1039 = vrot.lane.b32.xlu1 %v1510_v60, %s1538_s21 }
0x151b   :  { %1051 = vrot.lane.b32.xlu1 %v1036_v19, %s1540_s18 }
0x1589   :  { %v1040_v61 = vpop.permute.xlu1 %1039 }
0x158a   :  { %v1042_v62 = vmul.f32 %v1508_v50, %v1040_v61 }
0x158c   :  { %1044 = vrot.lane.b32.xlu0 %v1042_v62, %s1539_s2  ;;  %s1541_s2 = smov [#allocation5]  }
0x158d   :  { %v1052_v63 = vpop.permute.xlu1 %1051  ;;  %s1150_s5 = sshll.u32 %s1541_s2, 4  ;;  %s1151_s5 = int_to_ptr.vmem [resolvable:$true] %s1150_s5 }
0x158e   :  { %1054 = vst.msk [vmem:[#allocation4] sm:$0xff] %vm39_vm0, %v1052_v63  ;;  %1059 = vst.msk [vmem:[%s1849_s10] sm:$0xff] %vm39_vm0, %v1052_v63  ;;  %s1511_s22 = scalar_lea.vmem %s1151_s5, 1024  ;;  %p1516_p1 = scmp.lt.s32.totalorder %s1151_s5, %s1151_s5 }
0x158f   :  { %p1512_p0 = scmp.ne.s32.totalorder %s1151_s5, %s1511_s22  ;;  %p1517_p2 = scmp.lt.s32.totalorder %s1511_s22, %s1511_s22 }
0x1591   :  { %p1518_p3 = por %p1517_p2, %p1516_p1 }
0x1593   :  { %p1519_p4 = pnand %p1518_p3, %p1512_p0 }
0x15fe   :  { %v1045_v0 = vpop.permute.xlu0 %1044 }
0x15ff   :  { %1048 = vst.msk [vmem:[#allocation5 + $0x38] sm:$0xff] %vm39_vm0, %v1045_v0  ;;  %1049 = vst.msk [vmem:[#allocation3] sm:$0xff] %vm39_vm0, %v1045_v0  ;;  %1374 = vmatmul.mubr.msk.f32.vlgmr.msra.gmra.mrb[14].mxu0 %vm39_vm0, %v1045_v0 }
0x1600   :  { %1058 = vst.msk [vmem:[%s1848_s9] sm:$0xff] %vm39_vm0, %v1045_v0 }
0x1601   :  { %1522 = shalt.err (!%p1519_p4)
}
0x1602   :  { %s1523_s24 = scalar_lea.hbm %s1847_s8, 1024 }
0x1603   :  { %p1524_p5 = scmp.ne.s32.totalorder %s1847_s8, %s1523_s24  ;;  %p1527_p6 = scmp.lt.u32.totalorder %s1523_s24, %s1847_s8 }
0x1605   :  { %p1529_p7 = pnand %p1527_p6, %p1524_p5 }
0x1607   :  { %1532 = shalt.err (!%p1529_p7)
}
0x1608   :  { %s1542_s28 = smov 128   ;;  %s1543_s29 = smov 8   ;;  %v1198_v4 = vld [vmem:[%s1846_s7] ss:$0 sm:$0xff]  ;;  %vm1143_vm2 = vcmask 523264  }
0x1609   :  { %1156 = dma.vmem_to_hbm [thread:$0]  %s1151_s5, 1024, %s1847_s8, [#allocation6], %s1542_s28, %s1542_s28, %s1543_s29  }
0x16d2   :  { %v1139_v1 = vpop.f32.mrb[14].mxu0 }
0x16d3   :  { %v1140_v2 = vadd.f32 %v1198_v4, %v1139_v1  ;;  %v1375_v5 = vpop.f32.mrb[15].mxu0 }
0x16d5   :  { %1144 = vst.msk [vmem:[%s1850_s11] sm:$0xff] %vm1143_vm2, %v1140_v2 }
0x16d6   :  { %1533 = dma.done.wait [#allocation6], 1024  }
0x16d7   :  { %1534 = vsyncadd [#allocation6], 4294966272 }
0x16d8   :  { %1172 = vsyncpa [#allocation6], 1 }

// kernel: _lambda_.4
= control target key start
LH: loop header
LB: loop body
LE: loop exit
PB: predicated region body
PF: predicated region fallthrough
CT: control target
= control target key end

     0   :  { %v1407_v3 = vmov 0.0|0.0   ;;  %vm1408_vm0 = vmmov 0   ;;  %v1409_v4 = vmov 0.0   ;;  %vm58_vm1 = vcmask 523264   ;;  %s1410_s14 = smov 64   ;;  %s1691_s3 = inlined_call_operand.vmem [shape: f32[64,128], index: 3, kind: input, shape index: {}]   ;;  %s1692_s4 = inlined_call_operand.vmem [shape: f32[32,128], index: 4, kind: input, shape index: {}]   ;;  %s1693_s0 = inlined_call_operand.vmem [shape: f32[8,8,64], index: 0, kind: input, shape index: {}]   ;;  %s1694_s1 = inlined_call_operand.vmem [shape: f32[8,32], index: 1, kind: input, shape index: {}, may-alias: {1,2}]   ;;  %s1695_s2 = inlined_call_operand.vmem [shape: f32[8,32], index: 2, kind: input, shape index: {}, may-alias: {1,2}]   ;;  %s1696_s5 = inlined_call_operand.vmem [shape: f32[1,128], index: 5, kind: input, shape index: {}]   ;;  %s1697_s6 = inlined_call_operand.vmem [shape: f32[8,8,32], index: 6, kind: output, shape index: {0}]   ;;  %s1698_s8 = inlined_call_operand.vmem [shape: f32[8,32], index: 8, kind: output, shape index: {2}]   ;;  %s1699_s7 = inlined_call_operand.vmem [shape: f32[8,32], index: 7, kind: output, shape index: {1}]  }
   0x1   :  { %v35_v0 = vld [vmem:[%s1691_s3] sm:$0xff]  ;;  %v36_v1 = vld [vmem:[%s1691_s3 + $0x8] sm:$0xff]  ;;  %v37_v2 = vld [vmem:[%s1691_s3 + $0x10] sm:$0xff]  ;;  %1289 = vmatprep.subr.bf16.mxu1 %v1407_v3  ;;  %1193 = vmatprep.mubr.msk.f32.mxu1 %vm1408_vm0, %v1409_v4  ;;  %vm31_vm2 = vcmask 261120  }
   0x2   :  { %v1273_v5 = vpack.c.bf16 %v36_v1, %v35_v0  ;;  %v38_v6 = vld [vmem:[%s1691_s3 + $0x18] sm:$0xff]  ;;  %v39_v7 = vld [vmem:[%s1691_s3 + $0x20] sm:$0xff]  ;;  %v40_v9 = vld [vmem:[%s1691_s3 + $0x28] sm:$0xff] }
   0x3   :  { %v1277_v8 = vpack.c.bf16 %v38_v6, %v37_v2  ;;  %v196_v10 = vld [vmem:[%s1692_s4] sm:$0xff]  ;;  %v197_v11 = vld [vmem:[%s1692_s4 + $0x8] sm:$0xff]  ;;  %v198_v14 = vld [vmem:[%s1692_s4 + $0x10] sm:$0xff]  ;;  %v1281_v17 = vpack.c.bf16 %v40_v9, %v39_v7 }
   0x4   :  { %1274 = vmatprep.subr.bf16.mxu0 %v1273_v5  ;;  %v1485_v12 = vpack.c.bf16 %v197_v11, %v196_v10  ;;  %v43_v13 = vld [vmem:[%s1693_s0] sm:$0xff]  ;;  %v199_v15 = vld [vmem:[%s1692_s4 + $0x18] sm:$0xff]  ;;  %v41_v19 = vld [vmem:[%s1691_s3 + $0x30] sm:$0xff] }
   0x5   :  { %1276 = vmatpush3.bf16.msra.mxu0 %v1273_v5  ;;  %1173 = vmatprep.mubr.msk.f32.mxu0 %vm58_vm1, %v43_v13  ;;  %v30_v16 = vld [vmem:[%s1694_s1] sm:$0xff]  ;;  %v1501_v18 = vpack.c.bf16 %v199_v15, %v198_v14  ;;  %v42_v20 = vld [vmem:[%s1691_s3 + $0x38] sm:$0xff]  ;;  %v44_v23 = vld [vmem:[%s1693_s0 + $0x8] sm:$0xff] }
   0x6   :  { %1278 = vmatprep.subr.bf16.mxu0 %v1277_v8  ;;  %1291 = vmatpush3.bf16.msra.mxu1 %v1485_v12  ;;  %32 = vst.msk [vmem:[#allocation3] sm:$0xff] %vm31_vm2, %v30_v16  ;;  %v1285_v21 = vpack.c.bf16 %v42_v20, %v41_v19  ;;  %v33_v24 = vld [vmem:[%s1695_s2] sm:$0xff]  ;;  %s1411_s2 = smov 32   ;;  %v45_v62 = vld [vmem:[%s1693_s0 + $0x10] sm:$0xff]  ;;  %v46_v63 = vld [vmem:[%s1693_s0 + $0x18] sm:$0xff] }
   0x7   :  { %1292 = vmatprep.subr.bf16.mxu1 %v1407_v3  ;;  %34 = vst.msk [vmem:[#allocation4] sm:$0xff] %vm31_vm2, %v33_v24  ;;  %v1536_v27 = vld [vmem:[%s1696_s5] ss:$0 sm:$0xff]  ;;  %s1412_s5 = smov 96  }
   0x8   :  { %v47_v24 = vld [vmem:[%s1693_s0 + $0x20] sm:$0xff] }
   0x9   :  { %1280 = vmatpush3.bf16.msra.mxu0 %v1277_v8 }
   0xa   :  { %1282 = vmatprep.subr.bf16.mxu0 %v1281_v17  ;;  %1294 = vmatpush3.bf16.msra.mxu1 %v1501_v18 }
   0xb   :  { %1295 = vmatprep.subr.bf16.mxu1 %v1407_v3 }
   0xd   :  { %1284 = vmatpush3.bf16.msra.mxu0 %v1281_v17  ;;  %v200_v22 = vld [vmem:[#allocation3] sm:$0xff] }
   0xe   :  { %1286 = vmatprep.subr.bf16.mxu0 %v1285_v21  ;;  %1194 = vmatmul.mubr.msk.f32.vlgmr.msra.gmra.mrb[0].mxu1 %vm31_vm2, %v200_v22  ;;  %v201_v33 = vld [vmem:[#allocation4] sm:$0xff] }
   0xf   :  { %1297 = vmatpush3.bf16.msra.mxu1 %v1485_v12  ;;  %1204 = vmatprep.mubr.msk.f32.mxu1 %vm1408_vm0, %v1409_v4 }
  0x10   :  { %1298 = vmatprep.subr.bf16.mxu1 %v1407_v3 }
  0x11   :  { %1288 = vmatpush3.bf16.msra.mxu0 %v1285_v21 }
  0x12   :  { %1307 = vmatprep.subr.bf16.mxu0 %v1407_v3 }
  0x13   :  { %1300 = vmatpush3.bf16.msra.mxu1 %v1501_v18 }
  0x14   :  { %1174 = vmatmul.mubr.msk.f32.vlgmr.msra.gmra.mrb[0].mxu0 %vm58_vm1, %v44_v23  ;;  %1301 = vmatprep.subr.bf16.mxu1 %v1407_v3 }
  0x15   :  { %1309 = vmatpush3.bf16.msra.mxu0 %v1485_v12  ;;  %1176 = vmatprep.mubr.msk.f32.mxu0 %vm58_vm1, %v45_v62 }
  0x16   :  { %1310 = vmatprep.subr.bf16.mxu0 %v1407_v3 }
  0x18   :  { %1177 = vmatmul.mubr.msk.f32.gmra.mrb[2].mxu0 %vm58_vm1, %v46_v63 }
  0x19   :  { %1312 = vmatpush3.bf16.msra.mxu0 %v1501_v18  ;;  %1179 = vmatprep.mubr.msk.f32.mxu0 %vm58_vm1, %v47_v24 }
  0x1a   :  { %1319 = vmatprep.subr.bf16.mxu0 %v1407_v3 }
  0xe1   :  { %v273_v25 = vpop.f32.mrb[0].mxu1 }
  0xe2   :  { %v1195_v26 = vpop.f32.mrb[1].mxu1 }
  0xe3   :  { %v49_v26 = vld [vmem:[%s1693_s0 + $0x30] sm:$0xff] }
  0xe7   :  { %v1175_v28 = vpop.f32.mrb[0].mxu0 }
  0xe8   :  { %v149_v29 = vpop.f32.mrb[1].mxu0  ;;  %v155_v48 = vadd.f32 %v1175_v28, %v1536_v27  ;;  %v50_v28 = vld [vmem:[%s1693_s0 + $0x38] sm:$0xff] }
  0xe9   :  { %v150_v30 = vadd.f32 %v1536_v27, %v149_v29 }
  0xeb   :  { %v277_v31 = vadd.f32 %v273_v25, %v150_v30  ;;  %v1178_v5 = vpop.f32.mrb[2].mxu0  ;;  %v48_v25 = vld [vmem:[%s1693_s0 + $0x28] sm:$0xff] }
  0xec   :  { %v159_v6 = vpop.f32.mrb[3].mxu0  ;;  %1180 = vmatmul.mubr.msk.f32.gmra.mrb[4].mxu0 %vm58_vm1, %v48_v25 }
  0xed   :  { %1343 = vtanh.f32 %v277_v31  ;;  %v1079_v34 = vmul.f32 -1.442695, %v277_v31  ;;  %v160_v8 = vadd.f32 %v1536_v27, %v159_v6  ;;  %1182 = vmatprep.mubr.msk.f32.mxu0 %vm58_vm1, %v49_v26 }
  0xef   :  { %1345 = vpow2.f32 %v1079_v34 }
  0xf0   :  { %1183 = vmatmul.mubr.msk.f32.gmra.mrb[6].mxu0 %vm58_vm1, %v50_v28 }
  0xf1   :  { %1226 = vmatprep.mubr.msk.f32.mxu0 %vm1408_vm0, %v1409_v4 }
  0xf7   :  { %v1344_v32 = vpop.eup %1343 }
  0xf8   :  { %291 = vrot.lane.b32.xlu0 %v1344_v32, %s1410_s14 }
  0xf9   :  { %v1346_v35 = vpop.eup %1345 }
  0xfa   :  { %v281_v36 = vadd.f32 1.0, %v1346_v35 }
  0xfc   :  { %286 = vrot.lane.b32.xlu0 %v201_v33, %s1411_s2  ;;  %1347 = vrcp.f32 %v281_v36 }
 0x106   :  { %v1348_v37 = vpop.eup %1347 }
 0x16a   :  { %v292_v38 = vpop.permute.xlu0 %291 }
 0x16b   :  { %v294_v39 = vmul.f32 %v1348_v37, %v292_v38 }
 0x16d   :  { %296 = vrot.lane.b32.xlu1 %v294_v39, %s1411_s2 }
 0x16e   :  { %v287_v40 = vpop.permute.xlu0 %286 }
 0x16f   :  { %v289_v41 = vmul.f32 %v1348_v37, %v287_v40 }
 0x1bf   :  { %v1602_v32 = vpop.f32.mrb[4].mxu0 }
 0x1c0   :  { %v169_v33 = vpop.f32.mrb[5].mxu0 }
 0x1c3   :  { %v1604_v34 = vpop.f32.mrb[6].mxu0 }
 0x1c4   :  { %v1606_v35 = vpop.f32.mrb[7].mxu0 }
 0x1c5   :  { %v180_v28 = vadd.f32 %v1536_v27, %v1606_v35 }
 0x1df   :  { %v297_v42 = vpop.permute.xlu1 %296 }
 0x1e0   :  { %v299_v43 = vadd.f32 %v297_v42, %v289_v41 }
 0x1e2   :  { %1349 = vtanh.f32 %v299_v43 }
 0x1ec   :  { %v1350_v44 = vpop.eup %1349 }
 0x1ed   :  { %302 = vrot.lane.b32.xlu1 %v1350_v44, %s1410_s14 }
 0x25f   :  { %v303_v45 = vpop.permute.xlu1 %302 }
 0x260   :  { %v305_v46 = vmul.f32 %v1348_v37, %v303_v45  ;;  %v165_v37 = vadd.f32 %v1178_v5, %v1536_v27 }
 0x262   :  { %307 = vrot.lane.b32.xlu0 %v305_v46, %s1411_s2 }
 0x2d4   :  { %v308_v47 = vpop.permute.xlu0 %307 }
 0x2d5   :  { %310 = vst.msk [vmem:[%s1697_s6] sm:$0xff] %vm31_vm2, %v308_v47  ;;  %1205 = vmatmul.mubr.msk.f32.vlgmr.msra.gmra.mrb[2].mxu1 %vm31_vm2, %v308_v47 }
 0x2d6   :  { %1303 = vmatpush3.bf16.msra.mxu1 %v1485_v12  ;;  %1215 = vmatprep.mubr.msk.f32.mxu1 %vm1408_vm0, %v1409_v4 }
 0x2d7   :  { %1304 = vmatprep.subr.bf16.mxu1 %v1407_v3 }
 0x2da   :  { %1306 = vmatpush3.bf16.msra.mxu1 %v1501_v18 }
 0x2db   :  { %1313 = vmatprep.subr.bf16.mxu1 %v1407_v3 }
 0x3a8   :  { %v381_v49 = vpop.f32.mrb[2].mxu1 }
 0x3a9   :  { %v385_v50 = vadd.f32 %v381_v49, %v155_v48  ;;  %v1206_v51 = vpop.f32.mrb[3].mxu1 }
 0x3ab   :  { %1351 = vtanh.f32 %v385_v50  ;;  %v1081_v53 = vmul.f32 -1.442695, %v385_v50 }
 0x3ad   :  { %1353 = vpow2.f32 %v1081_v53 }
 0x3b5   :  { %v1352_v52 = vpop.eup %1351 }
 0x3b6   :  { %395 = vrot.lane.b32.xlu1 %v1352_v52, %s1410_s14 }
 0x3b7   :  { %v1354_v54 = vpop.eup %1353 }
 0x3b8   :  { %v389_v55 = vadd.f32 1.0, %v1354_v54 }
 0x3ba   :  { %1355 = vrcp.f32 %v389_v55  ;;  %v170_v55 = vadd.f32 %v1536_v27, %v169_v33 }
 0x3c4   :  { %v1356_v56 = vpop.eup %1355 }
 0x3c5   :  { %v393_v59 = vmul.f32 %v1356_v56, %v299_v43 }
 0x428   :  { %v396_v57 = vpop.permute.xlu1 %395 }
 0x429   :  { %v398_v58 = vmul.f32 %v1356_v56, %v396_v57 }
 0x42b   :  { %400 = vrot.lane.b32.xlu0 %v398_v58, %s1411_s2 }
 0x49d   :  { %v401_v60 = vpop.permute.xlu0 %400 }
 0x49e   :  { %v403_v61 = vadd.f32 %v401_v60, %v393_v59 }
 0x4a0   :  { %1357 = vtanh.f32 %v403_v61 }
 0x4aa   :  { %v1358_v0 = vpop.eup %1357 }
 0x4ab   :  { %406 = vrot.lane.b32.xlu1 %v1358_v0, %s1410_s14 }
 0x51d   :  { %v407_v1 = vpop.permute.xlu1 %406 }
 0x51e   :  { %v409_v2 = vmul.f32 %v1356_v56, %v407_v1 }
 0x520   :  { %411 = vrot.lane.b32.xlu0 %v409_v2, %s1411_s2 }
 0x592   :  { %v412_v7 = vpop.permute.xlu0 %411 }
 0x593   :  { %1082 = vst.msk [vmem:[%s1697_s6 + $0x8] sm:$0xff] %vm31_vm2, %v412_v7  ;;  %1216 = vmatmul.mubr.msk.f32.vlgmr.msra.gmra.mrb[4].mxu1 %vm31_vm2, %v412_v7 }
 0x594   :  { %1315 = vmatpush3.bf16.msra.mxu1 %v1485_v12  ;;  %1237 = vmatprep.mubr.msk.f32.mxu1 %vm1408_vm0, %v1409_v4 }
 0x595   :  { %1316 = vmatprep.subr.bf16.mxu1 %v1407_v3 }
 0x598   :  { %1318 = vmatpush3.bf16.msra.mxu1 %v1501_v18 }
 0x599   :  { %1325 = vmatprep.subr.bf16.mxu1 %v1407_v3 }
 0x666   :  { %v486_v9 = vpop.f32.mrb[4].mxu1 }
 0x667   :  { %v490_v10 = vadd.f32 %v486_v9, %v160_v8  ;;  %v1217_v11 = vpop.f32.mrb[5].mxu1 }
 0x668   :  { %v175_v11 = vadd.f32 %v1602_v32, %v1536_v27 }
 0x669   :  { %1359 = vtanh.f32 %v490_v10  ;;  %v1084_v14 = vmul.f32 -1.442695, %v490_v10 }
 0x66b   :  { %1361 = vpow2.f32 %v1084_v14 }
 0x673   :  { %v1360_v13 = vpop.eup %1359 }
 0x674   :  { %500 = vrot.lane.b32.xlu1 %v1360_v13, %s1410_s14 }
 0x675   :  { %v1362_v15 = vpop.eup %1361 }
 0x676   :  { %v494_v16 = vadd.f32 1.0, %v1362_v15 }
 0x678   :  { %1363 = vrcp.f32 %v494_v16 }
 0x682   :  { %v1364_v17 = vpop.eup %1363 }
 0x683   :  { %v498_v21 = vmul.f32 %v1364_v17, %v403_v61 }
 0x6e6   :  { %v501_v19 = vpop.permute.xlu1 %500 }
 0x6e7   :  { %v503_v20 = vmul.f32 %v1364_v17, %v501_v19 }
 0x6e9   :  { %505 = vrot.lane.b32.xlu0 %v503_v20, %s1411_s2 }
 0x75b   :  { %v506_v22 = vpop.permute.xlu0 %505 }
 0x75c   :  { %v508_v23 = vadd.f32 %v506_v22, %v498_v21 }
 0x75e   :  { %1365 = vtanh.f32 %v508_v23 }
 0x768   :  { %v1366_v29 = vpop.eup %1365 }
 0x769   :  { %511 = vrot.lane.b32.xlu1 %v1366_v29, %s1410_s14 }
 0x7db   :  { %v512_v30 = vpop.permute.xlu1 %511 }
 0x7dc   :  { %v514_v31 = vmul.f32 %v1364_v17, %v512_v30 }
 0x7de   :  { %516 = vrot.lane.b32.xlu0 %v514_v31, %s1411_s2 }
 0x850   :  { %v517_v36 = vpop.permute.xlu0 %516 }
 0x851   :  { %1085 = vst.msk [vmem:[%s1697_s6 + $0x10] sm:$0xff] %vm31_vm2, %v517_v36  ;;  %1227 = vmatmul.mubr.msk.f32.vlgmr.msra.gmra.mrb[8].mxu0 %vm31_vm2, %v517_v36 }
 0x852   :  { %1321 = vmatpush3.bf16.msra.mxu0 %v1485_v12  ;;  %1248 = vmatprep.mubr.msk.f32.mxu0 %vm1408_vm0, %v1409_v4 }
 0x853   :  { %1322 = vmatprep.subr.bf16.mxu0 %v1407_v3 }
 0x856   :  { %1324 = vmatpush3.bf16.msra.mxu0 %v1501_v18 }
 0x857   :  { %1331 = vmatprep.subr.bf16.mxu0 %v1407_v3 }
 0x924   :  { %v591_v38 = vpop.f32.mrb[8].mxu0 }
 0x925   :  { %v595_v39 = vadd.f32 %v591_v38, %v165_v37  ;;  %v1228_v40 = vpop.f32.mrb[9].mxu0 }
 0x927   :  { %1367 = vtanh.f32 %v595_v39  ;;  %v1087_v42 = vmul.f32 -1.442695, %v595_v39 }
 0x929   :  { %1369 = vpow2.f32 %v1087_v42 }
 0x931   :  { %v1368_v41 = vpop.eup %1367 }
 0x932   :  { %605 = vrot.lane.b32.xlu1 %v1368_v41, %s1410_s14 }
 0x933   :  { %v1370_v43 = vpop.eup %1369 }
 0x934   :  { %v599_v44 = vadd.f32 1.0, %v1370_v43 }
 0x936   :  { %1371 = vrcp.f32 %v599_v44 }
 0x940   :  { %v1372_v45 = vpop.eup %1371 }
 0x941   :  { %v603_v48 = vmul.f32 %v1372_v45, %v508_v23 }
 0x9a4   :  { %v606_v46 = vpop.permute.xlu1 %605 }
 0x9a5   :  { %v608_v47 = vmul.f32 %v1372_v45, %v606_v46 }
 0x9a7   :  { %610 = vrot.lane.b32.xlu0 %v608_v47, %s1411_s2  ;;  %v185_v47 = vadd.f32 %v1604_v34, %v1536_v27 }
 0xa19   :  { %v611_v49 = vpop.permute.xlu0 %610 }
 0xa1a   :  { %v613_v50 = vadd.f32 %v611_v49, %v603_v48 }
 0xa1c   :  { %1373 = vtanh.f32 %v613_v50 }
 0xa26   :  { %v1374_v51 = vpop.eup %1373 }
 0xa27   :  { %616 = vrot.lane.b32.xlu1 %v1374_v51, %s1410_s14 }
 0xa99   :  { %v617_v52 = vpop.permute.xlu1 %616 }
 0xa9a   :  { %v619_v53 = vmul.f32 %v1372_v45, %v617_v52 }
 0xa9c   :  { %621 = vrot.lane.b32.xlu0 %v619_v53, %s1411_s2 }
 0xb0e   :  { %v622_v54 = vpop.permute.xlu0 %621 }
 0xb0f   :  { %1088 = vst.msk [vmem:[%s1697_s6 + $0x18] sm:$0xff] %vm31_vm2, %v622_v54  ;;  %1238 = vmatmul.mubr.msk.f32.vlgmr.msra.gmra.mrb[6].mxu1 %vm31_vm2, %v622_v54 }
 0xb10   :  { %1327 = vmatpush3.bf16.msra.mxu1 %v1485_v12  ;;  %1259 = vmatprep.mubr.msk.f32.mxu1 %vm1408_vm0, %v1409_v4 }
 0xb11   :  { %1328 = vmatprep.subr.bf16.mxu1 %v1407_v3 }
 0xb14   :  { %1330 = vmatpush3.bf16.msra.mxu1 %v1501_v18 }
 0xbe2   :  { %v696_v56 = vpop.f32.mrb[6].mxu1 }
 0xbe3   :  { %v700_v57 = vadd.f32 %v696_v56, %v170_v55  ;;  %v1239_v58 = vpop.f32.mrb[7].mxu1 }
 0xbe5   :  { %1375 = vtanh.f32 %v700_v57  ;;  %v1090_v60 = vmul.f32 -1.442695, %v700_v57 }
 0xbe7   :  { %1377 = vpow2.f32 %v1090_v60 }
 0xbef   :  { %v1376_v59 = vpop.eup %1375 }
 0xbf0   :  { %710 = vrot.lane.b32.xlu1 %v1376_v59, %s1410_s14 }
 0xbf1   :  { %v1378_v61 = vpop.eup %1377 }
 0xbf2   :  { %v704_v62 = vadd.f32 1.0, %v1378_v61 }
 0xbf4   :  { %1379 = vrcp.f32 %v704_v62 }
 0xbfe   :  { %v1380_v63 = vpop.eup %1379 }
 0xbff   :  { %v708_v2 = vmul.f32 %v1380_v63, %v613_v50 }
 0xc62   :  { %v711_v0 = vpop.permute.xlu1 %710 }
 0xc63   :  { %v713_v1 = vmul.f32 %v1380_v63, %v711_v0 }
 0xc65   :  { %715 = vrot.lane.b32.xlu0 %v713_v1, %s1411_s2 }
 0xcd7   :  { %v716_v5 = vpop.permute.xlu0 %715 }
 0xcd8   :  { %v718_v6 = vadd.f32 %v716_v5, %v708_v2 }
 0xcda   :  { %1381 = vtanh.f32 %v718_v6 }
 0xce4   :  { %v1382_v7 = vpop.eup %1381 }
 0xce5   :  { %721 = vrot.lane.b32.xlu1 %v1382_v7, %s1410_s14 }
 0xd57   :  { %v722_v8 = vpop.permute.xlu1 %721 }
 0xd58   :  { %v724_v9 = vmul.f32 %v1380_v63, %v722_v8 }
 0xd5a   :  { %726 = vrot.lane.b32.xlu0 %v724_v9, %s1411_s2 }
 0xdcc   :  { %v727_v10 = vpop.permute.xlu0 %726 }
 0xdcd   :  { %1091 = vst.msk [vmem:[%s1697_s6 + $0x20] sm:$0xff] %vm31_vm2, %v727_v10  ;;  %1249 = vmatmul.mubr.msk.f32.vlgmr.msra.gmra.mrb[10].mxu0 %vm31_vm2, %v727_v10 }
 0xdce   :  { %1333 = vmatpush3.bf16.msra.mxu0 %v1485_v12  ;;  %1270 = vmatprep.mubr.msk.f32.mxu0 %vm1408_vm0, %v1409_v4 }
 0xdcf   :  { %1334 = vmatprep.subr.bf16.mxu0 %v1407_v3 }
 0xdd2   :  { %1336 = vmatpush3.bf16.msra.mxu0 %v1501_v18 }
 0xea0   :  { %v801_v13 = vpop.f32.mrb[10].mxu0 }
 0xea1   :  { %v805_v14 = vadd.f32 %v801_v13, %v175_v11  ;;  %v1250_v15 = vpop.f32.mrb[11].mxu0 }
 0xea3   :  { %1383 = vtanh.f32 %v805_v14  ;;  %v1093_v17 = vmul.f32 -1.442695, %v805_v14 }
 0xea5   :  { %1385 = vpow2.f32 %v1093_v17 }
 0xead   :  { %v1384_v16 = vpop.eup %1383 }
 0xeae   :  { %815 = vrot.lane.b32.xlu1 %v1384_v16, %s1410_s14 }
 0xeaf   :  { %v1386_v12 = vpop.eup %1385 }
 0xeb0   :  { %v809_v19 = vadd.f32 1.0, %v1386_v12 }
 0xeb2   :  { %1387 = vrcp.f32 %v809_v19 }
 0xebc   :  { %v1388_v4 = vpop.eup %1387 }
 0xebd   :  { %v813_v18 = vmul.f32 %v1388_v4, %v718_v6 }
 0xf20   :  { %v816_v20 = vpop.permute.xlu1 %815 }
 0xf21   :  { %v818_v3 = vmul.f32 %v1388_v4, %v816_v20 }
 0xf23   :  { %820 = vrot.lane.b32.xlu0 %v818_v3, %s1411_s2 }
 0xf95   :  { %v821_v21 = vpop.permute.xlu0 %820 }
 0xf96   :  { %v823_v22 = vadd.f32 %v821_v21, %v813_v18 }
 0xf98   :  { %1389 = vtanh.f32 %v823_v22 }
 0xfa2   :  { %v1390_v23 = vpop.eup %1389 }
 0xfa3   :  { %826 = vrot.lane.b32.xlu1 %v1390_v23, %s1410_s14 }
0x1015   :  { %v827_v24 = vpop.permute.xlu1 %826 }
0x1016   :  { %v829_v25 = vmul.f32 %v1388_v4, %v827_v24 }
0x1018   :  { %831 = vrot.lane.b32.xlu0 %v829_v25, %s1411_s2 }
0x108a   :  { %v832_v26 = vpop.permute.xlu0 %831 }
0x108b   :  { %1094 = vst.msk [vmem:[%s1697_s6 + $0x28] sm:$0xff] %vm31_vm2, %v832_v26  ;;  %1260 = vmatmul.mubr.msk.f32.vlgmr.msra.gmra.mrb[8].mxu1 %vm31_vm2, %v832_v26 }
0x115e   :  { %v906_v29 = vpop.f32.mrb[8].mxu1 }
0x115f   :  { %v910_v30 = vadd.f32 %v906_v29, %v180_v28  ;;  %v1261_v31 = vpop.f32.mrb[9].mxu1 }
0x1161   :  { %1391 = vtanh.f32 %v910_v30  ;;  %v1096_v33 = vmul.f32 -1.442695, %v910_v30 }
0x1163   :  { %1393 = vpow2.f32 %v1096_v33 }
0x116b   :  { %v1392_v32 = vpop.eup %1391 }
0x116c   :  { %920 = vrot.lane.b32.xlu1 %v1392_v32, %s1410_s14 }
0x116d   :  { %v1394_v36 = vpop.eup %1393 }
0x116e   :  { %v914_v37 = vadd.f32 1.0, %v1394_v36 }
0x1170   :  { %1395 = vrcp.f32 %v914_v37 }
0x117a   :  { %v1396_v38 = vpop.eup %1395 }
0x117b   :  { %v918_v41 = vmul.f32 %v1396_v38, %v823_v22 }
0x11de   :  { %v921_v39 = vpop.permute.xlu1 %920 }
0x11df   :  { %v923_v40 = vmul.f32 %v1396_v38, %v921_v39 }
0x11e1   :  { %925 = vrot.lane.b32.xlu0 %v923_v40, %s1411_s2 }
0x1253   :  { %v926_v42 = vpop.permute.xlu0 %925 }
0x1254   :  { %v928_v35 = vadd.f32 %v926_v42, %v918_v41 }
0x1256   :  { %1397 = vtanh.f32 %v928_v35 }
0x1260   :  { %v1398_v43 = vpop.eup %1397 }
0x1261   :  { %931 = vrot.lane.b32.xlu1 %v1398_v43, %s1410_s14 }
0x12d3   :  { %v932_v44 = vpop.permute.xlu1 %931 }
0x12d4   :  { %v934_v45 = vmul.f32 %v1396_v38, %v932_v44 }
0x12d6   :  { %936 = vrot.lane.b32.xlu0 %v934_v45, %s1411_s2 }
0x1348   :  { %v937_v46 = vpop.permute.xlu0 %936 }
0x1349   :  { %1097 = vst.msk [vmem:[%s1697_s6 + $0x30] sm:$0xff] %vm31_vm2, %v937_v46  ;;  %1271 = vmatmul.mubr.msk.f32.vlgmr.msra.gmra.mrb[12].mxu0 %vm31_vm2, %v937_v46 }
0x141c   :  { %v1011_v48 = vpop.f32.mrb[12].mxu0 }
0x141d   :  { %v1015_v49 = vadd.f32 %v1011_v48, %v185_v47  ;;  %v1272_v50 = vpop.f32.mrb[13].mxu0 }
0x141f   :  { %1399 = vtanh.f32 %v1015_v49  ;;  %v1099_v52 = vmul.f32 -1.442695, %v1015_v49 }
0x1421   :  { %1401 = vpow2.f32 %v1099_v52 }
0x1429   :  { %v1400_v51 = vpop.eup %1399 }
0x142a   :  { %1025 = vrot.lane.b32.xlu1 %v1400_v51, %s1410_s14 }
0x142b   :  { %v1402_v53 = vpop.eup %1401 }
0x142c   :  { %v1019_v54 = vadd.f32 1.0, %v1402_v53 }
0x142e   :  { %1403 = vrcp.f32 %v1019_v54 }
0x1438   :  { %v1404_v55 = vpop.eup %1403 }
0x1439   :  { %v1023_v58 = vmul.f32 %v1404_v55, %v928_v35 }
0x149c   :  { %v1026_v56 = vpop.permute.xlu1 %1025 }
0x149d   :  { %v1028_v57 = vmul.f32 %v1404_v55, %v1026_v56 }
0x149f   :  { %1030 = vrot.lane.b32.xlu0 %v1028_v57, %s1411_s2 }
0x1511   :  { %v1031_v59 = vpop.permute.xlu0 %1030 }
0x1512   :  { %v1033_v27 = vadd.f32 %v1031_v59, %v1023_v58 }
0x1514   :  { %1405 = vtanh.f32 %v1033_v27 }
0x151e   :  { %v1406_v34 = vpop.eup %1405 }
0x151f   :  { %1036 = vrot.lane.b32.xlu1 %v1406_v34, %s1410_s14 }
0x1523   :  { %1048 = vrot.lane.b32.xlu1 %v1033_v27, %s1412_s5 }
0x1591   :  { %v1037_v60 = vpop.permute.xlu1 %1036 }
0x1592   :  { %v1039_v61 = vmul.f32 %v1404_v55, %v1037_v60 }
0x1594   :  { %1041 = vrot.lane.b32.xlu0 %v1039_v61, %s1411_s2 }
0x1595   :  { %v1049_v62 = vpop.permute.xlu1 %1048 }
0x1596   :  { %1051 = vst.msk [vmem:[#allocation4] sm:$0xff] %vm31_vm2, %v1049_v62  ;;  %1056 = vst.msk [vmem:[%s1698_s8] sm:$0xff] %vm31_vm2, %v1049_v62 }
0x1606   :  { %v1042_v63 = vpop.permute.xlu0 %1041 }
0x1607   :  { %1100 = vst.msk [vmem:[%s1697_s6 + $0x38] sm:$0xff] %vm31_vm2, %v1042_v63  ;;  %1046 = vst.msk [vmem:[#allocation3] sm:$0xff] %vm31_vm2, %v1042_v63 }
0x1608   :  { %1055 = vst.msk [vmem:[%s1699_s7] sm:$0xff] %vm31_vm2, %v1042_v63 }

// kernel: _lambda_.7
= control target key start
LH: loop header
LB: loop body
LE: loop exit
PB: predicated region body
PF: predicated region fallthrough
CT: control target
= control target key end

     0   :  { %v1535_v4 = vmov 0.0|0.0   ;;  %vm39_vm0 = vcmask 261120   ;;  %vm1536_vm1 = vmmov 0   ;;  %v1537_v13 = vmov 0.0   ;;  %s1839_s0 = inlined_call_operand.vmem [shape: f32[8,8,32], index: 0, kind: input, shape index: {}]   ;;  %s1840_s1 = inlined_call_operand.vmem [shape: f32[8,32], index: 1, kind: input, shape index: {}, may-alias: {1,2}]   ;;  %s1841_s2 = inlined_call_operand.vmem [shape: f32[8,32], index: 2, kind: input, shape index: {}, may-alias: {1,2}]   ;;  %s1842_s3 = inlined_call_operand.vmem [shape: f32[32,128], index: 3, kind: input, shape index: {}]   ;;  %s1843_s4 = inlined_call_operand.vmem [shape: f32[32,128], index: 4, kind: input, shape index: {}]   ;;  %s1844_s5 = inlined_call_operand.vmem [shape: f32[1,128], index: 5, kind: input, shape index: {}]   ;;  %s1845_s6 = inlined_call_operand.vmem [shape: f32[32,64], index: 6, kind: input, shape index: {}]   ;;  %s1846_s7 = inlined_call_operand.vmem [shape: f32[1,64], index: 7, kind: input, shape index: {}]   ;;  %s1847_s8 = inlined_call_operand.hbm [shape: f32[8,8,32], index: 8, kind: output, shape index: {0}]   ;;  %s1848_s9 = inlined_call_operand.vmem [shape: f32[8,32], index: 9, kind: output, shape index: {1}]   ;;  %s1849_s10 = inlined_call_operand.vmem [shape: f32[8,32], index: 10, kind: output, shape index: {2}]   ;;  %s1850_s11 = inlined_call_operand.vmem [shape: f32[8,64], index: 11, kind: output, shape index: {3}]  }
   0x1   :  { %v43_v0 = vld [vmem:[%s1842_s3] sm:$0xff]  ;;  %v44_v1 = vld [vmem:[%s1842_s3 + $0x8] sm:$0xff]  ;;  %1384 = vmatprep.subr.bf16.mxu1 %v1535_v4  ;;  %v45_v6 = vld [vmem:[%s1842_s3 + $0x10] sm:$0xff]  ;;  %1285 = vmatprep.mubr.msk.f32.mxu1 %vm1536_vm1, %v1537_v13 }
   0x2   :  { %v200_v2 = vld [vmem:[%s1843_s4] sm:$0xff]  ;;  %v1376_v3 = vpack.c.bf16 %v44_v1, %v43_v0  ;;  %v201_v5 = vld [vmem:[%s1843_s4 + $0x8] sm:$0xff]  ;;  %v46_v7 = vld [vmem:[%s1842_s3 + $0x18] sm:$0xff] }
   0x3   :  { %v1623_v8 = vpack.c.bf16 %v201_v5, %v200_v2  ;;  %v1380_v9 = vpack.c.bf16 %v46_v7, %v45_v6  ;;  %v47_v10 = vld [vmem:[%s1839_s0] sm:$0xff]  ;;  %v202_v11 = vld [vmem:[%s1843_s4 + $0x10] sm:$0xff]  ;;  %v203_v12 = vld [vmem:[%s1843_s4 + $0x18] sm:$0xff] }
   0x4   :  { %1377 = vmatprep.subr.bf16.mxu0 %v1376_v3  ;;  %1265 = vmatprep.mubr.msk.f32.mxu0 %vm39_vm0, %v47_v10  ;;  %v38_v14 = vld [vmem:[%s1840_s1] sm:$0xff] }
   0x5   :  { %17 = vsyncpa [#allocation6], 0  ;;  %1379 = vmatpush3.bf16.msra.mxu0 %v1376_v3  ;;  %1386 = vmatpush3.bf16.msra.mxu1 %v1623_v8  ;;  %v1641_v15 = vpack.c.bf16 %v203_v12, %v202_v11  ;;  %40 = vst.msk [vmem:[#allocation3] sm:$0xff] %vm39_vm0, %v38_v14  ;;  %v48_v16 = vld [vmem:[%s1839_s0 + $0x8] sm:$0xff]  ;;  %v41_v18 = vld [vmem:[%s1841_s2] sm:$0xff]  ;;  %s1538_s21 = smov 64  }
   0x6   :  { %1381 = vmatprep.subr.bf16.mxu0 %v1380_v9  ;;  %1387 = vmatprep.subr.bf16.mxu1 %v1535_v4  ;;  %42 = vst.msk [vmem:[#allocation4] sm:$0xff] %vm39_vm0, %v41_v18  ;;  %v1670_v19 = vld [vmem:[%s1844_s5] ss:$0 sm:$0xff]  ;;  %s1539_s2 = smov 32   ;;  %v49_v56 = vld [vmem:[%s1839_s0 + $0x10] sm:$0xff]  ;;  %v50_v57 = vld [vmem:[%s1839_s0 + $0x18] sm:$0xff] }
   0x7   :  { %v51_v58 = vld [vmem:[%s1839_s0 + $0x20] sm:$0xff]  ;;  %v52_v59 = vld [vmem:[%s1839_s0 + $0x28] sm:$0xff]  ;;  %v53_v60 = vld [vmem:[%s1839_s0 + $0x30] sm:$0xff]  ;;  %s1540_s18 = smov 96  }
   0x8   :  { %v54_v61 = vld [vmem:[%s1839_s0 + $0x38] sm:$0xff] }
   0x9   :  { %1383 = vmatpush3.bf16.msra.mxu0 %v1380_v9  ;;  %1389 = vmatpush3.bf16.msra.mxu1 %v1641_v15 }
   0xa   :  { %1390 = vmatprep.subr.bf16.mxu1 %v1535_v4  ;;  %1396 = vmatprep.subr.bf16.mxu0 %v1535_v4 }
   0xc   :  { %1266 = vmatmul.mubr.msk.f32.vlgmr.msra.gmra.mrb[0].mxu0 %vm39_vm0, %v48_v16  ;;  %v204_v17 = vld [vmem:[#allocation3] sm:$0xff] }
   0xd   :  { %1286 = vmatmul.mubr.msk.f32.vlgmr.msra.gmra.mrb[0].mxu1 %vm39_vm0, %v204_v17  ;;  %1398 = vmatpush3.bf16.msra.mxu0 %v1623_v8  ;;  %v205_v27 = vld [vmem:[#allocation4] sm:$0xff] }
   0xe   :  { %1392 = vmatpush3.bf16.msra.mxu1 %v1623_v8  ;;  %1296 = vmatprep.mubr.msk.f32.mxu1 %vm1536_vm1, %v1537_v13 }
   0xf   :  { %1393 = vmatprep.subr.bf16.mxu1 %v1535_v4  ;;  %1399 = vmatprep.subr.bf16.mxu0 %v1535_v4 }
  0x10   :  { %1268 = vmatprep.mubr.msk.f32.mxu0 %vm39_vm0, %v49_v56 }
  0x11   :  { %1401 = vmatpush3.bf16.msra.mxu0 %v1641_v15 }
  0x12   :  { %1395 = vmatpush3.bf16.msra.mxu1 %v1641_v15  ;;  %1408 = vmatprep.subr.bf16.mxu0 %v1535_v4 }
  0x13   :  { %1402 = vmatprep.subr.bf16.mxu1 %v1535_v4  ;;  %1269 = vmatmul.mubr.msk.f32.gmra.mrb[2].mxu0 %vm39_vm0, %v50_v57 }
  0x14   :  { %1271 = vmatprep.mubr.msk.f32.mxu0 %vm39_vm0, %v51_v58 }
  0x17   :  { %1272 = vmatmul.mubr.msk.f32.gmra.mrb[4].mxu0 %vm39_vm0, %v52_v59 }
  0x18   :  { %1274 = vmatprep.mubr.msk.f32.mxu0 %vm39_vm0, %v53_v60 }
  0x1b   :  { %1275 = vmatmul.mubr.msk.f32.gmra.mrb[6].mxu0 %vm39_vm0, %v54_v61 }
  0x1c   :  { %1307 = vmatprep.mubr.msk.f32.mxu0 %vm1536_vm1, %v1537_v13 }
  0xdf   :  { %v1267_v20 = vpop.f32.mrb[0].mxu0 }
  0xe0   :  { %v153_v21 = vpop.f32.mrb[1].mxu0  ;;  %v276_v22 = vpop.f32.mrb[0].mxu1  ;;  %v159_v42 = vadd.f32 %v1267_v20, %v1670_v19 }
  0xe1   :  { %v154_v23 = vadd.f32 %v1670_v19, %v153_v21  ;;  %v1287_v24 = vpop.f32.mrb[1].mxu1 }
  0xe3   :  { %v280_v25 = vadd.f32 %v276_v22, %v154_v23 }
  0xe5   :  { %1447 = vtanh.f32 %v280_v25  ;;  %v1183_v28 = vmul.f32 -1.442695, %v280_v25 }
  0xe6   :  { %v1270_v1 = vpop.f32.mrb[2].mxu0 }
  0xe7   :  { %1449 = vpow2.f32 %v1183_v28  ;;  %v163_v2 = vpop.f32.mrb[3].mxu0 }
  0xe8   :  { %v164_v10 = vadd.f32 %v1670_v19, %v163_v2 }
  0xea   :  { %v1717_v3 = vpop.f32.mrb[4].mxu0 }
  0xeb   :  { %v1719_v5 = vpop.f32.mrb[5].mxu0 }
  0xee   :  { %v1721_v6 = vpop.f32.mrb[6].mxu0 }
  0xef   :  { %v1448_v26 = vpop.eup %1447  ;;  %v1723_v7 = vpop.f32.mrb[7].mxu0 }
  0xf0   :  { %294 = vrot.lane.b32.xlu0 %v1448_v26, %s1538_s21 }
  0xf1   :  { %v1450_v29 = vpop.eup %1449 }
  0xf2   :  { %v284_v30 = vadd.f32 1.0, %v1450_v29 }
  0xf4   :  { %289 = vrot.lane.b32.xlu0 %v205_v27, %s1539_s2  ;;  %1451 = vrcp.f32 %v284_v30 }
  0xfe   :  { %v1452_v31 = vpop.eup %1451 }
 0x162   :  { %v295_v32 = vpop.permute.xlu0 %294 }
 0x163   :  { %v297_v33 = vmul.f32 %v1452_v31, %v295_v32 }
 0x165   :  { %299 = vrot.lane.b32.xlu1 %v297_v33, %s1539_s2 }
 0x166   :  { %v290_v34 = vpop.permute.xlu0 %289 }
 0x167   :  { %v292_v35 = vmul.f32 %v1452_v31, %v290_v34 }
 0x1d7   :  { %v300_v36 = vpop.permute.xlu1 %299 }
 0x1d8   :  { %v302_v37 = vadd.f32 %v300_v36, %v292_v35 }
 0x1da   :  { %1453 = vtanh.f32 %v302_v37 }
 0x1e4   :  { %v1454_v38 = vpop.eup %1453 }
 0x1e5   :  { %305 = vrot.lane.b32.xlu1 %v1454_v38, %s1538_s21 }
 0x257   :  { %v306_v39 = vpop.permute.xlu1 %305 }
 0x258   :  { %v308_v40 = vmul.f32 %v1452_v31, %v306_v39  ;;  %v169_v31 = vadd.f32 %v1270_v1, %v1670_v19 }
 0x25a   :  { %310 = vrot.lane.b32.xlu0 %v308_v40, %s1539_s2 }
 0x2cc   :  { %v311_v41 = vpop.permute.xlu0 %310 }
 0x2cd   :  { %313 = vst.msk [vmem:[#allocation5] sm:$0xff] %vm39_vm0, %v311_v41  ;;  %1297 = vmatmul.mubr.msk.f32.vlgmr.msra.gmra.mrb[2].mxu1 %vm39_vm0, %v311_v41 }
 0x2ce   :  { %1404 = vmatpush3.bf16.msra.mxu1 %v1623_v8  ;;  %1318 = vmatprep.mubr.msk.f32.mxu1 %vm1536_vm1, %v1537_v13 }
 0x2cf   :  { %1405 = vmatprep.subr.bf16.mxu1 %v1535_v4 }
 0x2d2   :  { %1407 = vmatpush3.bf16.msra.mxu1 %v1641_v15 }
 0x2d3   :  { %1414 = vmatprep.subr.bf16.mxu1 %v1535_v4 }
 0x3a0   :  { %v384_v43 = vpop.f32.mrb[2].mxu1 }
 0x3a1   :  { %v388_v44 = vadd.f32 %v384_v43, %v159_v42  ;;  %v1298_v45 = vpop.f32.mrb[3].mxu1 }
 0x3a3   :  { %1455 = vtanh.f32 %v388_v44  ;;  %v1185_v47 = vmul.f32 -1.442695, %v388_v44 }
 0x3a5   :  { %1457 = vpow2.f32 %v1185_v47 }
 0x3ad   :  { %v1456_v46 = vpop.eup %1455 }
 0x3ae   :  { %398 = vrot.lane.b32.xlu1 %v1456_v46, %s1538_s21 }
 0x3af   :  { %v1458_v48 = vpop.eup %1457 }
 0x3b0   :  { %v392_v49 = vadd.f32 1.0, %v1458_v48 }
 0x3b2   :  { %1459 = vrcp.f32 %v392_v49  ;;  %v174_v49 = vadd.f32 %v1670_v19, %v1719_v5  ;;  %v179_v5 = vadd.f32 %v1717_v3, %v1670_v19 }
 0x3bc   :  { %v1460_v50 = vpop.eup %1459 }
 0x3bd   :  { %v396_v53 = vmul.f32 %v1460_v50, %v302_v37 }
 0x420   :  { %v399_v51 = vpop.permute.xlu1 %398 }
 0x421   :  { %v401_v52 = vmul.f32 %v1460_v50, %v399_v51 }
 0x423   :  { %403 = vrot.lane.b32.xlu0 %v401_v52, %s1539_s2 }
 0x495   :  { %v404_v54 = vpop.permute.xlu0 %403 }
 0x496   :  { %v406_v55 = vadd.f32 %v404_v54, %v396_v53 }
 0x498   :  { %1461 = vtanh.f32 %v406_v55 }
 0x4a2   :  { %v1462_v62 = vpop.eup %1461 }
 0x4a3   :  { %409 = vrot.lane.b32.xlu1 %v1462_v62, %s1538_s21 }
 0x515   :  { %v410_v63 = vpop.permute.xlu1 %409 }
 0x516   :  { %v412_v0 = vmul.f32 %v1460_v50, %v410_v63 }
 0x518   :  { %414 = vrot.lane.b32.xlu0 %v412_v0, %s1539_s2 }
 0x58a   :  { %v415_v9 = vpop.permute.xlu0 %414 }
 0x58b   :  { %418 = vst.msk [vmem:[#allocation5 + $0x8] sm:$0xff] %vm39_vm0, %v415_v9  ;;  %1308 = vmatmul.mubr.msk.f32.vlgmr.msra.gmra.mrb[8].mxu0 %vm39_vm0, %v415_v9 }
 0x58c   :  { %1410 = vmatpush3.bf16.msra.mxu0 %v1623_v8  ;;  %1329 = vmatprep.mubr.msk.f32.mxu0 %vm1536_vm1, %v1537_v13 }
 0x58d   :  { %1411 = vmatprep.subr.bf16.mxu0 %v1535_v4 }
 0x590   :  { %1413 = vmatpush3.bf16.msra.mxu0 %v1641_v15 }
 0x591   :  { %1420 = vmatprep.subr.bf16.mxu0 %v1535_v4 }
 0x65e   :  { %v489_v11 = vpop.f32.mrb[8].mxu0 }
 0x65f   :  { %v493_v12 = vadd.f32 %v489_v11, %v164_v10  ;;  %v1309_v14 = vpop.f32.mrb[9].mxu0 }
 0x661   :  { %1463 = vtanh.f32 %v493_v12  ;;  %v1187_v17 = vmul.f32 -1.442695, %v493_v12 }
 0x663   :  { %1465 = vpow2.f32 %v1187_v17 }
 0x66b   :  { %v1464_v16 = vpop.eup %1463 }
 0x66c   :  { %503 = vrot.lane.b32.xlu1 %v1464_v16, %s1538_s21 }
 0x66d   :  { %v1466_v18 = vpop.eup %1465 }
 0x66e   :  { %v497_v20 = vadd.f32 1.0, %v1466_v18 }
 0x670   :  { %1467 = vrcp.f32 %v497_v20 }
 0x67a   :  { %v1468_v21 = vpop.eup %1467 }
 0x67b   :  { %v501_v24 = vmul.f32 %v1468_v21, %v406_v55 }
 0x6de   :  { %v504_v22 = vpop.permute.xlu1 %503 }
 0x6df   :  { %v506_v23 = vmul.f32 %v1468_v21, %v504_v22 }
 0x6e1   :  { %508 = vrot.lane.b32.xlu0 %v506_v23, %s1539_s2 }
 0x753   :  { %v509_v25 = vpop.permute.xlu0 %508 }
 0x754   :  { %v511_v26 = vadd.f32 %v509_v25, %v501_v24 }
 0x756   :  { %1469 = vtanh.f32 %v511_v26 }
 0x760   :  { %v1470_v27 = vpop.eup %1469 }
 0x761   :  { %514 = vrot.lane.b32.xlu1 %v1470_v27, %s1538_s21 }
 0x7d3   :  { %v515_v28 = vpop.permute.xlu1 %514 }
 0x7d4   :  { %v517_v29 = vmul.f32 %v1468_v21, %v515_v28 }
 0x7d6   :  { %519 = vrot.lane.b32.xlu0 %v517_v29, %s1539_s2 }
 0x848   :  { %v520_v30 = vpop.permute.xlu0 %519 }
 0x849   :  { %523 = vst.msk [vmem:[#allocation5 + $0x10] sm:$0xff] %vm39_vm0, %v520_v30  ;;  %1319 = vmatmul.mubr.msk.f32.vlgmr.msra.gmra.mrb[4].mxu1 %vm39_vm0, %v520_v30 }
 0x84a   :  { %1416 = vmatpush3.bf16.msra.mxu1 %v1623_v8  ;;  %1340 = vmatprep.mubr.msk.f32.mxu1 %vm1536_vm1, %v1537_v13 }
 0x84b   :  { %1417 = vmatprep.subr.bf16.mxu1 %v1535_v4 }
 0x84e   :  { %1419 = vmatpush3.bf16.msra.mxu1 %v1641_v15 }
 0x84f   :  { %1426 = vmatprep.subr.bf16.mxu1 %v1535_v4 }
 0x91c   :  { %v594_v32 = vpop.f32.mrb[4].mxu1 }
 0x91d   :  { %v598_v33 = vadd.f32 %v594_v32, %v169_v31  ;;  %v1320_v34 = vpop.f32.mrb[5].mxu1 }
 0x91f   :  { %1471 = vtanh.f32 %v598_v33  ;;  %v1189_v36 = vmul.f32 -1.442695, %v598_v33 }
 0x921   :  { %1473 = vpow2.f32 %v1189_v36 }
 0x929   :  { %v1472_v35 = vpop.eup %1471 }
 0x92a   :  { %608 = vrot.lane.b32.xlu1 %v1472_v35, %s1538_s21 }
 0x92b   :  { %v1474_v37 = vpop.eup %1473 }
 0x92c   :  { %v602_v38 = vadd.f32 1.0, %v1474_v37 }
 0x92e   :  { %1475 = vrcp.f32 %v602_v38 }
 0x938   :  { %v1476_v39 = vpop.eup %1475 }
 0x939   :  { %v606_v42 = vmul.f32 %v1476_v39, %v511_v26  ;;  %v184_v26 = vadd.f32 %v1670_v19, %v1723_v7 }
 0x99c   :  { %v609_v40 = vpop.permute.xlu1 %608 }
 0x99d   :  { %v611_v41 = vmul.f32 %v1476_v39, %v609_v40 }
 0x99f   :  { %613 = vrot.lane.b32.xlu0 %v611_v41, %s1539_s2 }
 0xa11   :  { %v614_v43 = vpop.permute.xlu0 %613 }
 0xa12   :  { %v616_v44 = vadd.f32 %v614_v43, %v606_v42  ;;  %v189_v42 = vadd.f32 %v1721_v6, %v1670_v19  ;;  %v1060_v6 = vld [vmem:[%s1845_s6] sm:$0xff] }
 0xa14   :  { %1477 = vtanh.f32 %v616_v44 }
 0xa1e   :  { %v1478_v45 = vpop.eup %1477 }
 0xa1f   :  { %619 = vrot.lane.b32.xlu1 %v1478_v45, %s1538_s21 }
 0xa91   :  { %v620_v46 = vpop.permute.xlu1 %619 }
 0xa92   :  { %v622_v47 = vmul.f32 %v1476_v39, %v620_v46 }
 0xa94   :  { %624 = vrot.lane.b32.xlu0 %v622_v47, %s1539_s2 }
 0xb06   :  { %v625_v48 = vpop.permute.xlu0 %624 }
 0xb07   :  { %628 = vst.msk [vmem:[#allocation5 + $0x18] sm:$0xff] %vm39_vm0, %v625_v48  ;;  %1330 = vmatmul.mubr.msk.f32.vlgmr.msra.gmra.mrb[10].mxu0 %vm39_vm0, %v625_v48 }
 0xb08   :  { %1422 = vmatpush3.bf16.msra.mxu0 %v1623_v8  ;;  %1351 = vmatprep.mubr.msk.f32.mxu0 %vm1536_vm1, %v1537_v13 }
 0xb09   :  { %1423 = vmatprep.subr.bf16.mxu0 %v1535_v4 }
 0xb0c   :  { %1425 = vmatpush3.bf16.msra.mxu0 %v1641_v15 }
 0xb0d   :  { %1432 = vmatprep.subr.bf16.mxu0 %v1535_v4 }
 0xbda   :  { %v699_v50 = vpop.f32.mrb[10].mxu0 }
 0xbdb   :  { %v703_v51 = vadd.f32 %v699_v50, %v174_v49  ;;  %v1331_v52 = vpop.f32.mrb[11].mxu0 }
 0xbdd   :  { %1479 = vtanh.f32 %v703_v51  ;;  %v1191_v54 = vmul.f32 -1.442695, %v703_v51 }
 0xbdf   :  { %1481 = vpow2.f32 %v1191_v54 }
 0xbe7   :  { %v1480_v53 = vpop.eup %1479 }
 0xbe8   :  { %713 = vrot.lane.b32.xlu1 %v1480_v53, %s1538_s21 }
 0xbe9   :  { %v1482_v55 = vpop.eup %1481 }
 0xbea   :  { %v707_v56 = vadd.f32 1.0, %v1482_v55  ;;  %v1061_v55 = vld [vmem:[%s1845_s6 + $0x8] sm:$0xff] }
 0xbec   :  { %1483 = vrcp.f32 %v707_v56  ;;  %v1062_v56 = vld [vmem:[%s1845_s6 + $0x10] sm:$0xff] }
 0xbf6   :  { %v1484_v57 = vpop.eup %1483 }
 0xbf7   :  { %v711_v60 = vmul.f32 %v1484_v57, %v616_v44 }
 0xc5a   :  { %v714_v58 = vpop.permute.xlu1 %713 }
 0xc5b   :  { %v716_v59 = vmul.f32 %v1484_v57, %v714_v58  ;;  %v1063_v58 = vld [vmem:[%s1845_s6 + $0x18] sm:$0xff] }
 0xc5d   :  { %718 = vrot.lane.b32.xlu0 %v716_v59, %s1539_s2  ;;  %v1436_v59 = vpack.c.bf16 %v1063_v58, %v1062_v56 }
 0xccf   :  { %v719_v61 = vpop.permute.xlu0 %718 }
 0xcd0   :  { %v721_v62 = vadd.f32 %v719_v61, %v711_v60 }
 0xcd2   :  { %1485 = vtanh.f32 %v721_v62 }
 0xcdc   :  { %v1486_v63 = vpop.eup %1485 }
 0xcdd   :  { %724 = vrot.lane.b32.xlu1 %v1486_v63, %s1538_s21 }
 0xd4f   :  { %v725_v0 = vpop.permute.xlu1 %724 }
 0xd50   :  { %v727_v1 = vmul.f32 %v1484_v57, %v725_v0  ;;  %v1433_v57 = vpack.c.bf16 %v1061_v55, %v1060_v6 }
 0xd52   :  { %729 = vrot.lane.b32.xlu0 %v727_v1, %s1539_s2 }
 0xdc4   :  { %v730_v2 = vpop.permute.xlu0 %729 }
 0xdc5   :  { %733 = vst.msk [vmem:[#allocation5 + $0x20] sm:$0xff] %vm39_vm0, %v730_v2  ;;  %1341 = vmatmul.mubr.msk.f32.vlgmr.msra.gmra.mrb[6].mxu1 %vm39_vm0, %v730_v2 }
 0xdc6   :  { %1428 = vmatpush3.bf16.msra.mxu1 %v1623_v8  ;;  %1362 = vmatprep.mubr.msk.f32.mxu1 %vm1536_vm1, %v1537_v13 }
 0xdc7   :  { %1429 = vmatprep.subr.bf16.mxu1 %v1535_v4 }
 0xdca   :  { %1431 = vmatpush3.bf16.msra.mxu1 %v1641_v15 }
 0xe98   :  { %v804_v9 = vpop.f32.mrb[6].mxu1 }
 0xe99   :  { %v808_v10 = vadd.f32 %v804_v9, %v179_v5  ;;  %v1342_v11 = vpop.f32.mrb[7].mxu1 }
 0xe9b   :  { %1487 = vtanh.f32 %v808_v10  ;;  %v1193_v14 = vmul.f32 -1.442695, %v808_v10 }
 0xe9d   :  { %1489 = vpow2.f32 %v1193_v14 }
 0xea5   :  { %v1488_v12 = vpop.eup %1487 }
 0xea6   :  { %818 = vrot.lane.b32.xlu1 %v1488_v12, %s1538_s21 }
 0xea7   :  { %v1490_v8 = vpop.eup %1489 }
 0xea8   :  { %v812_v16 = vadd.f32 1.0, %v1490_v8 }
 0xeaa   :  { %1491 = vrcp.f32 %v812_v16 }
 0xeb4   :  { %v1492_v17 = vpop.eup %1491 }
 0xeb5   :  { %v816_v15 = vmul.f32 %v1492_v17, %v721_v62 }
 0xf18   :  { %v819_v18 = vpop.permute.xlu1 %818 }
 0xf19   :  { %v821_v20 = vmul.f32 %v1492_v17, %v819_v18 }
 0xf1b   :  { %823 = vrot.lane.b32.xlu0 %v821_v20, %s1539_s2 }
 0xf8d   :  { %v824_v21 = vpop.permute.xlu0 %823 }
 0xf8e   :  { %v826_v3 = vadd.f32 %v824_v21, %v816_v15 }
 0xf90   :  { %1493 = vtanh.f32 %v826_v3 }
 0xf9a   :  { %v1494_v22 = vpop.eup %1493 }
 0xf9b   :  { %829 = vrot.lane.b32.xlu1 %v1494_v22, %s1538_s21 }
0x100d   :  { %v830_v23 = vpop.permute.xlu1 %829 }
0x100e   :  { %v832_v24 = vmul.f32 %v1492_v17, %v830_v23 }
0x1010   :  { %834 = vrot.lane.b32.xlu0 %v832_v24, %s1539_s2 }
0x1082   :  { %v835_v25 = vpop.permute.xlu0 %834 }
0x1083   :  { %838 = vst.msk [vmem:[#allocation5 + $0x28] sm:$0xff] %vm39_vm0, %v835_v25  ;;  %1352 = vmatmul.mubr.msk.f32.vlgmr.msra.gmra.mrb[12].mxu0 %vm39_vm0, %v835_v25 }
0x1084   :  { %1373 = vmatprep.mubr.msk.f32.mxu0 %vm1536_vm1, %v1537_v13  ;;  %1434 = vmatpush3.bf16.msra.mxu0 %v1433_v57 }
0x1085   :  { %1435 = vmatprep.subr.bf16.mxu0 %v1535_v4 }
0x1088   :  { %1437 = vmatpush3.bf16.msra.mxu0 %v1436_v59 }
0x1156   :  { %v909_v27 = vpop.f32.mrb[12].mxu0 }
0x1157   :  { %v913_v28 = vadd.f32 %v909_v27, %v184_v26  ;;  %v1353_v29 = vpop.f32.mrb[13].mxu0 }
0x1159   :  { %1495 = vtanh.f32 %v913_v28  ;;  %v1195_v31 = vmul.f32 -1.442695, %v913_v28 }
0x115b   :  { %1497 = vpow2.f32 %v1195_v31 }
0x1163   :  { %v1496_v30 = vpop.eup %1495 }
0x1164   :  { %923 = vrot.lane.b32.xlu1 %v1496_v30, %s1538_s21 }
0x1165   :  { %v1498_v32 = vpop.eup %1497 }
0x1166   :  { %v917_v33 = vadd.f32 1.0, %v1498_v32 }
0x1168   :  { %1499 = vrcp.f32 %v917_v33 }
0x1172   :  { %v1500_v34 = vpop.eup %1499 }
0x1173   :  { %v921_v13 = vmul.f32 %v1500_v34, %v826_v3 }
0x11d6   :  { %v924_v35 = vpop.permute.xlu1 %923 }
0x11d7   :  { %v926_v36 = vmul.f32 %v1500_v34, %v924_v35 }
0x11d9   :  { %928 = vrot.lane.b32.xlu0 %v926_v36, %s1539_s2 }
0x124b   :  { %v929_v37 = vpop.permute.xlu0 %928 }
0x124c   :  { %v931_v7 = vadd.f32 %v929_v37, %v921_v13 }
0x124e   :  { %1501 = vtanh.f32 %v931_v7 }
0x1258   :  { %v1502_v38 = vpop.eup %1501 }
0x1259   :  { %934 = vrot.lane.b32.xlu1 %v1502_v38, %s1538_s21 }
0x12cb   :  { %v935_v39 = vpop.permute.xlu1 %934 }
0x12cc   :  { %v937_v40 = vmul.f32 %v1500_v34, %v935_v39 }
0x12ce   :  { %939 = vrot.lane.b32.xlu0 %v937_v40, %s1539_s2 }
0x1340   :  { %v940_v41 = vpop.permute.xlu0 %939 }
0x1341   :  { %943 = vst.msk [vmem:[#allocation5 + $0x30] sm:$0xff] %vm39_vm0, %v940_v41  ;;  %1363 = vmatmul.mubr.msk.f32.vlgmr.msra.gmra.mrb[8].mxu1 %vm39_vm0, %v940_v41 }
0x1414   :  { %v1014_v43 = vpop.f32.mrb[8].mxu1 }
0x1415   :  { %v1018_v44 = vadd.f32 %v1014_v43, %v189_v42  ;;  %v1364_v45 = vpop.f32.mrb[9].mxu1 }
0x1417   :  { %1503 = vtanh.f32 %v1018_v44  ;;  %v1197_v47 = vmul.f32 -1.442695, %v1018_v44 }
0x1419   :  { %1505 = vpow2.f32 %v1197_v47 }
0x1421   :  { %v1504_v46 = vpop.eup %1503 }
0x1422   :  { %1028 = vrot.lane.b32.xlu1 %v1504_v46, %s1538_s21 }
0x1423   :  { %v1506_v48 = vpop.eup %1505 }
0x1424   :  { %v1022_v49 = vadd.f32 1.0, %v1506_v48 }
0x1426   :  { %1507 = vrcp.f32 %v1022_v49 }
0x1430   :  { %v1508_v50 = vpop.eup %1507 }
0x1431   :  { %v1026_v53 = vmul.f32 %v1508_v50, %v931_v7 }
0x1494   :  { %v1029_v51 = vpop.permute.xlu1 %1028 }
0x1495   :  { %v1031_v52 = vmul.f32 %v1508_v50, %v1029_v51 }
0x1497   :  { %1033 = vrot.lane.b32.xlu0 %v1031_v52, %s1539_s2 }
0x1509   :  { %v1034_v54 = vpop.permute.xlu0 %1033 }
0x150a   :  { %v1036_v19 = vadd.f32 %v1034_v54, %v1026_v53 }
0x150c   :  { %1509 = vtanh.f32 %v1036_v19 }
0x1516   :  { %v1510_v60 = vpop.eup %1509 }
0x1517   :  { %1039 = vrot.lane.b32.xlu1 %v1510_v60, %s1538_s21 }
0x151b   :  { %1051 = vrot.lane.b32.xlu1 %v1036_v19, %s1540_s18 }
0x1589   :  { %v1040_v61 = vpop.permute.xlu1 %1039 }
0x158a   :  { %v1042_v62 = vmul.f32 %v1508_v50, %v1040_v61 }
0x158c   :  { %1044 = vrot.lane.b32.xlu0 %v1042_v62, %s1539_s2  ;;  %s1541_s2 = smov [#allocation5]  }
0x158d   :  { %v1052_v63 = vpop.permute.xlu1 %1051  ;;  %s1150_s5 = sshll.u32 %s1541_s2, 4  ;;  %s1151_s5 = int_to_ptr.vmem [resolvable:$true] %s1150_s5 }
0x158e   :  { %1054 = vst.msk [vmem:[#allocation4] sm:$0xff] %vm39_vm0, %v1052_v63  ;;  %1059 = vst.msk [vmem:[%s1849_s10] sm:$0xff] %vm39_vm0, %v1052_v63  ;;  %s1511_s22 = scalar_lea.vmem %s1151_s5, 1024  ;;  %p1516_p1 = scmp.lt.s32.totalorder %s1151_s5, %s1151_s5 }
0x158f   :  { %p1512_p0 = scmp.ne.s32.totalorder %s1151_s5, %s1511_s22  ;;  %p1517_p2 = scmp.lt.s32.totalorder %s1511_s22, %s1511_s22 }
0x1591   :  { %p1518_p3 = por %p1517_p2, %p1516_p1 }
0x1593   :  { %p1519_p4 = pnand %p1518_p3, %p1512_p0 }
0x15fe   :  { %v1045_v0 = vpop.permute.xlu0 %1044 }
0x15ff   :  { %1048 = vst.msk [vmem:[#allocation5 + $0x38] sm:$0xff] %vm39_vm0, %v1045_v0  ;;  %1049 = vst.msk [vmem:[#allocation3] sm:$0xff] %vm39_vm0, %v1045_v0  ;;  %1374 = vmatmul.mubr.msk.f32.vlgmr.msra.gmra.mrb[14].mxu0 %vm39_vm0, %v1045_v0 }
0x1600   :  { %1058 = vst.msk [vmem:[%s1848_s9] sm:$0xff] %vm39_vm0, %v1045_v0 }
0x1601   :  { %1522 = shalt.err (!%p1519_p4)
}
0x1602   :  { %s1523_s24 = scalar_lea.hbm %s1847_s8, 1024 }
0x1603   :  { %p1524_p5 = scmp.ne.s32.totalorder %s1847_s8, %s1523_s24  ;;  %p1527_p6 = scmp.lt.u32.totalorder %s1523_s24, %s1847_s8 }
0x1605   :  { %p1529_p7 = pnand %p1527_p6, %p1524_p5 }
0x1607   :  { %1532 = shalt.err (!%p1529_p7)
}
0x1608   :  { %s1542_s28 = smov 128   ;;  %s1543_s29 = smov 8   ;;  %v1198_v4 = vld [vmem:[%s1846_s7] ss:$0 sm:$0xff]  ;;  %vm1143_vm2 = vcmask 523264  }
0x1609   :  { %1156 = dma.vmem_to_hbm [thread:$0]  %s1151_s5, 1024, %s1847_s8, [#allocation6], %s1542_s28, %s1542_s28, %s1543_s29  }
0x16d2   :  { %v1139_v1 = vpop.f32.mrb[14].mxu0 }
0x16d3   :  { %v1140_v2 = vadd.f32 %v1198_v4, %v1139_v1  ;;  %v1375_v5 = vpop.f32.mrb[15].mxu0 }
0x16d5   :  { %1144 = vst.msk [vmem:[%s1850_s11] sm:$0xff] %vm1143_vm2, %v1140_v2 }
0x16d6   :  { %1533 = dma.done.wait [#allocation6], 1024  }
0x16d7   :  { %1534 = vsyncadd [#allocation6], 4294966272 }
0x16d8   :  { %1172 = vsyncpa [#allocation6], 1 }

// kernel: _lambda_.5
= control target key start
LH: loop header
LB: loop body
LE: loop exit
PB: predicated region body
PF: predicated region fallthrough
CT: control target
= control target key end

     0   :  { %v1382_v2 = vmov 0.0|0.0   ;;  %vm1383_vm0 = vmmov 0   ;;  %v1384_v4 = vmov 0.0   ;;  %vm31_vm1 = vcmask 261120   ;;  %s1385_s28 = smov 64   ;;  %s1657_s3 = inlined_call_operand.vmem [shape: f32[32,128], index: 3, kind: input, shape index: {}]   ;;  %s1658_s4 = inlined_call_operand.vmem [shape: f32[32,128], index: 4, kind: input, shape index: {}]   ;;  %s1659_s0 = inlined_call_operand.vmem [shape: f32[8,8,32], index: 0, kind: input, shape index: {}]   ;;  %s1660_s1 = inlined_call_operand.vmem [shape: f32[8,32], index: 1, kind: input, shape index: {}, may-alias: {1,2}]   ;;  %s1661_s2 = inlined_call_operand.vmem [shape: f32[8,32], index: 2, kind: input, shape index: {}, may-alias: {1,2}]   ;;  %s1662_s5 = inlined_call_operand.vmem [shape: f32[1,128], index: 5, kind: input, shape index: {}]   ;;  %s1663_s6 = inlined_call_operand.vmem [shape: f32[8,8,32], index: 6, kind: output, shape index: {0}]   ;;  %s1664_s8 = inlined_call_operand.vmem [shape: f32[8,32], index: 8, kind: output, shape index: {2}]   ;;  %s1665_s7 = inlined_call_operand.vmem [shape: f32[8,32], index: 7, kind: output, shape index: {1}]  }
   0x1   :  { %v35_v0 = vld [vmem:[%s1657_s3] sm:$0xff]  ;;  %v36_v1 = vld [vmem:[%s1657_s3 + $0x8] sm:$0xff]  ;;  %1264 = vmatprep.subr.bf16.mxu1 %v1382_v2  ;;  %1176 = vmatprep.mubr.msk.f32.mxu1 %vm1383_vm0, %v1384_v4  ;;  %v37_v7 = vld [vmem:[%s1657_s3 + $0x10] sm:$0xff] }
   0x2   :  { %v192_v3 = vld [vmem:[%s1658_s4] sm:$0xff]  ;;  %v1256_v5 = vpack.c.bf16 %v36_v1, %v35_v0  ;;  %v193_v6 = vld [vmem:[%s1658_s4 + $0x8] sm:$0xff]  ;;  %v38_v8 = vld [vmem:[%s1657_s3 + $0x18] sm:$0xff] }
   0x3   :  { %v1454_v9 = vpack.c.bf16 %v193_v6, %v192_v3  ;;  %v1260_v10 = vpack.c.bf16 %v38_v8, %v37_v7  ;;  %v39_v11 = vld [vmem:[%s1659_s0] sm:$0xff]  ;;  %v194_v12 = vld [vmem:[%s1658_s4 + $0x10] sm:$0xff]  ;;  %v195_v13 = vld [vmem:[%s1658_s4 + $0x18] sm:$0xff] }
   0x4   :  { %1257 = vmatprep.subr.bf16.mxu0 %v1256_v5  ;;  %1156 = vmatprep.mubr.msk.f32.mxu0 %vm31_vm1, %v39_v11  ;;  %v30_v14 = vld [vmem:[%s1660_s1] sm:$0xff]  ;;  %v1470_v15 = vpack.c.bf16 %v195_v13, %v194_v12  ;;  %v40_v16 = vld [vmem:[%s1659_s0 + $0x8] sm:$0xff]  ;;  %v41_v56 = vld [vmem:[%s1659_s0 + $0x10] sm:$0xff] }
   0x5   :  { %1259 = vmatpush3.bf16.msra.mxu0 %v1256_v5  ;;  %1266 = vmatpush3.bf16.msra.mxu1 %v1454_v9  ;;  %32 = vst.msk [vmem:[#allocation3] sm:$0xff] %vm31_vm1, %v30_v14  ;;  %v33_v18 = vld [vmem:[%s1661_s2] sm:$0xff]  ;;  %s1386_s2 = smov 32   ;;  %v42_v57 = vld [vmem:[%s1659_s0 + $0x18] sm:$0xff]  ;;  %v44_v59 = vld [vmem:[%s1659_s0 + $0x28] sm:$0xff] }
   0x6   :  { %1261 = vmatprep.subr.bf16.mxu0 %v1260_v10  ;;  %1267 = vmatprep.subr.bf16.mxu1 %v1382_v2  ;;  %34 = vst.msk [vmem:[#allocation4] sm:$0xff] %vm31_vm1, %v33_v18  ;;  %v1499_v19 = vld [vmem:[%s1662_s5] ss:$0 sm:$0xff]  ;;  %v45_v60 = vld [vmem:[%s1659_s0 + $0x30] sm:$0xff]  ;;  %v46_v61 = vld [vmem:[%s1659_s0 + $0x38] sm:$0xff]  ;;  %s1387_s5 = smov 96  }
   0x7   :  { %v43_v58 = vld [vmem:[%s1659_s0 + $0x20] sm:$0xff] }
   0x9   :  { %1263 = vmatpush3.bf16.msra.mxu0 %v1260_v10  ;;  %1269 = vmatpush3.bf16.msra.mxu1 %v1470_v15 }
   0xa   :  { %1270 = vmatprep.subr.bf16.mxu1 %v1382_v2  ;;  %1276 = vmatprep.subr.bf16.mxu0 %v1382_v2 }
   0xc   :  { %1157 = vmatmul.mubr.msk.f32.vlgmr.msra.gmra.mrb[0].mxu0 %vm31_vm1, %v40_v16  ;;  %v196_v17 = vld [vmem:[#allocation3] sm:$0xff] }
   0xd   :  { %1177 = vmatmul.mubr.msk.f32.vlgmr.msra.gmra.mrb[0].mxu1 %vm31_vm1, %v196_v17  ;;  %1278 = vmatpush3.bf16.msra.mxu0 %v1454_v9  ;;  %v197_v27 = vld [vmem:[#allocation4] sm:$0xff] }
   0xe   :  { %1272 = vmatpush3.bf16.msra.mxu1 %v1454_v9  ;;  %1187 = vmatprep.mubr.msk.f32.mxu1 %vm1383_vm0, %v1384_v4 }
   0xf   :  { %1273 = vmatprep.subr.bf16.mxu1 %v1382_v2  ;;  %1279 = vmatprep.subr.bf16.mxu0 %v1382_v2 }
  0x10   :  { %1159 = vmatprep.mubr.msk.f32.mxu0 %vm31_vm1, %v41_v56 }
  0x11   :  { %1281 = vmatpush3.bf16.msra.mxu0 %v1470_v15 }
  0x12   :  { %1275 = vmatpush3.bf16.msra.mxu1 %v1470_v15  ;;  %1288 = vmatprep.subr.bf16.mxu0 %v1382_v2 }
  0x13   :  { %1282 = vmatprep.subr.bf16.mxu1 %v1382_v2  ;;  %1160 = vmatmul.mubr.msk.f32.gmra.mrb[2].mxu0 %vm31_vm1, %v42_v57 }
  0x14   :  { %1162 = vmatprep.mubr.msk.f32.mxu0 %vm31_vm1, %v43_v58 }
  0x17   :  { %1163 = vmatmul.mubr.msk.f32.gmra.mrb[4].mxu0 %vm31_vm1, %v44_v59 }
  0x18   :  { %1165 = vmatprep.mubr.msk.f32.mxu0 %vm31_vm1, %v45_v60 }
  0x1b   :  { %1166 = vmatmul.mubr.msk.f32.gmra.mrb[6].mxu0 %vm31_vm1, %v46_v61 }
  0x1c   :  { %1198 = vmatprep.mubr.msk.f32.mxu0 %vm1383_vm0, %v1384_v4 }
  0xdf   :  { %v1158_v20 = vpop.f32.mrb[0].mxu0 }
  0xe0   :  { %v145_v21 = vpop.f32.mrb[1].mxu0  ;;  %v268_v22 = vpop.f32.mrb[0].mxu1  ;;  %v151_v42 = vadd.f32 %v1158_v20, %v1499_v19 }
  0xe1   :  { %v146_v23 = vadd.f32 %v1499_v19, %v145_v21  ;;  %v1178_v24 = vpop.f32.mrb[1].mxu1 }
  0xe3   :  { %v272_v25 = vadd.f32 %v268_v22, %v146_v23 }
  0xe5   :  { %1318 = vtanh.f32 %v272_v25  ;;  %v1074_v28 = vmul.f32 -1.442695, %v272_v25 }
  0xe6   :  { %v1161_v1 = vpop.f32.mrb[2].mxu0 }
  0xe7   :  { %1320 = vpow2.f32 %v1074_v28  ;;  %v155_v3 = vpop.f32.mrb[3].mxu0 }
  0xe8   :  { %v156_v11 = vadd.f32 %v1499_v19, %v155_v3 }
  0xea   :  { %v1549_v5 = vpop.f32.mrb[4].mxu0 }
  0xeb   :  { %v1551_v6 = vpop.f32.mrb[5].mxu0 }
  0xee   :  { %v1553_v7 = vpop.f32.mrb[6].mxu0 }
  0xef   :  { %v1319_v26 = vpop.eup %1318  ;;  %v1555_v8 = vpop.f32.mrb[7].mxu0 }
  0xf0   :  { %286 = vrot.lane.b32.xlu0 %v1319_v26, %s1385_s28 }
  0xf1   :  { %v1321_v29 = vpop.eup %1320 }
  0xf2   :  { %v276_v30 = vadd.f32 1.0, %v1321_v29 }
  0xf4   :  { %281 = vrot.lane.b32.xlu0 %v197_v27, %s1386_s2  ;;  %1322 = vrcp.f32 %v276_v30 }
  0xfe   :  { %v1323_v31 = vpop.eup %1322 }
 0x162   :  { %v287_v32 = vpop.permute.xlu0 %286 }
 0x163   :  { %v289_v33 = vmul.f32 %v1323_v31, %v287_v32 }
 0x165   :  { %291 = vrot.lane.b32.xlu1 %v289_v33, %s1386_s2 }
 0x166   :  { %v282_v34 = vpop.permute.xlu0 %281 }
 0x167   :  { %v284_v35 = vmul.f32 %v1323_v31, %v282_v34 }
 0x1d7   :  { %v292_v36 = vpop.permute.xlu1 %291 }
 0x1d8   :  { %v294_v37 = vadd.f32 %v292_v36, %v284_v35 }
 0x1da   :  { %1324 = vtanh.f32 %v294_v37 }
 0x1e4   :  { %v1325_v38 = vpop.eup %1324 }
 0x1e5   :  { %297 = vrot.lane.b32.xlu1 %v1325_v38, %s1385_s28 }
 0x257   :  { %v298_v39 = vpop.permute.xlu1 %297 }
 0x258   :  { %v300_v40 = vmul.f32 %v1323_v31, %v298_v39  ;;  %v161_v31 = vadd.f32 %v1161_v1, %v1499_v19 }
 0x25a   :  { %302 = vrot.lane.b32.xlu0 %v300_v40, %s1386_s2 }
 0x2cc   :  { %v303_v41 = vpop.permute.xlu0 %302 }
 0x2cd   :  { %305 = vst.msk [vmem:[%s1663_s6] sm:$0xff] %vm31_vm1, %v303_v41  ;;  %1188 = vmatmul.mubr.msk.f32.vlgmr.msra.gmra.mrb[2].mxu1 %vm31_vm1, %v303_v41 }
 0x2ce   :  { %1284 = vmatpush3.bf16.msra.mxu1 %v1454_v9  ;;  %1209 = vmatprep.mubr.msk.f32.mxu1 %vm1383_vm0, %v1384_v4 }
 0x2cf   :  { %1285 = vmatprep.subr.bf16.mxu1 %v1382_v2 }
 0x2d2   :  { %1287 = vmatpush3.bf16.msra.mxu1 %v1470_v15 }
 0x2d3   :  { %1294 = vmatprep.subr.bf16.mxu1 %v1382_v2 }
 0x3a0   :  { %v376_v43 = vpop.f32.mrb[2].mxu1 }
 0x3a1   :  { %v380_v44 = vadd.f32 %v376_v43, %v151_v42  ;;  %v1189_v45 = vpop.f32.mrb[3].mxu1 }
 0x3a3   :  { %1326 = vtanh.f32 %v380_v44  ;;  %v1076_v47 = vmul.f32 -1.442695, %v380_v44 }
 0x3a5   :  { %1328 = vpow2.f32 %v1076_v47 }
 0x3ad   :  { %v1327_v46 = vpop.eup %1326 }
 0x3ae   :  { %390 = vrot.lane.b32.xlu1 %v1327_v46, %s1385_s28 }
 0x3af   :  { %v1329_v48 = vpop.eup %1328 }
 0x3b0   :  { %v384_v49 = vadd.f32 1.0, %v1329_v48 }
 0x3b2   :  { %1330 = vrcp.f32 %v384_v49  ;;  %v166_v49 = vadd.f32 %v1499_v19, %v1551_v6  ;;  %v171_v6 = vadd.f32 %v1549_v5, %v1499_v19 }
 0x3bc   :  { %v1331_v50 = vpop.eup %1330 }
 0x3bd   :  { %v388_v53 = vmul.f32 %v1331_v50, %v294_v37 }
 0x420   :  { %v391_v51 = vpop.permute.xlu1 %390 }
 0x421   :  { %v393_v52 = vmul.f32 %v1331_v50, %v391_v51 }
 0x423   :  { %395 = vrot.lane.b32.xlu0 %v393_v52, %s1386_s2 }
 0x495   :  { %v396_v54 = vpop.permute.xlu0 %395 }
 0x496   :  { %v398_v55 = vadd.f32 %v396_v54, %v388_v53 }
 0x498   :  { %1332 = vtanh.f32 %v398_v55 }
 0x4a2   :  { %v1333_v62 = vpop.eup %1332 }
 0x4a3   :  { %401 = vrot.lane.b32.xlu1 %v1333_v62, %s1385_s28 }
 0x515   :  { %v402_v63 = vpop.permute.xlu1 %401 }
 0x516   :  { %v404_v0 = vmul.f32 %v1331_v50, %v402_v63 }
 0x518   :  { %406 = vrot.lane.b32.xlu0 %v404_v0, %s1386_s2 }
 0x58a   :  { %v407_v10 = vpop.permute.xlu0 %406 }
 0x58b   :  { %1077 = vst.msk [vmem:[%s1663_s6 + $0x8] sm:$0xff] %vm31_vm1, %v407_v10  ;;  %1199 = vmatmul.mubr.msk.f32.vlgmr.msra.gmra.mrb[8].mxu0 %vm31_vm1, %v407_v10 }
 0x58c   :  { %1290 = vmatpush3.bf16.msra.mxu0 %v1454_v9  ;;  %1220 = vmatprep.mubr.msk.f32.mxu0 %vm1383_vm0, %v1384_v4 }
 0x58d   :  { %1291 = vmatprep.subr.bf16.mxu0 %v1382_v2 }
 0x590   :  { %1293 = vmatpush3.bf16.msra.mxu0 %v1470_v15 }
 0x591   :  { %1300 = vmatprep.subr.bf16.mxu0 %v1382_v2 }
 0x65e   :  { %v481_v12 = vpop.f32.mrb[8].mxu0 }
 0x65f   :  { %v485_v13 = vadd.f32 %v481_v12, %v156_v11  ;;  %v1200_v14 = vpop.f32.mrb[9].mxu0 }
 0x661   :  { %1334 = vtanh.f32 %v485_v13  ;;  %v1079_v17 = vmul.f32 -1.442695, %v485_v13 }
 0x663   :  { %1336 = vpow2.f32 %v1079_v17 }
 0x66b   :  { %v1335_v16 = vpop.eup %1334 }
 0x66c   :  { %495 = vrot.lane.b32.xlu1 %v1335_v16, %s1385_s28 }
 0x66d   :  { %v1337_v18 = vpop.eup %1336 }
 0x66e   :  { %v489_v20 = vadd.f32 1.0, %v1337_v18 }
 0x670   :  { %1338 = vrcp.f32 %v489_v20 }
 0x67a   :  { %v1339_v21 = vpop.eup %1338 }
 0x67b   :  { %v493_v24 = vmul.f32 %v1339_v21, %v398_v55 }
 0x6de   :  { %v496_v22 = vpop.permute.xlu1 %495 }
 0x6df   :  { %v498_v23 = vmul.f32 %v1339_v21, %v496_v22 }
 0x6e1   :  { %500 = vrot.lane.b32.xlu0 %v498_v23, %s1386_s2 }
 0x753   :  { %v501_v25 = vpop.permute.xlu0 %500 }
 0x754   :  { %v503_v26 = vadd.f32 %v501_v25, %v493_v24  ;;  %v176_v24 = vadd.f32 %v1499_v19, %v1555_v8 }
 0x756   :  { %1340 = vtanh.f32 %v503_v26 }
 0x760   :  { %v1341_v27 = vpop.eup %1340 }
 0x761   :  { %506 = vrot.lane.b32.xlu1 %v1341_v27, %s1385_s28 }
 0x7d3   :  { %v507_v28 = vpop.permute.xlu1 %506 }
 0x7d4   :  { %v509_v29 = vmul.f32 %v1339_v21, %v507_v28 }
 0x7d6   :  { %511 = vrot.lane.b32.xlu0 %v509_v29, %s1386_s2 }
 0x848   :  { %v512_v30 = vpop.permute.xlu0 %511 }
 0x849   :  { %1080 = vst.msk [vmem:[%s1663_s6 + $0x10] sm:$0xff] %vm31_vm1, %v512_v30  ;;  %1210 = vmatmul.mubr.msk.f32.vlgmr.msra.gmra.mrb[4].mxu1 %vm31_vm1, %v512_v30 }
 0x84a   :  { %1296 = vmatpush3.bf16.msra.mxu1 %v1454_v9  ;;  %1231 = vmatprep.mubr.msk.f32.mxu1 %vm1383_vm0, %v1384_v4 }
 0x84b   :  { %1297 = vmatprep.subr.bf16.mxu1 %v1382_v2 }
 0x84e   :  { %1299 = vmatpush3.bf16.msra.mxu1 %v1470_v15 }
 0x84f   :  { %1306 = vmatprep.subr.bf16.mxu1 %v1382_v2 }
 0x91c   :  { %v586_v32 = vpop.f32.mrb[4].mxu1 }
 0x91d   :  { %v590_v33 = vadd.f32 %v586_v32, %v161_v31  ;;  %v1211_v34 = vpop.f32.mrb[5].mxu1 }
 0x91f   :  { %1342 = vtanh.f32 %v590_v33  ;;  %v1082_v36 = vmul.f32 -1.442695, %v590_v33 }
 0x921   :  { %1344 = vpow2.f32 %v1082_v36 }
 0x929   :  { %v1343_v35 = vpop.eup %1342 }
 0x92a   :  { %600 = vrot.lane.b32.xlu1 %v1343_v35, %s1385_s28 }
 0x92b   :  { %v1345_v37 = vpop.eup %1344 }
 0x92c   :  { %v594_v38 = vadd.f32 1.0, %v1345_v37 }
 0x92e   :  { %1346 = vrcp.f32 %v594_v38 }
 0x938   :  { %v1347_v39 = vpop.eup %1346 }
 0x939   :  { %v598_v42 = vmul.f32 %v1347_v39, %v503_v26 }
 0x99c   :  { %v601_v40 = vpop.permute.xlu1 %600 }
 0x99d   :  { %v603_v41 = vmul.f32 %v1347_v39, %v601_v40 }
 0x99f   :  { %605 = vrot.lane.b32.xlu0 %v603_v41, %s1386_s2  ;;  %v181_v41 = vadd.f32 %v1553_v7, %v1499_v19 }
 0xa11   :  { %v606_v43 = vpop.permute.xlu0 %605 }
 0xa12   :  { %v608_v44 = vadd.f32 %v606_v43, %v598_v42 }
 0xa14   :  { %1348 = vtanh.f32 %v608_v44 }
 0xa1e   :  { %v1349_v45 = vpop.eup %1348 }
 0xa1f   :  { %611 = vrot.lane.b32.xlu1 %v1349_v45, %s1385_s28 }
 0xa91   :  { %v612_v46 = vpop.permute.xlu1 %611 }
 0xa92   :  { %v614_v47 = vmul.f32 %v1347_v39, %v612_v46 }
 0xa94   :  { %616 = vrot.lane.b32.xlu0 %v614_v47, %s1386_s2 }
 0xb06   :  { %v617_v48 = vpop.permute.xlu0 %616 }
 0xb07   :  { %1083 = vst.msk [vmem:[%s1663_s6 + $0x18] sm:$0xff] %vm31_vm1, %v617_v48  ;;  %1221 = vmatmul.mubr.msk.f32.vlgmr.msra.gmra.mrb[10].mxu0 %vm31_vm1, %v617_v48 }
 0xb08   :  { %1302 = vmatpush3.bf16.msra.mxu0 %v1454_v9  ;;  %1242 = vmatprep.mubr.msk.f32.mxu0 %vm1383_vm0, %v1384_v4 }
 0xb09   :  { %1303 = vmatprep.subr.bf16.mxu0 %v1382_v2 }
 0xb0c   :  { %1305 = vmatpush3.bf16.msra.mxu0 %v1470_v15 }
 0xbda   :  { %v691_v50 = vpop.f32.mrb[10].mxu0 }
 0xbdb   :  { %v695_v51 = vadd.f32 %v691_v50, %v166_v49  ;;  %v1222_v52 = vpop.f32.mrb[11].mxu0 }
 0xbdd   :  { %1350 = vtanh.f32 %v695_v51  ;;  %v1085_v54 = vmul.f32 -1.442695, %v695_v51 }
 0xbdf   :  { %1352 = vpow2.f32 %v1085_v54 }
 0xbe7   :  { %v1351_v53 = vpop.eup %1350 }
 0xbe8   :  { %705 = vrot.lane.b32.xlu1 %v1351_v53, %s1385_s28 }
 0xbe9   :  { %v1353_v55 = vpop.eup %1352 }
 0xbea   :  { %v699_v56 = vadd.f32 1.0, %v1353_v55 }
 0xbec   :  { %1354 = vrcp.f32 %v699_v56 }
 0xbf6   :  { %v1355_v57 = vpop.eup %1354 }
 0xbf7   :  { %v703_v60 = vmul.f32 %v1355_v57, %v608_v44 }
 0xc5a   :  { %v706_v58 = vpop.permute.xlu1 %705 }
 0xc5b   :  { %v708_v59 = vmul.f32 %v1355_v57, %v706_v58 }
 0xc5d   :  { %710 = vrot.lane.b32.xlu0 %v708_v59, %s1386_s2 }
 0xccf   :  { %v711_v61 = vpop.permute.xlu0 %710 }
 0xcd0   :  { %v713_v62 = vadd.f32 %v711_v61, %v703_v60 }
 0xcd2   :  { %1356 = vtanh.f32 %v713_v62 }
 0xcdc   :  { %v1357_v63 = vpop.eup %1356 }
 0xcdd   :  { %716 = vrot.lane.b32.xlu1 %v1357_v63, %s1385_s28 }
 0xd4f   :  { %v717_v0 = vpop.permute.xlu1 %716 }
 0xd50   :  { %v719_v1 = vmul.f32 %v1355_v57, %v717_v0 }
 0xd52   :  { %721 = vrot.lane.b32.xlu0 %v719_v1, %s1386_s2 }
 0xdc4   :  { %v722_v3 = vpop.permute.xlu0 %721 }
 0xdc5   :  { %1086 = vst.msk [vmem:[%s1663_s6 + $0x20] sm:$0xff] %vm31_vm1, %v722_v3  ;;  %1232 = vmatmul.mubr.msk.f32.vlgmr.msra.gmra.mrb[6].mxu1 %vm31_vm1, %v722_v3 }
 0xdc6   :  { %1308 = vmatpush3.bf16.msra.mxu1 %v1454_v9  ;;  %1253 = vmatprep.mubr.msk.f32.mxu1 %vm1383_vm0, %v1384_v4 }
 0xdc7   :  { %1309 = vmatprep.subr.bf16.mxu1 %v1382_v2 }
 0xdca   :  { %1311 = vmatpush3.bf16.msra.mxu1 %v1470_v15 }
 0xe98   :  { %v796_v10 = vpop.f32.mrb[6].mxu1 }
 0xe99   :  { %v800_v11 = vadd.f32 %v796_v10, %v171_v6  ;;  %v1233_v12 = vpop.f32.mrb[7].mxu1 }
 0xe9b   :  { %1358 = vtanh.f32 %v800_v11  ;;  %v1088_v14 = vmul.f32 -1.442695, %v800_v11 }
 0xe9d   :  { %1360 = vpow2.f32 %v1088_v14 }
 0xea5   :  { %v1359_v13 = vpop.eup %1358 }
 0xea6   :  { %810 = vrot.lane.b32.xlu1 %v1359_v13, %s1385_s28 }
 0xea7   :  { %v1361_v9 = vpop.eup %1360 }
 0xea8   :  { %v804_v16 = vadd.f32 1.0, %v1361_v9 }
 0xeaa   :  { %1362 = vrcp.f32 %v804_v16 }
 0xeb4   :  { %v1363_v4 = vpop.eup %1362 }
 0xeb5   :  { %v808_v15 = vmul.f32 %v1363_v4, %v713_v62 }
 0xf18   :  { %v811_v17 = vpop.permute.xlu1 %810 }
 0xf19   :  { %v813_v2 = vmul.f32 %v1363_v4, %v811_v17 }
 0xf1b   :  { %815 = vrot.lane.b32.xlu0 %v813_v2, %s1386_s2 }
 0xf8d   :  { %v816_v18 = vpop.permute.xlu0 %815 }
 0xf8e   :  { %v818_v5 = vadd.f32 %v816_v18, %v808_v15 }
 0xf90   :  { %1364 = vtanh.f32 %v818_v5 }
 0xf9a   :  { %v1365_v20 = vpop.eup %1364 }
 0xf9b   :  { %821 = vrot.lane.b32.xlu1 %v1365_v20, %s1385_s28 }
0x100d   :  { %v822_v21 = vpop.permute.xlu1 %821 }
0x100e   :  { %v824_v22 = vmul.f32 %v1363_v4, %v822_v21 }
0x1010   :  { %826 = vrot.lane.b32.xlu0 %v824_v22, %s1386_s2 }
0x1082   :  { %v827_v23 = vpop.permute.xlu0 %826 }
0x1083   :  { %1089 = vst.msk [vmem:[%s1663_s6 + $0x28] sm:$0xff] %vm31_vm1, %v827_v23  ;;  %1243 = vmatmul.mubr.msk.f32.vlgmr.msra.gmra.mrb[12].mxu0 %vm31_vm1, %v827_v23 }
0x1156   :  { %v901_v25 = vpop.f32.mrb[12].mxu0 }
0x1157   :  { %v905_v26 = vadd.f32 %v901_v25, %v176_v24  ;;  %v1244_v27 = vpop.f32.mrb[13].mxu0 }
0x1159   :  { %1366 = vtanh.f32 %v905_v26  ;;  %v1091_v29 = vmul.f32 -1.442695, %v905_v26 }
0x115b   :  { %1368 = vpow2.f32 %v1091_v29 }
0x1163   :  { %v1367_v28 = vpop.eup %1366 }
0x1164   :  { %915 = vrot.lane.b32.xlu1 %v1367_v28, %s1385_s28 }
0x1165   :  { %v1369_v30 = vpop.eup %1368 }
0x1166   :  { %v909_v31 = vadd.f32 1.0, %v1369_v30 }
0x1168   :  { %1370 = vrcp.f32 %v909_v31 }
0x1172   :  { %v1371_v32 = vpop.eup %1370 }
0x1173   :  { %v913_v35 = vmul.f32 %v1371_v32, %v818_v5 }
0x11d6   :  { %v916_v33 = vpop.permute.xlu1 %915 }
0x11d7   :  { %v918_v34 = vmul.f32 %v1371_v32, %v916_v33 }
0x11d9   :  { %920 = vrot.lane.b32.xlu0 %v918_v34, %s1386_s2 }
0x124b   :  { %v921_v36 = vpop.permute.xlu0 %920 }
0x124c   :  { %v923_v8 = vadd.f32 %v921_v36, %v913_v35 }
0x124e   :  { %1372 = vtanh.f32 %v923_v8 }
0x1258   :  { %v1373_v37 = vpop.eup %1372 }
0x1259   :  { %926 = vrot.lane.b32.xlu1 %v1373_v37, %s1385_s28 }
0x12cb   :  { %v927_v38 = vpop.permute.xlu1 %926 }
0x12cc   :  { %v929_v39 = vmul.f32 %v1371_v32, %v927_v38 }
0x12ce   :  { %931 = vrot.lane.b32.xlu0 %v929_v39, %s1386_s2 }
0x1340   :  { %v932_v40 = vpop.permute.xlu0 %931 }
0x1341   :  { %1092 = vst.msk [vmem:[%s1663_s6 + $0x30] sm:$0xff] %vm31_vm1, %v932_v40  ;;  %1254 = vmatmul.mubr.msk.f32.vlgmr.msra.gmra.mrb[8].mxu1 %vm31_vm1, %v932_v40 }
0x1414   :  { %v1006_v42 = vpop.f32.mrb[8].mxu1 }
0x1415   :  { %v1010_v43 = vadd.f32 %v1006_v42, %v181_v41  ;;  %v1255_v44 = vpop.f32.mrb[9].mxu1 }
0x1417   :  { %1374 = vtanh.f32 %v1010_v43  ;;  %v1094_v46 = vmul.f32 -1.442695, %v1010_v43 }
0x1419   :  { %1376 = vpow2.f32 %v1094_v46 }
0x1421   :  { %v1375_v45 = vpop.eup %1374 }
0x1422   :  { %1020 = vrot.lane.b32.xlu1 %v1375_v45, %s1385_s28 }
0x1423   :  { %v1377_v47 = vpop.eup %1376 }
0x1424   :  { %v1014_v48 = vadd.f32 1.0, %v1377_v47 }
0x1426   :  { %1378 = vrcp.f32 %v1014_v48 }
0x1430   :  { %v1379_v49 = vpop.eup %1378 }
0x1431   :  { %v1018_v52 = vmul.f32 %v1379_v49, %v923_v8 }
0x1494   :  { %v1021_v50 = vpop.permute.xlu1 %1020 }
0x1495   :  { %v1023_v51 = vmul.f32 %v1379_v49, %v1021_v50 }
0x1497   :  { %1025 = vrot.lane.b32.xlu0 %v1023_v51, %s1386_s2 }
0x1509   :  { %v1026_v53 = vpop.permute.xlu0 %1025 }
0x150a   :  { %v1028_v19 = vadd.f32 %v1026_v53, %v1018_v52 }
0x150c   :  { %1380 = vtanh.f32 %v1028_v19 }
0x1516   :  { %v1381_v7 = vpop.eup %1380 }
0x1517   :  { %1031 = vrot.lane.b32.xlu1 %v1381_v7, %s1385_s28 }
0x151b   :  { %1043 = vrot.lane.b32.xlu1 %v1028_v19, %s1387_s5 }
0x1589   :  { %v1032_v54 = vpop.permute.xlu1 %1031 }
0x158a   :  { %v1034_v55 = vmul.f32 %v1379_v49, %v1032_v54 }
0x158c   :  { %1036 = vrot.lane.b32.xlu0 %v1034_v55, %s1386_s2 }
0x158d   :  { %v1044_v56 = vpop.permute.xlu1 %1043 }
0x158e   :  { %1046 = vst.msk [vmem:[#allocation4] sm:$0xff] %vm31_vm1, %v1044_v56  ;;  %1051 = vst.msk [vmem:[%s1664_s8] sm:$0xff] %vm31_vm1, %v1044_v56 }
0x15fe   :  { %v1037_v57 = vpop.permute.xlu0 %1036 }
0x15ff   :  { %1095 = vst.msk [vmem:[%s1663_s6 + $0x38] sm:$0xff] %vm31_vm1, %v1037_v57  ;;  %1041 = vst.msk [vmem:[#allocation3] sm:$0xff] %vm31_vm1, %v1037_v57 }
0x1600   :  { %1050 = vst.msk [vmem:[%s1665_s7] sm:$0xff] %vm31_vm1, %v1037_v57 }

</bundles_post_ra>
